<compile_context>
chip_gen: v7x
topology: tpu7x:2x2x1
jax: 0.10.0
libtpu: 0.0.40
codegen_flags: <defaults>
</compile_context>

<pallas_src>
import jax
import jax.numpy as jnp
from jax.experimental import pallas as pl
from jax.experimental.pallas import tpu as pltpu


def vgg_block_kernel(x_ref, w1_ref, s1_ref, t1_ref, w2_ref, s2_ref, t2_ref,
                     o_ref, xpad_ref, hpad_ref):
    """Fused conv1+bn1+relu -> conv2+bn2+relu for one image (NHWC).

    x_ref:   (1, H, W, Cin)        bf16 input tile
    w1_ref:  (9, Cin, Cmid)        bf16 conv1 taps
    s1/t1:   (1, Cmid)             f32 folded BN1 scale / shift (incl. conv bias)
    w2_ref:  (9, Cmid, Cout)       bf16 conv2 taps
    s2/t2:   (1, Cout)             f32 folded BN2 scale / shift
    o_ref:   (1, H, W, Cout)       f32 output tile
    xpad_ref:(H+2, W+2, Cin)       bf16 VMEM scratch (zero halo)
    hpad_ref:(H+2, W+2, Cmid)      bf16 VMEM scratch for intermediate h (zero halo)
    """
    _, H, W, Cin = x_ref.shape
    Cmid = w1_ref.shape[-1]
    Cout = o_ref.shape[-1]

    # Build zero halos in VMEM (no wrapper-side jnp.pad, no HBM round-trip).
    xpad_ref[...] = jnp.zeros_like(xpad_ref)
    hpad_ref[...] = jnp.zeros_like(hpad_ref)
    xpad_ref[1:H + 1, 1:W + 1, :] = x_ref[0]

    def conv3x3(src_ref, w_ref, cin, cout):
        acc = jnp.zeros((H * W, cout), jnp.float32)
        for k in range(9):
            dy, dx = divmod(k, 3)
            # Ref slice per tap: sublane-shifted loads, no value-relayout copy.
            xs = src_ref[dy:dy + H, dx:dx + W, :].reshape(H * W, cin)
            acc = acc + jnp.dot(xs, w_ref[k], preferred_element_type=jnp.float32)
        return acc

    # conv1 -> bn1 -> relu  (epilogue in f32, intermediate stored bf16 in VMEM)
    acc1 = conv3x3(xpad_ref, w1_ref, Cin, Cmid)
    h = jnp.maximum(acc1 * s1_ref[0] + t1_ref[0], 0.0)
    hpad_ref[1:H + 1, 1:W + 1, :] = h.reshape(H, W, Cmid).astype(hpad_ref.dtype)

    # conv2 -> bn2 -> relu
    acc2 = conv3x3(hpad_ref, w2_ref, Cmid, Cout)
    out = jnp.maximum(acc2 * s2_ref[0] + t2_ref[0], 0.0)
    o_ref[0] = out.reshape(H, W, Cout).astype(o_ref.dtype)


def _fold_bn(bias, gamma, beta, mean, var, eps):
    scale = gamma / jnp.sqrt(var + eps)
    shift = beta + scale * (bias - mean)
    return scale.astype(jnp.float32), shift.astype(jnp.float32)


def _pack_w(w_oihw):
    # (Cout, Cin, 3, 3) -> (3, 3, Cin, Cout) -> (9, Cin, Cout), bf16 for the MXU.
    cout, cin = w_oihw.shape[0], w_oihw.shape[1]
    return jnp.transpose(w_oihw, (2, 3, 1, 0)).reshape(9, cin, cout).astype(jnp.bfloat16)


def vgg_block_forward(x_nchw, params, eps=1e-5):
    N, Cin, H, W = x_nchw.shape
    Cmid = params["w1"].shape[0]
    Cout = params["w2"].shape[0]

    # NCHW -> NHWC (channels on the 128-lane axis), bf16 activations.
    x = jnp.transpose(x_nchw, (0, 2, 3, 1)).astype(jnp.bfloat16)

    w1 = _pack_w(params["w1"])
    w2 = _pack_w(params["w2"])
    s1, t1 = _fold_bn(params["b1"], params["bn1_gamma"], params["bn1_beta"],
                      params["bn1_mean"], params["bn1_var"], eps)
    s2, t2 = _fold_bn(params["b2"], params["bn2_gamma"], params["bn2_beta"],
                      params["bn2_mean"], params["bn2_var"], eps)

    out_nhwc = pl.pallas_call(
        vgg_block_kernel,
        out_shape=jax.ShapeDtypeStruct((N, H, W, Cout), jnp.float32),
        grid=(N,),
        in_specs=[
            pl.BlockSpec((1, H, W, Cin), lambda n: (n, 0, 0, 0)),
            pl.BlockSpec((9, Cin, Cmid), lambda n: (0, 0, 0)),
            pl.BlockSpec((1, Cmid), lambda n: (0, 0)),
            pl.BlockSpec((1, Cmid), lambda n: (0, 0)),
            pl.BlockSpec((9, Cmid, Cout), lambda n: (0, 0, 0)),
            pl.BlockSpec((1, Cout), lambda n: (0, 0)),
            pl.BlockSpec((1, Cout), lambda n: (0, 0)),
        ],
        out_specs=pl.BlockSpec((1, H, W, Cout), lambda n: (n, 0, 0, 0)),
        scratch_shapes=[
            pltpu.VMEM((H + 2, W + 2, Cin), jnp.bfloat16),
            pltpu.VMEM((H + 2, W + 2, Cmid), jnp.bfloat16),
        ],
        compiler_params=pltpu.CompilerParams(
            dimension_semantics=("parallel",),
            vmem_limit_bytes=32 * 1024 * 1024,
        ),
    )(x, w1, s1.reshape(1, Cmid), t1.reshape(1, Cmid),
      w2, s2.reshape(1, Cout), t2.reshape(1, Cout))

    return jnp.transpose(out_nhwc, (0, 3, 1, 2))  # back to NCHW


def init_vgg_block_params(key, in_channels, middle_channels, out_channels):
    ks = jax.random.split(key, 8)
    p = {}
    p["w1"] = 0.1 * jax.random.normal(ks[0], (middle_channels, in_channels, 3, 3), jnp.float32)
    p["b1"] = 0.05 * jax.random.normal(ks[1], (middle_channels,), jnp.float32)
    p["bn1_gamma"] = 1.0 + 0.1 * jax.random.normal(ks[2], (middle_channels,), jnp.float32)
    p["bn1_beta"] = 0.1 * jax.random.normal(ks[3], (middle_channels,), jnp.float32)
    p["bn1_mean"] = jnp.zeros((middle_channels,), jnp.float32)
    p["bn1_var"] = jnp.ones((middle_channels,), jnp.float32)
    p["w2"] = 0.1 * jax.random.normal(ks[4], (out_channels, middle_channels, 3, 3), jnp.float32)
    p["b2"] = 0.05 * jax.random.normal(ks[5], (out_channels,), jnp.float32)
    p["bn2_gamma"] = 1.0 + 0.1 * jax.random.normal(ks[6], (out_channels,), jnp.float32)
    p["bn2_beta"] = 0.1 * jax.random.normal(ks[7], (out_channels,), jnp.float32)
    p["bn2_mean"] = jnp.zeros((out_channels,), jnp.float32)
    p["bn2_var"] = jnp.ones((out_channels,), jnp.float32)
    return p


if __name__ == "__main__":
    key = jax.random.PRNGKey(0)
    k_x, k_p = jax.random.split(key)

    N, Cin, H, W = 2, 4, 16, 16
    Cmid, Cout = 8, 4
    drop_rate = 0.5  # unused in eval mode

    x = jax.random.normal(k_x, (N, Cin, H, W), jnp.float32)
    params = init_vgg_block_params(k_p, Cin, Cmid, Cout)

    out = vgg_block_forward(x, params)
    out = jax.block_until_ready(out)

    assert out.shape == (N, Cout, H, W)
    assert bool(jnp.all(out >= 0.0))  # ReLU output
    print("KERNEL_OK")
</pallas_src>

<mosaic_0001>
module attributes {stable_mosaic.version = 11 : i64} {
  func.func @vgg_block_kernel(%arg0: i32, %arg1: memref<1x16x16x4xbf16, #tpu.memory_space<vmem>>, %arg2: memref<9x4x8xbf16, #tpu.memory_space<vmem>>, %arg3: memref<1x8xf32, #tpu.memory_space<vmem>>, %arg4: memref<1x8xf32, #tpu.memory_space<vmem>>, %arg5: memref<9x8x4xbf16, #tpu.memory_space<vmem>>, %arg6: memref<1x4xf32, #tpu.memory_space<vmem>>, %arg7: memref<1x4xf32, #tpu.memory_space<vmem>>, %arg8: memref<1x16x16x4xf32, #tpu.memory_space<vmem>>, %arg9: memref<18x18x4xbf16, #tpu.memory_space<vmem>>, %arg10: memref<18x18x8xbf16, #tpu.memory_space<vmem>>) attributes {dimension_semantics = [#tpu.dimension_semantics<parallel>], iteration_bounds = array<i64: 2>, scalar_prefetch = 0 : i64, scratch_operands = 2 : i64, tpu.core_type = #tpu.core_type<tc>, window_params = [{transform_indices = @transform_0, window_bounds = array<i64: 1, 16, 16, 4>}, {pipeline_mode = #tpu.pipeline_mode<synchronous>, transform_indices = @transform_1, window_bounds = array<i64: 9, 4, 8>}, {pipeline_mode = #tpu.pipeline_mode<synchronous>, transform_indices = @transform_2, window_bounds = array<i64: 1, 8>}, {pipeline_mode = #tpu.pipeline_mode<synchronous>, transform_indices = @transform_3, window_bounds = array<i64: 1, 8>}, {pipeline_mode = #tpu.pipeline_mode<synchronous>, transform_indices = @transform_4, window_bounds = array<i64: 9, 8, 4>}, {pipeline_mode = #tpu.pipeline_mode<synchronous>, transform_indices = @transform_5, window_bounds = array<i64: 1, 4>}, {pipeline_mode = #tpu.pipeline_mode<synchronous>, transform_indices = @transform_6, window_bounds = array<i64: 1, 4>}, {transform_indices = @transform_7, window_bounds = array<i64: 1, 16, 16, 4>}]} {
    %cst = arith.constant 0.000000e+00 : bf16
    %0 = vector.broadcast %cst : bf16 to vector<18x18x4xbf16>
    %c0 = arith.constant 0 : index
    %c0_0 = arith.constant 0 : index
    %c0_1 = arith.constant 0 : index
    %1 = vector.load %arg9[%c0, %c0_0, %c0_1] : memref<18x18x4xbf16, #tpu.memory_space<vmem>>, vector<18x18x4xbf16>
    tpu.vector_store %arg9[%c0, %c0_0, %c0_1], %0 {strides = array<i32>} : memref<18x18x4xbf16, #tpu.memory_space<vmem>>, vector<18x18x4xbf16>,
    %cst_2 = arith.constant 0.000000e+00 : bf16
    %2 = vector.broadcast %cst_2 : bf16 to vector<18x18x8xbf16>
    %c0_3 = arith.constant 0 : index
    %c0_4 = arith.constant 0 : index
    %c0_5 = arith.constant 0 : index
    %3 = vector.load %arg10[%c0_3, %c0_4, %c0_5] : memref<18x18x8xbf16, #tpu.memory_space<vmem>>, vector<18x18x8xbf16>
    tpu.vector_store %arg10[%c0_3, %c0_4, %c0_5], %2 {strides = array<i32>} : memref<18x18x8xbf16, #tpu.memory_space<vmem>>, vector<18x18x8xbf16>,
    %c0_6 = arith.constant 0 : index
    %c0_7 = arith.constant 0 : index
    %c0_8 = arith.constant 0 : index
    %c0_9 = arith.constant 0 : index
    %4 = vector.load %arg1[%c0_6, %c0_7, %c0_8, %c0_9] : memref<1x16x16x4xbf16, #tpu.memory_space<vmem>>, vector<1x16x16x4xbf16>
    %5 = vector.shape_cast %4 : vector<1x16x16x4xbf16> to vector<16x16x4xbf16>
    %c1 = arith.constant 1 : index
    %c1_10 = arith.constant 1 : index
    %c0_11 = arith.constant 0 : index
    %6 = vector.load %arg9[%c1, %c1_10, %c0_11] : memref<18x18x4xbf16, #tpu.memory_space<vmem>>, vector<16x16x4xbf16>
    tpu.vector_store %arg9[%c1, %c1_10, %c0_11], %5 {strides = array<i32>} : memref<18x18x4xbf16, #tpu.memory_space<vmem>>, vector<16x16x4xbf16>,
    %cst_12 = arith.constant 0.000000e+00 : f32
    %7 = vector.broadcast %cst_12 : f32 to vector<256x8xf32>
    %c0_13 = arith.constant 0 : index
    %c0_14 = arith.constant 0 : index
    %c0_15 = arith.constant 0 : index
    %8 = vector.load %arg9[%c0_13, %c0_14, %c0_15] : memref<18x18x4xbf16, #tpu.memory_space<vmem>>, vector<16x16x4xbf16>
    %9 = vector.shape_cast %8 : vector<16x16x4xbf16> to vector<256x4xbf16>
    %c0_16 = arith.constant 0 : index
    %c0_17 = arith.constant 0 : index
    %c0_18 = arith.constant 0 : index
    %10 = vector.load %arg2[%c0_16, %c0_17, %c0_18] : memref<9x4x8xbf16, #tpu.memory_space<vmem>>, vector<1x4x8xbf16>
    %11 = vector.shape_cast %10 : vector<1x4x8xbf16> to vector<4x8xbf16>
    %cst_19 = arith.constant dense<0.000000e+00> : vector<256x8xf32>
    %12 = tpu.matmul %9, %11, %cst_19 {dimension_numbers = #tpu.dot_dimension_numbers<[1], [0], [0], [1], [0, 0, 1, 1], [], []>} : vector<256x4xbf16>, vector<4x8xbf16>, vector<256x8xf32> -> vector<256x8xf32>
    %13 = arith.addf %7, %12 : vector<256x8xf32>
    %c0_20 = arith.constant 0 : index
    %c1_21 = arith.constant 1 : index
    %c0_22 = arith.constant 0 : index
    %14 = vector.load %arg9[%c0_20, %c1_21, %c0_22] : memref<18x18x4xbf16, #tpu.memory_space<vmem>>, vector<16x16x4xbf16>
    %15 = vector.shape_cast %14 : vector<16x16x4xbf16> to vector<256x4xbf16>
    %c1_23 = arith.constant 1 : index
    %c0_24 = arith.constant 0 : index
    %c0_25 = arith.constant 0 : index
    %16 = vector.load %arg2[%c1_23, %c0_24, %c0_25] : memref<9x4x8xbf16, #tpu.memory_space<vmem>>, vector<1x4x8xbf16>
    %17 = vector.shape_cast %16 : vector<1x4x8xbf16> to vector<4x8xbf16>
    %cst_26 = arith.constant dense<0.000000e+00> : vector<256x8xf32>
    %18 = tpu.matmul %15, %17, %cst_26 {dimension_numbers = #tpu.dot_dimension_numbers<[1], [0], [0], [1], [0, 0, 1, 1], [], []>} : vector<256x4xbf16>, vector<4x8xbf16>, vector<256x8xf32> -> vector<256x8xf32>
    %19 = arith.addf %13, %18 : vector<256x8xf32>
    %c0_27 = arith.constant 0 : index
    %c2 = arith.constant 2 : index
    %c0_28 = arith.constant 0 : index
    %20 = vector.load %arg9[%c0_27, %c2, %c0_28] : memref<18x18x4xbf16, #tpu.memory_space<vmem>>, vector<16x16x4xbf16>
    %21 = vector.shape_cast %20 : vector<16x16x4xbf16> to vector<256x4xbf16>
    %c2_29 = arith.constant 2 : index
    %c0_30 = arith.constant 0 : index
    %c0_31 = arith.constant 0 : index
    %22 = vector.load %arg2[%c2_29, %c0_30, %c0_31] : memref<9x4x8xbf16, #tpu.memory_space<vmem>>, vector<1x4x8xbf16>
    %23 = vector.shape_cast %22 : vector<1x4x8xbf16> to vector<4x8xbf16>
    %cst_32 = arith.constant dense<0.000000e+00> : vector<256x8xf32>
    %24 = tpu.matmul %21, %23, %cst_32 {dimension_numbers = #tpu.dot_dimension_numbers<[1], [0], [0], [1], [0, 0, 1, 1], [], []>} : vector<256x4xbf16>, vector<4x8xbf16>, vector<256x8xf32> -> vector<256x8xf32>
    %25 = arith.addf %19, %24 : vector<256x8xf32>
    %c1_33 = arith.constant 1 : index
    %c0_34 = arith.constant 0 : index
    %c0_35 = arith.constant 0 : index
    %26 = vector.load %arg9[%c1_33, %c0_34, %c0_35] : memref<18x18x4xbf16, #tpu.memory_space<vmem>>, vector<16x16x4xbf16>
    %27 = vector.shape_cast %26 : vector<16x16x4xbf16> to vector<256x4xbf16>
    %c3 = arith.constant 3 : index
    %c0_36 = arith.constant 0 : index
    %c0_37 = arith.constant 0 : index
    %28 = vector.load %arg2[%c3, %c0_36, %c0_37] : memref<9x4x8xbf16, #tpu.memory_space<vmem>>, vector<1x4x8xbf16>
    %29 = vector.shape_cast %28 : vector<1x4x8xbf16> to vector<4x8xbf16>
    %cst_38 = arith.constant dense<0.000000e+00> : vector<256x8xf32>
    %30 = tpu.matmul %27, %29, %cst_38 {dimension_numbers = #tpu.dot_dimension_numbers<[1], [0], [0], [1], [0, 0, 1, 1], [], []>} : vector<256x4xbf16>, vector<4x8xbf16>, vector<256x8xf32> -> vector<256x8xf32>
    %31 = arith.addf %25, %30 : vector<256x8xf32>
    %c1_39 = arith.constant 1 : index
    %c1_40 = arith.constant 1 : index
    %c0_41 = arith.constant 0 : index
    %32 = vector.load %arg9[%c1_39, %c1_40, %c0_41] : memref<18x18x4xbf16, #tpu.memory_space<vmem>>, vector<16x16x4xbf16>
    %33 = vector.shape_cast %32 : vector<16x16x4xbf16> to vector<256x4xbf16>
    %c4 = arith.constant 4 : index
    %c0_42 = arith.constant 0 : index
    %c0_43 = arith.constant 0 : index
    %34 = vector.load %arg2[%c4, %c0_42, %c0_43] : memref<9x4x8xbf16, #tpu.memory_space<vmem>>, vector<1x4x8xbf16>
    %35 = vector.shape_cast %34 : vector<1x4x8xbf16> to vector<4x8xbf16>
    %cst_44 = arith.constant dense<0.000000e+00> : vector<256x8xf32>
    %36 = tpu.matmul %33, %35, %cst_44 {dimension_numbers = #tpu.dot_dimension_numbers<[1], [0], [0], [1], [0, 0, 1, 1], [], []>} : vector<256x4xbf16>, vector<4x8xbf16>, vector<256x8xf32> -> vector<256x8xf32>
    %37 = arith.addf %31, %36 : vector<256x8xf32>
    %c1_45 = arith.constant 1 : index
    %c2_46 = arith.constant 2 : index
    %c0_47 = arith.constant 0 : index
    %38 = vector.load %arg9[%c1_45, %c2_46, %c0_47] : memref<18x18x4xbf16, #tpu.memory_space<vmem>>, vector<16x16x4xbf16>
    %39 = vector.shape_cast %38 : vector<16x16x4xbf16> to vector<256x4xbf16>
    %c5 = arith.constant 5 : index
    %c0_48 = arith.constant 0 : index
    %c0_49 = arith.constant 0 : index
    %40 = vector.load %arg2[%c5, %c0_48, %c0_49] : memref<9x4x8xbf16, #tpu.memory_space<vmem>>, vector<1x4x8xbf16>
    %41 = vector.shape_cast %40 : vector<1x4x8xbf16> to vector<4x8xbf16>
    %cst_50 = arith.constant dense<0.000000e+00> : vector<256x8xf32>
    %42 = tpu.matmul %39, %41, %cst_50 {dimension_numbers = #tpu.dot_dimension_numbers<[1], [0], [0], [1], [0, 0, 1, 1], [], []>} : vector<256x4xbf16>, vector<4x8xbf16>, vector<256x8xf32> -> vector<256x8xf32>
    %43 = arith.addf %37, %42 : vector<256x8xf32>
    %c2_51 = arith.constant 2 : index
    %c0_52 = arith.constant 0 : index
    %c0_53 = arith.constant 0 : index
    %44 = vector.load %arg9[%c2_51, %c0_52, %c0_53] : memref<18x18x4xbf16, #tpu.memory_space<vmem>>, vector<16x16x4xbf16>
    %45 = vector.shape_cast %44 : vector<16x16x4xbf16> to vector<256x4xbf16>
    %c6 = arith.constant 6 : index
    %c0_54 = arith.constant 0 : index
    %c0_55 = arith.constant 0 : index
    %46 = vector.load %arg2[%c6, %c0_54, %c0_55] : memref<9x4x8xbf16, #tpu.memory_space<vmem>>, vector<1x4x8xbf16>
    %47 = vector.shape_cast %46 : vector<1x4x8xbf16> to vector<4x8xbf16>
    %cst_56 = arith.constant dense<0.000000e+00> : vector<256x8xf32>
    %48 = tpu.matmul %45, %47, %cst_56 {dimension_numbers = #tpu.dot_dimension_numbers<[1], [0], [0], [1], [0, 0, 1, 1], [], []>} : vector<256x4xbf16>, vector<4x8xbf16>, vector<256x8xf32> -> vector<256x8xf32>
    %49 = arith.addf %43, %48 : vector<256x8xf32>
    %c2_57 = arith.constant 2 : index
    %c1_58 = arith.constant 1 : index
    %c0_59 = arith.constant 0 : index
    %50 = vector.load %arg9[%c2_57, %c1_58, %c0_59] : memref<18x18x4xbf16, #tpu.memory_space<vmem>>, vector<16x16x4xbf16>
    %51 = vector.shape_cast %50 : vector<16x16x4xbf16> to vector<256x4xbf16>
    %c7 = arith.constant 7 : index
    %c0_60 = arith.constant 0 : index
    %c0_61 = arith.constant 0 : index
    %52 = vector.load %arg2[%c7, %c0_60, %c0_61] : memref<9x4x8xbf16, #tpu.memory_space<vmem>>, vector<1x4x8xbf16>
    %53 = vector.shape_cast %52 : vector<1x4x8xbf16> to vector<4x8xbf16>
    %cst_62 = arith.constant dense<0.000000e+00> : vector<256x8xf32>
    %54 = tpu.matmul %51, %53, %cst_62 {dimension_numbers = #tpu.dot_dimension_numbers<[1], [0], [0], [1], [0, 0, 1, 1], [], []>} : vector<256x4xbf16>, vector<4x8xbf16>, vector<256x8xf32> -> vector<256x8xf32>
    %55 = arith.addf %49, %54 : vector<256x8xf32>
    %c2_63 = arith.constant 2 : index
    %c2_64 = arith.constant 2 : index
    %c0_65 = arith.constant 0 : index
    %56 = vector.load %arg9[%c2_63, %c2_64, %c0_65] : memref<18x18x4xbf16, #tpu.memory_space<vmem>>, vector<16x16x4xbf16>
    %57 = vector.shape_cast %56 : vector<16x16x4xbf16> to vector<256x4xbf16>
    %c8 = arith.constant 8 : index
    %c0_66 = arith.constant 0 : index
    %c0_67 = arith.constant 0 : index
    %58 = vector.load %arg2[%c8, %c0_66, %c0_67] : memref<9x4x8xbf16, #tpu.memory_space<vmem>>, vector<1x4x8xbf16>
    %59 = vector.shape_cast %58 : vector<1x4x8xbf16> to vector<4x8xbf16>
    %cst_68 = arith.constant dense<0.000000e+00> : vector<256x8xf32>
    %60 = tpu.matmul %57, %59, %cst_68 {dimension_numbers = #tpu.dot_dimension_numbers<[1], [0], [0], [1], [0, 0, 1, 1], [], []>} : vector<256x4xbf16>, vector<4x8xbf16>, vector<256x8xf32> -> vector<256x8xf32>
    %61 = arith.addf %55, %60 : vector<256x8xf32>
    %c0_69 = arith.constant 0 : index
    %c0_70 = arith.constant 0 : index
    %62 = vector.load %arg3[%c0_69, %c0_70] : memref<1x8xf32, #tpu.memory_space<vmem>>, vector<1x8xf32>
    %63 = vector.shape_cast %62 : vector<1x8xf32> to vector<8xf32>
    %64 = vector.shape_cast %63 : vector<8xf32> to vector<1x8xf32>
    %65 = vector.broadcast %64 : vector<1x8xf32> to vector<256x8xf32>
    %66 = arith.mulf %61, %65 : vector<256x8xf32>
    %c0_71 = arith.constant 0 : index
    %c0_72 = arith.constant 0 : index
    %67 = vector.load %arg4[%c0_71, %c0_72] : memref<1x8xf32, #tpu.memory_space<vmem>>, vector<1x8xf32>
    %68 = vector.shape_cast %67 : vector<1x8xf32> to vector<8xf32>
    %69 = vector.shape_cast %68 : vector<8xf32> to vector<1x8xf32>
    %70 = vector.broadcast %69 : vector<1x8xf32> to vector<256x8xf32>
    %71 = arith.addf %66, %70 : vector<256x8xf32>
    %cst_73 = arith.constant 0.000000e+00 : f32
    %72 = vector.broadcast %cst_73 : f32 to vector<256x8xf32>
    %73 = arith.maximumf %71, %72 : vector<256x8xf32>
    %74 = vector.shape_cast %73 : vector<256x8xf32> to vector<16x16x8xf32>
    %75 = arith.truncf %74 : vector<16x16x8xf32> to vector<16x16x8xbf16>
    %c1_74 = arith.constant 1 : index
    %c1_75 = arith.constant 1 : index
    %c0_76 = arith.constant 0 : index
    %76 = vector.load %arg10[%c1_74, %c1_75, %c0_76] : memref<18x18x8xbf16, #tpu.memory_space<vmem>>, vector<16x16x8xbf16>
    tpu.vector_store %arg10[%c1_74, %c1_75, %c0_76], %75 {strides = array<i32>} : memref<18x18x8xbf16, #tpu.memory_space<vmem>>, vector<16x16x8xbf16>,
    %cst_77 = arith.constant 0.000000e+00 : f32
    %77 = vector.broadcast %cst_77 : f32 to vector<256x4xf32>
    %c0_78 = arith.constant 0 : index
    %c0_79 = arith.constant 0 : index
    %c0_80 = arith.constant 0 : index
    %78 = vector.load %arg10[%c0_78, %c0_79, %c0_80] : memref<18x18x8xbf16, #tpu.memory_space<vmem>>, vector<16x16x8xbf16>
    %79 = vector.shape_cast %78 : vector<16x16x8xbf16> to vector<256x8xbf16>
    %c0_81 = arith.constant 0 : index
    %c0_82 = arith.constant 0 : index
    %c0_83 = arith.constant 0 : index
    %80 = vector.load %arg5[%c0_81, %c0_82, %c0_83] : memref<9x8x4xbf16, #tpu.memory_space<vmem>>, vector<1x8x4xbf16>
    %81 = vector.shape_cast %80 : vector<1x8x4xbf16> to vector<8x4xbf16>
    %cst_84 = arith.constant dense<0.000000e+00> : vector<256x4xf32>
    %82 = tpu.matmul %79, %81, %cst_84 {dimension_numbers = #tpu.dot_dimension_numbers<[1], [0], [0], [1], [0, 0, 1, 1], [], []>} : vector<256x8xbf16>, vector<8x4xbf16>, vector<256x4xf32> -> vector<256x4xf32>
    %83 = arith.addf %77, %82 : vector<256x4xf32>
    %c0_85 = arith.constant 0 : index
    %c1_86 = arith.constant 1 : index
    %c0_87 = arith.constant 0 : index
    %84 = vector.load %arg10[%c0_85, %c1_86, %c0_87] : memref<18x18x8xbf16, #tpu.memory_space<vmem>>, vector<16x16x8xbf16>
    %85 = vector.shape_cast %84 : vector<16x16x8xbf16> to vector<256x8xbf16>
    %c1_88 = arith.constant 1 : index
    %c0_89 = arith.constant 0 : index
    %c0_90 = arith.constant 0 : index
    %86 = vector.load %arg5[%c1_88, %c0_89, %c0_90] : memref<9x8x4xbf16, #tpu.memory_space<vmem>>, vector<1x8x4xbf16>
    %87 = vector.shape_cast %86 : vector<1x8x4xbf16> to vector<8x4xbf16>
    %cst_91 = arith.constant dense<0.000000e+00> : vector<256x4xf32>
    %88 = tpu.matmul %85, %87, %cst_91 {dimension_numbers = #tpu.dot_dimension_numbers<[1], [0], [0], [1], [0, 0, 1, 1], [], []>} : vector<256x8xbf16>, vector<8x4xbf16>, vector<256x4xf32> -> vector<256x4xf32>
    %89 = arith.addf %83, %88 : vector<256x4xf32>
    %c0_92 = arith.constant 0 : index
    %c2_93 = arith.constant 2 : index
    %c0_94 = arith.constant 0 : index
    %90 = vector.load %arg10[%c0_92, %c2_93, %c0_94] : memref<18x18x8xbf16, #tpu.memory_space<vmem>>, vector<16x16x8xbf16>
    %91 = vector.shape_cast %90 : vector<16x16x8xbf16> to vector<256x8xbf16>
    %c2_95 = arith.constant 2 : index
    %c0_96 = arith.constant 0 : index
    %c0_97 = arith.constant 0 : index
    %92 = vector.load %arg5[%c2_95, %c0_96, %c0_97] : memref<9x8x4xbf16, #tpu.memory_space<vmem>>, vector<1x8x4xbf16>
    %93 = vector.shape_cast %92 : vector<1x8x4xbf16> to vector<8x4xbf16>
    %cst_98 = arith.constant dense<0.000000e+00> : vector<256x4xf32>
    %94 = tpu.matmul %91, %93, %cst_98 {dimension_numbers = #tpu.dot_dimension_numbers<[1], [0], [0], [1], [0, 0, 1, 1], [], []>} : vector<256x8xbf16>, vector<8x4xbf16>, vector<256x4xf32> -> vector<256x4xf32>
    %95 = arith.addf %89, %94 : vector<256x4xf32>
    %c1_99 = arith.constant 1 : index
    %c0_100 = arith.constant 0 : index
    %c0_101 = arith.constant 0 : index
    %96 = vector.load %arg10[%c1_99, %c0_100, %c0_101] : memref<18x18x8xbf16, #tpu.memory_space<vmem>>, vector<16x16x8xbf16>
    %97 = vector.shape_cast %96 : vector<16x16x8xbf16> to vector<256x8xbf16>
    %c3_102 = arith.constant 3 : index
    %c0_103 = arith.constant 0 : index
    %c0_104 = arith.constant 0 : index
    %98 = vector.load %arg5[%c3_102, %c0_103, %c0_104] : memref<9x8x4xbf16, #tpu.memory_space<vmem>>, vector<1x8x4xbf16>
    %99 = vector.shape_cast %98 : vector<1x8x4xbf16> to vector<8x4xbf16>
    %cst_105 = arith.constant dense<0.000000e+00> : vector<256x4xf32>
    %100 = tpu.matmul %97, %99, %cst_105 {dimension_numbers = #tpu.dot_dimension_numbers<[1], [0], [0], [1], [0, 0, 1, 1], [], []>} : vector<256x8xbf16>, vector<8x4xbf16>, vector<256x4xf32> -> vector<256x4xf32>
    %101 = arith.addf %95, %100 : vector<256x4xf32>
    %c1_106 = arith.constant 1 : index
    %c1_107 = arith.constant 1 : index
    %c0_108 = arith.constant 0 : index
    %102 = vector.load %arg10[%c1_106, %c1_107, %c0_108] : memref<18x18x8xbf16, #tpu.memory_space<vmem>>, vector<16x16x8xbf16>
    %103 = vector.shape_cast %102 : vector<16x16x8xbf16> to vector<256x8xbf16>
    %c4_109 = arith.constant 4 : index
    %c0_110 = arith.constant 0 : index
    %c0_111 = arith.constant 0 : index
    %104 = vector.load %arg5[%c4_109, %c0_110, %c0_111] : memref<9x8x4xbf16, #tpu.memory_space<vmem>>, vector<1x8x4xbf16>
    %105 = vector.shape_cast %104 : vector<1x8x4xbf16> to vector<8x4xbf16>
    %cst_112 = arith.constant dense<0.000000e+00> : vector<256x4xf32>
    %106 = tpu.matmul %103, %105, %cst_112 {dimension_numbers = #tpu.dot_dimension_numbers<[1], [0], [0], [1], [0, 0, 1, 1], [], []>} : vector<256x8xbf16>, vector<8x4xbf16>, vector<256x4xf32> -> vector<256x4xf32>
    %107 = arith.addf %101, %106 : vector<256x4xf32>
    %c1_113 = arith.constant 1 : index
    %c2_114 = arith.constant 2 : index
    %c0_115 = arith.constant 0 : index
    %108 = vector.load %arg10[%c1_113, %c2_114, %c0_115] : memref<18x18x8xbf16, #tpu.memory_space<vmem>>, vector<16x16x8xbf16>
    %109 = vector.shape_cast %108 : vector<16x16x8xbf16> to vector<256x8xbf16>
    %c5_116 = arith.constant 5 : index
    %c0_117 = arith.constant 0 : index
    %c0_118 = arith.constant 0 : index
    %110 = vector.load %arg5[%c5_116, %c0_117, %c0_118] : memref<9x8x4xbf16, #tpu.memory_space<vmem>>, vector<1x8x4xbf16>
    %111 = vector.shape_cast %110 : vector<1x8x4xbf16> to vector<8x4xbf16>
    %cst_119 = arith.constant dense<0.000000e+00> : vector<256x4xf32>
    %112 = tpu.matmul %109, %111, %cst_119 {dimension_numbers = #tpu.dot_dimension_numbers<[1], [0], [0], [1], [0, 0, 1, 1], [], []>} : vector<256x8xbf16>, vector<8x4xbf16>, vector<256x4xf32> -> vector<256x4xf32>
    %113 = arith.addf %107, %112 : vector<256x4xf32>
    %c2_120 = arith.constant 2 : index
    %c0_121 = arith.constant 0 : index
    %c0_122 = arith.constant 0 : index
    %114 = vector.load %arg10[%c2_120, %c0_121, %c0_122] : memref<18x18x8xbf16, #tpu.memory_space<vmem>>, vector<16x16x8xbf16>
    %115 = vector.shape_cast %114 : vector<16x16x8xbf16> to vector<256x8xbf16>
    %c6_123 = arith.constant 6 : index
    %c0_124 = arith.constant 0 : index
    %c0_125 = arith.constant 0 : index
    %116 = vector.load %arg5[%c6_123, %c0_124, %c0_125] : memref<9x8x4xbf16, #tpu.memory_space<vmem>>, vector<1x8x4xbf16>
    %117 = vector.shape_cast %116 : vector<1x8x4xbf16> to vector<8x4xbf16>
    %cst_126 = arith.constant dense<0.000000e+00> : vector<256x4xf32>
    %118 = tpu.matmul %115, %117, %cst_126 {dimension_numbers = #tpu.dot_dimension_numbers<[1], [0], [0], [1], [0, 0, 1, 1], [], []>} : vector<256x8xbf16>, vector<8x4xbf16>, vector<256x4xf32> -> vector<256x4xf32>
    %119 = arith.addf %113, %118 : vector<256x4xf32>
    %c2_127 = arith.constant 2 : index
    %c1_128 = arith.constant 1 : index
    %c0_129 = arith.constant 0 : index
    %120 = vector.load %arg10[%c2_127, %c1_128, %c0_129] : memref<18x18x8xbf16, #tpu.memory_space<vmem>>, vector<16x16x8xbf16>
    %121 = vector.shape_cast %120 : vector<16x16x8xbf16> to vector<256x8xbf16>
    %c7_130 = arith.constant 7 : index
    %c0_131 = arith.constant 0 : index
    %c0_132 = arith.constant 0 : index
    %122 = vector.load %arg5[%c7_130, %c0_131, %c0_132] : memref<9x8x4xbf16, #tpu.memory_space<vmem>>, vector<1x8x4xbf16>
    %123 = vector.shape_cast %122 : vector<1x8x4xbf16> to vector<8x4xbf16>
    %cst_133 = arith.constant dense<0.000000e+00> : vector<256x4xf32>
    %124 = tpu.matmul %121, %123, %cst_133 {dimension_numbers = #tpu.dot_dimension_numbers<[1], [0], [0], [1], [0, 0, 1, 1], [], []>} : vector<256x8xbf16>, vector<8x4xbf16>, vector<256x4xf32> -> vector<256x4xf32>
    %125 = arith.addf %119, %124 : vector<256x4xf32>
    %c2_134 = arith.constant 2 : index
    %c2_135 = arith.constant 2 : index
    %c0_136 = arith.constant 0 : index
    %126 = vector.load %arg10[%c2_134, %c2_135, %c0_136] : memref<18x18x8xbf16, #tpu.memory_space<vmem>>, vector<16x16x8xbf16>
    %127 = vector.shape_cast %126 : vector<16x16x8xbf16> to vector<256x8xbf16>
    %c8_137 = arith.constant 8 : index
    %c0_138 = arith.constant 0 : index
    %c0_139 = arith.constant 0 : index
    %128 = vector.load %arg5[%c8_137, %c0_138, %c0_139] : memref<9x8x4xbf16, #tpu.memory_space<vmem>>, vector<1x8x4xbf16>
    %129 = vector.shape_cast %128 : vector<1x8x4xbf16> to vector<8x4xbf16>
    %cst_140 = arith.constant dense<0.000000e+00> : vector<256x4xf32>
    %130 = tpu.matmul %127, %129, %cst_140 {dimension_numbers = #tpu.dot_dimension_numbers<[1], [0], [0], [1], [0, 0, 1, 1], [], []>} : vector<256x8xbf16>, vector<8x4xbf16>, vector<256x4xf32> -> vector<256x4xf32>
    %131 = arith.addf %125, %130 : vector<256x4xf32>
    %c0_141 = arith.constant 0 : index
    %c0_142 = arith.constant 0 : index
    %132 = vector.load %arg6[%c0_141, %c0_142] : memref<1x4xf32, #tpu.memory_space<vmem>>, vector<1x4xf32>
    %133 = vector.shape_cast %132 : vector<1x4xf32> to vector<4xf32>
    %134 = vector.shape_cast %133 : vector<4xf32> to vector<1x4xf32>
    %135 = vector.broadcast %134 : vector<1x4xf32> to vector<256x4xf32>
    %136 = arith.mulf %131, %135 : vector<256x4xf32>
    %c0_143 = arith.constant 0 : index
    %c0_144 = arith.constant 0 : index
    %137 = vector.load %arg7[%c0_143, %c0_144] : memref<1x4xf32, #tpu.memory_space<vmem>>, vector<1x4xf32>
    %138 = vector.shape_cast %137 : vector<1x4xf32> to vector<4xf32>
    %139 = vector.shape_cast %138 : vector<4xf32> to vector<1x4xf32>
    %140 = vector.broadcast %139 : vector<1x4xf32> to vector<256x4xf32>
    %141 = arith.addf %136, %140 : vector<256x4xf32>
    %cst_145 = arith.constant 0.000000e+00 : f32
    %142 = vector.broadcast %cst_145 : f32 to vector<256x4xf32>
    %143 = arith.maximumf %141, %142 : vector<256x4xf32>
    %144 = vector.shape_cast %143 : vector<256x4xf32> to vector<16x16x4xf32>
    %c0_146 = arith.constant 0 : index
    %c0_147 = arith.constant 0 : index
    %c0_148 = arith.constant 0 : index
    %c0_149 = arith.constant 0 : index
    %145 = vector.load %arg8[%c0_146, %c0_147, %c0_148, %c0_149] : memref<1x16x16x4xf32, #tpu.memory_space<vmem>>, vector<1x16x16x4xf32>
    %146 = vector.shape_cast %145 : vector<1x16x16x4xf32> to vector<16x16x4xf32>
    %147 = vector.shape_cast %144 : vector<16x16x4xf32> to vector<1x16x16x4xf32>
    tpu.vector_store %arg8[%c0_146, %c0_147, %c0_148, %c0_149], %147 {strides = array<i32>} : memref<1x16x16x4xf32, #tpu.memory_space<vmem>>, vector<1x16x16x4xf32>,
    return
  }
  func.func @transform_0(%arg0: i32) -> (i32, i32, i32, i32) {
    %c0_i32 = arith.constant 0 : i32
    %c0_i32_0 = arith.constant 0 : i32
    %c0_i32_1 = arith.constant 0 : i32
    %c0_i32_2 = arith.constant 0 : i32
    return %arg0, %c0_i32, %c0_i32_0, %c0_i32_1 : i32, i32, i32, i32
  }
  func.func @transform_1(%arg0: i32) -> (i32, i32, i32) {
    %c0_i32 = arith.constant 0 : i32
    %c0_i32_0 = arith.constant 0 : i32
    %c0_i32_1 = arith.constant 0 : i32
    %c0_i32_2 = arith.constant 0 : i32
    return %c0_i32, %c0_i32_0, %c0_i32_1 : i32, i32, i32
  }
  func.func @transform_2(%arg0: i32) -> (i32, i32) {
    %c0_i32 = arith.constant 0 : i32
    %c0_i32_0 = arith.constant 0 : i32
    %c0_i32_1 = arith.constant 0 : i32
    return %c0_i32, %c0_i32_0 : i32, i32
  }
  func.func @transform_3(%arg0: i32) -> (i32, i32) {
    %c0_i32 = arith.constant 0 : i32
    %c0_i32_0 = arith.constant 0 : i32
    %c0_i32_1 = arith.constant 0 : i32
    return %c0_i32, %c0_i32_0 : i32, i32
  }
  func.func @transform_4(%arg0: i32) -> (i32, i32, i32) {
    %c0_i32 = arith.constant 0 : i32
    %c0_i32_0 = arith.constant 0 : i32
    %c0_i32_1 = arith.constant 0 : i32
    %c0_i32_2 = arith.constant 0 : i32
    return %c0_i32, %c0_i32_0, %c0_i32_1 : i32, i32, i32
  }
  func.func @transform_5(%arg0: i32) -> (i32, i32) {
    %c0_i32 = arith.constant 0 : i32
    %c0_i32_0 = arith.constant 0 : i32
    %c0_i32_1 = arith.constant 0 : i32
    return %c0_i32, %c0_i32_0 : i32, i32
  }
  func.func @transform_6(%arg0: i32) -> (i32, i32) {
    %c0_i32 = arith.constant 0 : i32
    %c0_i32_0 = arith.constant 0 : i32
    %c0_i32_1 = arith.constant 0 : i32
    return %c0_i32, %c0_i32_0 : i32, i32
  }
  func.func @transform_7(%arg0: i32) -> (i32, i32, i32, i32) {
    %c0_i32 = arith.constant 0 : i32
    %c0_i32_0 = arith.constant 0 : i32
    %c0_i32_1 = arith.constant 0 : i32
    %c0_i32_2 = arith.constant 0 : i32
    return %arg0, %c0_i32, %c0_i32_0, %c0_i32_1 : i32, i32, i32, i32
  }
}

</mosaic_0001>

<bundles_post_ra>
// kernel: tpu_custom_call.1
= control target key start
LH: loop header
LB: loop body
LE: loop exit
PB: predicated region body
PF: predicated region fallthrough
CT: control target
= control target key end

     0   :  { %s13206_s24 = smov 0   ;;  %s17167_s0 = inlined_call_operand.vmem [shape: bf16[2,16,16,4], index: 0, kind: input, shape index: {}]   ;;  %s17168_s1 = inlined_call_operand.vmem [shape: bf16[9,4,8], index: 1, kind: input, shape index: {}]   ;;  %s17169_s2 = inlined_call_operand.vmem [shape: f32[1,8], index: 2, kind: input, shape index: {}]   ;;  %s17170_s3 = inlined_call_operand.vmem [shape: f32[1,8], index: 3, kind: input, shape index: {}]   ;;  %s17171_s4 = inlined_call_operand.vmem [shape: bf16[9,8,4], index: 4, kind: input, shape index: {}]   ;;  %s17172_s5 = inlined_call_operand.vmem [shape: f32[1,4], index: 5, kind: input, shape index: {}]   ;;  %s17173_s6 = inlined_call_operand.vmem [shape: f32[1,4], index: 6, kind: input, shape index: {}]   ;;  %s17174_s7 = inlined_call_operand.vmem [shape: f32[2,16,16,4], index: 7, kind: output, shape index: {}]  }
   0x1 LB: > { %s10815_s25 = sadd.s32 4294967295, %s13163_s24   ;;  %p10819_p0 = scmp.ge.s32.totalorder %s13163_s24, 1  ;;  %s13163_s24 = sphi %s13206_s24, %s17_s24  }
   0x2   : > { %p237_p1 = scmp.lt.s32.totalorder %s13163_s24, 3 }
   0x4   : > { %p238_p2 = pnand %p10819_p0, %p237_p1 }
   0x6   : > { %241 = sbr.rel (%p238_p2) target bundleno = 1727 (0x6bf), region = 48 }
   0xd   : > { %v10824_v0 = vld [vmem:[%s17168_s1 + $0x2] sm:$0x3]  ;;  %vm1400_vm0 = vcmask 1041408   ;;  %vm280_vm1 = vcmask 27648   ;;  %vm283_vm2 = vcmask 24576   ;;  %v17175_v2 = vmov 0  }
   0xe   : > { %13014 = vmatprep.subr.msk.bf16.mxu0 %vm1400_vm0, %v10824_v0  ;;  %v1402_v1 = vsel %vm1400_vm0, %v10824_v0, 0  ;;  %281 = vst.msk [vmem:[#allocation2] sm:$0xf] %vm280_vm1, %v17175_v2  ;;  %282 = vst.msk [vmem:[#allocation2 + $0x4] sm:$0xf] %vm280_vm1, %v17175_v2  ;;  %p269_p3 = scmp.lt.s32.totalorder %s10815_s25, 1 }
   0xf   : > { %284 = vst.msk [vmem:[#allocation2 + $0x8] sm:$0x1] %vm283_vm2, %v17175_v2  ;;  %287 = vst.msk [vmem:[#allocation2 + $0x14] sm:$0x1] %vm283_vm2, %v17175_v2  ;;  %11891 = vmatpush3.bf16.msra.mxu0 %v1402_v1  ;;  %v13330_v3 = vld [vmem:[%s17168_s1] sm:$0x3] }
  0x10   : > { %285 = vst.msk [vmem:[#allocation2 + $0xc] sm:$0xf] %vm280_vm1, %v17175_v2  ;;  %286 = vst.msk [vmem:[#allocation2 + $0x10] sm:$0xf] %vm280_vm1, %v17175_v2  ;;  %13015 = vmatprep.subr.msk.bf16.mxu0 %vm1400_vm0, %v13330_v3  ;;  %s17580_s25 = smov (!%p269_p3, %s10815_s25), 1  ;;  %vm1351_vm9 = vcmask 31744  }
  0x11   : > { %288 = vst.msk [vmem:[#allocation2 + $0x18] sm:$0xf] %vm280_vm1, %v17175_v2  ;;  %289 = vst.msk [vmem:[#allocation2 + $0x1c] sm:$0xf] %vm280_vm1, %v17175_v2  ;;  %vm914_vm3 = vsmask.f32 3328 }
  0x12   : > { %290 = vst.msk [vmem:[#allocation2 + $0x20] sm:$0x1] %vm283_vm2, %v17175_v2  ;;  %293 = vst.msk [vmem:[#allocation2 + $0x2c] sm:$0x1] %vm283_vm2, %v17175_v2  ;;  %vm915_vm4 = vsmask.f32 7440 }
  0x13   : > { %291 = vst.msk [vmem:[#allocation2 + $0x24] sm:$0xf] %vm280_vm1, %v17175_v2  ;;  %292 = vst.msk [vmem:[#allocation2 + $0x28] sm:$0xf] %vm280_vm1, %v17175_v2  ;;  %s11550_s30 = sshll.u32 %s17580_s25, 7  ;;  %v17296_v38 = vmov 0 }
  0x14   : > { %294 = vst.msk [vmem:[#allocation2 + $0x30] sm:$0xf] %vm280_vm1, %v17175_v2  ;;  %295 = vst.msk [vmem:[#allocation2 + $0x34] sm:$0xf] %vm280_vm1, %v17175_v2  ;;  %s13344_s10 = scalar_lea.vmem %s17167_s0, %s11550_s30  ;;  %vm424_vm5 = vsmask.f32 256 }
  0x15   : > { %296 = vst.msk [vmem:[#allocation2 + $0x38] sm:$0x1] %vm283_vm2, %v17175_v2  ;;  %299 = vst.msk [vmem:[#allocation2 + $0x44] sm:$0x1] %vm283_vm2, %v17175_v2  ;;  %vm425_vm6 = vsmask.f32 4368 }
  0x16   : > { %297 = vst.msk [vmem:[#allocation2 + $0x3c] sm:$0xf] %vm280_vm1, %v17175_v2  ;;  %298 = vst.msk [vmem:[#allocation2 + $0x40] sm:$0xf] %vm280_vm1, %v17175_v2  ;;  %vm749_vm7 = vsmask.f32 7938 }
  0x17   : > { %300 = vst.msk [vmem:[#allocation2 + $0x48] sm:$0xf] %vm280_vm1, %v17175_v2  ;;  %301 = vst.msk [vmem:[#allocation2 + $0x4c] sm:$0xf] %vm280_vm1, %v17175_v2  ;;  %v865_v4 = vld [vmem:[#allocation2] sm:$0xf] }
  0x18   : > { %302 = vst.msk [vmem:[#allocation2 + $0x50] sm:$0x1] %vm283_vm2, %v17175_v2  ;;  %305 = vst.msk [vmem:[#allocation2 + $0x5c] sm:$0x1] %vm283_vm2, %v17175_v2  ;;  %v866_v5 = vld [vmem:[#allocation2 + $0x4] sm:$0xf] }
  0x19   : > { %303 = vst.msk [vmem:[#allocation2 + $0x54] sm:$0xf] %vm280_vm1, %v17175_v2  ;;  %304 = vst.msk [vmem:[#allocation2 + $0x58] sm:$0xf] %vm280_vm1, %v17175_v2  ;;  %v898_v6 = vld [vmem:[#allocation2 + $0x8] sm:$0x1] }
  0x1a   : > { %306 = vst.msk [vmem:[#allocation2 + $0x60] sm:$0xf] %vm280_vm1, %v17175_v2  ;;  %307 = vst.msk [vmem:[#allocation2 + $0x64] sm:$0xf] %vm280_vm1, %v17175_v2  ;;  %v918_v7 = vshrl.u32 %v865_v4, 16  ;;  %v921_v8 = vshll.u32 %v865_v4, 16 }
  0x1b   : > { %308 = vst.msk [vmem:[#allocation2 + $0x68] sm:$0x1] %vm283_vm2, %v17175_v2  ;;  %311 = vst.msk [vmem:[#allocation2 + $0x74] sm:$0x1] %vm283_vm2, %v17175_v2  ;;  %v927_v9 = vshll.u32 %v866_v5, 16  ;;  %v931_v10 = vshrl.u32 %v866_v5, 16 }
  0x1c   : > { %309 = vst.msk [vmem:[#allocation2 + $0x6c] sm:$0xf] %vm280_vm1, %v17175_v2  ;;  %310 = vst.msk [vmem:[#allocation2 + $0x70] sm:$0xf] %vm280_vm1, %v17175_v2  ;;  %v392_v11 = vld [vmem:[%s13344_s10] sm:$0xf] }
  0x1d   : > { %312 = vst.msk [vmem:[#allocation2 + $0x78] sm:$0xf] %vm280_vm1, %v17175_v2  ;;  %313 = vst.msk [vmem:[#allocation2 + $0x7c] sm:$0xf] %vm280_vm1, %v17175_v2  ;;  %v937_v12 = vshll.u32 %v898_v6, 16  ;;  %v428_v14 = vshrl.u32 %v392_v11, 16 }
  0x1e   : > { %314 = vst.msk [vmem:[#allocation2 + $0x80] sm:$0x1] %vm283_vm2, %v17175_v2  ;;  %317 = vst.msk [vmem:[#allocation2 + $0x8c] sm:$0x1] %vm283_vm2, %v17175_v2  ;;  %v393_v13 = vld [vmem:[%s13344_s10 + $0x4] sm:$0xf] }
  0x1f   : > { %315 = vst.msk [vmem:[#allocation2 + $0x84] sm:$0xf] %vm280_vm1, %v17175_v2  ;;  %316 = vst.msk [vmem:[#allocation2 + $0x88] sm:$0xf] %vm280_vm1, %v17175_v2  ;;  %v431_v15 = vshll.u32 %v392_v11, 16  ;;  %v920_v16 = vrot.slane %v918_v7, 4 }
  0x20   : > { %318 = vst.msk [vmem:[#allocation2 + $0x90] sm:$0xf] %vm280_vm1, %v17175_v2  ;;  %319 = vst.msk [vmem:[#allocation2 + $0x94] sm:$0xf] %vm280_vm1, %v17175_v2  ;;  %v923_v17 = vrot.slane %v921_v8, 5  ;;  %v929_v18 = vrot.slane %v927_v9, 5 }
  0x21   : > { %320 = vst.msk [vmem:[#allocation2 + $0x98] sm:$0x1] %vm283_vm2, %v17175_v2  ;;  %323 = vst.msk [vmem:[#allocation2 + $0xa4] sm:$0x1] %vm283_vm2, %v17175_v2  ;;  %v933_v19 = vrot.slane %v931_v10, 4  ;;  %v430_v21 = vrot.slane %v428_v14, 7 }
  0x22   : > { %321 = vst.msk [vmem:[#allocation2 + $0x9c] sm:$0xf] %vm280_vm1, %v17175_v2  ;;  %322 = vst.msk [vmem:[#allocation2 + $0xa0] sm:$0xf] %vm280_vm1, %v17175_v2  ;;  %v436_v22 = vshrl.u32 %v393_v13, 16  ;;  %v439_v23 = vshll.u32 %v393_v13, 16  ;;  %v924_v25 = vor.u32 %v923_v17, %v920_v16 }
  0x23   : > { %324 = vst.msk [vmem:[#allocation2 + $0xa8] sm:$0xf] %vm280_vm1, %v17175_v2  ;;  %325 = vst.msk [vmem:[#allocation2 + $0xac] sm:$0xf] %vm280_vm1, %v17175_v2  ;;  %v751_v24 = vld [vmem:[#allocation2 + $0xc] sm:$0xf]  ;;  %v934_v26 = vor.u32 %v933_v19, %v929_v18  ;;  %v433_v31 = vor.u32 %v431_v15, %v430_v21 }
  0x24   : > { %326 = vst.msk [vmem:[#allocation2 + $0xb0] sm:$0x1] %vm283_vm2, %v17175_v2  ;;  %329 = vst.msk [vmem:[#allocation2 + $0xbc] sm:$0x1] %vm283_vm2, %v17175_v2  ;;  %v939_v27 = vrot.slane %v937_v12, 5  ;;  %v434_v32 = vrot.slane %v430_v21, 4 }
  0x25   : > { %327 = vst.msk [vmem:[#allocation2 + $0xb4] sm:$0xf] %vm280_vm1, %v17175_v2  ;;  %328 = vst.msk [vmem:[#allocation2 + $0xb8] sm:$0xf] %vm280_vm1, %v17175_v2  ;;  %v394_v29 = vld [vmem:[%s13344_s10 + $0x8] sm:$0xf] }
  0x26   : > { %330 = vst.msk [vmem:[#allocation2 + $0xc0] sm:$0xf] %vm280_vm1, %v17175_v2  ;;  %331 = vst.msk [vmem:[#allocation2 + $0xc4] sm:$0xf] %vm280_vm1, %v17175_v2  ;;  %v395_v30 = vld [vmem:[%s13344_s10 + $0xc] sm:$0xf] }
  0x27   : > { %332 = vst.msk [vmem:[#allocation2 + $0xc8] sm:$0x1] %vm283_vm2, %v17175_v2  ;;  %335 = vst.msk [vmem:[#allocation2 + $0xd4] sm:$0x1] %vm283_vm2, %v17175_v2  ;;  %v438_v33 = vrot.slane %v436_v22, 7  ;;  %v445_v35 = vshrl.u32 %v394_v29, 16 }
  0x28   : > { %333 = vst.msk [vmem:[#allocation2 + $0xcc] sm:$0xf] %vm280_vm1, %v17175_v2  ;;  %334 = vst.msk [vmem:[#allocation2 + $0xd0] sm:$0xf] %vm280_vm1, %v17175_v2  ;;  %v925_v36 = vrot.slane %v924_v25, 4  ;;  %v935_v37 = vrot.slane %v934_v26, 4 }
  0x29   : > { %vm13350_vm8 = vmor %vm914_vm3, %vm915_vm4  ;;  %v757_v39 = vld [vmem:[#allocation2 + $0x14] sm:$0x1]  ;;  %v448_v40 = vshll.u32 %v394_v29, 16  ;;  %v453_v41 = vshrl.u32 %v395_v30, 16  ;;  %v441_v42 = vor.u32 %v439_v23, %v438_v33  ;;  %v443_v43 = vrot.slane %v438_v33, 4  ;;  %s11551_s13 = sshll.u32 %s17580_s25, 8 }
  0x2a   : > { %vm13356_vm10 = vmand %vm280_vm1, %vm749_vm7  ;;  %v447_v45 = vrot.slane %v445_v35, 7  ;;  %v396_v46 = vld [vmem:[%s13344_s10 + $0x10] sm:$0xf]  ;;  %v930_v47 = vsel %vm13350_vm8, %v925_v36, %v929_v18  ;;  %v940_v48 = vsel %vm13350_vm8, %v935_v37, %v939_v27  ;;  %v456_v50 = vshll.u32 %v395_v30, 16  ;;  %v760_v51 = vld [vmem:[#allocation2 + $0x18] sm:$0xf]  ;;  %s17038_s16 = scalar_lea.vmem %s17174_s7, %s11551_s13 }
  0x2b   : > { %vm13364_vm11 = vmand %vm283_vm2, %vm424_vm5  ;;  %v752_v44 = vsel %vm13356_vm10, %v433_v31, %v751_v24  ;;  %v455_v49 = vrot.slane %v453_v41, 7  ;;  %v397_v52 = vld [vmem:[%s13344_s10 + $0x14] sm:$0xf]  ;;  %v10825_v53 = vcombine.low %v930_v47, %v940_v48  ;;  %v764_v57 = vld [vmem:[#allocation2 + $0x20] sm:$0x1]  ;;  %v462_v62 = vshrl.u32 %v396_v46, 16 }
  0x2c   : > { %vm13370_vm12 = vmor %vm424_vm5, %vm425_vm6  ;;  %753 = vst [vmem:[#allocation2 + $0xc] sm:$0xf] %v752_v44  ;;  %v758_v55 = vsel %vm13364_vm11, %v443_v43, %v757_v39  ;;  %v450_v56 = vor.u32 %v448_v40, %v447_v45  ;;  %v398_v58 = vld [vmem:[%s13344_s10 + $0x18] sm:$0xf]  ;;  %v451_v59 = vrot.slane %v447_v45, 4  ;;  %v465_v1 = vshll.u32 %v396_v46, 16 }
  0x2d   : > { %v17297_v38 = vsel %vm13370_vm12, 4294967295, %v17296_v38  ;;  %v442_v54 = vsel %vm13370_vm12, %v434_v32, %v441_v42  ;;  %759 = vst [vmem:[#allocation2 + $0x14] sm:$0x1] %v758_v55  ;;  %v458_v60 = vor.u32 %v456_v50, %v455_v49  ;;  %v460_v61 = vrot.slane %v455_v49, 4  ;;  %v399_v63 = vld [vmem:[%s13344_s10 + $0x1c] sm:$0xf]  ;;  %11892 = vmatprep.mubr.msk.bf16.mxu0 %vm1351_vm9, %v10825_v53 }
  0x2e   : > { %17298 = vst [vmem:[#allocation4_spill] sm:$0xff] %v17297_v38  ;;  %754 = vst.msk [vmem:[#allocation2 + $0x10] sm:$0xf] %vm280_vm1, %v442_v54  ;;  %v761_v0 = vsel %vm13356_vm10, %v450_v56, %v760_v51  ;;  %v470_v4 = vshrl.u32 %v397_v52, 16  ;;  %v473_v5 = vshll.u32 %v397_v52, 16  ;;  %v464_v8 = vrot.slane %v462_v62, 7 }
  0x2f   : > { %v459_v6 = vsel %vm13370_vm12, %v451_v59, %v458_v60  ;;  %762 = vst [vmem:[#allocation2 + $0x18] sm:$0xf] %v761_v0  ;;  %v765_v7 = vsel %vm13364_vm11, %v460_v61, %v764_v57  ;;  %v479_v9 = vshrl.u32 %v398_v58, 16  ;;  %v767_v11 = vld [vmem:[#allocation2 + $0x24] sm:$0xf]  ;;  %v482_v12 = vshll.u32 %v398_v58, 16 }
  0x30   : > { %763 = vst.msk [vmem:[#allocation2 + $0x1c] sm:$0xf] %vm280_vm1, %v459_v6  ;;  %766 = vst [vmem:[#allocation2 + $0x20] sm:$0x1] %v765_v7  ;;  %v472_v10 = vrot.slane %v470_v4, 7  ;;  %v487_v13 = vshrl.u32 %v399_v63, 16  ;;  %v467_v15 = vor.u32 %v465_v1, %v464_v8 }
  0x31   : > { %v490_v14 = vshll.u32 %v399_v63, 16  ;;  %v468_v16 = vrot.slane %v464_v8, 4  ;;  %v771_v17 = vld [vmem:[#allocation2 + $0x2c] sm:$0x1]  ;;  %v481_v18 = vrot.slane %v479_v9, 7  ;;  %v13401_v21 = vsel %vm1400_vm0, %v13330_v3, 0 }
  0x32   : > { %v475_v22 = vor.u32 %v473_v5, %v472_v10  ;;  %v477_v23 = vrot.slane %v472_v10, 4  ;;  %v489_v24 = vrot.slane %v487_v13, 7  ;;  %v768_v27 = vsel %vm13356_vm10, %v467_v15, %v767_v11  ;;  %v774_v30 = vld [vmem:[#allocation2 + $0x30] sm:$0xf]  ;;  %v13408_v31 = vld [vmem:[%s13344_s10 + $0x20] sm:$0xf] }
  0x33   : > { %v13397_v19 = vld [vmem:[#allocation2 + $0xc] sm:$0xf]  ;;  %v484_v29 = vor.u32 %v482_v12, %v481_v18  ;;  %769 = vst [vmem:[#allocation2 + $0x24] sm:$0xf] %v768_v27  ;;  %v485_v36 = vrot.slane %v481_v18, 4  ;;  %v496_v46 = vshrl.u32 %v13408_v31, 16 }
  0x34   : > { %v942_v25 = vshrl.u32 %v13397_v19, 16  ;;  %v945_v26 = vshll.u32 %v13397_v19, 16  ;;  %v899_v33 = vld [vmem:[#allocation2 + $0x14] sm:$0x1]  ;;  %v476_v3 = vsel %vm13370_vm12, %v468_v16, %v475_v22  ;;  %v772_v35 = vsel %vm13364_vm11, %v477_v23, %v771_v17  ;;  %v778_v62 = vld [vmem:[#allocation2 + $0x38] sm:$0x1] }
  0x35   : > { %v13410_v32 = vld [vmem:[#allocation2 + $0x10] sm:$0xf]  ;;  %v492_v37 = vor.u32 %v490_v14, %v489_v24  ;;  %770 = vst.msk [vmem:[#allocation2 + $0x28] sm:$0xf] %vm280_vm1, %v476_v3  ;;  %773 = vst [vmem:[#allocation2 + $0x2c] sm:$0x1] %v772_v35  ;;  %v775_v53 = vsel %vm13356_vm10, %v484_v29, %v774_v30 }
  0x36   : > { %v944_v39 = vrot.slane %v942_v25, 4  ;;  %v947_v40 = vrot.slane %v945_v26, 5  ;;  %v951_v41 = vshll.u32 %v13410_v32, 16  ;;  %v955_v42 = vshrl.u32 %v13410_v32, 16  ;;  %v869_v44 = vld [vmem:[#allocation2 + $0x18] sm:$0xf] }
  0x37   : > { %v961_v43 = vshll.u32 %v899_v33, 16  ;;  %v493_v45 = vsel %vm13370_vm12, %v485_v36, %v492_v37  ;;  %v499_v47 = vshll.u32 %v13408_v31, 16  ;;  %v870_v51 = vld [vmem:[#allocation2 + $0x1c] sm:$0xf]  ;;  %v900_v52 = vld [vmem:[#allocation2 + $0x20] sm:$0x1] }
  0x38   : > { %v948_v48 = vor.u32 %v947_v40, %v944_v39  ;;  %v953_v49 = vrot.slane %v951_v41, 5  ;;  %v957_v50 = vrot.slane %v955_v42, 4  ;;  %777 = vst.msk [vmem:[#allocation2 + $0x34] sm:$0xf] %vm280_vm1, %v493_v45  ;;  %v966_v55 = vshrl.u32 %v869_v44, 16 }
  0x39   : > { %v963_v54 = vrot.slane %v961_v43, 5  ;;  %v969_v56 = vshll.u32 %v869_v44, 16  ;;  %v975_v57 = vshll.u32 %v870_v51, 16  ;;  %776 = vst [vmem:[#allocation2 + $0x30] sm:$0xf] %v775_v53  ;;  %v979_v60 = vshrl.u32 %v870_v51, 16 }
  0x3a   : > { %v949_v58 = vrot.slane %v948_v48, 4  ;;  %v958_v59 = vor.u32 %v957_v50, %v953_v49  ;;  %v985_v61 = vshll.u32 %v900_v52, 16  ;;  %v968_v63 = vrot.slane %v966_v55, 4  ;;  %v871_v9 = vld [vmem:[#allocation2 + $0x24] sm:$0xf] }
  0x3b   : > { %v971_v0 = vrot.slane %v969_v56, 5  ;;  %v977_v1 = vrot.slane %v975_v57, 5  ;;  %v494_v4 = vrot.slane %v489_v24, 4  ;;  %v981_v7 = vrot.slane %v979_v60, 4  ;;  %v401_v45 = vld [vmem:[%s13344_s10 + $0x24] sm:$0xf] }
  0x3c   : > { %v954_v5 = vsel %vm13350_vm8, %v949_v58, %v953_v49  ;;  %v959_v6 = vrot.slane %v958_v59, 4  ;;  %v987_v8 = vrot.slane %v985_v61, 5  ;;  %v872_v11 = vld [vmem:[#allocation2 + $0x28] sm:$0xf]  ;;  %v901_v12 = vld [vmem:[#allocation2 + $0x2c] sm:$0x1] }
  0x3d   : > { %v972_v10 = vor.u32 %v971_v0, %v968_v63  ;;  %v990_v13 = vshrl.u32 %v871_v9, 16  ;;  %v993_v14 = vshll.u32 %v871_v9, 16  ;;  %v779_v15 = vsel %vm13364_vm11, %v494_v4, %v778_v62  ;;  %v781_v56 = vld [vmem:[#allocation2 + $0x3c] sm:$0xf]  ;;  %v402_v61 = vld [vmem:[%s13344_s10 + $0x28] sm:$0xf] }
  0x3e   : > { %v964_v16 = vsel %vm13350_vm8, %v959_v6, %v963_v54  ;;  %v982_v17 = vor.u32 %v981_v7, %v977_v1  ;;  %v999_v18 = vshll.u32 %v872_v11, 16  ;;  %v1003_v22 = vshrl.u32 %v872_v11, 16  ;;  %780 = vst [vmem:[#allocation2 + $0x38] sm:$0x1] %v779_v15  ;;  %v403_v7 = vld [vmem:[%s13344_s10 + $0x2c] sm:$0xf] }
  0x3f   : > { %v10826_v23 = vcombine.low %v954_v5, %v964_v16  ;;  %v973_v24 = vrot.slane %v972_v10, 4  ;;  %v992_v25 = vrot.slane %v990_v13, 4  ;;  %v995_v26 = vrot.slane %v993_v14, 5  ;;  %v874_v27 = vld [vmem:[#allocation2 + $0x34] sm:$0xf] }
  0x40   : > { %v983_v29 = vrot.slane %v982_v17, 4  ;;  %v1001_v30 = vrot.slane %v999_v18, 5  ;;  %v1005_v33 = vrot.slane %v1003_v22, 4  ;;  %v1009_v3 = vshll.u32 %v901_v12, 16  ;;  %v873_v35 = vld [vmem:[#allocation2 + $0x30] sm:$0xf] }
  0x41   : > { %11893 = vmatmul.mubr.msk.bf16.vlgmr.msra.gmra.mrb[0].mxu0 %vm1351_vm9, %v10826_v23  ;;  %v978_v36 = vsel %vm13350_vm8, %v973_v24, %v977_v1  ;;  %v996_v37 = vor.u32 %v995_v26, %v992_v25  ;;  %v1014_v39 = vshrl.u32 %v873_v35, 16  ;;  %v1017_v40 = vshll.u32 %v873_v35, 16  ;;  %v785_v11 = vld [vmem:[#allocation2 + $0x44] sm:$0x1]  ;;  %v404_v13 = vld [vmem:[%s13344_s10 + $0x30] sm:$0xf] }
  0x42   : > { %11925 = vmatpush3.bf16.msra.mxu0 %v13401_v21  ;;  %v988_v41 = vsel %vm13350_vm8, %v983_v29, %v987_v8  ;;  %v1006_v42 = vor.u32 %v1005_v33, %v1001_v30  ;;  %v1011_v43 = vrot.slane %v1009_v3, 5  ;;  %v1023_v44 = vshll.u32 %v874_v27, 16  ;;  %v405_v23 = vld [vmem:[%s13344_s10 + $0x34] sm:$0xf]  ;;  %v788_v26 = vld [vmem:[#allocation2 + $0x48] sm:$0xf] }
  0x43   : > { %v10827_v48 = vcombine.low %v978_v36, %v988_v41  ;;  %v997_v49 = vrot.slane %v996_v37, 4  ;;  %v1016_v50 = vrot.slane %v1014_v39, 4  ;;  %v1019_v51 = vrot.slane %v1017_v40, 5  ;;  %v792_v37 = vld [vmem:[#allocation2 + $0x50] sm:$0x1] }
  0x44   : > { %v1007_v52 = vrot.slane %v1006_v42, 4  ;;  %v1025_v53 = vrot.slane %v1023_v44, 5  ;;  %v1027_v54 = vshrl.u32 %v874_v27, 16  ;;  %v498_v55 = vrot.slane %v496_v46, 7  ;;  %v13116_v2 = vld [vmem:[#allocation2 + $0x14] sm:$0x1] }
  0x45   : > { %11896 = vmatprep.mubr.msk.bf16.mxu0 %vm1351_vm9, %v10827_v48  ;;  %v1002_v21 = vsel %vm13350_vm8, %v997_v49, %v1001_v30  ;;  %v902_v57 = vld [vmem:[#allocation2 + $0x38] sm:$0x1]  ;;  %v1020_v58 = vor.u32 %v1019_v51, %v1016_v50  ;;  %v504_v59 = vshrl.u32 %v401_v45, 16  ;;  %v507_v60 = vshll.u32 %v401_v45, 16  ;;  %v14023_v34 = vld [vmem:[#allocation2 + $0x34] sm:$0xf] }
  0x46   : > { %v1012_v62 = vsel %vm13350_vm8, %v1007_v52, %v1011_v43  ;;  %v1029_v63 = vrot.slane %v1027_v54, 4  ;;  %v1033_v0 = vshll.u32 %v902_v57, 16  ;;  %v501_v46 = vor.u32 %v499_v47, %v498_v55  ;;  %v406_v30 = vld [vmem:[%s13344_s10 + $0x38] sm:$0xf]  ;;  %v407_v43 = vld [vmem:[%s13344_s10 + $0x3c] sm:$0xf] }
  0x47   : > { %v10828_v1 = vcombine.low %v1002_v21, %v1012_v62  ;;  %v1021_v4 = vrot.slane %v1020_v58, 4  ;;  %v502_v5 = vrot.slane %v498_v55, 4  ;;  %v506_v6 = vrot.slane %v504_v59, 7  ;;  %v799_v57 = vld [vmem:[#allocation2 + $0x5c] sm:$0x1] }
  0x48   : > { %v1030_v8 = vor.u32 %v1029_v63, %v1025_v53  ;;  %v1035_v9 = vrot.slane %v1033_v0, 5  ;;  %v782_v10 = vsel %vm13356_vm10, %v501_v46, %v781_v56  ;;  %v513_v12 = vshrl.u32 %v402_v61, 16 }
  0x49   : > { %11897 = vmatmul.mubr.msk.bf16.gmra.mrb[4].mxu0 %vm1351_vm9, %v10828_v1  ;;  %v1026_v31 = vsel %vm13350_vm8, %v1021_v4, %v1025_v53  ;;  %v509_v47 = vor.u32 %v507_v60, %v506_v6  ;;  %v511_v14 = vrot.slane %v506_v6, 4  ;;  %783 = vst [vmem:[#allocation2 + $0x3c] sm:$0xf] %v782_v10  ;;  %v516_v15 = vshll.u32 %v402_v61, 16  ;;  %v795_v53 = vld [vmem:[#allocation2 + $0x54] sm:$0xf] }
  0x4a   : > { %v1031_v16 = vrot.slane %v1030_v8, 4  ;;  %v515_v17 = vrot.slane %v513_v12, 7  ;;  %v521_v18 = vshrl.u32 %v403_v7, 16  ;;  %v524_v22 = vshll.u32 %v403_v7, 16  ;;  %v408_v6 = vld [vmem:[%s13344_s10 + $0x40] sm:$0xf] }
  0x4b   : > { %v510_v24 = vsel %vm13370_vm12, %v502_v5, %v509_v47  ;;  %v786_v25 = vsel %vm13364_vm11, %v511_v14, %v785_v11  ;;  %v530_v27 = vshrl.u32 %v404_v13, 16  ;;  %v533_v29 = vshll.u32 %v404_v13, 16  ;;  %v802_v5 = vld [vmem:[#allocation2 + $0x60] sm:$0xf] }
  0x4c   : > { %v1036_v33 = vsel %vm13350_vm8, %v1031_v16, %v1035_v9  ;;  %784 = vst.msk [vmem:[#allocation2 + $0x40] sm:$0xf] %vm280_vm1, %v510_v24  ;;  %787 = vst [vmem:[#allocation2 + $0x44] sm:$0x1] %v786_v25  ;;  %v518_v3 = vor.u32 %v516_v15, %v515_v17  ;;  %v519_v35 = vrot.slane %v515_v17, 4  ;;  %v523_v36 = vrot.slane %v521_v18, 7 }
  0x4d   : > { %v10829_v39 = vcombine.low %v1026_v31, %v1036_v33  ;;  %v532_v40 = vrot.slane %v530_v27, 7  ;;  %v538_v41 = vshrl.u32 %v405_v23, 16  ;;  %v541_v42 = vshll.u32 %v405_v23, 16  ;;  %v806_v15 = vld [vmem:[#allocation2 + $0x68] sm:$0x1] }
  0x4e   : > { %v526_v44 = vor.u32 %v524_v22, %v523_v36  ;;  %v528_v45 = vrot.slane %v523_v36, 4  ;;  %v789_v48 = vsel %vm13356_vm10, %v518_v3, %v788_v26  ;;  %v547_v49 = vshrl.u32 %v406_v30, 16 }
  0x4f   : > { %11900 = vmatprep.mubr.msk.bf16.mxu0 %vm1351_vm9, %v10829_v39  ;;  %790 = vst [vmem:[#allocation2 + $0x48] sm:$0xf] %v789_v48  ;;  %v535_v50 = vor.u32 %v533_v29, %v532_v40  ;;  %v536_v51 = vrot.slane %v532_v40, 4  ;;  %v540_v52 = vrot.slane %v538_v41, 7  ;;  %v550_v54 = vshll.u32 %v406_v30, 16 }
  0x50   : > { %v875_v55 = vld [vmem:[#allocation2 + $0x3c] sm:$0xf]  ;;  %v527_v56 = vsel %vm13370_vm12, %v519_v35, %v526_v44  ;;  %v793_v21 = vsel %vm13364_vm11, %v528_v45, %v792_v37  ;;  %v549_v58 = vrot.slane %v547_v49, 7  ;;  %v555_v59 = vshrl.u32 %v407_v43, 16  ;;  %v13493_v35 = vld [vmem:[%s17168_s1 + $0x4] sm:$0x3] }
  0x51   : > { %v1038_v60 = vshrl.u32 %v875_v55, 16  ;;  %v1041_v61 = vshll.u32 %v875_v55, 16  ;;  %791 = vst.msk [vmem:[#allocation2 + $0x4c] sm:$0xf] %vm280_vm1, %v527_v56  ;;  %794 = vst [vmem:[#allocation2 + $0x50] sm:$0x1] %v793_v21  ;;  %v543_v62 = vor.u32 %v541_v42, %v540_v52  ;;  %v796_v0 = vsel %vm13356_vm10, %v535_v50, %v795_v53  ;;  %13016 = vmatprep.subr.msk.bf16.mxu0 %vm1400_vm0, %v13493_v35 }
  0x52   : > { %v545_v63 = vrot.slane %v540_v52, 4  ;;  %v552_v46 = vor.u32 %v550_v54, %v549_v58  ;;  %v553_v1 = vrot.slane %v549_v58, 4  ;;  %v557_v4 = vrot.slane %v555_v59, 7  ;;  %797 = vst [vmem:[#allocation2 + $0x54] sm:$0xf] %v796_v0 }
  0x53   : > { %v876_v7 = vld [vmem:[#allocation2 + $0x40] sm:$0xf]  ;;  %v903_v8 = vld [vmem:[#allocation2 + $0x44] sm:$0x1]  ;;  %v1040_v9 = vrot.slane %v1038_v60, 4  ;;  %v1043_v10 = vrot.slane %v1041_v61, 5  ;;  %v544_v11 = vsel %vm13370_vm12, %v536_v51, %v543_v62  ;;  %v10858_v58 = vcombine.low %v13397_v19, %v13410_v32 }
  0x54   : > { %v800_v12 = vsel %vm13364_vm11, %v545_v63, %v799_v57  ;;  %v1047_v13 = vshll.u32 %v876_v7, 16  ;;  %v1051_v31 = vshrl.u32 %v876_v7, 16  ;;  %v1057_v47 = vshll.u32 %v903_v8, 16  ;;  %798 = vst.msk [vmem:[#allocation2 + $0x58] sm:$0xf] %vm280_vm1, %v544_v11 }
  0x55   : > { %801 = vst [vmem:[#allocation2 + $0x5c] sm:$0x1] %v800_v12  ;;  %v558_v14 = vshll.u32 %v407_v43, 16  ;;  %v1044_v16 = vor.u32 %v1043_v10, %v1040_v9  ;;  %v562_v17 = vrot.slane %v557_v4, 4  ;;  %v803_v18 = vsel %vm13356_vm10, %v552_v46, %v802_v5 }
  0x56   : > { %v564_v22 = vshrl.u32 %v408_v6, 16  ;;  %v1049_v23 = vrot.slane %v1047_v13, 5  ;;  %v1053_v24 = vrot.slane %v1051_v31, 4  ;;  %v1059_v25 = vrot.slane %v1057_v47, 5  ;;  %v13484_v26 = vld [vmem:[#allocation2 + $0x48] sm:$0xf] }
  0x57   : > { %v560_v27 = vor.u32 %v558_v14, %v557_v4  ;;  %804 = vst [vmem:[#allocation2 + $0x60] sm:$0xf] %v803_v18  ;;  %v1045_v29 = vrot.slane %v1044_v16, 4  ;;  %v1062_v30 = vshrl.u32 %v13484_v26, 16  ;;  %v1065_v33 = vshll.u32 %v13484_v26, 16 }
  0x58   : > { %v807_v3 = vsel %vm13364_vm11, %v562_v17, %v806_v15  ;;  %v1054_v36 = vor.u32 %v1053_v24, %v1049_v23  ;;  %v13495_v37 = vld [vmem:[#allocation2 + $0x4c] sm:$0xf]  ;;  %v904_v39 = vld [vmem:[#allocation2 + $0x50] sm:$0x1]  ;;  %v13499_v41 = vrot.slane %v564_v22, 7  ;;  %v567_v42 = vshll.u32 %v408_v6, 16 }
  0x59   : > { %v561_v40 = vsel %vm13370_vm12, %v553_v1, %v560_v27  ;;  %808 = vst [vmem:[#allocation2 + $0x68] sm:$0x1] %v807_v3  ;;  %v1050_v43 = vsel %vm13350_vm8, %v1045_v29, %v1049_v23  ;;  %v1064_v44 = vrot.slane %v1062_v30, 4  ;;  %v1067_v45 = vrot.slane %v1065_v33, 5  ;;  %v13508_v52 = vld [vmem:[#allocation2 + $0x54] sm:$0xf] }
  0x5a   : > { %v1071_v48 = vshll.u32 %v13495_v37, 16  ;;  %805 = vst.msk [vmem:[#allocation2 + $0x64] sm:$0xf] %vm280_vm1, %v561_v40  ;;  %v1055_v49 = vrot.slane %v1054_v36, 4  ;;  %v1075_v50 = vshrl.u32 %v13495_v37, 16  ;;  %v1081_v51 = vshll.u32 %v904_v39, 16 }
  0x5b   : > { %v13511_v53 = vor.u32 %v567_v42, %v13499_v41  ;;  %v1068_v54 = vor.u32 %v1067_v45, %v1064_v44  ;;  %v13513_v56 = vld [vmem:[#allocation2 + $0x58] sm:$0xf]  ;;  %v1086_v57 = vshrl.u32 %v13508_v52, 16  ;;  %v1089_v62 = vshll.u32 %v13508_v52, 16  ;;  %v409_v17 = vld [vmem:[%s13344_s10 + $0x44] sm:$0xf] }
  0x5c   : > { %v1073_v55 = vrot.slane %v1071_v48, 5  ;;  %v905_v21 = vld [vmem:[#allocation2 + $0x5c] sm:$0x1]  ;;  %v1060_v59 = vsel %vm13350_vm8, %v1055_v49, %v1059_v25  ;;  %v1077_v60 = vrot.slane %v1075_v50, 4  ;;  %v1083_v61 = vrot.slane %v1081_v51, 5 }
  0x5d   : > { %v10830_v63 = vcombine.low %v1050_v43, %v1060_v59  ;;  %v1069_v0 = vrot.slane %v1068_v54, 4  ;;  %v1088_v46 = vrot.slane %v1086_v57, 4  ;;  %v1095_v1 = vshll.u32 %v13513_v56, 16  ;;  %v809_v25 = vld [vmem:[#allocation2 + $0x6c] sm:$0xf] }
  0x5e   : > { %v13522_v4 = vld [vmem:[#allocation2 + $0x60] sm:$0xf]  ;;  %v1078_v5 = vor.u32 %v1077_v60, %v1073_v55  ;;  %v1091_v6 = vrot.slane %v1089_v62, 5  ;;  %v1099_v7 = vshrl.u32 %v13513_v56, 16  ;;  %v1105_v8 = vshll.u32 %v905_v21, 16 }
  0x5f   : > { %11901 = vmatmul.mubr.msk.bf16.gmra.mrb[8].mxu0 %vm1351_vm9, %v10830_v63  ;;  %v1074_v9 = vsel %vm13350_vm8, %v1069_v0, %v1073_v55  ;;  %v1097_v10 = vrot.slane %v1095_v1, 5  ;;  %v1110_v12 = vshrl.u32 %v13522_v4, 16  ;;  %v1113_v13 = vshll.u32 %v13522_v4, 16  ;;  %v410_v27 = vld [vmem:[%s13344_s10 + $0x48] sm:$0xf] }
  0x60   : > { %v906_v11 = vld [vmem:[#allocation2 + $0x68] sm:$0x1]  ;;  %v1079_v31 = vrot.slane %v1078_v5, 4  ;;  %v1092_v47 = vor.u32 %v1091_v6, %v1088_v46  ;;  %v1101_v14 = vrot.slane %v1099_v7, 4  ;;  %v1107_v15 = vrot.slane %v1105_v8, 5 }
  0x61   : > { %v13530_v16 = vld [vmem:[#allocation2 + $0x64] sm:$0xf]  ;;  %v1112_v18 = vrot.slane %v1110_v12, 4  ;;  %v1115_v22 = vrot.slane %v1113_v13, 5  ;;  %v1129_v3 = vshll.u32 %v906_v11, 16  ;;  %v570_v49 = vrot.slane %v13499_v41, 4 }
  0x62   : > { %v1119_v23 = vshll.u32 %v13530_v16, 16  ;;  %v1123_v24 = vshrl.u32 %v13530_v16, 16  ;;  %v1084_v29 = vsel %vm13350_vm8, %v1079_v31, %v1083_v61  ;;  %v1093_v30 = vrot.slane %v1092_v47, 4  ;;  %v411_v43 = vld [vmem:[%s13344_s10 + $0x4c] sm:$0xf] }
  0x63   : > { %v1102_v33 = vor.u32 %v1101_v14, %v1097_v10  ;;  %v10831_v36 = vcombine.low %v1074_v9, %v1084_v29  ;;  %v1116_v39 = vor.u32 %v1115_v22, %v1112_v18  ;;  %v1131_v48 = vrot.slane %v1129_v3, 5  ;;  %v412_v21 = vld [vmem:[%s13344_s10 + $0x50] sm:$0xf]  ;;  %v813_v60 = vld [vmem:[#allocation2 + $0x74] sm:$0x1] }
  0x64   : > { %v1121_v40 = vrot.slane %v1119_v23, 5  ;;  %v1125_v42 = vrot.slane %v1123_v24, 4  ;;  %v1098_v44 = vsel %vm13350_vm8, %v1093_v30, %v1097_v10  ;;  %v572_v54 = vshrl.u32 %v409_v17, 16  ;;  %v413_v63 = vld [vmem:[%s13344_s10 + $0x54] sm:$0xf] }
  0x65   : > { %v1103_v45 = vrot.slane %v1102_v33, 4  ;;  %11904 = vmatprep.mubr.msk.bf16.mxu0 %vm1351_vm9, %v10831_v36  ;;  %v1117_v50 = vrot.slane %v1116_v39, 4  ;;  %v575_v55 = vshll.u32 %v409_v17, 16  ;;  %v810_v59 = vsel %vm13356_vm10, %v13511_v53, %v809_v25  ;;  %v816_v5 = vld [vmem:[#allocation2 + $0x78] sm:$0xf] }
  0x66   : > { %v1126_v51 = vor.u32 %v1125_v42, %v1121_v40  ;;  %v581_v61 = vshrl.u32 %v410_v27, 16  ;;  %v584_v62 = vshll.u32 %v410_v27, 16  ;;  %v574_v1 = vrot.slane %v572_v54, 7  ;;  %811 = vst [vmem:[#allocation2 + $0x6c] sm:$0xf] %v810_v59 }
  0x67   : > { %v1108_v57 = vsel %vm13350_vm8, %v1103_v45, %v1107_v15  ;;  %v1122_v0 = vsel %vm13350_vm8, %v1117_v50, %v1121_v40  ;;  %v589_v7 = vshrl.u32 %v411_v43, 16  ;;  %v592_v8 = vshll.u32 %v411_v43, 16  ;;  %v414_v10 = vld [vmem:[%s13344_s10 + $0x58] sm:$0xf]  ;;  %v820_v13 = vld [vmem:[#allocation2 + $0x80] sm:$0x1] }
  0x68   : > { %v10832_v41 = vcombine.low %v1098_v44, %v1108_v57  ;;  %v1127_v46 = vrot.slane %v1126_v51, 4  ;;  %v583_v6 = vrot.slane %v581_v61, 7  ;;  %v598_v9 = vshrl.u32 %v412_v21, 16  ;;  %v415_v47 = vld [vmem:[%s13344_s10 + $0x5c] sm:$0xf] }
  0x69   : > { %v577_v11 = vor.u32 %v575_v55, %v574_v1  ;;  %v579_v12 = vrot.slane %v574_v1, 4  ;;  %v601_v31 = vshll.u32 %v412_v21, 16  ;;  %v591_v18 = vrot.slane %v589_v7, 7  ;;  %v823_v27 = vld [vmem:[#allocation2 + $0x84] sm:$0xf] }
  0x6a   : > { %11905 = vmatmul.mubr.msk.bf16.gmra.mrb[12].mxu0 %vm1351_vm9, %v10832_v41  ;;  %v1132_v53 = vsel %vm13350_vm8, %v1127_v46, %v1131_v48  ;;  %v586_v15 = vor.u32 %v584_v62, %v583_v6  ;;  %v587_v17 = vrot.slane %v583_v6, 4  ;;  %v600_v24 = vrot.slane %v598_v9, 7  ;;  %v827_v48 = vld [vmem:[#allocation2 + $0x8c] sm:$0x1]  ;;  %v13575_v57 = vld [vmem:[%s13344_s10 + $0x60] sm:$0xf] }
  0x6b   : > { %v10833_v14 = vcombine.low %v1122_v0, %v1132_v53  ;;  %v578_v22 = vsel %vm13370_vm12, %v570_v49, %v577_v11  ;;  %v814_v23 = vsel %vm13364_vm11, %v579_v12, %v813_v60  ;;  %v606_v25 = vshrl.u32 %v413_v63, 16 }
  0x6c   : > { %812 = vst.msk [vmem:[#allocation2 + $0x70] sm:$0xf] %vm280_vm1, %v578_v22  ;;  %815 = vst [vmem:[#allocation2 + $0x74] sm:$0x1] %v814_v23  ;;  %v594_v29 = vor.u32 %v592_v8, %v591_v18  ;;  %v596_v30 = vrot.slane %v591_v18, 4  ;;  %v817_v33 = vsel %vm13356_vm10, %v586_v15, %v816_v5  ;;  %v609_v3 = vshll.u32 %v413_v63, 16 }
  0x6d   : > { %11908 = vmatprep.mubr.msk.bf16.mxu0 %vm1351_vm9, %v10833_v14  ;;  %818 = vst [vmem:[#allocation2 + $0x78] sm:$0xf] %v817_v33  ;;  %v603_v36 = vor.u32 %v601_v31, %v600_v24  ;;  %v604_v39 = vrot.slane %v600_v24, 4  ;;  %v608_v40 = vrot.slane %v606_v25, 7  ;;  %v615_v42 = vshrl.u32 %v414_v10, 16 }
  0x6e   : > { %v13565_v43 = vld [vmem:[#allocation2 + $0x6c] sm:$0xf]  ;;  %v595_v44 = vsel %vm13370_vm12, %v587_v17, %v594_v29  ;;  %v821_v45 = vsel %vm13364_vm11, %v596_v30, %v820_v13  ;;  %v618_v49 = vshll.u32 %v414_v10, 16  ;;  %v623_v50 = vshrl.u32 %v415_v47, 16  ;;  %v830_v63 = vld [vmem:[#allocation2 + $0x90] sm:$0xf] }
  0x6f   : > { %v1134_v51 = vshrl.u32 %v13565_v43, 16  ;;  %v1137_v54 = vshll.u32 %v13565_v43, 16  ;;  %819 = vst.msk [vmem:[#allocation2 + $0x7c] sm:$0xf] %vm280_vm1, %v595_v44  ;;  %822 = vst [vmem:[#allocation2 + $0x80] sm:$0x1] %v821_v45  ;;  %v611_v55 = vor.u32 %v609_v3, %v608_v40  ;;  %v824_v59 = vsel %vm13356_vm10, %v603_v36, %v823_v27 }
  0x70   : > { %v613_v21 = vrot.slane %v608_v40, 4  ;;  %v617_v60 = vrot.slane %v615_v42, 7  ;;  %v625_v61 = vrot.slane %v623_v50, 7  ;;  %v626_v62 = vshll.u32 %v415_v47, 16  ;;  %825 = vst [vmem:[#allocation2 + $0x84] sm:$0xf] %v824_v59 }
  0x71   : > { %v1136_v41 = vrot.slane %v1134_v51, 4  ;;  %v1139_v0 = vrot.slane %v1137_v54, 5  ;;  %v612_v46 = vsel %vm13370_vm12, %v604_v39, %v611_v55  ;;  %v834_v5 = vld [vmem:[#allocation2 + $0x98] sm:$0x1]  ;;  %v632_v12 = vshrl.u32 %v13575_v57, 16 }
  0x72   : > { %v828_v1 = vsel %vm13364_vm11, %v613_v21, %v827_v48  ;;  %826 = vst.msk [vmem:[#allocation2 + $0x88] sm:$0xf] %vm280_vm1, %v612_v46  ;;  %v620_v6 = vor.u32 %v618_v49, %v617_v60  ;;  %v621_v7 = vrot.slane %v617_v60, 4  ;;  %v628_v8 = vor.u32 %v626_v62, %v625_v61 }
  0x73   : > { %829 = vst [vmem:[#allocation2 + $0x8c] sm:$0x1] %v828_v1  ;;  %v630_v9 = vrot.slane %v625_v61, 4  ;;  %v13584_v10 = vld [vmem:[#allocation2 + $0x70] sm:$0xf]  ;;  %v1140_v11 = vor.u32 %v1139_v0, %v1136_v41  ;;  %v635_v30 = vshll.u32 %v13575_v57, 16 }
  0x74   : > { %v13586_v53 = vld [vmem:[#allocation2 + $0x74] sm:$0x1]  ;;  %v1143_v13 = vshll.u32 %v13584_v10, 16  ;;  %v1147_v31 = vshrl.u32 %v13584_v10, 16  ;;  %v13592_v14 = vld [vmem:[#allocation2 + $0x78] sm:$0xf]  ;;  %v629_v15 = vsel %vm13370_vm12, %v621_v7, %v628_v8  ;;  %v831_v23 = vsel %vm13356_vm10, %v620_v6, %v830_v63 }
  0x75   : > { %v1153_v47 = vshll.u32 %v13586_v53, 16  ;;  %v1141_v17 = vrot.slane %v1140_v11, 4  ;;  %v1158_v18 = vshrl.u32 %v13592_v14, 16  ;;  %v1161_v22 = vshll.u32 %v13592_v14, 16  ;;  %833 = vst.msk [vmem:[#allocation2 + $0x94] sm:$0xf] %vm280_vm1, %v629_v15 }
  0x76   : > { %v1145_v24 = vrot.slane %v1143_v13, 5  ;;  %v1149_v25 = vrot.slane %v1147_v31, 4  ;;  %v13601_v27 = vld [vmem:[#allocation2 + $0x7c] sm:$0xf]  ;;  %832 = vst [vmem:[#allocation2 + $0x90] sm:$0xf] %v831_v23  ;;  %v835_v29 = vsel %vm13364_vm11, %v630_v9, %v834_v5 }
  0x77   : > { %v13606_v33 = vld [vmem:[#allocation2 + $0x80] sm:$0x1]  ;;  %v1160_v3 = vrot.slane %v1158_v18, 4  ;;  %v1163_v36 = vrot.slane %v1161_v22, 5  ;;  %v1167_v39 = vshll.u32 %v13601_v27, 16  ;;  %v1171_v40 = vshrl.u32 %v13601_v27, 16 }
  0x78   : > { %836 = vst [vmem:[#allocation2 + $0x98] sm:$0x1] %v835_v29  ;;  %v1150_v42 = vor.u32 %v1149_v25, %v1145_v24  ;;  %v1155_v44 = vrot.slane %v1153_v47, 5  ;;  %v1177_v45 = vshll.u32 %v13606_v33, 16  ;;  %v13611_v48 = vld [vmem:[#allocation2 + $0x84] sm:$0xf]  ;;  %v1146_v50 = vsel %vm13350_vm8, %v1141_v17, %v1145_v24 }
  0x79   : > { %v13613_v49 = vrot.slane %v632_v12, 7  ;;  %v1164_v51 = vor.u32 %v1163_v36, %v1160_v3  ;;  %v1169_v54 = vrot.slane %v1167_v39, 5  ;;  %v1173_v55 = vrot.slane %v1171_v40, 4  ;;  %v13617_v21 = vld [vmem:[#allocation2 + $0x88] sm:$0xf] }
  0x7a   : > { %v13619_v57 = vld [vmem:[#allocation2 + $0x8c] sm:$0x1]  ;;  %v1151_v59 = vrot.slane %v1150_v42, 4  ;;  %v1179_v60 = vrot.slane %v1177_v45, 5  ;;  %v1182_v61 = vshrl.u32 %v13611_v48, 16  ;;  %v1185_v62 = vshll.u32 %v13611_v48, 16 }
  0x7b   : > { %v1165_v63 = vrot.slane %v1164_v51, 4  ;;  %v1174_v41 = vor.u32 %v1173_v55, %v1169_v54  ;;  %v1191_v0 = vshll.u32 %v13617_v21, 16  ;;  %v1195_v46 = vshrl.u32 %v13617_v21, 16  ;;  %v417_v23 = vld [vmem:[%s13344_s10 + $0x64] sm:$0xf] }
  0x7c   : > { %v1156_v1 = vsel %vm13350_vm8, %v1151_v59, %v1155_v44  ;;  %v1184_v5 = vrot.slane %v1182_v61, 4  ;;  %v1187_v6 = vrot.slane %v1185_v62, 5  ;;  %v1201_v7 = vshll.u32 %v13619_v57, 16  ;;  %v13628_v8 = vld [vmem:[#allocation2 + $0x94] sm:$0xf] }
  0x7d   : > { %v10834_v9 = vcombine.low %v1146_v50, %v1156_v1  ;;  %v1170_v11 = vsel %vm13350_vm8, %v1165_v63, %v1169_v54  ;;  %v1175_v12 = vrot.slane %v1174_v41, 4  ;;  %v1193_v13 = vrot.slane %v1191_v0, 5  ;;  %v13632_v31 = vld [vmem:[#allocation2 + $0x90] sm:$0xf]  ;;  %v837_v36 = vld [vmem:[#allocation2 + $0x9c] sm:$0xf] }
  0x7e   : > { %v1188_v47 = vor.u32 %v1187_v6, %v1184_v5  ;;  %v1197_v15 = vrot.slane %v1195_v46, 4  ;;  %v1203_v17 = vrot.slane %v1201_v7, 5  ;;  %v1206_v22 = vshrl.u32 %v13632_v31, 16  ;;  %v418_v39 = vld [vmem:[%s13344_s10 + $0x68] sm:$0xf] }
  0x7f   : > { %v13634_v18 = vld [vmem:[#allocation2 + $0x98] sm:$0x1]  ;;  %11909 = vmatmul.mubr.msk.bf16.gmra.mrb[16].mxu0 %vm1351_vm9, %v10834_v9  ;;  %v1180_v24 = vsel %vm13350_vm8, %v1175_v12, %v1179_v60  ;;  %v1209_v25 = vshll.u32 %v13632_v31, 16  ;;  %v1215_v29 = vshll.u32 %v13628_v8, 16  ;;  %v1219_v3 = vshrl.u32 %v13628_v8, 16 }
  0x80   : > { %v10835_v40 = vcombine.low %v1170_v11, %v1180_v24  ;;  %v1189_v42 = vrot.slane %v1188_v47, 4  ;;  %v1198_v44 = vor.u32 %v1197_v15, %v1193_v13  ;;  %v1208_v45 = vrot.slane %v1206_v22, 4  ;;  %v419_v59 = vld [vmem:[%s13344_s10 + $0x6c] sm:$0xf]  ;;  %v841_v9 = vld [vmem:[#allocation2 + $0xa4] sm:$0x1] }
  0x81   : > { %v1211_v50 = vrot.slane %v1209_v25, 5  ;;  %v1217_v51 = vrot.slane %v1215_v29, 5  ;;  %v1221_v54 = vrot.slane %v1219_v3, 4  ;;  %v1225_v55 = vshll.u32 %v13634_v18, 16  ;;  %v420_v15 = vld [vmem:[%s13344_s10 + $0x70] sm:$0xf] }
  0x82   : > { %11912 = vmatprep.mubr.msk.bf16.mxu0 %vm1351_vm9, %v10835_v40  ;;  %v1194_v60 = vsel %vm13350_vm8, %v1189_v42, %v1193_v13  ;;  %v1199_v61 = vrot.slane %v1198_v44, 4  ;;  %v637_v62 = vor.u32 %v635_v30, %v13613_v49  ;;  %v638_v63 = vrot.slane %v13613_v49, 4  ;;  %v844_v49 = vld [vmem:[#allocation2 + $0xa8] sm:$0xf]  ;;  %v421_v3 = vld [vmem:[%s13344_s10 + $0x74] sm:$0xf] }
  0x83   : > { %v1212_v41 = vor.u32 %v1211_v50, %v1208_v45  ;;  %v1222_v0 = vor.u32 %v1221_v54, %v1217_v51  ;;  %v1227_v46 = vrot.slane %v1225_v55, 5  ;;  %v640_v1 = vshrl.u32 %v417_v23, 16  ;;  %v848_v42 = vld [vmem:[#allocation2 + $0xb0] sm:$0x1] }
  0x84   : > { %v1204_v5 = vsel %vm13350_vm8, %v1199_v61, %v1203_v17  ;;  %v643_v6 = vshll.u32 %v417_v23, 16  ;;  %v838_v7 = vsel %vm13356_vm10, %v637_v62, %v837_v36  ;;  %v649_v11 = vshrl.u32 %v418_v39, 16 }
  0x85   : > { %v10836_v12 = vcombine.low %v1194_v60, %v1204_v5  ;;  %v1213_v13 = vrot.slane %v1212_v41, 4  ;;  %v1223_v30 = vrot.slane %v1222_v0, 4  ;;  %v642_v47 = vrot.slane %v640_v1, 7  ;;  %839 = vst [vmem:[#allocation2 + $0x9c] sm:$0xf] %v838_v7 }
  0x86   : > { %v651_v22 = vrot.slane %v649_v11, 7  ;;  %v652_v24 = vshll.u32 %v418_v39, 16  ;;  %v657_v25 = vshrl.u32 %v419_v59, 16  ;;  %v660_v29 = vshll.u32 %v419_v59, 16 }
  0x87   : > { %11913 = vmatmul.mubr.msk.bf16.gmra.mrb[20].mxu0 %vm1351_vm9, %v10836_v12  ;;  %v1218_v17 = vsel %vm13350_vm8, %v1213_v13, %v1217_v51  ;;  %v1228_v23 = vsel %vm13350_vm8, %v1223_v30, %v1227_v46  ;;  %v645_v36 = vor.u32 %v643_v6, %v642_v47  ;;  %v647_v40 = vrot.slane %v642_v47, 4  ;;  %v855_v30 = vld [vmem:[#allocation2 + $0xbc] sm:$0x1] }
  0x88   : > { %v10837_v44 = vcombine.low %v1218_v17, %v1228_v23  ;;  %v654_v45 = vor.u32 %v652_v24, %v651_v22  ;;  %v655_v50 = vrot.slane %v651_v22, 4  ;;  %v659_v54 = vrot.slane %v657_v25, 7 }
  0x89   : > { %v646_v39 = vsel %vm13370_vm12, %v638_v63, %v645_v36  ;;  %v842_v55 = vsel %vm13364_vm11, %v647_v40, %v841_v9  ;;  %v666_v59 = vshrl.u32 %v420_v15, 16  ;;  %v669_v60 = vshll.u32 %v420_v15, 16  ;;  %v851_v63 = vld [vmem:[#allocation2 + $0xb4] sm:$0xf] }
  0x8a   : > { %11916 = vmatprep.mubr.msk.bf16.mxu0 %vm1351_vm9, %v10837_v44  ;;  %840 = vst.msk [vmem:[#allocation2 + $0xa0] sm:$0xf] %vm280_vm1, %v646_v39  ;;  %843 = vst [vmem:[#allocation2 + $0xa4] sm:$0x1] %v842_v55  ;;  %v662_v51 = vor.u32 %v660_v29, %v659_v54  ;;  %v664_v61 = vrot.slane %v659_v54, 4  ;;  %v845_v62 = vsel %vm13356_vm10, %v654_v45, %v844_v49  ;;  %v674_v41 = vshrl.u32 %v421_v3, 16 }
  0x8b   : > { %846 = vst [vmem:[#allocation2 + $0xa8] sm:$0xf] %v845_v62  ;;  %v668_v0 = vrot.slane %v666_v59, 7  ;;  %v677_v46 = vshll.u32 %v421_v3, 16  ;;  %v10866_v3 = vcombine.low %v13565_v43, %v13584_v10  ;;  %v10867_v17 = vcombine.low %v13592_v14, %v13601_v27  ;;  %v13115_v59 = vld [vmem:[#allocation2 + $0x10] sm:$0xf] }
  0x8c   : > { %v13671_v1 = vld [vmem:[#allocation2 + $0x9c] sm:$0xf]  ;;  %v663_v5 = vsel %vm13370_vm12, %v655_v50, %v662_v51  ;;  %v849_v6 = vsel %vm13364_vm11, %v664_v61, %v848_v42  ;;  %v676_v7 = vrot.slane %v674_v41, 7  ;;  %v10868_v42 = vcombine.low %v13611_v48, %v13617_v21 }
  0x8d   : > { %v1230_v9 = vshrl.u32 %v13671_v1, 16  ;;  %v1233_v11 = vshll.u32 %v13671_v1, 16  ;;  %847 = vst.msk [vmem:[#allocation2 + $0xac] sm:$0xf] %vm280_vm1, %v663_v5  ;;  %850 = vst [vmem:[#allocation2 + $0xb0] sm:$0x1] %v849_v6  ;;  %v671_v12 = vor.u32 %v669_v60, %v668_v0  ;;  %v10869_v44 = vcombine.low %v13632_v31, %v13628_v8 }
  0x8e   : > { %v672_v13 = vrot.slane %v668_v0, 4  ;;  %v679_v47 = vor.u32 %v677_v46, %v676_v7  ;;  %v681_v49 = vrot.slane %v676_v7, 4  ;;  %v1917_v60 = vrot.slane %v13115_v59, 5 }
  0x8f   : > { %v1232_v15 = vrot.slane %v1230_v9, 4  ;;  %v1235_v22 = vrot.slane %v1233_v11, 5  ;;  %v852_v24 = vsel %vm13356_vm10, %v671_v12, %v851_v63  ;;  %vm1905_vm13 = vcmask 1042432  }
  0x90   : > { %v680_v25 = vsel %vm13370_vm12, %v672_v13, %v679_v47  ;;  %853 = vst [vmem:[#allocation2 + $0xb4] sm:$0xf] %v852_v24  ;;  %v856_v29 = vsel %vm13364_vm11, %v681_v49, %v855_v30  ;;  %vm1906_vm14 = vcmask 1046532   ;;  %v1920_v30 = vrot.slane %v13116_v2, 5 }
  0x91   : > { %v13690_v23 = vld [vmem:[#allocation2 + $0xa0] sm:$0xf]  ;;  %v13692_v36 = vld [vmem:[#allocation2 + $0xa4] sm:$0x1]  ;;  %v1236_v40 = vor.u32 %v1235_v22, %v1232_v15  ;;  %854 = vst.msk [vmem:[#allocation2 + $0xb8] sm:$0xf] %vm280_vm1, %v680_v25  ;;  %vm13741_vm15 = vmor %vm1905_vm13, %vm1906_vm14 }
  0x92   : > { %857 = vst [vmem:[#allocation2 + $0xbc] sm:$0x1] %v856_v29  ;;  %v1239_v45 = vshll.u32 %v13690_v23, 16  ;;  %v1243_v50 = vshrl.u32 %v13690_v23, 16  ;;  %v1249_v54 = vshll.u32 %v13692_v36, 16  ;;  %v1919_v2 = vrot.slane %v1917_v60, 4 }
  0x93   : > { %v13702_v39 = vld [vmem:[#allocation2 + $0xa8] sm:$0xf]  ;;  %v1237_v62 = vrot.slane %v1236_v40, 4  ;;  %v1980_v32 = vrot.slane %v13601_v27, 5  ;;  %v1857_v27 = vld [vmem:[#allocation2] sm:$0xe] }
  0x94   : > { %v1254_v51 = vshrl.u32 %v13702_v39, 16  ;;  %v1257_v61 = vshll.u32 %v13702_v39, 16  ;;  %v1241_v41 = vrot.slane %v1239_v45, 5  ;;  %v1245_v0 = vrot.slane %v1243_v50, 4  ;;  %v13708_v46 = vld [vmem:[#allocation2 + $0xac] sm:$0xf] }
  0x95   : > { %v13710_v63 = vld [vmem:[#allocation2 + $0xb0] sm:$0x1]  ;;  %v1263_v7 = vshll.u32 %v13708_v46, 16  ;;  %v1267_v9 = vshrl.u32 %v13708_v46, 16  ;;  %v1251_v12 = vrot.slane %v1249_v54, 5  ;;  %vm6598_vm2 = vcmask 1043456  }
  0x96   : > { %v1256_v5 = vrot.slane %v1254_v51, 4  ;;  %v1259_v6 = vrot.slane %v1257_v61, 5  ;;  %v1246_v11 = vor.u32 %v1245_v0, %v1241_v41  ;;  %v1273_v13 = vshll.u32 %v13710_v63, 16  ;;  %v1858_v61 = vld [vmem:[#allocation2 + $0xc] sm:$0xe] }
  0x97   : > { %v1265_v49 = vrot.slane %v1263_v7, 5  ;;  %v1269_v15 = vrot.slane %v1267_v9, 4  ;;  %v13717_v22 = vld [vmem:[#allocation2 + $0xb4] sm:$0xf]  ;;  %v1242_v24 = vsel %vm13350_vm8, %v1237_v62, %v1241_v41  ;;  %vm6549_vm3 = vcmask 64512  }
  0x98   : > { %v1260_v47 = vor.u32 %v1259_v6, %v1256_v5  ;;  %v1247_v25 = vrot.slane %v1246_v11, 4  ;;  %v1275_v29 = vrot.slane %v1273_v13, 5  ;;  %v13721_v40 = vld [vmem:[#allocation2 + $0xb8] sm:$0xf]  ;;  %v1278_v59 = vshrl.u32 %v13717_v22, 16 }
  0x99   : > { %v13723_v45 = vld [vmem:[#allocation2 + $0xbc] sm:$0x1]  ;;  %v1270_v54 = vor.u32 %v1269_v15, %v1265_v49  ;;  %v1281_v51 = vshll.u32 %v13717_v22, 16  ;;  %v1287_v5 = vshll.u32 %v13721_v40, 16  ;;  %v1291_v62 = vshrl.u32 %v13721_v40, 16 }
  0x9a   : > { %v1261_v50 = vrot.slane %v1260_v47, 4  ;;  %v1252_v0 = vsel %vm13350_vm8, %v1247_v25, %v1251_v12  ;;  %v1297_v41 = vshll.u32 %v13723_v45, 16  ;;  %v1280_v11 = vrot.slane %v1278_v59, 4 }
  0x9b   : > { %v10838_v6 = vcombine.low %v1242_v24, %v1252_v0  ;;  %v1271_v9 = vrot.slane %v1270_v54, 4  ;;  %v1283_v13 = vrot.slane %v1281_v51, 5  ;;  %v1289_v47 = vrot.slane %v1287_v5, 5 }
  0x9c   : > { %v1266_v7 = vsel %vm13350_vm8, %v1261_v50, %v1265_v49  ;;  %v1293_v15 = vrot.slane %v1291_v62, 4  ;;  %v1299_v25 = vrot.slane %v1297_v41, 5  ;;  %v10872_v55 = vcombine.low %v13717_v22, %v13721_v40  ;;  %v13129_v22 = vld [vmem:[#allocation2 + $0x2c] sm:$0x1] }
  0x9d   : > { %11917 = vmatmul.mubr.msk.bf16.gmra.mrb[24].mxu0 %vm1351_vm9, %v10838_v6  ;;  %v1276_v12 = vsel %vm13350_vm8, %v1271_v9, %v1275_v29  ;;  %v1284_v50 = vor.u32 %v1283_v13, %v1280_v11  ;;  %v10890_v59 = vrot.slane %v1858_v61, 9  ;;  %v13752_v5 = vsel %vm13741_vm15, %v1919_v2, %v1920_v30  ;;  %v13117_v61 = vld [vmem:[#allocation2] sm:$0xf]  ;;  %v13758_v6 = vld [vmem:[#allocation2 + $0x4] sm:$0xf] }
  0x9e   : > { %v10839_v24 = vcombine.low %v1266_v7, %v1276_v12  ;;  %v1294_v54 = vor.u32 %v1293_v15, %v1289_v47  ;;  %v10857_v7 = vcombine.low %v13117_v61, %v13758_v6  ;;  %v1866_v30 = vld [vmem:[#allocation2 + $0x6c] sm:$0xe]  ;;  %v13119_v11 = vld [vmem:[#allocation2 + $0x18] sm:$0xf]  ;;  %v13765_v13 = vld [vmem:[#allocation2 + $0x1c] sm:$0xf] }
  0x9f   : > { %v1285_v51 = vrot.slane %v1284_v50, 4  ;;  %v13748_v29 = vsel %vm13741_vm15, %v10890_v59, %v1917_v60  ;;  %v2119_v15 = vsel %vm1400_vm0, %v13493_v35, 0  ;;  %v13773_v12 = vld [vmem:[%s17168_s1 + $0x6] sm:$0x3]  ;;  %v1867_v50 = vld [vmem:[#allocation2 + $0x78] sm:$0xe] }
  0xa0   : > { %11920 = vmatprep.mubr.msk.bf16.mxu0 %vm1351_vm9, %v10839_v24  ;;  %v1295_v0 = vrot.slane %v1294_v54, 4  ;;  %v10907_v9 = vcombine.low %v13748_v29, %v13752_v5  ;;  %v1973_v24 = vrot.slane %v13584_v10, 5  ;;  %v1868_v54 = vld [vmem:[#allocation2 + $0x84] sm:$0xe]  ;;  %v1976_v2 = vrot.slane %v13586_v53, 5 }
  0xa1   : > { %v1290_v62 = vsel %vm13350_vm8, %v1285_v51, %v1289_v47  ;;  %v10859_v47 = vcombine.low %v13119_v11, %v13765_v13  ;;  %v13121_v51 = vld [vmem:[#allocation2 + $0x24] sm:$0xf]  ;;  %v10899_v19 = vrot.slane %v1867_v50, 9  ;;  %v13793_v61 = vld [vmem:[#allocation2 + $0x34] sm:$0xf]  ;;  %v1987_v11 = vrot.slane %v13617_v21, 5 }
  0xa2   : > { %v1300_v41 = vsel %vm13350_vm8, %v1295_v0, %v1299_v25  ;;  %v10898_v25 = vrot.slane %v1866_v30, 9  ;;  %v1975_v59 = vrot.slane %v1973_v24, 4  ;;  %v13786_v0 = vld [vmem:[#allocation2 + $0x28] sm:$0xf]  ;;  %v10900_v30 = vrot.slane %v1868_v54, 9 }
  0xa3   : > { %v10840_v60 = vcombine.low %v1290_v62, %v1300_v41  ;;  %v10860_v62 = vcombine.low %v13121_v51, %v13786_v0  ;;  %v1869_v41 = vld [vmem:[#allocation2 + $0x90] sm:$0xe]  ;;  %v1994_v54 = vrot.slane %v13628_v8, 5  ;;  %v13127_v21 = vld [vmem:[#allocation2 + $0x8] sm:$0x1] }
  0xa4   : > { %v13783_v35 = vsel %vm13741_vm15, %v10898_v25, %v1973_v24  ;;  %v13798_v53 = vsel %vm13741_vm15, %v1975_v59, %v1976_v2  ;;  %v1982_v25 = vrot.slane %v1980_v32, 4  ;;  %v1990_v24 = vrot.slane %v13619_v57, 5  ;;  %v1862_v29 = vld [vmem:[#allocation2 + $0x3c] sm:$0xe]  ;;  %v13131_v5 = vld [vmem:[#allocation2 + $0x4c] sm:$0xf] }
  0xa5   : > { %11921 = vmatmul.mubr.msk.bf16.gmra.mrb[28].mxu0 %vm1351_vm9, %v10840_v60  ;;  %v13810_v50 = vsel %vm13741_vm15, %v10900_v30, %v1987_v11  ;;  %v1989_v59 = vrot.slane %v1987_v11, 4  ;;  %v10901_v2 = vrot.slane %v1869_v41, 9  ;;  %v1996_v11 = vrot.slane %v1994_v54, 4 }
  0xa6   : > { %11926 = vmatprep.mubr.msk.bf16.mxu0 %vm1351_vm9, %v10857_v7  ;;  %v13124_v7 = vld [vmem:[#allocation2 + $0x30] sm:$0xf]  ;;  %v2004_v57 = vrot.slane %v13692_v36, 5  ;;  %v2015_v36 = vrot.slane %v13721_v40, 5  ;;  %v1934_v40 = vrot.slane %v13129_v22, 5 }
  0xa7   : > { %v10861_v60 = vcombine.low %v13124_v7, %v13793_v61  ;;  %v1997_v7 = vrot.slane %v13634_v18, 5  ;;  %v13823_v30 = vsel %vm13741_vm15, %v1989_v59, %v1990_v24  ;;  %v13827_v41 = vsel %vm13741_vm15, %v10901_v2, %v1994_v54  ;;  %v13858_v18 = vld [vmem:[#allocation2 + $0x40] sm:$0xf] }
  0xa8   : > { %v2008_v2 = vrot.slane %v13708_v46, 5 }
  0xa9   : > { %v13840_v24 = vsel %vm13741_vm15, %v1996_v11, %v1997_v7  ;;  %v13125_v11 = vld [vmem:[#allocation2 + $0x3c] sm:$0xf] }
  0xaa   : > { %v10862_v54 = vcombine.low %v13125_v11, %v13858_v18 }
  0xad   : > { %11927 = vmatmul.mubr.msk.bf16.vlgmr.msra.gmra.mrb[0].mxu0 %vm1351_vm9, %v10858_v58  ;;  %v1983_v58 = vrot.slane %v13606_v33, 5  ;;  %v13805_v33 = vsel %vm13741_vm15, %v10899_v19, %v1980_v32  ;;  %v2001_v19 = vrot.slane %v13690_v23, 5  ;;  %v1871_v32 = vld [vmem:[#allocation2 + $0xa8] sm:$0xe] }
  0xae   : > { %11959 = vmatpush3.bf16.msra.mxu0 %v2119_v15  ;;  %11930 = vmatprep.mubr.msk.bf16.mxu0 %vm1351_vm9, %v10859_v47  ;;  %v1870_v47 = vld [vmem:[#allocation2 + $0x9c] sm:$0xe]  ;;  %v10903_v59 = vrot.slane %v1871_v32, 9  ;;  %v2010_v32 = vrot.slane %v2008_v2, 4 }
  0xaf   : > { %13017 = vmatprep.subr.msk.bf16.mxu0 %vm1400_vm0, %v13773_v12  ;;  %v13815_v51 = vsel %vm13741_vm15, %v1982_v25, %v1983_v58  ;;  %v10902_v15 = vrot.slane %v1870_v47, 9  ;;  %v1872_v58 = vld [vmem:[#allocation2 + $0xb4] sm:$0xe]  ;;  %v2003_v25 = vrot.slane %v2001_v19, 4 }
  0xb0   : > { %v13855_v7 = vsel %vm13741_vm15, %v10903_v59, %v2008_v2 }
  0xb1   : > { %v13834_v47 = vsel %vm13741_vm15, %v10902_v15, %v2001_v19  ;;  %v13848_v15 = vsel %vm13741_vm15, %v2003_v25, %v2004_v57  ;;  %v10904_v19 = vrot.slane %v1872_v58, 9  ;;  %v2017_v58 = vrot.slane %v2015_v36, 4 }
  0xb2   : > { %v10863_v25 = vcombine.low %v13484_v26, %v13495_v37  ;;  %v10864_v26 = vcombine.low %v13508_v52, %v13513_v56  ;;  %v10865_v37 = vcombine.low %v13522_v4, %v13530_v16  ;;  %v1910_v4 = vrot.slane %v13758_v6, 5 }
  0xb3   : > { %v13863_v57 = vsel %vm13741_vm15, %v10904_v19, %v2015_v36  ;;  %v858_v36 = vld [vmem:[#allocation2 + $0xc0] sm:$0xf]  ;;  %v17302_v6 = vcombine.low %v13702_v39, %v13708_v46  ;;  %v1931_v39 = vrot.slane %v13786_v0, 5 }
  0xb5   : > { %11931 = vmatmul.mubr.msk.bf16.gmra.mrb[4].mxu0 %vm1351_vm9, %v10860_v62  ;;  %v2011_v62 = vrot.slane %v13710_v63, 5  ;;  %v2018_v63 = vrot.slane %v13723_v45, 5 }
  0xb6   : > { %11934 = vmatprep.mubr.msk.bf16.mxu0 %vm1351_vm9, %v10861_v60  ;;  %v10919_v60 = vcombine.low %v13834_v47, %v13848_v15  ;;  %v14026_v47 = vld [vmem:[#allocation2 + $0x38] sm:$0x1]  ;;  %v3485_v15 = vrot.slane %v14023_v34, 5 }
  0xb7   : > { %v13869_v59 = vsel %vm13741_vm15, %v2010_v32, %v2011_v62  ;;  %v13875_v2 = vsel %vm13741_vm15, %v2017_v58, %v2018_v63  ;;  %v422_v62 = vld [vmem:[%s13344_s10 + $0x78] sm:$0xf]  ;;  %v10889_v32 = vrot.slane %v1857_v27, 9  ;;  %v1912_v63 = vrot.slane %v1910_v4, 4 }
  0xb8   : > { %v10920_v45 = vcombine.low %v13855_v7, %v13869_v59  ;;  %v10921_v19 = vcombine.low %v13863_v57, %v13875_v2  ;;  %v683_v52 = vshrl.u32 %v422_v62, 16  ;;  %v686_v43 = vshll.u32 %v422_v62, 16  ;;  %v1859_v58 = vld [vmem:[#allocation2 + $0x18] sm:$0xe]  ;;  %v13130_v27 = vld [vmem:[#allocation2 + $0x38] sm:$0x1] }
  0xb9   : > { %v1911_v11 = vsel %vm13741_vm15, %v10889_v32, %v1910_v4  ;;  %v3488_v7 = vrot.slane %v14026_v47, 5  ;;  %v3487_v57 = vrot.slane %v3485_v15, 4  ;;  %v13045_v59 = vld [vmem:[#allocation2 + $0x30] sm:$0xff]   ;;  %v13046_v2 = vld [vmem:[#allocation2 + $0x3c] sm:$0xff]  }
  0xba   : > { %v685_v16 = vrot.slane %v683_v52, 7  ;;  %v1938_v52 = vrot.slane %v13793_v61, 5 }
  0xbc   : > { %v1940_v0 = vrot.slane %v1938_v52, 4 }
  0xbd   : > { %11935 = vmatmul.mubr.msk.bf16.gmra.mrb[8].mxu0 %vm1351_vm9, %v10862_v54  ;;  %v423_v54 = vld [vmem:[%s13344_s10 + $0x7c] sm:$0xf] }
  0xbe   : > { %11938 = vmatprep.mubr.msk.bf16.mxu0 %vm1351_vm9, %v10863_v25  ;;  %v691_v56 = vshrl.u32 %v423_v54, 16  ;;  %v694_v14 = vshll.u32 %v423_v54, 16  ;;  %v1924_v25 = vrot.slane %v13765_v13, 5  ;;  %v1860_v54 = vld [vmem:[#allocation2 + $0x24] sm:$0xe] }
  0xc0   : > { %v13906_v10 = vrot.slane %v691_v56, 7  ;;  %v1926_v62 = vrot.slane %v1924_v25, 4  ;;  %v1861_v56 = vld [vmem:[#allocation2 + $0x30] sm:$0xe] }
  0xc2   : > { %v696_v48 = vor.u32 %v694_v14, %v13906_v10  ;;  %v10893_v14 = vrot.slane %v1861_v56, 9 }
  0xc5   : > { %11939 = vmatmul.mubr.msk.bf16.gmra.mrb[12].mxu0 %vm1351_vm9, %v10864_v26 }
  0xc6   : > { %11942 = vmatprep.mubr.msk.bf16.mxu0 %vm1351_vm9, %v10865_v37  ;;  %v10891_v37 = vrot.slane %v1859_v58, 9 }
  0xc8   : > { %v1925_v46 = vsel %vm13741_vm15, %v10891_v37, %v1924_v25  ;;  %v13134_v37 = vld [vmem:[#allocation2 + $0x58] sm:$0xf] }
  0xcd   : > { %11943 = vmatmul.mubr.msk.bf16.gmra.mrb[16].mxu0 %vm1351_vm9, %v10866_v3  ;;  %v688_v3 = vor.u32 %v686_v43, %v685_v16  ;;  %v1933_v43 = vrot.slane %v1931_v39, 4 }
  0xce   : > { %11946 = vmatprep.mubr.msk.bf16.mxu0 %vm1351_vm9, %v10867_v17  ;;  %v689_v17 = vrot.slane %v685_v16, 4  ;;  %v10892_v16 = vrot.slane %v1860_v54, 9  ;;  %v1865_v54 = vld [vmem:[#allocation2 + $0x60] sm:$0xe] }
  0xcf   : > { %v859_v31 = vsel %vm13356_vm10, %v688_v3, %v858_v36  ;;  %v1941_v3 = vrot.slane %v13130_v27, 5  ;;  %v1935_v61 = vsel %vm13741_vm15, %v1933_v43, %v1934_v40  ;;  %v1863_v36 = vld [vmem:[#allocation2 + $0x48] sm:$0xe]  ;;  %v13136_v43 = vld [vmem:[#allocation2 + $0x5c] sm:$0x1]  ;;  %v10897_v40 = vrot.slane %v1865_v54, 9 }
  0xd0   : > { %v697_v8 = vsel %vm13370_vm12, %v689_v17, %v696_v48  ;;  %860 = vst [vmem:[#allocation2 + $0xc0] sm:$0xf] %v859_v31  ;;  %v13943_v17 = vld [vmem:[%s17168_s1 + $0x8] sm:$0x3]  ;;  %v1945_v48 = vrot.slane %v13858_v18, 5  ;;  %v10895_v18 = vrot.slane %v1863_v36, 9 }
  0xd1   : > { %861 = vst.msk [vmem:[#allocation2 + $0xc4] sm:$0xf] %vm280_vm1, %v697_v8  ;;  %v10894_v8 = vrot.slane %v1862_v29, 9  ;;  %v1962_v22 = vrot.slane %v13136_v43, 5  ;;  %v17304_v29 = vcombine.low %v13805_v33, %v13815_v51  ;;  %v698_v36 = vrot.slane %v13906_v10, 4  ;;  %v13042_v33 = vld [vmem:[#allocation2 + $0xc] sm:$0xff]  }
  0xd2   : > { %v1947_v31 = vrot.slane %v1945_v48, 4  ;;  %v13044_v51 = vld [vmem:[#allocation2 + $0x24] sm:$0xff]   ;;  %v3405_v54 = vld [vmem:[#allocation2 + $0x60] sm:$0xe]  ;;  %v2675_v43 = vld [vmem:[#allocation2 + $0x18] sm:$0xf] }
  0xd3   : > { %v1946_v25 = vsel %vm13741_vm15, %v10894_v8, %v1945_v48  ;;  %v13055_v10 = vld [vmem:[#allocation2 + $0xa8] sm:$0xff]   ;;  %vm336_vm1 = vcmask 60416  }
  0xd4   : > { %vm15184_vm4 = vmand %vm336_vm1, %vm749_vm7 }
  0xd5   : > { %11947 = vmatmul.mubr.msk.bf16.gmra.mrb[20].mxu0 %vm1351_vm9, %v10868_v42  ;;  %v1913_v42 = vrot.slane %v13127_v21, 5  ;;  %v1939_v21 = vsel %vm13741_vm15, %v10893_v14, %v1938_v52  ;;  %v13137_v14 = vld [vmem:[#allocation2 + $0x68] sm:$0x1] }
  0xd6   : > { %11950 = vmatprep.mubr.msk.bf16.mxu0 %vm1351_vm9, %v10869_v44  ;;  %v17301_v44 = vcombine.low %v13671_v1, %v13690_v23  ;;  %v13128_v1 = vld [vmem:[#allocation2 + $0x20] sm:$0x1] }
  0xd7   : > { %v1914_v28 = vsel %vm13741_vm15, %v1912_v63, %v1913_v42  ;;  %v1927_v23 = vrot.slane %v13128_v1, 5  ;;  %v1942_v42 = vsel %vm13741_vm15, %v1940_v0, %v1941_v3  ;;  %v1969_v0 = vrot.slane %v13137_v14, 5  ;;  %v14074_v14 = vld [vmem:[#allocation2 + $0x14] sm:$0x1] }
  0xd8   : > { %v10906_v26 = vcombine.low %v1911_v11, %v1914_v28  ;;  %v10910_v63 = vcombine.low %v1939_v21, %v1942_v42  ;;  %v13133_v28 = vld [vmem:[#allocation2 + $0x50] sm:$0x1]  ;;  %v17303_v42 = vcombine.low %v13783_v35, %v13798_v53  ;;  %v862_v35 = vld [vmem:[#allocation2 + $0xc8] sm:$0x1] }
  0xd9   : > { %v1928_v13 = vsel %vm13741_vm15, %v1926_v62, %v1927_v23  ;;  %v1955_v58 = vrot.slane %v13133_v28, 5  ;;  %v1959_v62 = vrot.slane %v13134_v37, 5  ;;  %v863_v53 = vsel %vm13364_vm11, %v698_v36, %v862_v35  ;;  %v2678_v35 = vld [vmem:[#allocation2 + $0x24] sm:$0xf] }
  0xda   : > { %v10908_v4 = vcombine.low %v1925_v46, %v1928_v13  ;;  %v13135_v46 = vld [vmem:[#allocation2 + $0x64] sm:$0xf]  ;;  %864 = vst [vmem:[#allocation2 + $0xc8] sm:$0x1] %v863_v53 }
  0xdb   : > { %v1966_v13 = vrot.slane %v13135_v46, 5  ;;  %v14065_v46 = vld [vmem:[#allocation2 + $0x64] sm:$0xf] }
  0xdd   : > { %11951 = vmatmul.mubr.msk.bf16.gmra.mrb[24].mxu0 %vm1351_vm9, %v17301_v44  ;;  %v13132_v44 = vld [vmem:[#allocation2 + $0x44] sm:$0x1] }
  0xde   : > { %11954 = vmatprep.mubr.msk.bf16.mxu0 %vm1351_vm9, %v17302_v6  ;;  %v1948_v6 = vrot.slane %v13132_v44, 5 }
  0xe5   : > { %11955 = vmatmul.mubr.msk.bf16.gmra.mrb[28].mxu0 %vm1351_vm9, %v10872_v55  ;;  %v2477_v55 = vsel %vm1400_vm0, %v13773_v12, 0  ;;  %v1932_v12 = vsel %vm13741_vm15, %v10892_v16, %v1931_v39  ;;  %v1864_v39 = vld [vmem:[#allocation2 + $0x54] sm:$0xe]  ;;  %v1961_v16 = vrot.slane %v1959_v62, 4 }
  0xe6   : > { %11960 = vmatprep.mubr.msk.bf16.mxu0 %vm1351_vm9, %v10906_v26  ;;  %v10909_v32 = vcombine.low %v1932_v12, %v1935_v61  ;;  %v1949_v26 = vsel %vm13741_vm15, %v1947_v31, %v1948_v6  ;;  %v1967_v12 = vsel %vm13741_vm15, %v10897_v40, %v1966_v13 }
  0xe7   : > { %v10911_v52 = vcombine.low %v1946_v25, %v1949_v26  ;;  %v1963_v3 = vsel %vm13741_vm15, %v1961_v16, %v1962_v22  ;;  %v14054_v25 = vld [vmem:[#allocation2 + $0x10] sm:$0xf]  ;;  %v14072_v22 = vld [vmem:[#allocation2 + $0x1c] sm:$0xf] }
  0xe8   : > { %v2754_v36 = vshll.u32 %v14072_v22, 16 }
  0xed   : > { %11961 = vmatmul.mubr.msk.bf16.vlgmr.msra.gmra.mrb[0].mxu0 %vm1351_vm9, %v10907_v9  ;;  %v1952_v9 = vrot.slane %v13131_v5, 5  ;;  %v17305_v5 = vcombine.low %v13810_v50, %v13823_v30  ;;  %v13043_v50 = vld [vmem:[#allocation2 + $0x18] sm:$0xff]   ;;  %v3203_v30 = vsel %vm1400_vm0, %v13943_v17, 0 }
  0xee   : > { %11993 = vmatpush3.bf16.msra.mxu0 %v2477_v55  ;;  %11964 = vmatprep.mubr.msk.bf16.mxu0 %vm1351_vm9, %v10908_v4  ;;  %v10896_v4 = vrot.slane %v1864_v39, 9  ;;  %v1968_v55 = vrot.slane %v1966_v13, 4  ;;  %v2734_v39 = vshrl.u32 %v14054_v25, 16  ;;  %v14067_v13 = vld [vmem:[#allocation2 + $0x68] sm:$0x1] }
  0xef   : > { %13018 = vmatprep.subr.msk.bf16.mxu0 %vm1400_vm0, %v13943_v17  ;;  %v1954_v11 = vrot.slane %v1952_v9, 4  ;;  %v1953_v1 = vsel %vm13741_vm15, %v10895_v18, %v1952_v9  ;;  %v17306_v9 = vcombine.low %v13827_v41, %v13840_v24  ;;  %v14020_v41 = vld [vmem:[%s17168_s1 + $0xa] sm:$0x3]  ;;  %v3401_v24 = vld [vmem:[#allocation2 + $0x30] sm:$0xe] }
  0xf0   : > { %v1960_v27 = vsel %vm13741_vm15, %v10896_v4, %v1959_v62  ;;  %v1970_v61 = vsel %vm13741_vm15, %v1968_v55, %v1969_v0  ;;  %v14043_v17 = vld [vmem:[#allocation2 + $0x4c] sm:$0xf]  ;;  %v11011_v4 = vrot.slane %v3405_v54, 9  ;;  %v13049_v55 = vld [vmem:[#allocation2 + $0x60] sm:$0xff]   ;;  %v2772_v54 = vshll.u32 %v2678_v35, 16 }
  0xf1   : > { %v1956_v23 = vsel %vm13741_vm15, %v1954_v11, %v1955_v58  ;;  %v10913_v48 = vcombine.low %v1960_v27, %v1963_v3  ;;  %v10914_v21 = vcombine.low %v1967_v12, %v1970_v61  ;;  %v3499_v8 = vrot.slane %v14043_v17, 5  ;;  %v13047_v18 = vld [vmem:[#allocation2 + $0x48] sm:$0xff]   ;;  %v13048_v58 = vld [vmem:[#allocation2 + $0x54] sm:$0xff]  }
  0xf2   : > { %v10912_v56 = vcombine.low %v1953_v1, %v1956_v23  ;;  %v2672_v11 = vld [vmem:[#allocation2 + $0xc] sm:$0xf]  ;;  %v2730_v23 = vshll.u32 %v14054_v25, 16  ;;  %v2736_v3 = vrot.slane %v2734_v39, 4  ;;  %v13052_v39 = vld [vmem:[#allocation2 + $0x84] sm:$0xff]  }
  0xf3   : > { %v3501_v6 = vrot.slane %v3499_v8, 4  ;;  %v2721_v62 = vshrl.u32 %v2672_v11, 16  ;;  %v2724_v1 = vshll.u32 %v2672_v11, 16  ;;  %v13050_v61 = vld [vmem:[#allocation2 + $0x6c] sm:$0xff]   ;;  %v13051_v11 = vld [vmem:[#allocation2 + $0x78] sm:$0xff]  }
  0xf4   : > { %v14076_v27 = vrot.slane %v2730_v23, 5 }
  0xf5   : > { %11965 = vmatmul.mubr.msk.bf16.gmra.mrb[4].mxu0 %vm1351_vm9, %v10909_v32  ;;  %v14045_v32 = vld [vmem:[#allocation2 + $0x50] sm:$0x1]  ;;  %v2723_v16 = vrot.slane %v2721_v62, 4  ;;  %v2726_v0 = vrot.slane %v2724_v1, 5 }
  0xf6   : > { %11968 = vmatprep.mubr.msk.bf16.mxu0 %vm1351_vm9, %v10910_v63  ;;  %v3403_v63 = vld [vmem:[#allocation2 + $0x48] sm:$0xe]  ;;  %v3502_v31 = vrot.slane %v14045_v32, 5 }
  0xf7   : > { %v11009_v44 = vrot.slane %v3403_v63, 9  ;;  %v2727_v53 = vor.u32 %v2726_v0, %v2723_v16  ;;  %v14129_v0 = vld [vmem:[#allocation2 + $0x88] sm:$0xf] }
  0xf8   : > { %v14058_v26 = vsel %vm13741_vm15, %v3501_v6, %v3502_v31  ;;  %v14106_v31 = vrot.slane %v2754_v36, 5  ;;  %v2681_v6 = vld [vmem:[#allocation2 + $0x30] sm:$0xf]  ;;  %v3534_v36 = vrot.slane %v14129_v0, 5 }
  0xf9   : > { %v14052_v28 = vsel %vm13741_vm15, %v11009_v44, %v3499_v8  ;;  %17310 = vst [vmem:[#allocation8_spill] sm:$0xff] %v14058_v26 }
  0xfa   : > { %17309 = vst [vmem:[#allocation7_spill] sm:$0xff] %v14052_v28  ;;  %v14247_v28 = vld [vmem:[#allocation2 + $0x58] sm:$0xf] }
  0xfd   : > { %11969 = vmatmul.mubr.msk.bf16.gmra.mrb[8].mxu0 %vm1351_vm9, %v10911_v52  ;;  %v3513_v52 = vrot.slane %v14065_v46, 5 }
  0xfe   : > { %11972 = vmatprep.mubr.msk.bf16.mxu0 %vm1351_vm9, %v10912_v56  ;;  %v3516_v56 = vrot.slane %v14067_v13, 5 }
  0xff   : > { %v3515_v40 = vrot.slane %v3513_v52, 4  ;;  %v14080_v12 = vsel %vm13741_vm15, %v11011_v4, %v3513_v52 }
 0x100   : > { %17311 = vst [vmem:[#allocation9_spill] sm:$0xff] %v14080_v12 }
 0x105   : > { %11973 = vmatmul.mubr.msk.bf16.gmra.mrb[12].mxu0 %vm1351_vm9, %v10913_v48  ;;  %v14084_v48 = vsel %vm13741_vm15, %v3515_v40, %v3516_v56  ;;  %v2796_v40 = vshll.u32 %v2681_v6, 16 }
 0x106   : > { %11976 = vmatprep.mubr.msk.bf16.mxu0 %vm1351_vm9, %v10914_v21  ;;  %17312 = vst [vmem:[#allocation10_spill] sm:$0xff] %v14084_v48  ;;  %v2745_v21 = vshrl.u32 %v2675_v43, 16 }
 0x10d   : > { %11977 = vmatmul.mubr.msk.bf16.gmra.mrb[16].mxu0 %vm1351_vm9, %v17303_v42  ;;  %v2748_v42 = vshll.u32 %v2675_v43, 16  ;;  %v2793_v43 = vshrl.u32 %v2681_v6, 16  ;;  %v2798_v6 = vrot.slane %v2796_v40, 5 }
 0x10e   : > { %11980 = vmatprep.mubr.msk.bf16.mxu0 %vm1351_vm9, %v17304_v29 }
 0x115   : > { %11981 = vmatmul.mubr.msk.bf16.gmra.mrb[20].mxu0 %vm1351_vm9, %v17305_v5  ;;  %v2740_v5 = vshll.u32 %v14074_v14, 16 }
 0x116   : > { %11984 = vmatprep.mubr.msk.bf16.mxu0 %vm1351_vm9, %v17306_v9  ;;  %v14089_v9 = vld [vmem:[#allocation2 + $0x20] sm:$0x1] }
 0x117   : > { %v14104_v8 = vrot.slane %v2740_v5, 5  ;;  %v2764_v44 = vshll.u32 %v14089_v9, 16  ;;  %v3408_v5 = vld [vmem:[#allocation2 + $0x84] sm:$0xe] }
 0x119   : > { %v14161_v40 = vrot.slane %v2764_v44, 5  ;;  %v3411_v44 = vld [vmem:[#allocation2 + $0xa8] sm:$0xe] }
 0x11d   : > { %11985 = vmatmul.mubr.msk.bf16.gmra.mrb[24].mxu0 %vm1351_vm9, %v10919_v60  ;;  %v11007_v60 = vrot.slane %v3401_v24, 9  ;;  %v3407_v24 = vld [vmem:[#allocation2 + $0x78] sm:$0xe] }
 0x11e   : > { %11988 = vmatprep.mubr.msk.bf16.mxu0 %vm1351_vm9, %v10920_v45  ;;  %v11013_v63 = vrot.slane %v3407_v24, 9 }
 0x11f   : > { %v14034_v45 = vsel %vm13741_vm15, %v11007_v60, %v3485_v15 }
 0x120   : > { %17307 = vst [vmem:[#allocation5_spill] sm:$0xff] %v14034_v45  ;;  %v2850_v45 = vshll.u32 %v14043_v17, 16 }
 0x125   : > { %11989 = vmatmul.mubr.msk.bf16.gmra.mrb[28].mxu0 %vm1351_vm9, %v10921_v19  ;;  %v14038_v19 = vsel %vm13741_vm15, %v3487_v57, %v3488_v7  ;;  %v2747_v7 = vrot.slane %v2745_v21, 4  ;;  %v2750_v57 = vrot.slane %v2748_v42, 5  ;;  %v14136_v42 = vld [vmem:[#allocation2 + $0x98] sm:$0x1] }
 0x126   : > { %11994 = vmatprep.mubr.msk.bf16.mxu0 %vm1351_vm9, %v13042_v33  ;;  %17308 = vst [vmem:[#allocation6_spill] sm:$0xff] %v14038_v19  ;;  %v2737_v33 = vor.u32 %v2736_v3, %v14076_v27  ;;  %v14131_v3 = vld [vmem:[#allocation2 + $0x8c] sm:$0x1] }
 0x127   : > { %v2751_v21 = vor.u32 %v2750_v57, %v2747_v7  ;;  %v3536_v7 = vrot.slane %v3534_v36, 4 }
 0x128   : > { %v14111_v62 = vrot.slane %v2737_v33, 4  ;;  %v11014_v33 = vrot.slane %v3408_v5, 9  ;;  %v2802_v5 = vshll.u32 %v14023_v34, 16 }
 0x12d   : > { %11995 = vmatmul.mubr.msk.bf16.vlgmr.msra.gmra.mrb[0].mxu0 %vm1351_vm9, %v13043_v50  ;;  %v2758_v50 = vshrl.u32 %v14072_v22, 16 }
 0x12e   : > { %12027 = vmatpush3.bf16.msra.mxu0 %v3203_v30  ;;  %11998 = vmatprep.mubr.msk.bf16.mxu0 %vm1351_vm9, %v13044_v51  ;;  %v14095_v51 = vld [vmem:[#allocation2 + $0x7c] sm:$0xf]  ;;  %v14097_v30 = vld [vmem:[#allocation2 + $0x80] sm:$0x1] }
 0x12f   : > { %13019 = vmatprep.subr.msk.bf16.mxu0 %vm1400_vm0, %v14020_v41  ;;  %v3527_v15 = vrot.slane %v14095_v51, 5  ;;  %v3530_v60 = vrot.slane %v14097_v30, 5  ;;  %v14113_v1 = vrot.slane %v2758_v50, 4  ;;  %v3409_v50 = vld [vmem:[#allocation2 + $0x90] sm:$0xe] }
 0x130   : > { %v11015_v57 = vrot.slane %v3409_v50, 9 }
 0x131   : > { %v14117_v23 = vsel %vm13741_vm15, %v11013_v63, %v3527_v15  ;;  %v2795_v63 = vrot.slane %v2793_v43, 4  ;;  %v13054_v43 = vld [vmem:[#allocation2 + $0x9c] sm:$0xff]   ;;  %v2761_v50 = vor.u32 %v14113_v1, %v14106_v31  ;;  %v14190_v1 = vrot.slane %v2802_v5, 5 }
 0x132   : > { %17313 = vst [vmem:[#allocation11_spill] sm:$0xff] %v14117_v23  ;;  %v14228_v23 = vld [vmem:[#allocation2 + $0xb8] sm:$0xf] }
 0x133   : > { %v14199_v37 = vrot.slane %v2761_v50, 4 }
 0x135   : > { %11999 = vmatmul.mubr.msk.bf16.gmra.mrb[4].mxu0 %vm1351_vm9, %v13045_v59  ;;  %v14102_v59 = vld [vmem:[#allocation2 + $0x28] sm:$0xf] }
 0x136   : > { %12002 = vmatprep.mubr.msk.bf16.mxu0 %vm1351_vm9, %v13046_v2  ;;  %v2769_v2 = vshrl.u32 %v2678_v35, 16  ;;  %v2778_v52 = vshll.u32 %v14102_v59, 16  ;;  %v2782_v56 = vshrl.u32 %v14102_v59, 16  ;;  %v3537_v35 = vrot.slane %v14131_v3, 5 }
 0x138   : > { %v14125_v16 = vrot.slane %v2769_v2, 4  ;;  %v2784_v2 = vrot.slane %v2782_v56, 4 }
 0x13d   : > { %12003 = vmatmul.mubr.msk.bf16.gmra.mrb[8].mxu0 %vm1351_vm9, %v13047_v18  ;;  %v3529_v18 = vrot.slane %v3527_v15, 4  ;;  %v3544_v15 = vrot.slane %v14136_v42, 5 }
 0x13e   : > { %12006 = vmatprep.mubr.msk.bf16.mxu0 %vm1351_vm9, %v13048_v58  ;;  %v14109_v58 = vrot.slane %v2727_v53, 4  ;;  %v2774_v53 = vrot.slane %v2772_v54, 5  ;;  %v14149_v54 = vld [vmem:[#allocation2 + $0x2c] sm:$0x1] }
 0x13f   : > { %v14123_v4 = vsel %vm13741_vm15, %v3529_v18, %v3530_v60  ;;  %v14143_v60 = vrot.slane %v2778_v52, 5  ;;  %v14147_v18 = vsel %vm13741_vm15, %v11014_v33, %v3534_v36  ;;  %v14155_v52 = vsel %vm13741_vm15, %v3536_v7, %v3537_v35  ;;  %v14183_v36 = vld [vmem:[#allocation2 + $0x40] sm:$0xf] }
 0x140   : > { %17314 = vst [vmem:[#allocation12_spill] sm:$0xff] %v14123_v4  ;;  %17315 = vst [vmem:[#allocation13_spill] sm:$0xff] %v14147_v18  ;;  %v14173_v35 = vrot.slane %v2751_v21, 4  ;;  %v2775_v7 = vor.u32 %v2774_v53, %v14125_v16  ;;  %v14192_v16 = vld [vmem:[#allocation2 + $0xac] sm:$0xf] }
 0x141   : > { %17316 = vst [vmem:[#allocation14_spill] sm:$0xff] %v14155_v52  ;;  %v14194_v53 = vld [vmem:[#allocation2 + $0xb0] sm:$0x1]  ;;  %v13056_v52 = vld [vmem:[#allocation2 + $0xb4] sm:$0xff]  }
 0x142   : > { %v3558_v29 = vrot.slane %v14194_v53, 5 }
 0x145   : > { %12007 = vmatmul.mubr.msk.bf16.gmra.mrb[12].mxu0 %vm1351_vm9, %v13049_v55  ;;  %v2806_v55 = vshrl.u32 %v14023_v34, 16  ;;  %v2733_v34 = vsel %vm13350_vm8, %v14109_v58, %v14076_v27  ;;  %v2743_v27 = vsel %vm13350_vm8, %v14111_v62, %v14104_v8  ;;  %v2799_v58 = vor.u32 %v2798_v6, %v2795_v63 }
 0x146   : > { %12010 = vmatprep.mubr.msk.bf16.mxu0 %vm1351_vm9, %v13050_v61  ;;  %v14133_v61 = vld [vmem:[#allocation2 + $0x94] sm:$0xf]  ;;  %v2826_v8 = vshll.u32 %v14183_v36, 16  ;;  %v2830_v62 = vshrl.u32 %v14183_v36, 16  ;;  %v11017_v63 = vrot.slane %v3411_v44, 9  ;;  %v14203_v6 = vrot.slane %v2775_v7, 4 }
 0x147   : > { %v3541_v24 = vrot.slane %v14133_v61, 5  ;;  %v2808_v21 = vrot.slane %v2806_v55, 4  ;;  %v2687_v55 = vld [vmem:[#allocation2 + $0x48] sm:$0xf]  ;;  %v14209_v38 = vrot.slane %v2799_v58, 4 }
 0x148   : > { %v2841_v18 = vshrl.u32 %v2687_v55, 16  ;;  %v14224_v58 = vrot.slane %v2826_v8, 5  ;;  %v2832_v4 = vrot.slane %v2830_v62, 4  ;;  %v14239_v8 = vld [vmem:[#allocation2 + $0xc8] sm:$0x1] }
 0x149   : > { %v14159_v56 = vsel %vm13741_vm15, %v11015_v57, %v3541_v24  ;;  %v2785_v57 = vor.u32 %v2784_v2, %v14143_v60  ;;  %v3412_v62 = vld [vmem:[#allocation2 + $0xb4] sm:$0xe] }
 0x14a   : > { %17317 = vst [vmem:[#allocation15_spill] sm:$0xff] %v14159_v56  ;;  %v2843_v12 = vrot.slane %v2841_v18, 4  ;;  %v2833_v19 = vor.u32 %v2832_v4, %v14224_v58 }
 0x14b   : > { %v14205_v5 = vrot.slane %v2785_v57, 4 }
 0x14d   : > { %12011 = vmatmul.mubr.msk.bf16.gmra.mrb[16].mxu0 %vm1351_vm9, %v13051_v11  ;;  %v3543_v11 = vrot.slane %v3541_v24, 4  ;;  %v2684_v24 = vld [vmem:[#allocation2 + $0x3c] sm:$0xf] }
 0x14e   : > { %12014 = vmatprep.mubr.msk.bf16.mxu0 %vm1351_vm9, %v13052_v39  ;;  %v13053_v39 = vld [vmem:[#allocation2 + $0x90] sm:$0xff]   ;;  %v2820_v2 = vshll.u32 %v2684_v24, 16 }
 0x14f   : > { %v14167_v33 = vsel %vm13741_vm15, %v3543_v11, %v3544_v15  ;;  %v2788_v15 = vshll.u32 %v14149_v54, 16  ;;  %v2812_v11 = vshll.u32 %v14026_v47, 16  ;;  %v2817_v47 = vshrl.u32 %v2684_v24, 16 }
 0x150   : > { %17318 = vst [vmem:[#allocation16_spill] sm:$0xff] %v14167_v33  ;;  %v2809_v33 = vor.u32 %v2808_v21, %v14190_v1  ;;  %v2822_v7 = vrot.slane %v2820_v2, 5  ;;  %v2844_v21 = vshll.u32 %v2687_v55, 16  ;;  %v10972_v2 = vcombine.low %v2733_v34, %v2743_v27 }
 0x151   : > { %v14212_v50 = vrot.slane %v2812_v11, 5  ;;  %v2819_v44 = vrot.slane %v2817_v47, 4  ;;  %v14232_v47 = vld [vmem:[#allocation2 + $0xc4] sm:$0xf]  ;;  %v3562_v55 = vrot.slane %v14228_v23, 5  ;;  %v11018_v11 = vrot.slane %v3412_v62, 9 }
 0x152   : > { %v3572_v34 = vrot.slane %v14239_v8, 5  ;;  %v2846_v26 = vrot.slane %v2844_v21, 5  ;;  %v13057_v62 = vld [vmem:[#allocation2 + $0xc0] sm:$0xff]  }
 0x153   : > { %v2823_v27 = vor.u32 %v2822_v7, %v2819_v44  ;;  %v2854_v7 = vshrl.u32 %v14043_v17, 16  ;;  %v2767_v17 = vsel %vm13350_vm8, %v14199_v37, %v14161_v40 }
 0x155   : > { %12015 = vmatmul.mubr.msk.bf16.gmra.mrb[20].mxu0 %vm1351_vm9, %v13053_v39  ;;  %v3555_v39 = vrot.slane %v14192_v16, 5  ;;  %v2824_v40 = vrot.slane %v2823_v27, 4 }
 0x156   : > { %12018 = vmatprep.mubr.msk.bf16.mxu0 %vm1351_vm9, %v13054_v43  ;;  %v14207_v43 = vrot.slane %v2788_v15, 5  ;;  %v14222_v15 = vld [vmem:[#allocation2 + $0x44] sm:$0x1] }
 0x157   : > { %v3557_v24 = vrot.slane %v3555_v39, 4  ;;  %v14216_v56 = vsel %vm13741_vm15, %v11017_v63, %v3555_v39  ;;  %v14230_v39 = vld [vmem:[#allocation2 + $0xbc] sm:$0x1] }
 0x158   : > { %17319 = vst [vmem:[#allocation17_spill] sm:$0xff] %v14216_v56  ;;  %v3565_v63 = vrot.slane %v14230_v39, 5  ;;  %v2836_v56 = vshll.u32 %v14222_v15, 16 }
 0x159   : > { %v14220_v57 = vsel %vm13741_vm15, %v3557_v24, %v3558_v29  ;;  %v2757_v29 = vsel %vm13350_vm8, %v14173_v35, %v14106_v31  ;;  %v2810_v24 = vrot.slane %v2809_v33, 4  ;;  %v2690_v31 = vld [vmem:[#allocation2 + $0x54] sm:$0xf]  ;;  %v3564_v35 = vrot.slane %v3562_v55, 4 }
 0x15a   : > { %17320 = vst [vmem:[#allocation18_spill] sm:$0xff] %v14220_v57  ;;  %v3413_v57 = vld [vmem:[#allocation2 + $0xc0] sm:$0xe]  ;;  %v2868_v4 = vshll.u32 %v2690_v31, 16 }
 0x15b   : > { %v11019_v48 = vrot.slane %v3413_v57, 9  ;;  %v14257_v44 = vsel %vm13741_vm15, %v3564_v35, %v3565_v63  ;;  %v2865_v57 = vshrl.u32 %v2690_v31, 16  ;;  %v2878_v63 = vshrl.u32 %v14247_v28, 16 }
 0x15c   : > { %v2815_v37 = vsel %vm13350_vm8, %v2810_v24, %v14212_v50  ;;  %v2838_v31 = vrot.slane %v2836_v56, 5  ;;  %v14295_v35 = vrot.slane %v2850_v45, 5  ;;  %v10973_v56 = vcombine.low %v2757_v29, %v2767_v17  ;;  %v2699_v17 = vld [vmem:[#allocation2 + $0x78] sm:$0xf] }
 0x15d   : > { %12019 = vmatmul.mubr.msk.bf16.gmra.mrb[24].mxu0 %vm1351_vm9, %v13055_v10  ;;  %v3569_v10 = vrot.slane %v14232_v47, 5  ;;  %v2867_v21 = vrot.slane %v2865_v57, 4  ;;  %v3673_v45 = vsel %vm1400_vm0, %v14020_v41, 0 }
 0x15e   : > { %12022 = vmatprep.mubr.msk.bf16.mxu0 %vm1351_vm9, %v13056_v52  ;;  %v14251_v52 = vsel %vm13741_vm15, %v11018_v11, %v3562_v55  ;;  %v2874_v55 = vshll.u32 %v14247_v28, 16 }
 0x15f   : > { %v3571_v33 = vrot.slane %v3569_v10, 4  ;;  %v14261_v18 = vsel %vm13741_vm15, %v11019_v48, %v3569_v10  ;;  %v2781_v48 = vsel %vm13350_vm8, %v14203_v6, %v14143_v60  ;;  %v2791_v10 = vsel %vm13350_vm8, %v14205_v5, %v14207_v43  ;;  %v2693_v60 = vld [vmem:[#allocation2 + $0x60] sm:$0xf] }
 0x160   : > { %v2834_v6 = vrot.slane %v2833_v19, 4  ;;  %v2856_v5 = vrot.slane %v2854_v7, 4  ;;  %v2860_v43 = vshll.u32 %v14045_v32, 16  ;;  %v2889_v50 = vshrl.u32 %v2693_v60, 16 }
 0x161   : > { %v14268_v11 = vsel %vm13741_vm15, %v3571_v33, %v3572_v34  ;;  %v2805_v34 = vsel %vm13350_vm8, %v14209_v38, %v14190_v1  ;;  %v2847_v33 = vor.u32 %v2846_v26, %v2843_v12  ;;  %v2870_v38 = vrot.slane %v2868_v4, 5  ;;  %v2696_v4 = vld [vmem:[#allocation2 + $0x6c] sm:$0xf] }
 0x162   : > { %17321 = vst [vmem:[#allocation19_spill] sm:$0xff] %v14268_v11  ;;  %v14298_v1 = vrot.slane %v2874_v55, 5  ;;  %v14300_v11 = vld [vmem:[#allocation2 + $0x5c] sm:$0x1]  ;;  %v2892_v24 = vshll.u32 %v2693_v60, 16  ;;  %v2898_v26 = vshll.u32 %v14065_v46, 16  ;;  %v10974_v19 = vcombine.low %v2781_v48, %v2791_v10 }
 0x163   : > { %v2902_v12 = vshrl.u32 %v14065_v46, 16  ;;  %v2829_v32 = vsel %vm13350_vm8, %v2824_v40, %v14224_v58  ;;  %v14309_v27 = vrot.slane %v2847_v33, 4  ;;  %v2857_v7 = vor.u32 %v2856_v5, %v14295_v35  ;;  %v14314_v55 = vld [vmem:[#allocation2 + $0x70] sm:$0xf] }
 0x164   : > { %v14312_v57 = vrot.slane %v2860_v43, 5  ;;  %v2839_v46 = vsel %vm13350_vm8, %v2834_v6, %v2838_v31  ;;  %v2871_v29 = vor.u32 %v2870_v38, %v2867_v21  ;;  %v2891_v48 = vrot.slane %v2889_v50, 4 }
 0x165   : > { %12023 = vmatmul.mubr.msk.bf16.gmra.mrb[28].mxu0 %vm1351_vm9, %v13057_v62  ;;  %v2880_v62 = vrot.slane %v2878_v63, 4  ;;  %v2884_v63 = vshll.u32 %v14300_v11, 16  ;;  %v2894_v58 = vrot.slane %v2892_v24, 5  ;;  %v14320_v10 = vrot.slane %v2898_v26, 5 }
 0x166   : > { %12028 = vmatprep.mubr.msk.bf16.mxu0 %vm1351_vm9, %v10972_v2  ;;  %v10975_v2 = vcombine.low %v2805_v34, %v2815_v37  ;;  %v2904_v34 = vrot.slane %v2902_v12, 4  ;;  %v14325_v37 = vld [vmem:[%s17168_s1 + $0xc] sm:$0x3]  ;;  %v2913_v40 = vshrl.u32 %v2696_v4, 16  ;;  %v2916_v31 = vshll.u32 %v2696_v4, 16 }
 0x167   : > { %v2881_v41 = vor.u32 %v2880_v62, %v14298_v1  ;;  %v2922_v21 = vshll.u32 %v14314_v55, 16  ;;  %v2926_v33 = vshrl.u32 %v14314_v55, 16  ;;  %v10976_v60 = vcombine.low %v2829_v32, %v2839_v46 }
 0x168   : > { %v2858_v6 = vrot.slane %v2857_v7, 4  ;;  %v2937_v5 = vshrl.u32 %v2699_v17, 16  ;;  %v2940_v43 = vshll.u32 %v2699_v17, 16  ;;  %v2872_v38 = vrot.slane %v2871_v29, 4 }
 0x169   : > { %v2886_v62 = vrot.slane %v2884_v63, 5  ;;  %v2946_v50 = vshll.u32 %v14095_v51, 16  ;;  %v2950_v24 = vshrl.u32 %v14095_v51, 16  ;;  %v2882_v26 = vrot.slane %v2881_v41, 4  ;;  %v14346_v41 = vld [vmem:[#allocation2 + $0x74] sm:$0x1] }
 0x16a   : > { %v2895_v12 = vor.u32 %v2894_v58, %v2891_v48  ;;  %v2915_v32 = vrot.slane %v2913_v40, 4  ;;  %v2918_v7 = vrot.slane %v2916_v31, 5  ;;  %v14337_v4 = vrot.slane %v2922_v21, 5 }
 0x16b   : > { %v2928_v46 = vrot.slane %v2926_v33, 4  ;;  %v2853_v51 = vsel %vm13350_vm8, %v14309_v27, %v14295_v35  ;;  %v2863_v29 = vsel %vm13350_vm8, %v2858_v6, %v14312_v57  ;;  %v2939_v63 = vrot.slane %v2937_v5, 4 }
 0x16c   : > { %v2942_v17 = vrot.slane %v2940_v43, 5  ;;  %v2952_v48 = vrot.slane %v2950_v24, 4  ;;  %v2877_v40 = vsel %vm13350_vm8, %v2872_v38, %v14298_v1  ;;  %v2887_v35 = vsel %vm13350_vm8, %v2882_v26, %v2886_v62 }
 0x16d   : > { %12029 = vmatmul.mubr.msk.bf16.vlgmr.msra.gmra.mrb[0].mxu0 %vm1351_vm9, %v10973_v56  ;;  %v2905_v56 = vor.u32 %v2904_v34, %v14320_v10  ;;  %v2896_v27 = vrot.slane %v2895_v12, 4  ;;  %v2919_v21 = vor.u32 %v2918_v7, %v2915_v32  ;;  %v2929_v33 = vor.u32 %v2928_v46, %v14337_v4  ;;  %v2708_v32 = vld [vmem:[#allocation2 + $0x9c] sm:$0xf] }
 0x16e   : > { %12061 = vmatpush3.bf16.msra.mxu0 %v3673_v45  ;;  %12032 = vmatprep.mubr.msk.bf16.mxu0 %vm1351_vm9, %v10974_v19  ;;  %v2908_v45 = vshll.u32 %v14067_v13, 16  ;;  %v2702_v19 = vld [vmem:[#allocation2 + $0x84] sm:$0xf]  ;;  %v14348_v13 = vrot.slane %v2946_v50, 5  ;;  %v2932_v6 = vshll.u32 %v14346_v41, 16  ;;  %v2956_v5 = vshll.u32 %v14097_v30, 16 }
 0x16f   : > { %13020 = vmatprep.subr.msk.bf16.mxu0 %vm1400_vm0, %v14325_v37  ;;  %v2961_v58 = vshrl.u32 %v2702_v19, 16  ;;  %v2964_v34 = vshll.u32 %v2702_v19, 16  ;;  %v2906_v57 = vrot.slane %v2905_v56, 4  ;;  %v2970_v43 = vshll.u32 %v14129_v0, 16 }
 0x170   : > { %v2910_v31 = vrot.slane %v2908_v45, 5  ;;  %v2974_v1 = vshrl.u32 %v14129_v0, 16  ;;  %v2943_v38 = vor.u32 %v2942_v17, %v2939_v63  ;;  %v2953_v62 = vor.u32 %v2952_v48, %v14348_v13  ;;  %v14370_v17 = vld [vmem:[#allocation2 + $0xa0] sm:$0xf] }
 0x171   : > { %v2963_v50 = vrot.slane %v2961_v58, 4  ;;  %v2966_v24 = vrot.slane %v2964_v34, 5  ;;  %v10977_v26 = vcombine.low %v2853_v51, %v2863_v29  ;;  %v10978_v12 = vcombine.low %v2877_v40, %v2887_v35 }
 0x172   : > { %v2901_v56 = vsel %vm13350_vm8, %v2896_v27, %v14320_v10  ;;  %v2920_v30 = vrot.slane %v2919_v21, 4  ;;  %v2930_v45 = vrot.slane %v2929_v33, 4  ;;  %v2934_v19 = vrot.slane %v2932_v6, 5 }
 0x173   : > { %v14368_v0 = vrot.slane %v2970_v43, 5  ;;  %v2976_v7 = vrot.slane %v2974_v1, 4  ;;  %v2944_v51 = vrot.slane %v2943_v38, 4  ;;  %v2954_v29 = vrot.slane %v2953_v62, 4 }
 0x174   : > { %v2958_v48 = vrot.slane %v2956_v5, 5  ;;  %v2967_v58 = vor.u32 %v2966_v24, %v2963_v50  ;;  %v2994_v10 = vshll.u32 %v14133_v61, 16  ;;  %v2998_v34 = vshrl.u32 %v14133_v61, 16 }
 0x175   : > { %12033 = vmatmul.mubr.msk.bf16.gmra.mrb[4].mxu0 %vm1351_vm9, %v10975_v2  ;;  %v2705_v2 = vld [vmem:[#allocation2 + $0x90] sm:$0xf]  ;;  %v3009_v40 = vshrl.u32 %v2708_v32, 16  ;;  %v3012_v35 = vshll.u32 %v2708_v32, 16  ;;  %v2925_v27 = vsel %vm13350_vm8, %v2920_v30, %v14337_v4  ;;  %v3022_v21 = vshrl.u32 %v14370_v17, 16 }
 0x176   : > { %12036 = vmatprep.mubr.msk.bf16.mxu0 %vm1351_vm9, %v10976_v60  ;;  %v2911_v60 = vsel %vm13350_vm8, %v2906_v57, %v2910_v31  ;;  %v2985_v46 = vshrl.u32 %v2705_v2, 16  ;;  %v2988_v63 = vshll.u32 %v2705_v2, 16  ;;  %v2935_v31 = vsel %vm13350_vm8, %v2930_v45, %v2934_v19  ;;  %v2711_v45 = vld [vmem:[#allocation2 + $0xa8] sm:$0xf] }
 0x177   : > { %v3018_v57 = vshll.u32 %v14370_v17, 16  ;;  %v2977_v33 = vor.u32 %v2976_v7, %v14368_v0  ;;  %v2980_v61 = vshll.u32 %v14131_v3, 16  ;;  %v2949_v43 = vsel %vm13350_vm8, %v2944_v51, %v14348_v13 }
 0x178   : > { %v2987_v6 = vrot.slane %v2985_v46, 4  ;;  %v2990_v5 = vrot.slane %v2988_v63, 5  ;;  %v2959_v4 = vsel %vm13350_vm8, %v2954_v29, %v2958_v48  ;;  %v2968_v1 = vrot.slane %v2967_v58, 4  ;;  %v2714_v58 = vld [vmem:[#allocation2 + $0xb4] sm:$0xf] }
 0x179   : > { %v14390_v38 = vrot.slane %v2994_v10, 5  ;;  %v3000_v62 = vrot.slane %v2998_v34, 4  ;;  %v3011_v50 = vrot.slane %v3009_v40, 4  ;;  %v3014_v24 = vrot.slane %v3012_v35, 5 }
 0x17a   : > { %v10979_v2 = vcombine.low %v2901_v56, %v2911_v60  ;;  %v3020_v3 = vrot.slane %v3018_v57, 5  ;;  %v3024_v30 = vrot.slane %v3022_v21, 4  ;;  %v2978_v19 = vrot.slane %v2977_v33, 4 }
 0x17b   : > { %v2982_v32 = vrot.slane %v2980_v61, 5  ;;  %v2991_v7 = vor.u32 %v2990_v5, %v2987_v6  ;;  %v3004_v13 = vshll.u32 %v14136_v42, 16  ;;  %v10981_v46 = vcombine.low %v2949_v43, %v2959_v4 }
 0x17c   : > { %v3001_v63 = vor.u32 %v3000_v62, %v14390_v38  ;;  %v3015_v51 = vor.u32 %v3014_v24, %v3011_v50  ;;  %v3033_v48 = vshrl.u32 %v2711_v45, 16  ;;  %v3025_v56 = vor.u32 %v3024_v30, %v3020_v3  ;;  %v2717_v30 = vld [vmem:[#allocation2 + $0xc0] sm:$0xf] }
 0x17d   : > { %12037 = vmatmul.mubr.msk.bf16.gmra.mrb[8].mxu0 %vm1351_vm9, %v10977_v26  ;;  %v10980_v26 = vcombine.low %v2925_v27, %v2935_v31  ;;  %v3036_v60 = vshll.u32 %v2711_v45, 16  ;;  %v3042_v10 = vshll.u32 %v14192_v16, 16  ;;  %v3046_v34 = vshrl.u32 %v14192_v16, 16 }
 0x17e   : > { %12040 = vmatprep.mubr.msk.bf16.mxu0 %vm1351_vm9, %v10978_v12  ;;  %v14392_v12 = vld [vmem:[#allocation2 + $0xa4] sm:$0x1]  ;;  %v2973_v42 = vsel %vm13350_vm8, %v2968_v1, %v14368_v0  ;;  %v2983_v40 = vsel %vm13350_vm8, %v2978_v19, %v2982_v32  ;;  %v2992_v35 = vrot.slane %v2991_v7, 4  ;;  %v3006_v27 = vrot.slane %v3004_v13, 5 }
 0x17f   : > { %v3028_v29 = vshll.u32 %v14392_v12, 16  ;;  %v3057_v31 = vshrl.u32 %v2714_v58, 16  ;;  %v3060_v57 = vshll.u32 %v2714_v58, 16  ;;  %v3066_v21 = vshll.u32 %v14228_v23, 16 }
 0x180   : > { %v3070_v33 = vshrl.u32 %v14228_v23, 16  ;;  %v3002_v61 = vrot.slane %v3001_v63, 4  ;;  %v3016_v6 = vrot.slane %v3015_v51, 4  ;;  %v3035_v5 = vrot.slane %v3033_v48, 4 }
 0x181   : > { %v3030_v16 = vrot.slane %v3028_v29, 5  ;;  %v3026_v43 = vrot.slane %v3025_v56, 4  ;;  %v3038_v4 = vrot.slane %v3036_v60, 5  ;;  %v3044_v62 = vrot.slane %v3042_v10, 5 }
 0x182   : > { %v3048_v50 = vrot.slane %v3046_v34, 4  ;;  %v10982_v0 = vcombine.low %v2973_v42, %v2983_v40  ;;  %v3059_v1 = vrot.slane %v3057_v31, 4  ;;  %v3062_v24 = vrot.slane %v3060_v57, 5 }
 0x183   : > { %v2997_v45 = vsel %vm13350_vm8, %v2992_v35, %v14390_v38  ;;  %v3007_v23 = vsel %vm13350_vm8, %v3002_v61, %v3006_v27  ;;  %v3052_v19 = vshll.u32 %v14194_v53, 16  ;;  %v3021_v32 = vsel %vm13350_vm8, %v3016_v6, %v3020_v3 }
 0x184   : > { %v3031_v7 = vsel %vm13350_vm8, %v3026_v43, %v3030_v16  ;;  %v3039_v13 = vor.u32 %v3038_v4, %v3035_v5  ;;  %v3049_v63 = vor.u32 %v3048_v50, %v3044_v62  ;;  %v3081_v51 = vshrl.u32 %v2717_v30, 16  ;;  %v3398_v4 = vld [vmem:[#allocation2 + $0xc] sm:$0xe] }
 0x185   : > { %12041 = vmatmul.mubr.msk.bf16.gmra.mrb[12].mxu0 %vm1351_vm9, %v10979_v2  ;;  %v3068_v2 = vrot.slane %v3066_v21, 5  ;;  %v3084_v29 = vshll.u32 %v2717_v30, 16  ;;  %v3090_v38 = vshll.u32 %v14232_v47, 16  ;;  %v3094_v48 = vshrl.u32 %v14232_v47, 16 }
 0x186   : > { %12044 = vmatprep.mubr.msk.bf16.mxu0 %vm1351_vm9, %v10980_v26  ;;  %v3072_v26 = vrot.slane %v3070_v33, 4  ;;  %v3063_v58 = vor.u32 %v3062_v24, %v3059_v1  ;;  %v10983_v56 = vcombine.low %v2997_v45, %v3007_v23  ;;  %v10984_v60 = vcombine.low %v3021_v32, %v3031_v7  ;;  %v3399_v32 = vld [vmem:[#allocation2 + $0x18] sm:$0xe]  ;;  %v3400_v7 = vld [vmem:[#allocation2 + $0x24] sm:$0xe] }
 0x187   : > { %v3040_v3 = vrot.slane %v3039_v13, 4  ;;  %v3050_v10 = vrot.slane %v3049_v63, 4  ;;  %v3054_v34 = vrot.slane %v3052_v19, 5  ;;  %v3083_v42 = vrot.slane %v3081_v51, 4 }
 0x188   : > { %v3073_v53 = vor.u32 %v3072_v26, %v3068_v2  ;;  %v3086_v40 = vrot.slane %v3084_v29, 5  ;;  %v3092_v35 = vrot.slane %v3090_v38, 5  ;;  %v3096_v27 = vrot.slane %v3094_v48, 4 }
 0x189   : > { %v3064_v31 = vrot.slane %v3063_v58, 4  ;;  %v3045_v47 = vsel %vm13350_vm8, %v3040_v3, %v3044_v62  ;;  %v3100_v6 = vshll.u32 %v14239_v8, 16  ;;  %v3464_v43 = vrot.slane %v14054_v25, 5 }
 0x18a   : > { %v3074_v57 = vrot.slane %v3073_v53, 4  ;;  %v3087_v33 = vor.u32 %v3086_v40, %v3083_v42  ;;  %v3097_v61 = vor.u32 %v3096_v27, %v3092_v35  ;;  %v11004_v26 = vrot.slane %v3398_v4, 9 }
 0x18b   : > { %v3069_v16 = vsel %vm13350_vm8, %v3064_v31, %v3068_v2  ;;  %v3102_v24 = vrot.slane %v3100_v6, 5  ;;  %v3466_v30 = vrot.slane %v3464_v43, 4  ;;  %v3467_v45 = vrot.slane %v14074_v14, 5 }
 0x18c   : > { %v3098_v1 = vrot.slane %v3097_v61, 4  ;;  %v3471_v2 = vrot.slane %v14072_v22, 5  ;;  %v3465_v23 = vsel %vm13741_vm15, %v11004_v26, %v3464_v43  ;;  %v3478_v14 = vrot.slane %v14102_v59, 5 }
 0x18d   : > { %12045 = vmatmul.mubr.msk.bf16.gmra.mrb[16].mxu0 %vm1351_vm9, %v10981_v46  ;;  %v3076_v46 = vshll.u32 %v14230_v39, 16  ;;  %v3055_v39 = vsel %vm13350_vm8, %v3050_v10, %v3054_v34  ;;  %v3468_v19 = vsel %vm13741_vm15, %v3466_v30, %v3467_v45  ;;  %v11005_v51 = vrot.slane %v3399_v32, 9  ;;  %v17328_v30 = vld [vmem:[#allocation9_spill] sm:$0xff]  ;;  %v17329_v45 = vld [vmem:[#allocation10_spill] sm:$0xff]  ;;  %v17331_v32 = vld [vmem:[#allocation11_spill] sm:$0xff] }
 0x18e   : > { %12048 = vmatprep.mubr.msk.bf16.mxu0 %vm1351_vm9, %v10982_v0  ;;  %v10985_v50 = vcombine.low %v3045_v47, %v3055_v39  ;;  %v3088_v0 = vrot.slane %v3087_v33, 4  ;;  %v3103_v25 = vsel %vm13350_vm8, %v3098_v1, %v3102_v24  ;;  %v11021_v63 = vcombine.low %v3465_v23, %v3468_v19  ;;  %v17322_v39 = vld [vmem:[#allocation5_spill] sm:$0xff]  ;;  %v17323_v33 = vld [vmem:[#allocation6_spill] sm:$0xff] }
 0x18f   : > { %v3078_v21 = vrot.slane %v3076_v46, 5  ;;  %v3473_v29 = vrot.slane %v3471_v2, 4  ;;  %v3474_v38 = vrot.slane %v14089_v9, 5  ;;  %v11006_v48 = vrot.slane %v3400_v7, 9 }
 0x190   : > { %v3093_v8 = vsel %vm13350_vm8, %v3088_v0, %v3092_v35  ;;  %v3480_v58 = vrot.slane %v3478_v14, 4  ;;  %v3481_v22 = vrot.slane %v14149_v54, 5  ;;  %v3472_v53 = vsel %vm13741_vm15, %v11005_v51, %v3471_v2  ;;  %v11086_v35 = vld [vmem:[%s17168_s1 + $0xe] sm:$0x3]  ;;  %v17326_v0 = vld [vmem:[#allocation8_spill] sm:$0xff] }
 0x191   : > { %v3079_v5 = vsel %vm13350_vm8, %v3074_v57, %v3078_v21  ;;  %v10987_v13 = vcombine.low %v3093_v8, %v3103_v25  ;;  %v3475_v59 = vsel %vm13741_vm15, %v3473_v29, %v3474_v38  ;;  %v3479_v46 = vsel %vm13741_vm15, %v11006_v48, %v3478_v14  ;;  %v3410_v25 = vld [vmem:[#allocation2 + $0x9c] sm:$0xe]  ;;  %v17332_v14 = vld [vmem:[#allocation12_spill] sm:$0xff]  ;;  %v17337_v48 = vld [vmem:[#allocation15_spill] sm:$0xff] }
 0x192   : > { %v10986_v62 = vcombine.low %v3069_v16, %v3079_v5  ;;  %v3482_v9 = vsel %vm13741_vm15, %v3480_v58, %v3481_v22  ;;  %v11022_v54 = vcombine.low %v3472_v53, %v3475_v59  ;;  %v4032_v10 = vsel %vm1400_vm0, %v14325_v37, 0  ;;  %v3406_v5 = vld [vmem:[#allocation2 + $0x6c] sm:$0xe]  ;;  %v17338_v58 = vld [vmem:[#allocation16_spill] sm:$0xff]  ;;  %v17340_v22 = vld [vmem:[#allocation17_spill] sm:$0xff] }
 0x193   : > { %v11023_v3 = vcombine.low %v3479_v46, %v3482_v9  ;;  %v3495_v40 = vrot.slane %v14222_v15, 5  ;;  %v3506_v37 = vrot.slane %v14247_v28, 5  ;;  %v3404_v15 = vld [vmem:[#allocation2 + $0x54] sm:$0xe]  ;;  %v3509_v47 = vrot.slane %v14300_v11, 5  ;;  %v17341_v53 = vld [vmem:[#allocation18_spill] sm:$0xff] }
 0x194   : > { %v11010_v57 = vrot.slane %v3404_v15, 9  ;;  %v17324_v61 = vcombine.low %v17322_v39, %v17323_v33  ;;  %v3520_v16 = vrot.slane %v14314_v55, 5  ;;  %v11012_v4 = vrot.slane %v3406_v5, 9  ;;  %v13058_v9 = vld [vmem:[#allocation2 + $0x18] sm:$0xff]   ;;  %v14562_v39 = vld [vmem:[#allocation2 + $0x70] sm:$0xf] }
 0x195   : > { %12049 = vmatmul.mubr.msk.bf16.gmra.mrb[20].mxu0 %vm1351_vm9, %v10983_v56  ;;  %v3492_v56 = vrot.slane %v14183_v36, 5  ;;  %v3508_v21 = vrot.slane %v3506_v37, 4  ;;  %v3523_v11 = vrot.slane %v14346_v41, 5  ;;  %v17330_v8 = vcombine.low %v17328_v30, %v17329_v45  ;;  %v13063_v15 = vld [vmem:[#allocation2 + $0x54] sm:$0xff]  }
 0x196   : > { %12052 = vmatprep.mubr.msk.bf16.mxu0 %vm1351_vm9, %v10984_v60  ;;  %v3402_v60 = vld [vmem:[#allocation2 + $0x3c] sm:$0xe]  ;;  %v3507_v6 = vsel %vm13741_vm15, %v11010_v57, %v3506_v37  ;;  %v3521_v24 = vsel %vm13741_vm15, %v11012_v4, %v3520_v16  ;;  %v3548_v41 = vrot.slane %v14370_v17, 5  ;;  %v11016_v2 = vrot.slane %v3410_v25, 9  ;;  %v13064_v57 = vld [vmem:[#allocation2 + $0x60] sm:$0xff]  }
 0x197   : > { %v11008_v34 = vrot.slane %v3402_v60, 9  ;;  %v3494_v42 = vrot.slane %v3492_v56, 4  ;;  %v3510_v28 = vsel %vm13741_vm15, %v3508_v21, %v3509_v47  ;;  %v3551_v19 = vrot.slane %v14392_v12, 5  ;;  %v14564_v33 = vld [vmem:[#allocation2 + $0x74] sm:$0x1]  ;;  %v13073_v47 = vld [vmem:[#allocation2 + $0xcc] sm:$0xff]  }
 0x198   : > { %v11027_v43 = vcombine.low %v3507_v6, %v3510_v28  ;;  %v3550_v23 = vrot.slane %v3548_v41, 4  ;;  %v17333_v7 = vcombine.low %v17331_v32, %v17332_v14  ;;  %v3549_v29 = vsel %vm13741_vm15, %v11016_v2, %v3548_v41  ;;  %v4227_v4 = vld [vmem:[#allocation2 + $0x18] sm:$0xf]  ;;  %v14584_v25 = vld [vmem:[#allocation2 + $0x88] sm:$0xf] }
 0x199   : > { %v3493_v36 = vsel %vm13741_vm15, %v11008_v34, %v3492_v56  ;;  %v3496_v27 = vsel %vm13741_vm15, %v3494_v42, %v3495_v40  ;;  %v17339_v12 = vcombine.low %v17337_v48, %v17338_v58  ;;  %v17342_v59 = vcombine.low %v17340_v22, %v17341_v53  ;;  %v17344_v56 = vld [vmem:[#allocation19_spill] sm:$0xff]  ;;  %v14537_v34 = vld [vmem:[%s17168_s1 + $0x10] sm:$0x3]  ;;  %v14546_v42 = vld [vmem:[#allocation2 + $0x5c] sm:$0x1] }
 0x19a   : > { %v11025_v31 = vcombine.low %v3493_v36, %v3496_v27  ;;  %v3552_v17 = vsel %vm13741_vm15, %v3550_v23, %v3551_v19  ;;  %v17343_v46 = vcombine.low %v14251_v52, %v14257_v44  ;;  %v17345_v60 = vcombine.low %v14261_v18, %v17344_v56  ;;  %v13061_v52 = vld [vmem:[#allocation2 + $0x3c] sm:$0xff]   ;;  %v13062_v44 = vld [vmem:[#allocation2 + $0x48] sm:$0xff]   ;;  %v14544_v18 = vld [vmem:[#allocation2 + $0x58] sm:$0xf] }
 0x19b   : > { %v11033_v38 = vcombine.low %v3549_v29, %v3552_v17  ;;  %v4958_v40 = vld [vmem:[#allocation2 + $0x54] sm:$0xe]  ;;  %v5057_v36 = vrot.slane %v14546_v42, 5  ;;  %v5068_v6 = vrot.slane %v14562_v39, 5  ;;  %v5071_v28 = vrot.slane %v14564_v33, 5  ;;  %v13067_v17 = vld [vmem:[#allocation2 + $0x84] sm:$0xff]  }
 0x19c   : > { %v11124_v27 = vrot.slane %v4958_v40, 9  ;;  %v14586_v2 = vld [vmem:[#allocation2 + $0x8c] sm:$0x1]  ;;  %v4962_v23 = vld [vmem:[#allocation2 + $0x84] sm:$0xe]  ;;  %v5082_v19 = vrot.slane %v14584_v25, 5 }
 0x19d   : > { %12053 = vmatmul.mubr.msk.bf16.gmra.mrb[24].mxu0 %vm1351_vm9, %v10985_v50  ;;  %v3522_v50 = vrot.slane %v3520_v16, 4  ;;  %v5070_v5 = vrot.slane %v5068_v6, 4  ;;  %v5085_v32 = vrot.slane %v14586_v2, 5  ;;  %v14591_v14 = vld [vmem:[#allocation2 + $0x28] sm:$0xf]  ;;  %v13068_v53 = vld [vmem:[#allocation2 + $0x90] sm:$0xff]  }
 0x19e   : > { %12056 = vmatprep.mubr.msk.bf16.mxu0 %vm1351_vm9, %v10986_v62  ;;  %v17325_v62 = vld [vmem:[#allocation7_spill] sm:$0xff]  ;;  %v5084_v29 = vrot.slane %v5082_v19, 4 }
 0x19f   : > { %v17327_v1 = vcombine.low %v17325_v62, %v17326_v0  ;;  %v3524_v26 = vsel %vm13741_vm15, %v3522_v50, %v3523_v11  ;;  %v14569_v50 = vld [vmem:[#allocation2 + $0x1c] sm:$0xf]  ;;  %v4230_v0 = vld [vmem:[#allocation2 + $0x24] sm:$0xf] }
 0x1a0   : > { %v11029_v55 = vcombine.low %v3521_v24, %v3524_v26  ;;  %v13066_v62 = vld [vmem:[#allocation2 + $0x78] sm:$0xff]   ;;  %v4276_v26 = vshrl.u32 %v4227_v4, 16  ;;  %v4285_v30 = vshll.u32 %v14569_v50, 16  ;;  %v4289_v45 = vshrl.u32 %v14569_v50, 16 }
 0x1a1   : > { %v4303_v41 = vshll.u32 %v4230_v0, 16  ;;  %v14605_v56 = vsel %vm13741_vm15, %v5084_v29, %v5085_v32 }
 0x1a2   : > { %v4291_v48 = vrot.slane %v4289_v45, 4  ;;  %17349 = vst [vmem:[#allocation8_spill] sm:$0xff] %v14605_v56 }
 0x1a5   : > { %12057 = vmatmul.mubr.msk.bf16.gmra.mrb[28].mxu0 %vm1351_vm9, %v10987_v13  ;;  %v17334_v13 = vld [vmem:[#allocation13_spill] sm:$0xff] }
 0x1a6   : > { %12062 = vmatprep.mubr.msk.bf16.mxu0 %vm1351_vm9, %v11021_v63  ;;  %v17335_v63 = vld [vmem:[#allocation14_spill] sm:$0xff] }
 0x1a7   : > { %v17336_v51 = vcombine.low %v17334_v13, %v17335_v63  ;;  %v4278_v13 = vrot.slane %v4276_v26, 4 }
 0x1ad   : > { %12063 = vmatmul.mubr.msk.bf16.vlgmr.msra.gmra.mrb[0].mxu0 %vm1351_vm9, %v11022_v54  ;;  %v13059_v54 = vld [vmem:[#allocation2 + $0x24] sm:$0xff]  }
 0x1ae   : > { %12095 = vmatpush3.bf16.msra.mxu0 %v4032_v10  ;;  %12066 = vmatprep.mubr.msk.bf16.mxu0 %vm1351_vm9, %v11023_v3  ;;  %v13060_v3 = vld [vmem:[#allocation2 + $0x30] sm:$0xff]   ;;  %v4758_v10 = vsel %vm1400_vm0, %v11086_v35, 0 }
 0x1af   : > { %13021 = vmatprep.subr.msk.bf16.mxu0 %vm1400_vm0, %v11086_v35  ;;  %v5054_v35 = vrot.slane %v14544_v18, 5 }
 0x1b1   : > { %v5056_v37 = vrot.slane %v5054_v35, 4 }
 0x1b3   : > { %v14557_v21 = vsel %vm13741_vm15, %v5056_v37, %v5057_v36  ;;  %v14618_v37 = vld [vmem:[#allocation2 + $0xa4] sm:$0x1] }
 0x1b5   : > { %12067 = vmatmul.mubr.msk.bf16.gmra.mrb[4].mxu0 %vm1351_vm9, %v17324_v61  ;;  %v4960_v61 = vld [vmem:[#allocation2 + $0x6c] sm:$0xe] }
 0x1b6   : > { %12070 = vmatprep.mubr.msk.bf16.mxu0 %vm1351_vm9, %v11025_v31  ;;  %v14553_v31 = vsel %vm13741_vm15, %v11124_v27, %v5054_v35  ;;  %v11126_v16 = vrot.slane %v4960_v61, 9  ;;  %v14616_v27 = vld [vmem:[#allocation2 + $0xa0] sm:$0xf]  ;;  %v4964_v61 = vld [vmem:[#allocation2 + $0x9c] sm:$0xe] }
 0x1b8   : > { %v14573_v11 = vsel %vm13741_vm15, %v11126_v16, %v5068_v6  ;;  %v5096_v6 = vrot.slane %v14616_v27, 5 }
 0x1b9   : > { %17346 = vst [vmem:[#allocation5_spill] sm:$0xff] %v14573_v11  ;;  %v4254_v11 = vld [vmem:[#allocation2 + $0x84] sm:$0xf] }
 0x1ba   : > { %v5098_v26 = vrot.slane %v5096_v6, 4 }
 0x1bd   : > { %12071 = vmatmul.mubr.msk.bf16.gmra.mrb[8].mxu0 %vm1351_vm9, %v17327_v1  ;;  %v14577_v1 = vsel %vm13741_vm15, %v5070_v5, %v5071_v28  ;;  %v5099_v28 = vrot.slane %v14618_v37, 5  ;;  %v11130_v5 = vrot.slane %v4964_v61, 9  ;;  %v4966_v61 = vld [vmem:[#allocation2 + $0xb4] sm:$0xe] }
 0x1be   : > { %12074 = vmatprep.mubr.msk.bf16.mxu0 %vm1351_vm9, %v11027_v43  ;;  %v13065_v43 = vld [vmem:[#allocation2 + $0x6c] sm:$0xff]   ;;  %17347 = vst [vmem:[#allocation6_spill] sm:$0xff] %v14577_v1 }
 0x1c5   : > { %12075 = vmatmul.mubr.msk.bf16.gmra.mrb[12].mxu0 %vm1351_vm9, %v17330_v8  ;;  %v4300_v8 = vshrl.u32 %v4230_v0, 16  ;;  %v4236_v0 = vld [vmem:[#allocation2 + $0x3c] sm:$0xf] }
 0x1c6   : > { %12078 = vmatprep.mubr.msk.bf16.mxu0 %vm1351_vm9, %v11029_v55  ;;  %v4279_v55 = vshll.u32 %v4227_v4, 16 }
 0x1c7   : > { %v4302_v58 = vrot.slane %v4300_v8, 4 }
 0x1c8   : > { %v4281_v63 = vrot.slane %v4279_v55, 5  ;;  %v13069_v55 = vld [vmem:[#allocation2 + $0x9c] sm:$0xff]  }
 0x1cd   : > { %12079 = vmatmul.mubr.msk.bf16.gmra.mrb[16].mxu0 %vm1351_vm9, %v17333_v7  ;;  %v11128_v7 = vrot.slane %v4962_v23, 9  ;;  %v13070_v23 = vld [vmem:[#allocation2 + $0xa8] sm:$0xff]  }
 0x1ce   : > { %12082 = vmatprep.mubr.msk.bf16.mxu0 %vm1351_vm9, %v17336_v51  ;;  %v14593_v51 = vrot.slane %v4285_v30, 5 }
 0x1cf   : > { %v14599_v22 = vsel %vm13741_vm15, %v11128_v7, %v5082_v19 }
 0x1d0   : > { %17348 = vst [vmem:[#allocation7_spill] sm:$0xff] %v14599_v22 }
 0x1d5   : > { %12083 = vmatmul.mubr.msk.bf16.gmra.mrb[20].mxu0 %vm1351_vm9, %v17339_v12  ;;  %v4305_v12 = vrot.slane %v4303_v41, 5  ;;  %v14630_v41 = vsel %vm13741_vm15, %v11130_v5, %v5096_v6 }
 0x1d6   : > { %12086 = vmatprep.mubr.msk.bf16.mxu0 %vm1351_vm9, %v11033_v38  ;;  %v14595_v38 = vld [vmem:[#allocation2 + $0x20] sm:$0x1]  ;;  %17350 = vst [vmem:[#allocation9_spill] sm:$0xff] %v14630_v41 }
 0x1d7   : > { %v4306_v40 = vor.u32 %v4305_v12, %v4302_v58  ;;  %v14645_v12 = vld [vmem:[#allocation2 + $0x38] sm:$0x1] }
 0x1d9   : > { %v14632_v32 = vrot.slane %v4306_v40, 4  ;;  %v14657_v40 = vld [vmem:[#allocation2 + $0xb8] sm:$0xf] }
 0x1da   : > { %v5110_v6 = vrot.slane %v14657_v40, 5 }
 0x1dd   : > { %12087 = vmatmul.mubr.msk.bf16.gmra.mrb[24].mxu0 %vm1351_vm9, %v17342_v59  ;;  %v4309_v59 = vshll.u32 %v14591_v14, 16 }
 0x1de   : > { %12090 = vmatprep.mubr.msk.bf16.mxu0 %vm1351_vm9, %v17343_v46  ;;  %v4313_v46 = vshrl.u32 %v14591_v14, 16 }
 0x1e5   : > { %12091 = vmatmul.mubr.msk.bf16.gmra.mrb[28].mxu0 %vm1351_vm9, %v17345_v60  ;;  %v14724_v60 = vld [vmem:[#allocation2 + $0x60] sm:$0xf] }
 0x1e6   : > { %12096 = vmatprep.mubr.msk.bf16.mxu0 %vm1351_vm9, %v13058_v9  ;;  %v4233_v9 = vld [vmem:[#allocation2 + $0x30] sm:$0xf] }
 0x1e7   : > { %v4324_v35 = vshrl.u32 %v4233_v9, 16  ;;  %v4327_v36 = vshll.u32 %v4233_v9, 16 }
 0x1e9   : > { %v4326_v45 = vrot.slane %v4324_v35, 4  ;;  %v4329_v8 = vrot.slane %v4327_v36, 5  ;;  %v14659_v35 = vld [vmem:[#allocation2 + $0xbc] sm:$0x1] }
 0x1ed   : > { %12097 = vmatmul.mubr.msk.bf16.vlgmr.msra.gmra.mrb[0].mxu0 %vm1351_vm9, %v13059_v54  ;;  %v4282_v54 = vor.u32 %v4281_v63, %v4278_v13  ;;  %v14635_v13 = vld [vmem:[#allocation2 + $0x40] sm:$0xf]  ;;  %v14639_v63 = vsel %vm13741_vm15, %v5098_v26, %v5099_v28  ;;  %v4343_v28 = vshll.u32 %v14645_v12, 16  ;;  %v13071_v26 = vld [vmem:[#allocation2 + $0xb4] sm:$0xff]  }
 0x1ee   : > { %12129 = vmatpush3.bf16.msra.mxu0 %v4758_v10  ;;  %12100 = vmatprep.mubr.msk.bf16.mxu0 %vm1351_vm9, %v13060_v3  ;;  %v4295_v3 = vshll.u32 %v14595_v38, 16  ;;  %v14610_v10 = vld [vmem:[#allocation2 + $0x2c] sm:$0x1]  ;;  %17351 = vst [vmem:[#allocation10_spill] sm:$0xff] %v14639_v63  ;;  %v14732_v63 = vld [vmem:[#allocation2 + $0x64] sm:$0xf] }
 0x1ef   : > { %13022 = vmatprep.subr.msk.bf16.mxu0 %vm1400_vm0, %v14537_v34  ;;  %v4319_v16 = vshll.u32 %v14610_v10, 16 }
 0x1f0   : > { %v4297_v19 = vrot.slane %v4295_v3, 5  ;;  %v4357_v3 = vshll.u32 %v14635_v13, 16 }
 0x1f1   : > { %v14641_v29 = vrot.slane %v4319_v16, 5 }
 0x1f5   : > { %12101 = vmatmul.mubr.msk.bf16.gmra.mrb[4].mxu0 %vm1351_vm9, %v13061_v52  ;;  %v14612_v52 = vld [vmem:[#allocation2 + $0x34] sm:$0xf] }
 0x1f6   : > { %12104 = vmatprep.mubr.msk.bf16.mxu0 %vm1351_vm9, %v13062_v44  ;;  %v4292_v44 = vor.u32 %v4291_v48, %v14593_v51  ;;  %v4333_v4 = vshll.u32 %v14612_v52, 16  ;;  %v4351_v48 = vshll.u32 %v4236_v0, 16 }
 0x1f8   : > { %v4293_v30 = vrot.slane %v4292_v44, 4  ;;  %v4361_v44 = vshrl.u32 %v14635_v13, 16  ;;  %v4353_v5 = vrot.slane %v4351_v48, 5  ;;  %v14683_v48 = vld [vmem:[#allocation2 + $0x4c] sm:$0xf] }
 0x1fa   : > { %v4298_v36 = vsel %vm13350_vm8, %v4293_v30, %v4297_v19  ;;  %v14673_v30 = vrot.slane %v4357_v3, 5  ;;  %v13072_v19 = vld [vmem:[#allocation2 + $0xc0] sm:$0xff]   ;;  %v4345_v3 = vrot.slane %v4343_v28, 5  ;;  %v4385_v28 = vshrl.u32 %v14683_v48, 16 }
 0x1fd   : > { %12105 = vmatmul.mubr.msk.bf16.gmra.mrb[8].mxu0 %vm1351_vm9, %v13063_v15  ;;  %v14621_v15 = vrot.slane %v4309_v59, 5 }
 0x1fe   : > { %12108 = vmatprep.mubr.msk.bf16.mxu0 %vm1351_vm9, %v13064_v57  ;;  %v4315_v57 = vrot.slane %v4313_v46, 4  ;;  %v14649_v46 = vld [vmem:[#allocation2 + $0x44] sm:$0x1] }
 0x200   : > { %v4316_v7 = vor.u32 %v4315_v57, %v14621_v15 }
 0x202   : > { %v14664_v57 = vrot.slane %v4316_v7, 4 }
 0x205   : > { %12109 = vmatmul.mubr.msk.bf16.gmra.mrb[12].mxu0 %vm1351_vm9, %v13065_v43  ;;  %v4283_v43 = vrot.slane %v4282_v54, 4  ;;  %v4330_v54 = vor.u32 %v4329_v8, %v4326_v45  ;;  %v4363_v45 = vrot.slane %v4361_v44, 4  ;;  %v4239_v8 = vld [vmem:[#allocation2 + $0x48] sm:$0xf] }
 0x206   : > { %12112 = vmatprep.mubr.msk.bf16.mxu0 %vm1351_vm9, %v13066_v62  ;;  %v4337_v62 = vshrl.u32 %v14612_v52, 16 }
 0x207   : > { %v4288_v9 = vsel %vm13350_vm8, %v4283_v43, %v14593_v51  ;;  %v5113_v51 = vrot.slane %v14659_v35, 5  ;;  %v11132_v43 = vrot.slane %v4966_v61, 9  ;;  %v4242_v61 = vld [vmem:[#allocation2 + $0x54] sm:$0xf] }
 0x208   : > { %v4339_v59 = vrot.slane %v4337_v62, 4  ;;  %v4367_v62 = vshll.u32 %v14649_v46, 16  ;;  %v11087_v7 = vcombine.low %v4288_v9, %v4298_v36 }
 0x20d   : > { %12113 = vmatmul.mubr.msk.bf16.gmra.mrb[16].mxu0 %vm1351_vm9, %v13067_v17  ;;  %v4348_v17 = vshrl.u32 %v4236_v0, 16  ;;  %v5112_v0 = vrot.slane %v5110_v6, 4 }
 0x20e   : > { %12116 = vmatprep.mubr.msk.bf16.mxu0 %vm1351_vm9, %v13068_v53  ;;  %v14647_v53 = vrot.slane %v4333_v4, 5 }
 0x20f   : > { %v4350_v16 = vrot.slane %v4348_v17, 4  ;;  %v4312_v17 = vsel %vm13350_vm8, %v14632_v32, %v14621_v15  ;;  %v4372_v15 = vshrl.u32 %v4239_v8, 16  ;;  %v4375_v32 = vshll.u32 %v4239_v8, 16 }
 0x210   : > { %v4340_v4 = vor.u32 %v4339_v59, %v14647_v53  ;;  %v14687_v59 = vsel %vm13741_vm15, %v5112_v0, %v5113_v51  ;;  %v4409_v8 = vshrl.u32 %v14544_v18, 16 }
 0x211   : > { %17353 = vst [vmem:[#allocation12_spill] sm:$0xff] %v14687_v59  ;;  %v4354_v44 = vor.u32 %v4353_v5, %v4350_v16  ;;  %v14705_v16 = vld [vmem:[#allocation2 + $0xd0] sm:$0xf]  ;;  %v14707_v5 = vld [vmem:[#allocation2 + $0xd4] sm:$0x1] }
 0x212   : > { %v4341_v36 = vrot.slane %v4340_v4, 4  ;;  %v4399_v4 = vshll.u32 %v4242_v61, 16  ;;  %v5124_v0 = vrot.slane %v14705_v16, 5 }
 0x214   : > { %v4346_v58 = vsel %vm13350_vm8, %v4341_v36, %v4345_v3  ;;  %v5126_v24 = vrot.slane %v5124_v0, 4 }
 0x215   : > { %12117 = vmatmul.mubr.msk.bf16.gmra.mrb[20].mxu0 %vm1351_vm9, %v13069_v55  ;;  %v14671_v55 = vrot.slane %v4330_v54, 4  ;;  %v4322_v54 = vsel %vm13350_vm8, %v14664_v57, %v14641_v29  ;;  %v4364_v29 = vor.u32 %v4363_v45, %v14673_v30  ;;  %v4381_v57 = vshll.u32 %v14683_v48, 16 }
 0x216   : > { %12120 = vmatprep.mubr.msk.bf16.mxu0 %vm1351_vm9, %v13070_v23  ;;  %v14677_v23 = vsel %vm13741_vm15, %v11132_v43, %v5110_v6  ;;  %v14695_v6 = vrot.slane %v4367_v62, 5  ;;  %v4396_v43 = vshrl.u32 %v4242_v61, 16  ;;  %v4968_v62 = vld [vmem:[#allocation2 + $0xcc] sm:$0xe]  ;;  %v4405_v45 = vshll.u32 %v14544_v18, 16 }
 0x217   : > { %17352 = vst [vmem:[#allocation11_spill] sm:$0xff] %v14677_v23  ;;  %v4336_v51 = vsel %vm13350_vm8, %v14671_v55, %v14647_v53  ;;  %v14712_v53 = vrot.slane %v4354_v44, 4  ;;  %v14714_v55 = vld [vmem:[#allocation2 + $0x50] sm:$0x1]  ;;  %v11134_v9 = vrot.slane %v4968_v62, 9  ;;  %v14722_v61 = vrot.slane %v4375_v32, 5 }
 0x218   : > { %v14726_v44 = vrot.slane %v4364_v29, 4  ;;  %v14728_v59 = vrot.slane %v4381_v57, 5  ;;  %v14730_v23 = vrot.slane %v4385_v28, 4  ;;  %v4391_v3 = vshll.u32 %v14714_v55, 16 }
 0x219   : > { %v14736_v18 = vsel %vm13741_vm15, %v11134_v9, %v5124_v0  ;;  %v14739_v36 = vrot.slane %v4396_v43, 4  ;;  %v14747_v29 = vrot.slane %v4405_v45, 5  ;;  %v14749_v57 = vrot.slane %v4409_v8, 4 }
 0x21a   : > { %17354 = vst [vmem:[#allocation13_spill] sm:$0xff] %v14736_v18  ;;  %v4420_v28 = vshrl.u32 %v14724_v60, 16  ;;  %v14754_v62 = vcombine.low %v4312_v17, %v4322_v54  ;;  %v4423_v43 = vshll.u32 %v14724_v60, 16  ;;  %v4433_v0 = vshrl.u32 %v14732_v63, 16  ;;  %v14768_v17 = vld [vmem:[#allocation2 + $0x68] sm:$0x1] }
 0x21b   : > { %v4388_v45 = vor.u32 %v14730_v23, %v14728_v59  ;;  %v14771_v60 = vcombine.low %v4336_v51, %v4346_v58  ;;  %v14781_v54 = vrot.slane %v4391_v3, 5  ;;  %v14783_v23 = vld [vmem:[#allocation2 + $0x6c] sm:$0xf]  ;;  %v17356_v8 = vmov 0  }
 0x21c   : > { %344 = vst.msk [vmem:[#allocation3 + $0x18] sm:$0xf] %vm336_vm1, %v17356_v8  ;;  %337 = vst.msk [vmem:[#allocation3] sm:$0xf] %vm336_vm1, %v17356_v8  ;;  %v4415_v51 = vshll.u32 %v14546_v42, 16  ;;  %v4425_v3 = vrot.slane %v4423_v43, 5 }
 0x21d   : > { %12121 = vmatmul.mubr.msk.bf16.gmra.mrb[24].mxu0 %vm1351_vm9, %v13071_v26  ;;  %v5127_v26 = vrot.slane %v14707_v5, 5  ;;  %338 = vst.msk [vmem:[#allocation3 + $0x4] sm:$0xf] %vm336_vm1, %v17356_v8  ;;  %341 = vst.msk [vmem:[#allocation3 + $0xc] sm:$0xf] %vm336_vm1, %v17356_v8  ;;  %v4444_v41 = vshrl.u32 %v14783_v23, 16 }
 0x21e   : > { %12124 = vmatprep.mubr.msk.bf16.mxu0 %vm1351_vm9, %v13072_v19  ;;  %v14720_v19 = vrot.slane %v4372_v15, 4  ;;  %v14741_v15 = vrot.slane %v4399_v4, 5  ;;  %v4429_v4 = vshll.u32 %v14732_v63, 16  ;;  %342 = vst.msk [vmem:[#allocation3 + $0x10] sm:$0xf] %vm336_vm1, %v17356_v8  ;;  %v4457_v42 = vshrl.u32 %v14562_v39, 16 }
 0x21f   : > { %v14745_v32 = vsel %vm13741_vm15, %v5126_v24, %v5127_v26  ;;  %v14762_v24 = vsel %vm1400_vm0, %v14537_v34, 0  ;;  %345 = vst.msk [vmem:[#allocation3 + $0x1c] sm:$0xf] %vm336_vm1, %v17356_v8  ;;  %347 = vst.msk [vmem:[#allocation3 + $0x24] sm:$0xf] %vm336_vm1, %v17356_v8  ;;  %v4439_v34 = vshll.u32 %v14768_v17, 16 }
 0x220   : > { %17355 = vst [vmem:[#allocation14_spill] sm:$0xff] %v14745_v32  ;;  %v4378_v26 = vor.u32 %v14722_v61, %v14720_v19  ;;  %348 = vst.msk [vmem:[#allocation3 + $0x28] sm:$0xf] %vm336_vm1, %v17356_v8  ;;  %v4402_v58 = vor.u32 %v14741_v15, %v14739_v36  ;;  %v4422_v19 = vrot.slane %v4420_v28, 4  ;;  %v4251_v61 = vld [vmem:[#allocation2 + $0x78] sm:$0xf] }
 0x221   : > { %350 = vst.msk [vmem:[#allocation3 + $0x30] sm:$0xf] %vm336_vm1, %v17356_v8  ;;  %351 = vst.msk [vmem:[#allocation3 + $0x34] sm:$0xf] %vm336_vm1, %v17356_v8  ;;  %v14862_v9 = vrot.slane %v4429_v4, 5  ;;  %v4447_v36 = vshll.u32 %v14783_v23, 16 }
 0x222   : > { %353 = vst.msk [vmem:[#allocation3 + $0x3c] sm:$0xf] %vm336_vm1, %v17356_v8  ;;  %354 = vst.msk [vmem:[#allocation3 + $0x40] sm:$0xf] %vm336_vm1, %v17356_v8  ;;  %v14865_v32 = vld [vmem:[#allocation2 + $0x7c] sm:$0xf] }
 0x223   : > { %356 = vst.msk [vmem:[#allocation3 + $0x48] sm:$0xf] %vm336_vm1, %v17356_v8  ;;  %357 = vst.msk [vmem:[#allocation3 + $0x4c] sm:$0xf] %vm336_vm1, %v17356_v8  ;;  %v4379_v18 = vrot.slane %v4378_v26, 4  ;;  %v4453_v15 = vshll.u32 %v14562_v39, 16  ;;  %v4426_v26 = vor.u32 %v4425_v3, %v4422_v19 }
 0x224   : > { %359 = vst.msk [vmem:[#allocation3 + $0x54] sm:$0xf] %vm336_vm1, %v17356_v8  ;;  %360 = vst.msk [vmem:[#allocation3 + $0x58] sm:$0xf] %vm336_vm1, %v17356_v8  ;;  %v4471_v28 = vshll.u32 %v4251_v61, 16  ;;  %v14871_v43 = vrot.slane %v4402_v58, 4 }
 0x225   : > { %12125 = vmatmul.mubr.msk.bf16.gmra.mrb[28].mxu0 %vm1351_vm9, %v13073_v47  ;;  %362 = vst.msk [vmem:[#allocation3 + $0x60] sm:$0xf] %vm336_vm1, %v17356_v8  ;;  %363 = vst.msk [vmem:[#allocation3 + $0x64] sm:$0xf] %vm336_vm1, %v17356_v8  ;;  %v4435_v47 = vrot.slane %v4433_v0, 4  ;;  %v4417_v4 = vrot.slane %v4415_v51, 5  ;;  %v4384_v39 = vsel %vm13350_vm8, %v4379_v18, %v14728_v59 }
 0x226   : > { %12130 = vmatprep.mubr.msk.bf16.mxu0 %vm1351_vm9, %v11087_v7  ;;  %365 = vst.msk [vmem:[#allocation3 + $0x6c] sm:$0xf] %vm336_vm1, %v17356_v8  ;;  %366 = vst.msk [vmem:[#allocation3 + $0x70] sm:$0xf] %vm336_vm1, %v17356_v8  ;;  %v4412_v7 = vor.u32 %v14749_v57, %v14747_v29  ;;  %v4468_v57 = vshrl.u32 %v4251_v61, 16  ;;  %v4477_v0 = vshll.u32 %v14865_v32, 16 }
 0x227   : > { %368 = vst.msk [vmem:[#allocation3 + $0x78] sm:$0xf] %vm336_vm1, %v17356_v8  ;;  %369 = vst.msk [vmem:[#allocation3 + $0x7c] sm:$0xf] %vm336_vm1, %v17356_v8  ;;  %v4481_v56 = vshrl.u32 %v14865_v32, 16  ;;  %v4441_v1 = vrot.slane %v4439_v34, 5 }
 0x228   : > { %371 = vst.msk [vmem:[#allocation3 + $0x84] sm:$0xf] %vm336_vm1, %v17356_v8  ;;  %372 = vst.msk [vmem:[#allocation3 + $0x88] sm:$0xf] %vm336_vm1, %v17356_v8  ;;  %v4413_v22 = vrot.slane %v4412_v7, 4  ;;  %v4446_v58 = vrot.slane %v4444_v41, 4 }
 0x229   : > { %374 = vst.msk [vmem:[#allocation3 + $0x90] sm:$0xf] %vm336_vm1, %v17356_v8  ;;  %375 = vst.msk [vmem:[#allocation3 + $0x94] sm:$0xf] %vm336_vm1, %v17356_v8  ;;  %v4449_v51 = vrot.slane %v4447_v36, 5  ;;  %v4459_v34 = vrot.slane %v4457_v42, 4  ;;  %v17358_v36 = vsel %vm13350_vm8, %v14712_v53, %v14673_v30 }
 0x22a   : > { %377 = vst.msk [vmem:[#allocation3 + $0x9c] sm:$0xf] %vm336_vm1, %v17356_v8  ;;  %378 = vst.msk [vmem:[#allocation3 + $0xa0] sm:$0xf] %vm336_vm1, %v17356_v8  ;;  %v4470_v7 = vrot.slane %v4468_v57, 4  ;;  %v14891_v61 = vrot.slane %v4477_v0, 5 }
 0x22b   : > { %380 = vst.msk [vmem:[#allocation3 + $0xa8] sm:$0xf] %vm336_vm1, %v17356_v8  ;;  %381 = vst.msk [vmem:[#allocation3 + $0xac] sm:$0xf] %vm336_vm1, %v17356_v8  ;;  %v14889_v19 = vld [vmem:[#allocation2 + $0x80] sm:$0x1]  ;;  %v4450_v42 = vor.u32 %v4449_v51, %v4446_v58 }
 0x22c   : > { %383 = vst.msk [vmem:[#allocation3 + $0xb4] sm:$0xf] %vm336_vm1, %v17356_v8  ;;  %384 = vst.msk [vmem:[#allocation3 + $0xb8] sm:$0xf] %vm336_vm1, %v17356_v8  ;;  %v4483_v59 = vrot.slane %v4481_v56, 4  ;;  %v4492_v18 = vshrl.u32 %v4254_v11, 16 }
 0x22d   : > { %386 = vst.msk [vmem:[#allocation3 + $0xc0] sm:$0xf] %vm336_vm1, %v17356_v8  ;;  %387 = vst.msk [vmem:[#allocation3 + $0xc4] sm:$0xf] %vm336_vm1, %v17356_v8  ;;  %12131 = vmatmul.mubr.msk.bf16.vlgmr.msra.gmra.mrb[0].mxu0 %vm1351_vm9, %v14754_v62  ;;  %v4473_v62 = vrot.slane %v4471_v28, 5  ;;  %v4495_v3 = vshll.u32 %v4254_v11, 16  ;;  %v4408_v11 = vsel %vm13350_vm8, %v14871_v43, %v14747_v29 }
 0x22e   : > { %389 = vst.msk [vmem:[#allocation3 + $0xcc] sm:$0xf] %vm336_vm1, %v17356_v8  ;;  %390 = vst.msk [vmem:[#allocation3 + $0xd0] sm:$0xf] %vm336_vm1, %v17356_v8  ;;  %v4389_v8 = vrot.slane %v4388_v45, 4  ;;  %v4436_v45 = vor.u32 %v4435_v47, %v14862_v9  ;;  %12163 = vmatpush3.bf16.msra.mxu0 %v14762_v24  ;;  %12134 = vmatprep.mubr.msk.bf16.mxu0 %vm1351_vm9, %v14771_v60  ;;  %v14887_v47 = vrot.slane %v4453_v15, 5 }
 0x22f   : > { %v4505_v24 = vshrl.u32 %v14584_v25, 16  ;;  %v17357_v60 = vsel %vm13350_vm8, %v14726_v44, %v14695_v6  ;;  %v4463_v6 = vshll.u32 %v14564_v33, 16  ;;  %v4487_v44 = vshll.u32 %v14889_v19, 16  ;;  %v4257_v28 = vld [vmem:[#allocation2 + $0x90] sm:$0xf] }
 0x230   : > { %v4394_v23 = vsel %vm13350_vm8, %v4389_v8, %v14781_v54  ;;  %v4427_v54 = vrot.slane %v4426_v26, 4  ;;  %v4437_v41 = vrot.slane %v4436_v45, 4  ;;  %v4501_v8 = vshll.u32 %v14584_v25, 16  ;;  %v14914_v0 = vld [vmem:[#allocation2 + $0x94] sm:$0xf] }
 0x231   : > { %v11090_v15 = vcombine.low %v17358_v36, %v17357_v60  ;;  %v11091_v56 = vcombine.low %v4384_v39, %v4394_v23  ;;  %v4418_v25 = vsel %vm13350_vm8, %v4413_v22, %v4417_v4  ;;  %v4460_v57 = vor.u32 %v4459_v34, %v14887_v47 }
 0x232   : > { %v4474_v30 = vor.u32 %v4473_v62, %v4470_v7  ;;  %v4484_v53 = vor.u32 %v4483_v59, %v14891_v61  ;;  %v4494_v26 = vrot.slane %v4492_v18, 4  ;;  %v4497_v45 = vrot.slane %v4495_v3, 5  ;;  %v4260_v3 = vld [vmem:[#allocation2 + $0x9c] sm:$0xf] }
 0x233   : > { %v4432_v29 = vsel %vm13350_vm8, %v4427_v54, %v14862_v9  ;;  %v4442_v22 = vsel %vm13350_vm8, %v4437_v41, %v4441_v1  ;;  %v14922_v43 = vrot.slane %v4501_v8, 5  ;;  %v4507_v33 = vrot.slane %v4505_v24, 4  ;;  %v14930_v24 = vld [vmem:[#allocation2 + $0x98] sm:$0x1] }
 0x234   : > { %v4516_v4 = vshrl.u32 %v4257_v28, 16  ;;  %v4519_v39 = vshll.u32 %v4257_v28, 16  ;;  %v4525_v23 = vshll.u32 %v14914_v0, 16  ;;  %v4529_v58 = vshrl.u32 %v14914_v0, 16 }
 0x235   : > { %12135 = vmatmul.mubr.msk.bf16.gmra.mrb[4].mxu0 %vm1351_vm9, %v11090_v15  ;;  %v4451_v51 = vrot.slane %v4450_v42, 4  ;;  %v4461_v34 = vrot.slane %v4460_v57, 4  ;;  %v4465_v7 = vrot.slane %v4463_v6, 5  ;;  %v4489_v9 = vrot.slane %v4487_v44, 5 }
 0x236   : > { %12138 = vmatprep.mubr.msk.bf16.mxu0 %vm1351_vm9, %v11091_v56  ;;  %v4475_v62 = vrot.slane %v4474_v30, 4  ;;  %v4485_v59 = vrot.slane %v4484_v53, 4  ;;  %v4498_v1 = vor.u32 %v4497_v45, %v4494_v26  ;;  %v4511_v18 = vshll.u32 %v14586_v2, 16 }
 0x237   : > { %v11092_v54 = vcombine.low %v4408_v11, %v4418_v25  ;;  %v11093_v41 = vcombine.low %v4432_v29, %v4442_v22  ;;  %v4508_v8 = vor.u32 %v4507_v33, %v14922_v43  ;;  %v4518_v60 = vrot.slane %v4516_v4, 4  ;;  %v4263_v11 = vld [vmem:[#allocation2 + $0xa8] sm:$0xf]  ;;  %v14939_v25 = vld [vmem:[#allocation2 + $0xac] sm:$0xf] }
 0x238   : > { %v4521_v36 = vrot.slane %v4519_v39, 5  ;;  %v14932_v15 = vrot.slane %v4525_v23, 5  ;;  %v4531_v56 = vrot.slane %v4529_v58, 4  ;;  %v4456_v42 = vsel %vm13350_vm8, %v4451_v51, %v14887_v47 }
 0x239   : > { %v4466_v57 = vsel %vm13350_vm8, %v4461_v34, %v4465_v7  ;;  %v4540_v2 = vshrl.u32 %v4260_v3, 16  ;;  %v4543_v6 = vshll.u32 %v4260_v3, 16  ;;  %v4480_v44 = vsel %vm13350_vm8, %v4475_v62, %v14891_v61 }
 0x23a   : > { %v4490_v28 = vsel %vm13350_vm8, %v4485_v59, %v4489_v9  ;;  %v4499_v30 = vrot.slane %v4498_v1, 4  ;;  %v4513_v53 = vrot.slane %v4511_v18, 5  ;;  %v4509_v26 = vrot.slane %v4508_v8, 4  ;;  %v14961_v18 = vld [vmem:[#allocation2 + $0xb0] sm:$0x1] }
 0x23b   : > { %v4535_v47 = vshll.u32 %v14930_v24, 16  ;;  %v4549_v45 = vshll.u32 %v14616_v27, 16  ;;  %v4553_v29 = vshrl.u32 %v14616_v27, 16  ;;  %v4564_v22 = vshrl.u32 %v4263_v11, 16 }
 0x23c   : > { %v4567_v33 = vshll.u32 %v4263_v11, 16  ;;  %v4573_v4 = vshll.u32 %v14939_v25, 16  ;;  %v4577_v61 = vshrl.u32 %v14939_v25, 16  ;;  %v4522_v39 = vor.u32 %v4521_v36, %v4518_v60  ;;  %v4266_v60 = vld [vmem:[#allocation2 + $0xb4] sm:$0xf] }
 0x23d   : > { %12139 = vmatmul.mubr.msk.bf16.gmra.mrb[8].mxu0 %vm1351_vm9, %v11092_v54  ;;  %v4532_v23 = vor.u32 %v4531_v56, %v14932_v15  ;;  %v4542_v58 = vrot.slane %v4540_v2, 4  ;;  %v4545_v51 = vrot.slane %v4543_v6, 5  ;;  %v11094_v34 = vcombine.low %v4456_v42, %v4466_v57 }
 0x23e   : > { %12142 = vmatprep.mubr.msk.bf16.mxu0 %vm1351_vm9, %v11093_v41  ;;  %v11095_v7 = vcombine.low %v4480_v44, %v4490_v28  ;;  %v4504_v27 = vsel %vm13350_vm8, %v4499_v30, %v14922_v43  ;;  %v4514_v9 = vsel %vm13350_vm8, %v4509_v26, %v4513_v53  ;;  %v4537_v62 = vrot.slane %v4535_v47, 5  ;;  %v4269_v28 = vld [vmem:[#allocation2 + $0xc0] sm:$0xf]  ;;  %v14966_v30 = vld [vmem:[#allocation2 + $0xc4] sm:$0xf] }
 0x23f   : > { %v14959_v59 = vrot.slane %v4549_v45, 5  ;;  %v4555_v1 = vrot.slane %v4553_v29, 4  ;;  %v4566_v3 = vrot.slane %v4564_v22, 4  ;;  %v4569_v54 = vrot.slane %v4567_v33, 5 }
 0x240   : > { %v4575_v41 = vrot.slane %v4573_v4, 5  ;;  %v4579_v8 = vrot.slane %v4577_v61, 4  ;;  %v4523_v36 = vrot.slane %v4522_v39, 4  ;;  %v4533_v56 = vrot.slane %v4532_v23, 4 }
 0x241   : > { %v4546_v42 = vor.u32 %v4545_v51, %v4542_v58  ;;  %v4559_v57 = vshll.u32 %v14618_v37, 16  ;;  %v4583_v43 = vshll.u32 %v14961_v18, 16  ;;  %v11096_v2 = vcombine.low %v4504_v27, %v4514_v9 }
 0x242   : > { %v4556_v6 = vor.u32 %v4555_v1, %v14959_v59  ;;  %v4588_v11 = vshrl.u32 %v4266_v60, 16  ;;  %v4591_v44 = vshll.u32 %v4266_v60, 16  ;;  %v4570_v53 = vor.u32 %v4569_v54, %v4566_v3  ;;  %v4272_v60 = vld [vmem:[#allocation2 + $0xcc] sm:$0xf] }
 0x243   : > { %v4580_v26 = vor.u32 %v4579_v8, %v4575_v41  ;;  %v4597_v47 = vshll.u32 %v14657_v40, 16  ;;  %v4601_v45 = vshrl.u32 %v14657_v40, 16  ;;  %v4528_v37 = vsel %vm13350_vm8, %v4523_v36, %v14932_v15 }
 0x244   : > { %v4538_v29 = vsel %vm13350_vm8, %v4533_v56, %v4537_v62  ;;  %v4547_v22 = vrot.slane %v4546_v42, 4  ;;  %v4561_v33 = vrot.slane %v4559_v57, 5  ;;  %v4612_v4 = vshrl.u32 %v4269_v28, 16  ;;  %v14984_v57 = vld [vmem:[#allocation2 + $0xc8] sm:$0x1] }
 0x245   : > { %12143 = vmatmul.mubr.msk.bf16.gmra.mrb[12].mxu0 %vm1351_vm9, %v11094_v34  ;;  %v4615_v61 = vshll.u32 %v4269_v28, 16  ;;  %v4621_v39 = vshll.u32 %v14966_v30, 16  ;;  %v4625_v23 = vshrl.u32 %v14966_v30, 16  ;;  %v4557_v58 = vrot.slane %v4556_v6, 4 }
 0x246   : > { %12146 = vmatprep.mubr.msk.bf16.mxu0 %vm1351_vm9, %v11095_v7  ;;  %v4585_v51 = vrot.slane %v4583_v43, 5  ;;  %v4590_v40 = vrot.slane %v4588_v11, 4  ;;  %v4593_v34 = vrot.slane %v4591_v44, 5  ;;  %v4571_v7 = vrot.slane %v4570_v53, 4 }
 0x247   : > { %v4581_v27 = vrot.slane %v4580_v26, 4  ;;  %v4599_v9 = vrot.slane %v4597_v47, 5  ;;  %v4603_v1 = vrot.slane %v4601_v45, 4  ;;  %v11097_v15 = vcombine.low %v4528_v37, %v4538_v29 }
 0x248   : > { %v4614_v3 = vrot.slane %v4612_v4, 4  ;;  %v4617_v54 = vrot.slane %v4615_v61, 5  ;;  %v4623_v62 = vrot.slane %v4621_v39, 5  ;;  %v4627_v8 = vrot.slane %v4625_v23, 4 }
 0x249   : > { %v4552_v36 = vsel %vm13350_vm8, %v4547_v22, %v14959_v59  ;;  %v4562_v56 = vsel %vm13350_vm8, %v4557_v58, %v4561_v33  ;;  %v4594_v42 = vor.u32 %v4593_v34, %v4590_v40  ;;  %v4576_v43 = vsel %vm13350_vm8, %v4571_v7, %v4575_v41 }
 0x24a   : > { %v4586_v6 = vsel %vm13350_vm8, %v4581_v27, %v4585_v51  ;;  %v4604_v11 = vor.u32 %v4603_v1, %v4599_v9  ;;  %v4607_v44 = vshll.u32 %v14659_v35, 16  ;;  %v4636_v59 = vshrl.u32 %v4272_v60, 16 }
 0x24b   : > { %v4639_v28 = vshll.u32 %v4272_v60, 16  ;;  %v4645_v53 = vshll.u32 %v14705_v16, 16  ;;  %v4649_v26 = vshrl.u32 %v14705_v16, 16  ;;  %v4618_v47 = vor.u32 %v4617_v54, %v4614_v3  ;;  %v4953_v54 = vld [vmem:[#allocation2 + $0x18] sm:$0xe] }
 0x24c   : > { %v4628_v45 = vor.u32 %v4627_v8, %v4623_v62  ;;  %v11098_v37 = vcombine.low %v4552_v36, %v4562_v56  ;;  %v11099_v41 = vcombine.low %v4576_v43, %v4586_v6  ;;  %v4595_v29 = vrot.slane %v4594_v42, 4 }
 0x24d   : > { %12147 = vmatmul.mubr.msk.bf16.gmra.mrb[16].mxu0 %vm1351_vm9, %v11096_v2  ;;  %v4631_v2 = vshll.u32 %v14984_v57, 16  ;;  %v4605_v22 = vrot.slane %v4604_v11, 4  ;;  %v4609_v33 = vrot.slane %v4607_v44, 5  ;;  %v4638_v4 = vrot.slane %v4636_v59, 4  ;;  %v4954_v59 = vld [vmem:[#allocation2 + $0x24] sm:$0xe] }
 0x24e   : > { %12150 = vmatprep.mubr.msk.bf16.mxu0 %vm1351_vm9, %v11097_v15  ;;  %v4641_v61 = vrot.slane %v4639_v28, 5  ;;  %v4647_v35 = vrot.slane %v4645_v53, 5  ;;  %v4651_v39 = vrot.slane %v4649_v26, 4  ;;  %v4619_v23 = vrot.slane %v4618_v47, 4  ;;  %v4955_v28 = vld [vmem:[#allocation2 + $0x30] sm:$0xe] }
 0x24f   : > { %v4629_v58 = vrot.slane %v4628_v45, 4  ;;  %v4633_v51 = vrot.slane %v4631_v2, 5  ;;  %v4600_v16 = vsel %vm13350_vm8, %v4595_v29, %v4599_v9  ;;  %v4610_v40 = vsel %vm13350_vm8, %v4605_v22, %v4609_v33 }
 0x250   : > { %v4642_v34 = vor.u32 %v4641_v61, %v4638_v4  ;;  %v4652_v7 = vor.u32 %v4651_v39, %v4647_v35  ;;  %v4655_v27 = vshll.u32 %v14707_v5, 16  ;;  %v4624_v1 = vsel %vm13350_vm8, %v4619_v23, %v4623_v62  ;;  %v4956_v4 = vld [vmem:[#allocation2 + $0x3c] sm:$0xe]  ;;  %v4957_v61 = vld [vmem:[#allocation2 + $0x48] sm:$0xe] }
 0x251   : > { %v4634_v15 = vsel %vm13350_vm8, %v4629_v58, %v4633_v51  ;;  %v5019_v3 = vrot.slane %v14569_v50, 5  ;;  %v11100_v8 = vcombine.low %v4600_v16, %v4610_v40  ;;  %v11119_v42 = vrot.slane %v4953_v54, 9 }
 0x252   : > { %v11101_v9 = vcombine.low %v4624_v1, %v4634_v15  ;;  %v4643_v60 = vrot.slane %v4642_v34, 4  ;;  %v4653_v36 = vrot.slane %v4652_v7, 4  ;;  %v4657_v56 = vrot.slane %v4655_v27, 5  ;;  %v4959_v1 = vld [vmem:[#allocation2 + $0x60] sm:$0xe] }
 0x253   : > { %v5021_v43 = vrot.slane %v5019_v3, 4  ;;  %v5022_v6 = vrot.slane %v14595_v38, 5  ;;  %v5026_v62 = vrot.slane %v14591_v14, 5  ;;  %v5020_v11 = vsel %vm13741_vm15, %v11119_v42, %v5019_v3 }
 0x254   : > { %v4648_v5 = vsel %vm13350_vm8, %v4643_v60, %v4647_v35  ;;  %v4658_v50 = vsel %vm13350_vm8, %v4653_v36, %v4657_v56  ;;  %v5033_v38 = vrot.slane %v14612_v52, 5  ;;  %v11120_v47 = vrot.slane %v4954_v59, 9 }
 0x255   : > { %12151 = vmatmul.mubr.msk.bf16.gmra.mrb[20].mxu0 %vm1351_vm9, %v11098_v37  ;;  %v5023_v44 = vsel %vm13741_vm15, %v5021_v43, %v5022_v6  ;;  %v11102_v53 = vcombine.low %v4648_v5, %v4658_v50  ;;  %v5028_v45 = vrot.slane %v5026_v62, 4  ;;  %v5029_v2 = vrot.slane %v14610_v10, 5 }
 0x256   : > { %12154 = vmatprep.mubr.msk.bf16.mxu0 %vm1351_vm9, %v11099_v41  ;;  %v11136_v26 = vcombine.low %v5020_v11, %v5023_v44  ;;  %v11121_v37 = vrot.slane %v4955_v28, 9  ;;  %v5035_v41 = vrot.slane %v5033_v38, 4  ;;  %v5036_v14 = vrot.slane %v14645_v12, 5 }
 0x257   : > { %v5027_v29 = vsel %vm13741_vm15, %v11120_v47, %v5026_v62  ;;  %v5030_v52 = vsel %vm13741_vm15, %v5028_v45, %v5029_v2  ;;  %v5040_v22 = vrot.slane %v14635_v13, 5  ;;  %v5047_v12 = vrot.slane %v14683_v48, 5  ;;  %v4963_v62 = vld [vmem:[#allocation2 + $0x90] sm:$0xe] }
 0x258   : > { %v5034_v33 = vsel %vm13741_vm15, %v11121_v37, %v5033_v38  ;;  %v5037_v10 = vsel %vm13741_vm15, %v5035_v41, %v5036_v14  ;;  %v11137_v35 = vcombine.low %v5027_v29, %v5030_v52  ;;  %v11122_v23 = vrot.slane %v4956_v4, 9  ;;  %v17360_v38 = vld [vmem:[#allocation5_spill] sm:$0xff]  ;;  %v17363_v37 = vld [vmem:[#allocation7_spill] sm:$0xff]  ;;  %v17364_v41 = vld [vmem:[#allocation8_spill] sm:$0xff] }
 0x259   : > { %v11138_v39 = vcombine.low %v5034_v33, %v5037_v10  ;;  %v5042_v58 = vrot.slane %v5040_v22, 4  ;;  %v5043_v51 = vrot.slane %v14649_v46, 5  ;;  %v11123_v16 = vrot.slane %v4957_v61, 9  ;;  %v17367_v61 = vld [vmem:[#allocation10_spill] sm:$0xff] }
 0x25a   : > { %v5049_v40 = vrot.slane %v5047_v12, 4  ;;  %v5050_v13 = vrot.slane %v14714_v55, 5  ;;  %v5041_v34 = vsel %vm13741_vm15, %v11122_v23, %v5040_v22  ;;  %v5061_v27 = vrot.slane %v14732_v63, 5  ;;  %v4961_v63 = vld [vmem:[#allocation2 + $0x78] sm:$0xe] }
 0x25b   : > { %v5044_v48 = vsel %vm13741_vm15, %v5042_v58, %v5043_v51  ;;  %v5048_v7 = vsel %vm13741_vm15, %v11123_v16, %v5047_v12  ;;  %v11125_v3 = vrot.slane %v4959_v1, 9  ;;  %v5075_v36 = vrot.slane %v14865_v32, 5  ;;  %v4967_v22 = vld [vmem:[#allocation2 + $0xc0] sm:$0xe]  ;;  %v17366_v12 = vld [vmem:[#allocation9_spill] sm:$0xff]  ;;  %v17369_v58 = vld [vmem:[#allocation11_spill] sm:$0xff] }
 0x25c   : > { %v5051_v46 = vsel %vm13741_vm15, %v5049_v40, %v5050_v13  ;;  %v11139_v55 = vcombine.low %v5041_v34, %v5044_v48  ;;  %v5063_v54 = vrot.slane %v5061_v27, 4  ;;  %v11127_v42 = vrot.slane %v4961_v63, 9  ;;  %v17370_v51 = vld [vmem:[#allocation12_spill] sm:$0xff]  ;;  %v17373_v40 = vld [vmem:[#allocation14_spill] sm:$0xff]  ;;  %v6066_v48 = vld [vmem:[#allocation3] sm:$0xf] }
 0x25d   : > { %12155 = vmatmul.mubr.msk.bf16.gmra.mrb[24].mxu0 %vm1351_vm9, %v11100_v8  ;;  %v11140_v15 = vcombine.low %v5048_v7, %v5051_v46  ;;  %v5064_v8 = vrot.slane %v14768_v17, 5  ;;  %v5077_v43 = vrot.slane %v5075_v36, 4  ;;  %v5078_v6 = vrot.slane %v14889_v19, 5  ;;  %v6067_v7 = vld [vmem:[#allocation3 + $0x4] sm:$0xf] }
 0x25e   : > { %12158 = vmatprep.mubr.msk.bf16.mxu0 %vm1351_vm9, %v11101_v9  ;;  %v5062_v9 = vsel %vm13741_vm15, %v11125_v3, %v5061_v27  ;;  %v17359_v17 = vcombine.low %v14553_v31, %v14557_v21  ;;  %v5076_v5 = vsel %vm13741_vm15, %v11127_v42, %v5075_v36  ;;  %v5089_v32 = vrot.slane %v14914_v0, 5  ;;  %v17361_v31 = vld [vmem:[#allocation6_spill] sm:$0xff] }
 0x25f   : > { %v5065_v60 = vsel %vm13741_vm15, %v5063_v54, %v5064_v8  ;;  %v5079_v50 = vsel %vm13741_vm15, %v5077_v43, %v5078_v6  ;;  %v11129_v44 = vrot.slane %v4963_v62, 9  ;;  %v5092_v19 = vrot.slane %v14930_v24, 5  ;;  %v15157_v62 = vld [vmem:[%s17171_s4] sm:$0xf] }
 0x260   : > { %v11142_v56 = vcombine.low %v5062_v9, %v5065_v60  ;;  %v11144_v11 = vcombine.low %v5076_v5, %v5079_v50  ;;  %v5091_v59 = vrot.slane %v5089_v32, 4  ;;  %v17362_v21 = vcombine.low %v17360_v38, %v17361_v31  ;;  %v11202_v60 = vld [vmem:[%s17171_s4 + $0x4] sm:$0xf] }
 0x261   : > { %v5090_v28 = vsel %vm13741_vm15, %v11129_v44, %v5089_v32  ;;  %v5103_v0 = vrot.slane %v14939_v25, 5  ;;  %v5106_v24 = vrot.slane %v14961_v18, 5  ;;  %v17365_v14 = vcombine.low %v17363_v37, %v17364_v41  ;;  %13023 = vmatprep.subr.msk.bf16.mxu1 %vm6598_vm2, %v11202_v60 }
 0x262   : > { %v5117_v25 = vrot.slane %v14966_v30, 5  ;;  %v11133_v10 = vrot.slane %v4967_v22, 9  ;;  %v5120_v18 = vrot.slane %v14984_v57, 5  ;;  %v17371_v16 = vcombine.low %v17369_v58, %v17370_v51  ;;  %v17372_v57 = vld [vmem:[#allocation13_spill] sm:$0xff] }
 0x263   : > { %v5105_v2 = vrot.slane %v5103_v0, 4  ;;  %v17374_v13 = vcombine.low %v17372_v57, %v17373_v40  ;;  %vm339_vm0 = vcmask 57344   ;;  %v17375_v34 = vmov 0  }
 0x264   : > { %v5119_v4 = vrot.slane %v5117_v25, 4  ;;  %346 = vst.msk [vmem:[#allocation3 + $0x20] sm:$0x1] %vm339_vm0, %v17375_v34  ;;  %340 = vst.msk [vmem:[#allocation3 + $0x8] sm:$0x1] %vm339_vm0, %v17375_v34  ;;  %v6116_v46 = vshrl.u32 %v6066_v48, 16 }
 0x265   : > { %12159 = vmatmul.mubr.msk.bf16.gmra.mrb[28].mxu0 %vm1351_vm9, %v11102_v53  ;;  %v5093_v53 = vsel %vm13741_vm15, %v5091_v59, %v5092_v19  ;;  %v5107_v52 = vsel %vm13741_vm15, %v5105_v2, %v5106_v24  ;;  %343 = vst.msk [vmem:[#allocation3 + $0x14] sm:$0x1] %vm339_vm0, %v17375_v34  ;;  %349 = vst.msk [vmem:[#allocation3 + $0x2c] sm:$0x1] %vm339_vm0, %v17375_v34  ;;  %v6119_v27 = vshll.u32 %v6066_v48, 16  ;;  %v6125_v1 = vshll.u32 %v6067_v7, 16 }
 0x266   : > { %12164 = vmatprep.mubr.msk.bf16.mxu0 %vm1351_vm9, %v11136_v26  ;;  %v4965_v26 = vld [vmem:[#allocation2 + $0xa8] sm:$0xe]  ;;  %v11146_v47 = vcombine.low %v5090_v28, %v5093_v53  ;;  %v5121_v23 = vsel %vm13741_vm15, %v5119_v4, %v5120_v18  ;;  %352 = vst.msk [vmem:[#allocation3 + $0x38] sm:$0x1] %vm339_vm0, %v17375_v34  ;;  %355 = vst.msk [vmem:[#allocation3 + $0x44] sm:$0x1] %vm339_vm0, %v17375_v34 }
 0x267   : > { %v11131_v45 = vrot.slane %v4965_v26, 9  ;;  %358 = vst.msk [vmem:[#allocation3 + $0x50] sm:$0x1] %vm339_vm0, %v17375_v34  ;;  %361 = vst.msk [vmem:[#allocation3 + $0x5c] sm:$0x1] %vm339_vm0, %v17375_v34  ;;  %v6121_v3 = vrot.slane %v6119_v27, 5 }
 0x268   : > { %364 = vst.msk [vmem:[#allocation3 + $0x68] sm:$0x1] %vm339_vm0, %v17375_v34  ;;  %367 = vst.msk [vmem:[#allocation3 + $0x74] sm:$0x1] %vm339_vm0, %v17375_v34  ;;  %v6127_v54 = vrot.slane %v6125_v1, 5 }
 0x269   : > { %v5104_v29 = vsel %vm13741_vm15, %v11131_v45, %v5103_v0  ;;  %370 = vst.msk [vmem:[#allocation3 + $0x80] sm:$0x1] %vm339_vm0, %v17375_v34  ;;  %373 = vst.msk [vmem:[#allocation3 + $0x8c] sm:$0x1] %vm339_vm0, %v17375_v34  ;;  %v15169_v59 = vld [vmem:[%s17170_s3] ss:$0 sm:$0xff] }
 0x26a   : > { %v11148_v33 = vcombine.low %v5104_v29, %v5107_v52  ;;  %376 = vst.msk [vmem:[#allocation3 + $0x98] sm:$0x1] %vm339_vm0, %v17375_v34  ;;  %379 = vst.msk [vmem:[#allocation3 + $0xa4] sm:$0x1] %vm339_vm0, %v17375_v34 }
 0x26b   : > { %382 = vst.msk [vmem:[#allocation3 + $0xb0] sm:$0x1] %vm339_vm0, %v17375_v34  ;;  %385 = vst.msk [vmem:[#allocation3 + $0xbc] sm:$0x1] %vm339_vm0, %v17375_v34  ;;  %v6099_v9 = vld [vmem:[#allocation3 + $0x8] sm:$0x1] }
 0x26c   : > { %388 = vst.msk [vmem:[#allocation3 + $0xc8] sm:$0x1] %vm339_vm0, %v17375_v34  ;;  %391 = vst.msk [vmem:[#allocation3 + $0xd4] sm:$0x1] %vm339_vm0, %v17375_v34 }
 0x26d   : > { %12165 = vmatmul.mubr.msk.bf16.vlgmr.msra.gmra.mrb[0].mxu0 %vm1351_vm9, %v11137_v35  ;;  %v17368_v35 = vcombine.low %v17366_v12, %v17367_v61  ;;  %vm15191_vm6 = vmand %vm339_vm0, %vm424_vm5 }
 0x26e   : > { %12168 = vmatprep.mubr.msk.bf16.mxu0 %vm1351_vm9, %v11138_v39  ;;  %v5118_v39 = vsel %vm13741_vm15, %v11133_v10, %v5117_v25 }
 0x26f   : > { %v11150_v30 = vcombine.low %v5118_v39, %v5121_v23 }
 0x275   : > { %12169 = vmatmul.mubr.msk.bf16.gmra.mrb[4].mxu0 %vm1351_vm9, %v11139_v55  ;;  %v6129_v55 = vshrl.u32 %v6067_v7, 16 }
 0x276   : > { %12172 = vmatprep.mubr.msk.bf16.mxu0 %vm1351_vm9, %v11140_v15  ;;  %v6118_v15 = vrot.slane %v6116_v46, 4 }
 0x277   : > { %v6131_v8 = vrot.slane %v6129_v55, 4  ;;  %v5952_v55 = vld [vmem:[#allocation3 + $0xc] sm:$0xf] }
 0x278   : > { %v6122_v36 = vor.u32 %v6121_v3, %v6118_v15 }
 0x279   : > { %v6132_v63 = vor.u32 %v6131_v8, %v6127_v54 }
 0x27a   : > { %v6123_v42 = vrot.slane %v6122_v36, 4 }
 0x27b   : > { %v6133_v43 = vrot.slane %v6132_v63, 4 }
 0x27c   : > { %v6128_v5 = vsel %vm13350_vm8, %v6123_v42, %v6127_v54 }
 0x27d   : > { %12173 = vmatmul.mubr.msk.bf16.gmra.mrb[8].mxu0 %vm1351_vm9, %v17359_v17  ;;  %v6600_v17 = vsel %vm6598_vm2, %v11202_v60, 0  ;;  %v5965_v60 = vld [vmem:[#allocation3 + $0x20] sm:$0x1] }
 0x27e   : > { %12176 = vmatprep.mubr.msk.bf16.mxu0 %vm1351_vm9, %v11142_v56  ;;  %v6135_v56 = vshll.u32 %v6099_v9, 16  ;;  %12197 = vmatpush3.bf16.msra.mxu1 %v6600_v17 }
 0x27f   : > { %13024 = vmatprep.subr.msk.bf16.mxu1 %vm6598_vm2, %v15157_v62 }
 0x280   : > { %v6137_v6 = vrot.slane %v6135_v56, 5 }
 0x282   : > { %v6138_v50 = vsel %vm13350_vm8, %v6133_v43, %v6137_v6  ;;  %v5958_v6 = vld [vmem:[#allocation3 + $0x14] sm:$0x1] }
 0x283   : > { %v11203_v32 = vcombine.low %v6128_v5, %v6138_v50 }
 0x285   : > { %12177 = vmatmul.mubr.msk.bf16.gmra.mrb[12].mxu0 %vm1351_vm9, %v17362_v21  ;;  %12198 = vmatprep.mubr.msk.bf16.mxu1 %vm6549_vm3, %v11203_v32 }
 0x286   : > { %12180 = vmatprep.mubr.msk.bf16.mxu0 %vm1351_vm9, %v11144_v11  ;;  %v15164_v11 = vld [vmem:[%s17169_s2] ss:$0 sm:$0xff] }
 0x28d   : > { %12181 = vmatmul.mubr.msk.bf16.gmra.mrb[16].mxu0 %vm1351_vm9, %v17365_v14 }
 0x28e   : > { %12184 = vmatprep.mubr.msk.bf16.mxu0 %vm1351_vm9, %v11146_v47 }
 0x295   : > { %12185 = vmatmul.mubr.msk.bf16.gmra.mrb[20].mxu0 %vm1351_vm9, %v17368_v35 }
 0x296   : > { %12188 = vmatprep.mubr.msk.bf16.mxu0 %vm1351_vm9, %v11148_v33 }
 0x29d   : > { %12189 = vmatmul.mubr.msk.bf16.gmra.mrb[24].mxu0 %vm1351_vm9, %v17371_v16 }
 0x29e   : > { %12192 = vmatprep.mubr.msk.bf16.mxu0 %vm1351_vm9, %v11150_v30 }
 0x2a5   : > { %12193 = vmatmul.mubr.msk.bf16.gmra.mrb[28].mxu0 %vm1351_vm9, %v17374_v13  ;;  %v5961_v13 = vld [vmem:[#allocation3 + $0x18] sm:$0xf] }
 0x340   : > { %v12166_v44 = vpop.f32.mrb[0].mxu0 }
 0x341   : > { %v5432_v19 = vmul.f32 %v12166_v44, %v15164_v11  ;;  %v5264_v38 = vpop.f32.mrb[1].mxu0 }
 0x342   : > { %v5430_v31 = vmul.f32 %v15164_v11, %v5264_v38  ;;  %v12167_v21 = vpop.f32.mrb[2].mxu0 }
 0x343   : > { %v5471_v28 = vadd.f32 %v15169_v59, %v5432_v19  ;;  %v5433_v53 = vmul.f32 %v12167_v21, %v15164_v11  ;;  %v5267_v0 = vpop.f32.mrb[3].mxu0 }
 0x344   : > { %v5469_v26 = vadd.f32 %v15169_v59, %v5430_v31  ;;  %v5431_v47 = vmul.f32 %v15164_v11, %v5267_v0 }
 0x345   : > { %v5503_v45 = vmax.f32 %v5471_v28, 0.0  ;;  %v5472_v2 = vadd.f32 %v15169_v59, %v5433_v53 }
 0x346   : > { %v5501_v24 = vmax.f32 %v5469_v26, 0.0  ;;  %v5470_v37 = vadd.f32 %v15169_v59, %v5431_v47 }
 0x347   : > { %v11554_v41 = vpack.c.bf16 %v5503_v45, %v5503_v45  ;;  %v5504_v14 = vmax.f32 %v5472_v2, 0.0 }
 0x348   : > { %v11552_v29 = vpack.c.bf16 %v5501_v24, %v5501_v24  ;;  %v5502_v52 = vmax.f32 %v5470_v37, 0.0  ;;  %v12170_v25 = vpop.f32.mrb[4].mxu0 }
 0x349   : > { %v5647_v22 = vshrl.u32 %v11554_v41, 16  ;;  %v5650_v33 = vshll.u32 %v11554_v41, 16  ;;  %v11555_v10 = vpack.c.bf16 %v5504_v14, %v5504_v14  ;;  %v5436_v4 = vmul.f32 %v12170_v25, %v15164_v11  ;;  %v5280_v18 = vpop.f32.mrb[5].mxu0  ;;  %v5975_v25 = vld [vmem:[#allocation3 + $0x30] sm:$0xf] }
 0x34a   : > { %v5630_v12 = vshrl.u32 %v11552_v29, 16  ;;  %v5633_v61 = vshll.u32 %v11552_v29, 16  ;;  %v11553_v35 = vpack.c.bf16 %v5502_v52, %v5502_v52  ;;  %v5434_v39 = vmul.f32 %v15164_v11, %v5280_v18  ;;  %v12171_v23 = vpop.f32.mrb[6].mxu0 }
 0x34b   : > { %v5649_v30 = vrot.slane %v5647_v22, 7  ;;  %v5655_v58 = vshrl.u32 %v11555_v10, 16  ;;  %v5658_v51 = vshll.u32 %v11555_v10, 16  ;;  %v5475_v16 = vadd.f32 %v15169_v59, %v5436_v4  ;;  %v5283_v57 = vpop.f32.mrb[7].mxu0 }
 0x34c   : > { %v5632_v34 = vrot.slane %v5630_v12, 7  ;;  %v5638_v48 = vshrl.u32 %v11553_v35, 16  ;;  %v5641_v7 = vshll.u32 %v11553_v35, 16  ;;  %v5473_v46 = vadd.f32 %v15169_v59, %v5434_v39 }
 0x34d   : > { %v5652_v27 = vor.u32 %v5650_v33, %v5649_v30  ;;  %v5653_v1 = vrot.slane %v5649_v30, 4  ;;  %v5657_v15 = vrot.slane %v5655_v58, 7  ;;  %v5507_v3 = vmax.f32 %v5475_v16, 0.0 }
 0x34e   : > { %v5635_v54 = vor.u32 %v5633_v61, %v5632_v34  ;;  %v5636_v8 = vrot.slane %v5632_v34, 4  ;;  %v5640_v36 = vrot.slane %v5638_v48, 7  ;;  %v5505_v63 = vmax.f32 %v5473_v46, 0.0  ;;  %v5968_v61 = vld [vmem:[#allocation3 + $0x24] sm:$0xf] }
 0x34f   : > { %v5962_v56 = vsel %vm15184_vm4, %v5652_v27, %v5961_v13  ;;  %v5660_v42 = vor.u32 %v5658_v51, %v5657_v15  ;;  %v5662_v43 = vrot.slane %v5657_v15, 4  ;;  %v11558_v17 = vpack.c.bf16 %v5507_v3, %v5507_v3 }
 0x350   : > { %5963 = vst [vmem:[#allocation3 + $0x18] sm:$0xf] %v5962_v56  ;;  %v5953_v5 = vsel %vm15184_vm4, %v5635_v54, %v5952_v55  ;;  %v5643_v50 = vor.u32 %v5641_v7, %v5640_v36  ;;  %v5645_v32 = vrot.slane %v5640_v36, 4  ;;  %v11556_v44 = vpack.c.bf16 %v5505_v63, %v5505_v63  ;;  %v12174_v19 = vpop.f32.mrb[8].mxu0 }
 0x351   : > { %5954 = vst [vmem:[#allocation3 + $0xc] sm:$0xf] %v5953_v5  ;;  %v5661_v31 = vsel %vm13370_vm12, %v5653_v1, %v5660_v42  ;;  %v5966_v21 = vsel %vm15191_vm6, %v5662_v43, %v5965_v60  ;;  %v5681_v28 = vshrl.u32 %v11558_v17, 16  ;;  %v5684_v53 = vshll.u32 %v11558_v17, 16  ;;  %v5296_v0 = vpop.f32.mrb[9].mxu0 }
 0x352   : > { %5964 = vst.msk [vmem:[#allocation3 + $0x1c] sm:$0xf] %vm336_vm1, %v5661_v31  ;;  %5967 = vst [vmem:[#allocation3 + $0x20] sm:$0x1] %v5966_v21  ;;  %v5644_v26 = vsel %vm13370_vm12, %v5636_v8, %v5643_v50  ;;  %v5959_v47 = vsel %vm15191_vm6, %v5645_v32, %v5958_v6  ;;  %v5664_v45 = vshrl.u32 %v11556_v44, 16  ;;  %v5667_v2 = vshll.u32 %v11556_v44, 16 }
 0x353   : > { %v12175_v24 = vpop.f32.mrb[10].mxu0  ;;  %5955 = vst.msk [vmem:[#allocation3 + $0x10] sm:$0xf] %vm336_vm1, %v5644_v26  ;;  %5960 = vst [vmem:[#allocation3 + $0x14] sm:$0x1] %v5959_v47  ;;  %v15209_v37 = vrot.slane %v5681_v28, 7  ;;  %v5437_v41 = vmul.f32 %v12171_v23, %v15164_v11  ;;  %v5435_v14 = vmul.f32 %v15164_v11, %v5283_v57  ;;  %v5440_v29 = vmul.f32 %v12174_v19, %v15164_v11 }
 0x354   : > { %v5299_v52 = vpop.f32.mrb[11].mxu0  ;;  %v15214_v22 = vrot.slane %v5664_v45, 7  ;;  %v5438_v33 = vmul.f32 %v15164_v11, %v5296_v0  ;;  %v5441_v10 = vmul.f32 %v12175_v24, %v15164_v11  ;;  %v5979_v32 = vld [vmem:[#allocation3 + $0x38] sm:$0x1]  ;;  %v5972_v44 = vld [vmem:[#allocation3 + $0x2c] sm:$0x1] }
 0x355   : > { %v5439_v4 = vmul.f32 %v15164_v11, %v5299_v52  ;;  %v5686_v18 = vor.u32 %v5684_v53, %v15209_v37  ;;  %v5687_v12 = vrot.slane %v15209_v37, 4  ;;  %v5476_v35 = vadd.f32 %v15169_v59, %v5437_v41  ;;  %v5989_v26 = vld [vmem:[#allocation3 + $0x48] sm:$0xf] }
 0x356   : > { %v5474_v39 = vadd.f32 %v15169_v59, %v5435_v14  ;;  %v5669_v23 = vor.u32 %v5667_v2, %v15214_v22  ;;  %v5670_v30 = vrot.slane %v15214_v22, 4  ;;  %v5479_v58 = vadd.f32 %v15169_v59, %v5440_v29  ;;  %v5982_v22 = vld [vmem:[#allocation3 + $0x3c] sm:$0xf] }
 0x357   : > { %v5477_v51 = vadd.f32 %v15169_v59, %v5438_v33  ;;  %v5976_v16 = vsel %vm15184_vm4, %v5686_v18, %v5975_v25  ;;  %v5508_v57 = vmax.f32 %v5476_v35, 0.0  ;;  %v5480_v34 = vadd.f32 %v15169_v59, %v5441_v10 }
 0x358   : > { %v5506_v13 = vmax.f32 %v5474_v39, 0.0  ;;  %5977 = vst [vmem:[#allocation3 + $0x30] sm:$0xf] %v5976_v16  ;;  %v5969_v48 = vsel %vm15184_vm4, %v5669_v23, %v5968_v61  ;;  %v5511_v7 = vmax.f32 %v5479_v58, 0.0  ;;  %v5478_v27 = vadd.f32 %v15169_v59, %v5439_v4  ;;  %v12178_v1 = vpop.f32.mrb[12].mxu0 }
 0x359   : > { %v5509_v46 = vmax.f32 %v5477_v51, 0.0  ;;  %5970 = vst [vmem:[#allocation3 + $0x24] sm:$0xf] %v5969_v48  ;;  %v11559_v55 = vpack.c.bf16 %v5508_v57, %v5508_v57  ;;  %v5512_v3 = vmax.f32 %v5480_v34, 0.0  ;;  %v5444_v54 = vmul.f32 %v12178_v1, %v15164_v11  ;;  %v5312_v8 = vpop.f32.mrb[13].mxu0 }
 0x35a   : > { %v11557_v15 = vpack.c.bf16 %v5506_v13, %v5506_v13  ;;  %v11562_v60 = vpack.c.bf16 %v5511_v7, %v5511_v7  ;;  %v5510_v63 = vmax.f32 %v5478_v27, 0.0  ;;  %v5442_v56 = vmul.f32 %v15164_v11, %v5312_v8  ;;  %v12179_v42 = vpop.f32.mrb[14].mxu0 }
 0x35b   : > { %v11560_v36 = vpack.c.bf16 %v5509_v46, %v5509_v46  ;;  %v5689_v43 = vshrl.u32 %v11559_v55, 16  ;;  %v5692_v6 = vshll.u32 %v11559_v55, 16  ;;  %v5315_v50 = vpop.f32.mrb[15].mxu0  ;;  %v11563_v47 = vpack.c.bf16 %v5512_v3, %v5512_v3  ;;  %v5993_v55 = vld [vmem:[#allocation3 + $0x50] sm:$0x1] }
 0x35c   : > { %v5672_v17 = vshrl.u32 %v11557_v15, 16  ;;  %v5675_v5 = vshll.u32 %v11557_v15, 16  ;;  %v5715_v19 = vshrl.u32 %v11562_v60, 16  ;;  %v5718_v31 = vshll.u32 %v11562_v60, 16 }
 0x35d   : > { %v5698_v21 = vshrl.u32 %v11560_v36, 16  ;;  %v5701_v28 = vshll.u32 %v11560_v36, 16  ;;  %v5691_v53 = vrot.slane %v5689_v43, 7  ;;  %v11561_v45 = vpack.c.bf16 %v5510_v63, %v5510_v63 }
 0x35e   : > { %v5674_v0 = vrot.slane %v5672_v17, 7  ;;  %v5717_v2 = vrot.slane %v5715_v19, 7  ;;  %v5483_v37 = vadd.f32 %v15169_v59, %v5444_v54  ;;  %v5481_v41 = vadd.f32 %v15169_v59, %v5442_v56 }
 0x35f   : > { %v5700_v24 = vrot.slane %v5698_v21, 7  ;;  %v5694_v14 = vor.u32 %v5692_v6, %v5691_v53  ;;  %v5696_v29 = vrot.slane %v5691_v53, 4  ;;  %v5723_v57 = vshrl.u32 %v11563_v47, 16  ;;  %v5986_v6 = vld [vmem:[#allocation3 + $0x44] sm:$0x1] }
 0x360   : > { %v5677_v52 = vor.u32 %v5675_v5, %v5674_v0  ;;  %v5679_v25 = vrot.slane %v5674_v0, 4  ;;  %v5720_v33 = vor.u32 %v5718_v31, %v5717_v2  ;;  %v5721_v10 = vrot.slane %v5717_v2, 4  ;;  %v12182_v61 = vpop.f32.mrb[16].mxu0 }
 0x361   : > { %v5703_v4 = vor.u32 %v5701_v28, %v5700_v24  ;;  %v5704_v18 = vrot.slane %v5700_v24, 4  ;;  %v5695_v35 = vsel %vm13370_vm12, %v5687_v12, %v5694_v14  ;;  %v5980_v39 = vsel %vm15191_vm6, %v5696_v29, %v5979_v32  ;;  %v5328_v51 = vpop.f32.mrb[17].mxu0  ;;  %v6003_v24 = vld [vmem:[#allocation3 + $0x60] sm:$0xf] }
 0x362   : > { %v5678_v23 = vsel %vm13370_vm12, %v5670_v30, %v5677_v52  ;;  %v5973_v58 = vsel %vm15191_vm6, %v5679_v25, %v5972_v44  ;;  %5978 = vst.msk [vmem:[#allocation3 + $0x34] sm:$0xf] %vm336_vm1, %v5695_v35  ;;  %5981 = vst [vmem:[#allocation3 + $0x38] sm:$0x1] %v5980_v39  ;;  %v5990_v16 = vsel %vm15184_vm4, %v5720_v33, %v5989_v26  ;;  %v5726_v13 = vshll.u32 %v11563_v47, 16  ;;  %v12183_v34 = vpop.f32.mrb[18].mxu0 }
 0x363   : > { %5971 = vst.msk [vmem:[#allocation3 + $0x28] sm:$0xf] %vm336_vm1, %v5678_v23  ;;  %5974 = vst [vmem:[#allocation3 + $0x2c] sm:$0x1] %v5973_v58  ;;  %v5983_v12 = vsel %vm15184_vm4, %v5703_v4, %v5982_v22  ;;  %v5706_v30 = vshrl.u32 %v11561_v45, 16  ;;  %v5709_v48 = vshll.u32 %v11561_v45, 16  ;;  %v5445_v15 = vmul.f32 %v12179_v42, %v15164_v11 }
 0x364   : > { %5991 = vst [vmem:[#allocation3 + $0x48] sm:$0xf] %v5990_v16  ;;  %5984 = vst [vmem:[#allocation3 + $0x3c] sm:$0xf] %v5983_v12  ;;  %v5515_v7 = vmax.f32 %v5483_v37, 0.0  ;;  %v5513_v46 = vmax.f32 %v5481_v41, 0.0  ;;  %v5443_v3 = vmul.f32 %v15164_v11, %v5315_v50  ;;  %v5448_v54 = vmul.f32 %v12182_v61, %v15164_v11 }
 0x365   : > { %v15251_v27 = vpop.f32.mrb[19].mxu0  ;;  %v5725_v1 = vrot.slane %v5723_v57, 7  ;;  %v5708_v8 = vrot.slane %v5706_v30, 7  ;;  %v5446_v63 = vmul.f32 %v15164_v11, %v5328_v51  ;;  %v5484_v17 = vadd.f32 %v15169_v59, %v5445_v15  ;;  %v5996_v33 = vld [vmem:[#allocation3 + $0x54] sm:$0xf] }
 0x366   : > { %v11566_v60 = vpack.c.bf16 %v5515_v7, %v5515_v7  ;;  %v11564_v36 = vpack.c.bf16 %v5513_v46, %v5513_v46  ;;  %v5482_v5 = vadd.f32 %v15169_v59, %v5443_v3  ;;  %v5487_v14 = vadd.f32 %v15169_v59, %v5448_v54  ;;  %v15280_v58 = vld [vmem:[#allocation3 + $0xc] sm:$0xf]  ;;  %v6007_v46 = vld [vmem:[#allocation3 + $0x68] sm:$0x1] }
 0x367   : > { %v5728_v56 = vor.u32 %v5726_v13, %v5725_v1  ;;  %v5730_v43 = vrot.slane %v5725_v1, 4  ;;  %v5711_v32 = vor.u32 %v5709_v48, %v5708_v8  ;;  %v5713_v44 = vrot.slane %v5708_v8, 4 }
 0x368   : > { %v5749_v19 = vshrl.u32 %v11566_v60, 16  ;;  %v5752_v42 = vshll.u32 %v11566_v60, 16  ;;  %v5732_v21 = vshrl.u32 %v11564_v36, 16  ;;  %v5735_v28 = vshll.u32 %v11564_v36, 16  ;;  %v15263_v53 = vpop.f32.mrb[20].mxu0 }
 0x369   : > { %v5729_v50 = vsel %vm13370_vm12, %v5721_v10, %v5728_v56  ;;  %v5994_v31 = vsel %vm15191_vm6, %v5730_v43, %v5993_v55  ;;  %v5712_v0 = vsel %vm13370_vm12, %v5704_v18, %v5711_v32  ;;  %v5987_v26 = vsel %vm15191_vm6, %v5713_v44, %v5986_v6  ;;  %v15270_v2 = vpop.f32.mrb[21].mxu0  ;;  %v6000_v43 = vld [vmem:[#allocation3 + $0x5c] sm:$0x1] }
 0x36a   : > { %5992 = vst.msk [vmem:[#allocation3 + $0x4c] sm:$0xf] %vm336_vm1, %v5729_v50  ;;  %5995 = vst [vmem:[#allocation3 + $0x50] sm:$0x1] %v5994_v31  ;;  %v5751_v47 = vrot.slane %v5749_v19, 7  ;;  %v5516_v45 = vmax.f32 %v5484_v17, 0.0  ;;  %v5485_v29 = vadd.f32 %v15169_v59, %v5446_v63  ;;  %v5449_v4 = vmul.f32 %v12183_v34, %v15164_v11 }
 0x36b   : > { %5985 = vst.msk [vmem:[#allocation3 + $0x40] sm:$0xf] %vm336_vm1, %v5712_v0  ;;  %5988 = vst [vmem:[#allocation3 + $0x44] sm:$0x1] %v5987_v26  ;;  %v5734_v37 = vrot.slane %v5732_v21, 7  ;;  %v5514_v41 = vmax.f32 %v5482_v5, 0.0  ;;  %v5447_v15 = vmul.f32 %v15164_v11, %v15251_v27 }
 0x36c   : > { %v15275_v52 = vpop.f32.mrb[22].mxu0  ;;  %v5754_v25 = vor.u32 %v5752_v42, %v5751_v47  ;;  %v5755_v22 = vrot.slane %v5751_v47, 4  ;;  %v11567_v10 = vpack.c.bf16 %v5516_v45, %v5516_v45  ;;  %v5519_v23 = vmax.f32 %v5487_v14, 0.0  ;;  %v6017_v21 = vld [vmem:[#allocation3 + $0x78] sm:$0xf] }
 0x36d   : > { %v15278_v18 = vpop.f32.mrb[23].mxu0  ;;  %v5737_v61 = vor.u32 %v5735_v28, %v5734_v37  ;;  %v5738_v35 = vrot.slane %v5734_v37, 4  ;;  %v11565_v39 = vpack.c.bf16 %v5514_v41, %v5514_v41  ;;  %v5517_v57 = vmax.f32 %v5485_v29, 0.0  ;;  %v6069_v26 = vld [vmem:[#allocation3 + $0x10] sm:$0xf] }
 0x36e   : > { %v6004_v51 = vsel %vm15184_vm4, %v5754_v25, %v6003_v24  ;;  %v5757_v16 = vshrl.u32 %v11567_v10, 16  ;;  %v5760_v12 = vshll.u32 %v11567_v10, 16  ;;  %v11570_v48 = vpack.c.bf16 %v5519_v23, %v5519_v23  ;;  %v6010_v41 = vld [vmem:[#allocation3 + $0x6c] sm:$0xf] }
 0x36f   : > { %6005 = vst [vmem:[#allocation3 + $0x60] sm:$0xf] %v6004_v51  ;;  %v5997_v13 = vsel %vm15184_vm4, %v5737_v61, %v5996_v33  ;;  %v5740_v30 = vshrl.u32 %v11565_v39, 16  ;;  %v5743_v34 = vshll.u32 %v11565_v39, 16  ;;  %v11568_v1 = vpack.c.bf16 %v5517_v57, %v5517_v57  ;;  %v6071_v57 = vld [vmem:[#allocation3 + $0x1c] sm:$0xf] }
 0x370   : > { %5998 = vst [vmem:[#allocation3 + $0x54] sm:$0xf] %v5997_v13  ;;  %v5759_v7 = vrot.slane %v5757_v16, 7  ;;  %v5488_v55 = vadd.f32 %v15169_v59, %v5449_v4  ;;  %v5783_v54 = vshrl.u32 %v11570_v48, 16  ;;  %v5786_v8 = vshll.u32 %v11570_v48, 16  ;;  %v15290_v36 = vpop.f32.mrb[24].mxu0 }
 0x371   : > { %v5742_v3 = vrot.slane %v5740_v30, 7  ;;  %v6140_v60 = vshrl.u32 %v15280_v58, 16  ;;  %v5766_v6 = vshrl.u32 %v11568_v1, 16  ;;  %v5769_v17 = vshll.u32 %v11568_v1, 16  ;;  %v15292_v5 = vpop.f32.mrb[25].mxu0 }
 0x372   : > { %v5762_v63 = vor.u32 %v5760_v12, %v5759_v7  ;;  %v5764_v56 = vrot.slane %v5759_v7, 4  ;;  %v15294_v19 = vrot.slane %v5783_v54, 7  ;;  %v5520_v42 = vmax.f32 %v5488_v55, 0.0  ;;  %v15296_v27 = vpop.f32.mrb[26].mxu0  ;;  %v6070_v12 = vld [vmem:[#allocation3 + $0x18] sm:$0xf] }
 0x373   : > { %v5745_v32 = vor.u32 %v5743_v34, %v5742_v3  ;;  %v5747_v44 = vrot.slane %v5742_v3, 4  ;;  %v15302_v28 = vrot.slane %v5766_v6, 7  ;;  %v5486_v0 = vadd.f32 %v15169_v59, %v5447_v15  ;;  %v15305_v47 = vpop.f32.mrb[27].mxu0 }
 0x374   : > { %v5763_v50 = vsel %vm13370_vm12, %v5755_v22, %v5762_v63  ;;  %v6008_v31 = vsel %vm15191_vm6, %v5764_v56, %v6007_v46  ;;  %v5788_v37 = vor.u32 %v5786_v8, %v15294_v19  ;;  %v11571_v29 = vpack.c.bf16 %v5520_v42, %v5520_v42  ;;  %v6100_v22 = vld [vmem:[#allocation3 + $0x14] sm:$0x1] }
 0x375   : > { %6006 = vst.msk [vmem:[#allocation3 + $0x64] sm:$0xf] %vm336_vm1, %v5763_v50  ;;  %6009 = vst [vmem:[#allocation3 + $0x68] sm:$0x1] %v6008_v31  ;;  %v5746_v45 = vsel %vm13370_vm12, %v5738_v35, %v5745_v32  ;;  %v6001_v24 = vsel %vm15191_vm6, %v5747_v44, %v6000_v43  ;;  %v5771_v14 = vor.u32 %v5769_v17, %v15302_v28  ;;  %v5518_v25 = vmax.f32 %v5486_v0, 0.0 }
 0x376   : > { %5999 = vst.msk [vmem:[#allocation3 + $0x58] sm:$0xf] %vm336_vm1, %v5746_v45  ;;  %6002 = vst [vmem:[#allocation3 + $0x5c] sm:$0x1] %v6001_v24  ;;  %v15317_v33 = vsel %vm6598_vm2, %v15157_v62, 0  ;;  %v6018_v10 = vsel %vm15184_vm4, %v5788_v37, %v6017_v21  ;;  %v6142_v4 = vrot.slane %v6140_v60, 4 }
 0x377   : > { %v6143_v61 = vshll.u32 %v15280_v58, 16  ;;  %v6149_v35 = vshll.u32 %v6069_v26, 16  ;;  %v5789_v39 = vrot.slane %v15294_v19, 4  ;;  %6019 = vst [vmem:[#allocation3 + $0x78] sm:$0xf] %v6018_v10  ;;  %v6011_v23 = vsel %vm15184_vm4, %v5771_v14, %v6010_v41 }
 0x378   : > { %v5791_v51 = vshrl.u32 %v11571_v29, 16  ;;  %v11569_v16 = vpack.c.bf16 %v5518_v25, %v5518_v25  ;;  %6012 = vst [vmem:[#allocation3 + $0x6c] sm:$0xf] %v6011_v23  ;;  %v6021_v62 = vld [vmem:[#allocation3 + $0x80] sm:$0x1]  ;;  %v6153_v34 = vshrl.u32 %v6069_v26, 16  ;;  %v5452_v23 = vmul.f32 %v15263_v53, %v15164_v11 }
 0x379   : > { %v6145_v13 = vrot.slane %v6143_v61, 5  ;;  %v6151_v30 = vrot.slane %v6149_v35, 5  ;;  %v6159_v48 = vshll.u32 %v6100_v22, 16  ;;  %v15325_v7 = vpop.f32.mrb[28].mxu0  ;;  %v5772_v58 = vrot.slane %v15302_v28, 4 }
 0x37a   : > { %v5793_v46 = vrot.slane %v5791_v51, 7  ;;  %v5794_v1 = vshll.u32 %v11571_v29, 16  ;;  %v5774_v55 = vshrl.u32 %v11569_v16, 16  ;;  %v15328_v15 = vpop.f32.mrb[29].mxu0  ;;  %v5777_v3 = vshll.u32 %v11569_v16, 16 }
 0x37b   : > { %v6146_v54 = vor.u32 %v6145_v13, %v6142_v4  ;;  %v6155_v8 = vrot.slane %v6153_v34, 4  ;;  %v6161_v60 = vrot.slane %v6159_v48, 5  ;;  %v15330_v63 = vpop.f32.mrb[30].mxu0  ;;  %v6164_v17 = vshrl.u32 %v6070_v12, 16  ;;  %v6014_v44 = vld [vmem:[#allocation3 + $0x74] sm:$0x1] }
 0x37c   : > { %v5796_v56 = vor.u32 %v5794_v1, %v5793_v46  ;;  %v5798_v43 = vrot.slane %v5793_v46, 4  ;;  %v5776_v6 = vrot.slane %v5774_v55, 7  ;;  %v15332_v32 = vpop.f32.mrb[31].mxu0  ;;  %v6167_v50 = vshll.u32 %v6070_v12, 16  ;;  %v6101_v45 = vld [vmem:[#allocation3 + $0x20] sm:$0x1] }
 0x37d   : > { %v6147_v19 = vrot.slane %v6146_v54, 4  ;;  %v6156_v42 = vor.u32 %v6155_v8, %v6151_v30  ;;  %v6173_v31 = vshll.u32 %v6071_v57, 16  ;;  %v6166_v41 = vrot.slane %v6164_v17, 4  ;;  %v6072_v4 = vld [vmem:[#allocation3 + $0x24] sm:$0xf] }
 0x37e   : > { %v5797_v21 = vsel %vm13370_vm12, %v5789_v39, %v5796_v56  ;;  %v6022_v28 = vsel %vm15191_vm6, %v5798_v43, %v6021_v62  ;;  %v5779_v0 = vor.u32 %v5777_v3, %v5776_v6  ;;  %v5781_v26 = vrot.slane %v5776_v6, 4  ;;  %v15353_v51 = vld [vmem:[%s17171_s4 + $0x8] sm:$0xf]  ;;  %v15365_v1 = vld [vmem:[#allocation3 + $0x28] sm:$0xf] }
 0x37f   : > { %6020 = vst.msk [vmem:[#allocation3 + $0x7c] sm:$0xf] %vm336_vm1, %v5797_v21  ;;  %6023 = vst [vmem:[#allocation3 + $0x80] sm:$0x1] %v6022_v28  ;;  %v6152_v24 = vsel %vm13350_vm8, %v6147_v19, %v6151_v30  ;;  %v6157_v37 = vrot.slane %v6156_v42, 4  ;;  %v6169_v14 = vrot.slane %v6167_v50, 5  ;;  %v5453_v62 = vmul.f32 %v15275_v52, %v15164_v11 }
 0x380   : > { %v5780_v29 = vsel %vm13370_vm12, %v5772_v58, %v5779_v0  ;;  %v6015_v25 = vsel %vm15191_vm6, %v5781_v26, %v6014_v44  ;;  %v6175_v22 = vrot.slane %v6173_v31, 5  ;;  %v6177_v10 = vshrl.u32 %v6071_v57, 16  ;;  %v6031_v26 = vld [vmem:[#allocation3 + $0x90] sm:$0xf] }
 0x381   : > { %6013 = vst.msk [vmem:[#allocation3 + $0x70] sm:$0xf] %vm336_vm1, %v5780_v29  ;;  %6016 = vst [vmem:[#allocation3 + $0x74] sm:$0x1] %v6015_v25  ;;  %v6162_v61 = vsel %vm13350_vm8, %v6157_v37, %v6161_v60  ;;  %v6170_v35 = vor.u32 %v6169_v14, %v6166_v41  ;;  %v6183_v39 = vshll.u32 %v6101_v45, 16  ;;  %v5450_v57 = vmul.f32 %v15164_v11, %v15270_v2 }
 0x382   : > { %v11204_v16 = vcombine.low %v6152_v24, %v6162_v61  ;;  %v6179_v12 = vrot.slane %v6177_v10, 4  ;;  %v5491_v34 = vadd.f32 %v15169_v59, %v5452_v23  ;;  %v5451_v53 = vmul.f32 %v15164_v11, %v15278_v18  ;;  %v6024_v29 = vld [vmem:[#allocation3 + $0x84] sm:$0xf] }
 0x383   : > { %v6171_v13 = vrot.slane %v6170_v35, 4  ;;  %v6185_v30 = vrot.slane %v6183_v39, 5  ;;  %v5489_v58 = vadd.f32 %v15169_v59, %v5450_v57  ;;  %v5492_v46 = vadd.f32 %v15169_v59, %v5453_v62  ;;  %v6035_v35 = vld [vmem:[#allocation3 + $0x98] sm:$0x1]  ;;  %v6028_v62 = vld [vmem:[#allocation3 + $0x8c] sm:$0x1] }
 0x384   : > { %12199 = vmatmul.mubr.msk.bf16.vlgmr.msra.gmra.mrb[0].mxu1 %vm6549_vm3, %v11204_v16  ;;  %v6180_v48 = vor.u32 %v6179_v12, %v6175_v22  ;;  %v6188_v2 = vshrl.u32 %v6072_v4, 16  ;;  %v5523_v55 = vmax.f32 %v5491_v34, 0.0  ;;  %v5490_v3 = vadd.f32 %v15169_v59, %v5451_v53 }
 0x385   : > { %12231 = vmatpush3.bf16.msra.mxu1 %v15317_v33  ;;  %v6176_v52 = vsel %vm13350_vm8, %v6171_v13, %v6175_v22  ;;  %v6191_v54 = vshll.u32 %v6072_v4, 16  ;;  %v5521_v8 = vmax.f32 %v5489_v58, 0.0  ;;  %v5524_v60 = vmax.f32 %v5492_v46, 0.0  ;;  %v6102_v58 = vld [vmem:[#allocation3 + $0x2c] sm:$0x1] }
 0x386   : > { %v6181_v18 = vrot.slane %v6180_v48, 4  ;;  %v6190_v56 = vrot.slane %v6188_v2, 4  ;;  %13025 = vmatprep.subr.msk.bf16.mxu1 %vm6598_vm2, %v15353_v51  ;;  %v11574_v43 = vpack.c.bf16 %v5523_v55, %v5523_v55  ;;  %v5522_v6 = vmax.f32 %v5490_v3, 0.0  ;;  %v15378_v46 = vld [vmem:[#allocation3 + $0x30] sm:$0xf] }
 0x387   : > { %v6193_v17 = vrot.slane %v6191_v54, 5  ;;  %v6197_v44 = vshll.u32 %v15365_v1, 16  ;;  %v11572_v19 = vpack.c.bf16 %v5521_v8, %v5521_v8  ;;  %v11575_v42 = vpack.c.bf16 %v5524_v60, %v5524_v60  ;;  %v15384_v54 = vld [vmem:[#allocation3 + $0x34] sm:$0xf] }
 0x388   : > { %v6186_v33 = vsel %vm13350_vm8, %v6181_v18, %v6185_v30  ;;  %v6201_v50 = vshrl.u32 %v15365_v1, 16  ;;  %v5817_v21 = vshrl.u32 %v11574_v43, 16  ;;  %v5820_v28 = vshll.u32 %v11574_v43, 16  ;;  %v6103_v43 = vld [vmem:[#allocation3 + $0x38] sm:$0x1] }
 0x389   : > { %v11205_v31 = vcombine.low %v6176_v52, %v6186_v33  ;;  %v11573_v0 = vpack.c.bf16 %v5522_v6, %v5522_v6  ;;  %v5800_v45 = vshrl.u32 %v11572_v19, 16  ;;  %v5803_v24 = vshll.u32 %v11572_v19, 16 }
 0x38a   : > { %v5825_v37 = vshrl.u32 %v11575_v42, 16  ;;  %v5828_v41 = vshll.u32 %v11575_v42, 16  ;;  %v5819_v14 = vrot.slane %v5817_v21, 7  ;;  %v6194_v10 = vor.u32 %v6193_v17, %v6190_v56  ;;  %v15402_v21 = vld [vmem:[#allocation3 + $0x3c] sm:$0xf] }
 0x38b   : > { %12202 = vmatprep.mubr.msk.bf16.mxu1 %vm6549_vm3, %v11205_v31  ;;  %v5808_v25 = vshrl.u32 %v11573_v0, 16  ;;  %v5811_v22 = vshll.u32 %v11573_v0, 16  ;;  %v5802_v4 = vrot.slane %v5800_v45, 7  ;;  %v6199_v39 = vrot.slane %v6197_v44, 5 }
 0x38c   : > { %v5827_v61 = vrot.slane %v5825_v37, 7  ;;  %v6203_v23 = vrot.slane %v6201_v50, 4  ;;  %v5822_v16 = vor.u32 %v5820_v28, %v5819_v14  ;;  %v5823_v12 = vrot.slane %v5819_v14, 4 }
 0x38d   : > { %v5810_v57 = vrot.slane %v5808_v25, 7  ;;  %v6195_v13 = vrot.slane %v6194_v10, 4  ;;  %v5805_v30 = vor.u32 %v5803_v24, %v5802_v4  ;;  %v5806_v34 = vrot.slane %v5802_v4, 4 }
 0x38e   : > { %v5830_v53 = vor.u32 %v5828_v41, %v5827_v61  ;;  %v5832_v48 = vrot.slane %v5827_v61, 4  ;;  %v6032_v2 = vsel %vm15184_vm4, %v5822_v16, %v6031_v26  ;;  %v6204_v56 = vor.u32 %v6203_v23, %v6199_v39 }
 0x38f   : > { %v5813_v52 = vor.u32 %v5811_v22, %v5810_v57  ;;  %v5815_v55 = vrot.slane %v5810_v57, 4  ;;  %v6200_v3 = vsel %vm13350_vm8, %v6195_v13, %v6199_v39  ;;  %6033 = vst [vmem:[#allocation3 + $0x90] sm:$0xf] %v6032_v2  ;;  %v6025_v18 = vsel %vm15184_vm4, %v5805_v30, %v6024_v29 }
 0x390   : > { %v5831_v8 = vsel %vm13370_vm12, %v5823_v12, %v5830_v53  ;;  %v6036_v60 = vsel %vm15191_vm6, %v5832_v48, %v6035_v35  ;;  %6026 = vst [vmem:[#allocation3 + $0x84] sm:$0xf] %v6025_v18  ;;  %v6207_v44 = vshll.u32 %v6102_v58, 16  ;;  %v6212_v33 = vshrl.u32 %v15378_v46, 16  ;;  %v15425_v58 = vld [vmem:[#allocation3 + $0x40] sm:$0xf] }
 0x391   : > { %6034 = vst.msk [vmem:[#allocation3 + $0x94] sm:$0xf] %vm336_vm1, %v5831_v8  ;;  %6037 = vst [vmem:[#allocation3 + $0x98] sm:$0x1] %v6036_v60  ;;  %v5814_v6 = vsel %vm13370_vm12, %v5806_v34, %v5813_v52  ;;  %v6029_v17 = vsel %vm15191_vm6, %v5815_v55, %v6028_v62  ;;  %v6205_v19 = vrot.slane %v6204_v56, 4  ;;  %v6215_v42 = vshll.u32 %v15378_v46, 16 }
 0x392   : > { %6027 = vst.msk [vmem:[#allocation3 + $0x88] sm:$0xf] %vm336_vm1, %v5814_v6  ;;  %6030 = vst [vmem:[#allocation3 + $0x8c] sm:$0x1] %v6029_v17  ;;  %v6221_v50 = vshll.u32 %v15384_v54, 16  ;;  %v6225_v31 = vshrl.u32 %v15384_v54, 16  ;;  %v5456_v45 = vmul.f32 %v15290_v36, %v15164_v11  ;;  %v5454_v14 = vmul.f32 %v15164_v11, %v15292_v5 }
 0x393   : > { %v6209_v28 = vrot.slane %v6207_v44, 5  ;;  %v6214_v0 = vrot.slane %v6212_v33, 4  ;;  %v6231_v26 = vshll.u32 %v6103_v43, 16  ;;  %v6217_v24 = vrot.slane %v6215_v42, 5  ;;  %v6045_v8 = vld [vmem:[#allocation3 + $0xa8] sm:$0xf] }
 0x394   : > { %v6223_v37 = vrot.slane %v6221_v50, 5  ;;  %v6227_v41 = vrot.slane %v6225_v31, 4  ;;  %v5495_v22 = vadd.f32 %v15169_v59, %v5456_v45  ;;  %v5457_v10 = vmul.f32 %v15296_v27, %v15164_v11  ;;  %v6038_v17 = vld [vmem:[#allocation3 + $0x9c] sm:$0xf]  ;;  %v6049_v50 = vld [vmem:[#allocation3 + $0xb0] sm:$0x1] }
 0x395   : > { %v6210_v29 = vsel %vm13350_vm8, %v6205_v19, %v6209_v28  ;;  %v6233_v25 = vrot.slane %v6231_v26, 5  ;;  %v6218_v61 = vor.u32 %v6217_v24, %v6214_v0  ;;  %v5493_v36 = vadd.f32 %v15169_v59, %v5454_v14 }
 0x396   : > { %v11206_v4 = vcombine.low %v6200_v3, %v6210_v29  ;;  %v6228_v35 = vor.u32 %v6227_v41, %v6223_v37  ;;  %v5527_v39 = vmax.f32 %v5495_v22, 0.0  ;;  %v5496_v23 = vadd.f32 %v15169_v59, %v5457_v10  ;;  %v15432_v10 = vld [vmem:[#allocation3 + $0x48] sm:$0xf] }
 0x397   : > { %v5455_v5 = vmul.f32 %v15164_v11, %v15305_v47  ;;  %v6236_v16 = vshrl.u32 %v15402_v21, 16  ;;  %v6219_v12 = vrot.slane %v6218_v61, 4  ;;  %v5525_v62 = vmax.f32 %v5493_v36, 0.0 }
 0x398   : > { %12203 = vmatmul.mubr.msk.bf16.gmra.mrb[4].mxu1 %vm6549_vm3, %v11206_v4  ;;  %v6229_v57 = vrot.slane %v6228_v35, 4  ;;  %v6239_v27 = vshll.u32 %v15402_v21, 16  ;;  %v11578_v13 = vpack.c.bf16 %v5527_v39, %v5527_v39  ;;  %v5528_v30 = vmax.f32 %v5496_v23, 0.0 }
 0x399   : > { %v5494_v34 = vadd.f32 %v15169_v59, %v5455_v5  ;;  %v6238_v53 = vrot.slane %v6236_v16, 4  ;;  %v6224_v48 = vsel %vm13350_vm8, %v6219_v12, %v6223_v37  ;;  %v11576_v47 = vpack.c.bf16 %v5525_v62, %v5525_v62  ;;  %v15430_v37 = vld [vmem:[#allocation3 + $0x44] sm:$0x1]  ;;  %v15441_v12 = vld [vmem:[#allocation3 + $0x4c] sm:$0xf] }
 0x39a   : > { %v6234_v11 = vsel %vm13350_vm8, %v6229_v57, %v6233_v25  ;;  %v6241_v2 = vrot.slane %v6239_v27, 5  ;;  %v5851_v55 = vshrl.u32 %v11578_v13, 16  ;;  %v5854_v3 = vshll.u32 %v11578_v13, 16  ;;  %v6042_v27 = vld [vmem:[#allocation3 + $0xa4] sm:$0x1] }
 0x39b   : > { %v11207_v52 = vcombine.low %v6224_v48, %v6234_v11  ;;  %v11579_v18 = vpack.c.bf16 %v5528_v30, %v5528_v30  ;;  %v5834_v60 = vshrl.u32 %v11576_v47, 16  ;;  %v5837_v56 = vshll.u32 %v11576_v47, 16  ;;  %v15447_v13 = vld [vmem:[#allocation3 + $0x50] sm:$0x1] }
 0x39c   : > { %v5526_v43 = vmax.f32 %v5494_v34, 0.0  ;;  %v6242_v59 = vor.u32 %v6241_v2, %v6238_v53  ;;  %v5853_v6 = vrot.slane %v5851_v55, 7  ;;  %v6245_v19 = vshll.u32 %v15425_v58, 16 }
 0x39d   : > { %12206 = vmatprep.mubr.msk.bf16.mxu1 %vm6549_vm3, %v11207_v52  ;;  %v5859_v44 = vshrl.u32 %v11579_v18, 16  ;;  %v5862_v33 = vshll.u32 %v11579_v18, 16  ;;  %v5836_v42 = vrot.slane %v5834_v60, 7  ;;  %v6249_v0 = vshrl.u32 %v15425_v58, 16 }
 0x39e   : > { %v11577_v31 = vpack.c.bf16 %v5526_v43, %v5526_v43  ;;  %v6243_v28 = vrot.slane %v6242_v59, 4  ;;  %v5856_v26 = vor.u32 %v5854_v3, %v5853_v6  ;;  %v5857_v45 = vrot.slane %v5853_v6, 4 }
 0x39f   : > { %v5861_v24 = vrot.slane %v5859_v44, 7  ;;  %v6247_v41 = vrot.slane %v6245_v19, 5  ;;  %v5839_v14 = vor.u32 %v5837_v56, %v5836_v42  ;;  %v5840_v29 = vrot.slane %v5836_v42, 4 }
 0x3a0   : > { %v5842_v25 = vshrl.u32 %v11577_v31, 16  ;;  %v5845_v22 = vshll.u32 %v11577_v31, 16  ;;  %v6046_v4 = vsel %vm15184_vm4, %v5856_v26, %v6045_v8  ;;  %v6251_v5 = vrot.slane %v6249_v0, 4 }
 0x3a1   : > { %v5864_v61 = vor.u32 %v5862_v33, %v5861_v24  ;;  %v5866_v35 = vrot.slane %v5861_v24, 4  ;;  %v6248_v36 = vsel %vm13350_vm8, %v6243_v28, %v6247_v41  ;;  %6047 = vst [vmem:[#allocation3 + $0xa8] sm:$0xf] %v6046_v4  ;;  %v6039_v39 = vsel %vm15184_vm4, %v5839_v14, %v6038_v17  ;;  %v13138_v17 = vld [vmem:[%s17169_s2] ss:$0 sm:$0xff] }
 0x3a2   : > { %v5844_v23 = vrot.slane %v5842_v25, 7  ;;  %v6255_v16 = vshll.u32 %v15430_v37, 16  ;;  %6040 = vst [vmem:[#allocation3 + $0x9c] sm:$0xf] %v6039_v39  ;;  %v6260_v30 = vshrl.u32 %v15432_v10, 16  ;;  %v6263_v34 = vshll.u32 %v15432_v10, 16 }
 0x3a3   : > { %v5865_v57 = vsel %vm13370_vm12, %v5857_v45, %v5864_v61  ;;  %v6050_v62 = vsel %vm15191_vm6, %v5866_v35, %v6049_v50  ;;  %v6252_v11 = vor.u32 %v6251_v5, %v6247_v41  ;;  %v6269_v55 = vshll.u32 %v15441_v12, 16  ;;  %v15464_v33 = vld [vmem:[#allocation3 + $0x54] sm:$0xf]  ;;  %v13139_v45 = vld [vmem:[%s17170_s3] ss:$0 sm:$0xff] }
 0x3a4   : > { %6048 = vst.msk [vmem:[#allocation3 + $0xac] sm:$0xf] %vm336_vm1, %v5865_v57  ;;  %6051 = vst [vmem:[#allocation3 + $0xb0] sm:$0x1] %v6050_v62  ;;  %v5847_v53 = vor.u32 %v5845_v22, %v5844_v23  ;;  %v5849_v48 = vrot.slane %v5844_v23, 4  ;;  %v6257_v47 = vrot.slane %v6255_v16, 5  ;;  %v5460_v44 = vmul.f32 %v13138_v17, %v15325_v7 }
 0x3a5   : > { %v6262_v2 = vrot.slane %v6260_v30, 4  ;;  %v6265_v52 = vrot.slane %v6263_v34, 5  ;;  %v6273_v3 = vshrl.u32 %v15441_v12, 16  ;;  %v6253_v60 = vrot.slane %v6252_v11, 4  ;;  %v15484_v34 = vld [vmem:[#allocation3 + $0x5c] sm:$0x1] }
 0x3a6   : > { %v5848_v18 = vsel %vm13370_vm12, %v5840_v29, %v5847_v53  ;;  %v6043_v8 = vsel %vm15191_vm6, %v5849_v48, %v6042_v27  ;;  %v6279_v56 = vshll.u32 %v15447_v13, 16  ;;  %v6271_v59 = vrot.slane %v6269_v55, 5  ;;  %v15474_v29 = vld [vmem:[#allocation3 + $0x58] sm:$0xf]  ;;  %v15486_v53 = vld [vmem:[#allocation3 + $0x60] sm:$0xf] }
 0x3a7   : > { %6041 = vst.msk [vmem:[#allocation3 + $0xa0] sm:$0xf] %vm336_vm1, %v5848_v18  ;;  %6044 = vst [vmem:[#allocation3 + $0xa4] sm:$0x1] %v6043_v8  ;;  %v6266_v43 = vor.u32 %v6265_v52, %v6262_v2  ;;  %v6275_v6 = vrot.slane %v6273_v3, 4  ;;  %v6258_v19 = vsel %vm13350_vm8, %v6253_v60, %v6257_v47  ;;  %v5458_v50 = vmul.f32 %v13138_v17, %v15328_v15 }
 0x3a8   : > { %v6281_v42 = vrot.slane %v6279_v56, 5  ;;  %v5461_v31 = vmul.f32 %v13138_v17, %v15330_v63  ;;  %v11208_v28 = vcombine.low %v6248_v36, %v6258_v19  ;;  %v5499_v24 = vadd.f32 %v13139_v45, %v5460_v44  ;;  %v6059_v60 = vld [vmem:[#allocation3 + $0xc0] sm:$0xf] }
 0x3a9   : > { %v6267_v0 = vrot.slane %v6266_v43, 4  ;;  %v6276_v26 = vor.u32 %v6275_v6, %v6271_v59  ;;  %v5497_v41 = vadd.f32 %v13139_v45, %v5458_v50  ;;  %v5459_v14 = vmul.f32 %v13138_v17, %v15332_v32  ;;  %v6052_v17 = vld [vmem:[#allocation3 + $0xb4] sm:$0xf] }
 0x3aa   : > { %v5500_v7 = vadd.f32 %v13139_v45, %v5461_v31  ;;  %v6284_v25 = vshrl.u32 %v15464_v33, 16  ;;  %12207 = vmatmul.mubr.msk.bf16.gmra.mrb[8].mxu1 %vm6549_vm3, %v11208_v28  ;;  %v5531_v22 = vmax.f32 %v5499_v24, 0.0  ;;  %v6287_v4 = vshll.u32 %v15464_v33, 16  ;;  %v6063_v28 = vld [vmem:[#allocation3 + $0xc8] sm:$0x1] }
 0x3ab   : > { %v6272_v15 = vsel %vm13350_vm8, %v6267_v0, %v6271_v59  ;;  %v6277_v63 = vrot.slane %v6276_v26, 4  ;;  %v5529_v61 = vmax.f32 %v5497_v41, 0.0  ;;  %v5498_v36 = vadd.f32 %v13139_v45, %v5459_v14  ;;  %v6056_v14 = vld [vmem:[#allocation3 + $0xbc] sm:$0x1] }
 0x3ac   : > { %v5532_v35 = vmax.f32 %v5500_v7, 0.0  ;;  %v6286_v39 = vrot.slane %v6284_v25, 4  ;;  %v11582_v23 = vpack.c.bf16 %v5531_v22, %v5531_v22  ;;  %v6289_v5 = vrot.slane %v6287_v4, 5  ;;  %v15499_v4 = vld [vmem:[#allocation3 + $0x64] sm:$0xf] }
 0x3ad   : > { %v6282_v32 = vsel %vm13350_vm8, %v6277_v63, %v6281_v42  ;;  %v6293_v16 = vshll.u32 %v15474_v29, 16  ;;  %v11580_v62 = vpack.c.bf16 %v5529_v61, %v5529_v61  ;;  %v5530_v30 = vmax.f32 %v5498_v36, 0.0  ;;  %v15501_v61 = vld [vmem:[#allocation3 + $0x68] sm:$0x1] }
 0x3ae   : > { %v11209_v57 = vcombine.low %v6272_v15, %v6282_v32  ;;  %v11583_v27 = vpack.c.bf16 %v5532_v35, %v5532_v35  ;;  %v5885_v48 = vshrl.u32 %v11582_v23, 16  ;;  %v5888_v11 = vshll.u32 %v11582_v23, 16  ;;  %v15509_v23 = vld [vmem:[#allocation3 + $0x6c] sm:$0xf] }
 0x3af   : > { %v6290_v47 = vor.u32 %v6289_v5, %v6286_v39  ;;  %v15488_v2 = vrot.slane %v6293_v16, 5  ;;  %v5868_v52 = vshrl.u32 %v11580_v62, 16  ;;  %v5871_v55 = vshll.u32 %v11580_v62, 16  ;;  %v15511_v5 = vld [vmem:[#allocation3 + $0x70] sm:$0xf] }
 0x3b0   : > { %12210 = vmatprep.mubr.msk.bf16.mxu1 %vm6549_vm3, %v11209_v57  ;;  %v5893_v3 = vshrl.u32 %v11583_v27, 16  ;;  %v5896_v18 = vshll.u32 %v11583_v27, 16  ;;  %v5887_v8 = vrot.slane %v5885_v48, 7  ;;  %v11581_v56 = vpack.c.bf16 %v5530_v30, %v5530_v30 }
 0x3b1   : > { %v6291_v43 = vrot.slane %v6290_v47, 4  ;;  %v6297_v59 = vshrl.u32 %v15474_v29, 16  ;;  %v5870_v6 = vrot.slane %v5868_v52, 7  ;;  %v6303_v19 = vshll.u32 %v15484_v34, 16  ;;  %v15519_v47 = vld [vmem:[#allocation3 + $0x78] sm:$0xf] }
 0x3b2   : > { %v5895_v44 = vrot.slane %v5893_v3, 7  ;;  %v6308_v42 = vshrl.u32 %v15486_v53, 16  ;;  %v5890_v50 = vor.u32 %v5888_v11, %v5887_v8  ;;  %v5891_v31 = vrot.slane %v5887_v8, 4 }
 0x3b3   : > { %v5876_v0 = vshrl.u32 %v11581_v56, 16  ;;  %v5879_v26 = vshll.u32 %v11581_v56, 16  ;;  %v5873_v45 = vor.u32 %v5871_v55, %v5870_v6  ;;  %v5874_v24 = vrot.slane %v5870_v6, 4 }
 0x3b4   : > { %v5898_v41 = vor.u32 %v5896_v18, %v5895_v44  ;;  %v5900_v7 = vrot.slane %v5895_v44, 4  ;;  %v6060_v25 = vsel %vm15184_vm4, %v5890_v50, %v6059_v60  ;;  %v6296_v63 = vsel %vm13350_vm8, %v6291_v43, %v15488_v2  ;;  %v15527_v43 = vld [vmem:[#allocation3 + $0x74] sm:$0x1] }
 0x3b5   : > { %v5878_v15 = vrot.slane %v5876_v0, 7  ;;  %v6299_v22 = vrot.slane %v6297_v59, 4  ;;  %6061 = vst [vmem:[#allocation3 + $0xc0] sm:$0xf] %v6060_v25  ;;  %v6053_v35 = vsel %vm15184_vm4, %v5873_v45, %v6052_v17  ;;  %v6305_v32 = vrot.slane %v6303_v19, 5 }
 0x3b6   : > { %v5899_v36 = vsel %vm13370_vm12, %v5891_v31, %v5898_v41  ;;  %v6064_v39 = vsel %vm15191_vm6, %v5900_v7, %v6063_v28  ;;  %6054 = vst [vmem:[#allocation3 + $0xb4] sm:$0xf] %v6053_v35  ;;  %v6310_v62 = vrot.slane %v6308_v42, 4  ;;  %v6311_v27 = vshll.u32 %v15486_v53, 16  ;;  %v15529_v59 = vld [vmem:[#allocation3 + $0x7c] sm:$0xf] }
 0x3b7   : > { %6062 = vst.msk [vmem:[#allocation3 + $0xc4] sm:$0xf] %vm336_vm1, %v5899_v36  ;;  %6065 = vst [vmem:[#allocation3 + $0xc8] sm:$0x1] %v6064_v39  ;;  %v5881_v16 = vor.u32 %v5879_v26, %v5878_v15  ;;  %v5883_v57 = vrot.slane %v5878_v15, 4  ;;  %v6300_v40 = vor.u32 %v6299_v22, %v15488_v2  ;;  %v6317_v30 = vshll.u32 %v15499_v4, 16 }
 0x3b8   : > { %v6321_v48 = vshrl.u32 %v15499_v4, 16  ;;  %v6327_v11 = vshll.u32 %v15501_v61, 16  ;;  %v6332_v2 = vshrl.u32 %v15509_v23, 16  ;;  %v6313_v18 = vrot.slane %v6311_v27, 5  ;;  %v15537_v26 = vld [vmem:[#allocation3 + $0x80] sm:$0x1] }
 0x3b9   : > { %v5882_v52 = vsel %vm13370_vm12, %v5874_v24, %v5881_v16  ;;  %v6057_v55 = vsel %vm15191_vm6, %v5883_v57, %v6056_v14  ;;  %v6301_v3 = vrot.slane %v6300_v40, 4  ;;  %v6319_v8 = vrot.slane %v6317_v30, 5  ;;  %v15542_v25 = vld [vmem:[#allocation3 + $0x84] sm:$0xf]  ;;  %v15545_v36 = vld [vmem:[#allocation3 + $0x88] sm:$0xf] }
 0x3ba   : > { %6055 = vst.msk [vmem:[#allocation3 + $0xb8] sm:$0xf] %vm336_vm1, %v5882_v52  ;;  %6058 = vst [vmem:[#allocation3 + $0xbc] sm:$0x1] %v6057_v55  ;;  %v6323_v60 = vrot.slane %v6321_v48, 4  ;;  %v6329_v56 = vrot.slane %v6327_v11, 5  ;;  %v6314_v19 = vor.u32 %v6313_v18, %v6310_v62 }
 0x3bb   : > { %v6306_v38 = vsel %vm13350_vm8, %v6301_v3, %v6305_v32  ;;  %v6334_v6 = vrot.slane %v6332_v2, 4  ;;  %v6335_v9 = vshll.u32 %v15509_v23, 16  ;;  %v6341_v17 = vshll.u32 %v15511_v5, 16  ;;  %v15552_v48 = vld [vmem:[#allocation3 + $0x90] sm:$0xf] }
 0x3bc   : > { %v11210_v44 = vcombine.low %v6296_v63, %v6306_v38  ;;  %v6324_v42 = vor.u32 %v6323_v60, %v6319_v8  ;;  %v6345_v50 = vshrl.u32 %v15511_v5, 16  ;;  %v6351_v0 = vshll.u32 %v15527_v43, 16  ;;  %v15555_v3 = vld [vmem:[#allocation3 + $0x8c] sm:$0x1] }
 0x3bd   : > { %v6337_v31 = vrot.slane %v6335_v9, 5  ;;  %v6343_v28 = vrot.slane %v6341_v17, 5  ;;  %v6356_v45 = vshrl.u32 %v15519_v47, 16  ;;  %v6315_v24 = vrot.slane %v6314_v19, 4 }
 0x3be   : > { %12211 = vmatmul.mubr.msk.bf16.gmra.mrb[12].mxu1 %vm6549_vm3, %v11210_v44  ;;  %v6325_v41 = vrot.slane %v6324_v42, 4  ;;  %v6347_v7 = vrot.slane %v6345_v50, 4  ;;  %v6359_v14 = vshll.u32 %v15519_v47, 16  ;;  %v6353_v63 = vrot.slane %v6351_v0, 5  ;;  %v15565_v44 = vld [vmem:[#allocation3 + $0x94] sm:$0xf] }
 0x3bf   : > { %v6338_v15 = vor.u32 %v6337_v31, %v6334_v6  ;;  %v6358_v22 = vrot.slane %v6356_v45, 4  ;;  %v6365_v35 = vshll.u32 %v15529_v59, 16  ;;  %v6320_v39 = vsel %vm13350_vm8, %v6315_v24, %v6319_v8 }
 0x3c0   : > { %v6330_v32 = vsel %vm13350_vm8, %v6325_v41, %v6329_v56  ;;  %v6348_v16 = vor.u32 %v6347_v7, %v6343_v28  ;;  %v6361_v57 = vrot.slane %v6359_v14, 5  ;;  %v6369_v30 = vshrl.u32 %v15529_v59, 16  ;;  %v15573_v14 = vld [vmem:[#allocation3 + $0x98] sm:$0x1] }
 0x3c1   : > { %v11211_v40 = vcombine.low %v6320_v39, %v6330_v32  ;;  %v6339_v62 = vrot.slane %v6338_v15, 4  ;;  %v6367_v27 = vrot.slane %v6365_v35, 5  ;;  %v6375_v55 = vshll.u32 %v15537_v26, 16 }
 0x3c2   : > { %v6349_v11 = vrot.slane %v6348_v16, 4  ;;  %v6362_v52 = vor.u32 %v6361_v57, %v6358_v22  ;;  %v6380_v2 = vshrl.u32 %v15542_v25, 16  ;;  %v6371_v8 = vrot.slane %v6369_v30, 4  ;;  %v15578_v16 = vld [vmem:[#allocation3 + $0x9c] sm:$0xf] }
 0x3c3   : > { %12214 = vmatprep.mubr.msk.bf16.mxu1 %vm6549_vm3, %v11211_v40  ;;  %v6344_v18 = vsel %vm13350_vm8, %v6339_v62, %v6343_v28  ;;  %v6383_v60 = vshll.u32 %v15542_v25, 16  ;;  %v6389_v56 = vshll.u32 %v15545_v36, 16  ;;  %v6377_v9 = vrot.slane %v6375_v55, 5  ;;  %v15582_v30 = vld [vmem:[#allocation3 + $0xa0] sm:$0xf] }
 0x3c4   : > { %v6354_v38 = vsel %vm13350_vm8, %v6349_v11, %v6353_v63  ;;  %v6363_v6 = vrot.slane %v6362_v52, 4  ;;  %v6382_v17 = vrot.slane %v6380_v2, 4  ;;  %v6372_v42 = vor.u32 %v6371_v8, %v6367_v27 }
 0x3c5   : > { %v11212_v19 = vcombine.low %v6344_v18, %v6354_v38  ;;  %v6385_v50 = vrot.slane %v6383_v60, 5  ;;  %v6391_v31 = vrot.slane %v6389_v56, 5  ;;  %v6393_v0 = vshrl.u32 %v15545_v36, 16  ;;  %v15585_v18 = vld [vmem:[#allocation3 + $0xa4] sm:$0x1] }
 0x3c6   : > { %v6368_v28 = vsel %vm13350_vm8, %v6363_v6, %v6367_v27  ;;  %v6399_v45 = vshll.u32 %v15555_v3, 16  ;;  %v6404_v24 = vshrl.u32 %v15552_v48, 16  ;;  %v6373_v41 = vrot.slane %v6372_v42, 4  ;;  %v15591_v6 = vld [vmem:[#allocation3 + $0xa8] sm:$0xf] }
 0x3c7   : > { %12215 = vmatmul.mubr.msk.bf16.gmra.mrb[16].mxu1 %vm6549_vm3, %v11212_v19  ;;  %v6386_v7 = vor.u32 %v6385_v50, %v6382_v17  ;;  %v6407_v15 = vshll.u32 %v15552_v48, 16  ;;  %v6413_v63 = vshll.u32 %v15565_v44, 16  ;;  %v6395_v22 = vrot.slane %v6393_v0, 4 }
 0x3c8   : > { %v6401_v35 = vrot.slane %v6399_v45, 5  ;;  %v6406_v39 = vrot.slane %v6404_v24, 4  ;;  %v6417_v32 = vshrl.u32 %v15565_v44, 16  ;;  %v6378_v57 = vsel %vm13350_vm8, %v6373_v41, %v6377_v9 }
 0x3c9   : > { %v6387_v40 = vrot.slane %v6386_v7, 4  ;;  %v6409_v62 = vrot.slane %v6407_v15, 5  ;;  %v6415_v27 = vrot.slane %v6413_v63, 5  ;;  %v11213_v11 = vcombine.low %v6368_v28, %v6378_v57  ;;  %v15601_v63 = vld [vmem:[#allocation3 + $0xb0] sm:$0x1] }
 0x3ca   : > { %v6396_v52 = vor.u32 %v6395_v22, %v6391_v31  ;;  %v6419_v55 = vrot.slane %v6417_v32, 4  ;;  %v6423_v2 = vshll.u32 %v15573_v14, 16  ;;  %v6428_v56 = vshrl.u32 %v15578_v16, 16  ;;  %v15603_v22 = vld [vmem:[#allocation3 + $0xb4] sm:$0xf] }
 0x3cb   : > { %v6392_v8 = vsel %vm13350_vm8, %v6387_v40, %v6391_v31  ;;  %v6410_v60 = vor.u32 %v6409_v62, %v6406_v39  ;;  %v6431_v38 = vshll.u32 %v15578_v16, 16  ;;  %12218 = vmatprep.mubr.msk.bf16.mxu1 %vm6549_vm3, %v11213_v11  ;;  %v6437_v42 = vshll.u32 %v15582_v30, 16  ;;  %v15596_v31 = vld [vmem:[#allocation3 + $0xac] sm:$0xf] }
 0x3cc   : > { %v6397_v9 = vrot.slane %v6396_v52, 4  ;;  %v6420_v17 = vor.u32 %v6419_v55, %v6415_v27  ;;  %v6425_v19 = vrot.slane %v6423_v2, 5  ;;  %v6430_v28 = vrot.slane %v6428_v56, 4  ;;  %v15611_v52 = vld [vmem:[#allocation3 + $0xb8] sm:$0xf] }
 0x3cd   : > { %v6411_v50 = vrot.slane %v6410_v60, 4  ;;  %v6433_v0 = vrot.slane %v6431_v38, 5  ;;  %v6441_v45 = vshrl.u32 %v15582_v30, 16  ;;  %v6439_v7 = vrot.slane %v6437_v42, 5 }
 0x3ce   : > { %v6402_v24 = vsel %vm13350_vm8, %v6397_v9, %v6401_v35  ;;  %v6421_v41 = vrot.slane %v6420_v17, 4  ;;  %v6447_v15 = vshll.u32 %v15585_v18, 16  ;;  %v6452_v11 = vshrl.u32 %v15591_v6, 16 }
 0x3cf   : > { %v11214_v39 = vcombine.low %v6392_v8, %v6402_v24  ;;  %v6434_v32 = vor.u32 %v6433_v0, %v6430_v28  ;;  %v6443_v57 = vrot.slane %v6441_v45, 4  ;;  %v6416_v40 = vsel %vm13350_vm8, %v6411_v50, %v6415_v27  ;;  %v15621_v24 = vld [vmem:[#allocation3 + $0xbc] sm:$0x1] }
 0x3d0   : > { %v6426_v62 = vsel %vm13350_vm8, %v6421_v41, %v6425_v19  ;;  %v6455_v35 = vshll.u32 %v15591_v6, 16  ;;  %v6461_v8 = vshll.u32 %v15596_v31, 16  ;;  %v6449_v56 = vrot.slane %v6447_v15, 5 }
 0x3d1   : > { %12219 = vmatmul.mubr.msk.bf16.gmra.mrb[20].mxu1 %vm6549_vm3, %v11214_v39  ;;  %v11215_v55 = vcombine.low %v6416_v40, %v6426_v62  ;;  %v6435_v2 = vrot.slane %v6434_v32, 4  ;;  %v6444_v60 = vor.u32 %v6443_v57, %v6439_v7  ;;  %v6454_v38 = vrot.slane %v6452_v11, 4 }
 0x3d2   : > { %v6457_v9 = vrot.slane %v6455_v35, 5  ;;  %v6465_v27 = vshrl.u32 %v15596_v31, 16  ;;  %v6463_v19 = vrot.slane %v6461_v8, 5  ;;  %v6471_v42 = vshll.u32 %v15601_v63, 16 }
 0x3d3   : > { %12222 = vmatprep.mubr.msk.bf16.mxu1 %vm6549_vm3, %v11215_v55  ;;  %v6445_v17 = vrot.slane %v6444_v60, 4  ;;  %v6476_v50 = vshrl.u32 %v15603_v22, 16  ;;  %v6440_v28 = vsel %vm13350_vm8, %v6435_v2, %v6439_v7  ;;  %v6479_v41 = vshll.u32 %v15603_v22, 16 }
 0x3d4   : > { %v6458_v0 = vor.u32 %v6457_v9, %v6454_v38  ;;  %v6467_v45 = vrot.slane %v6465_v27, 4  ;;  %v6485_v32 = vshll.u32 %v15611_v52, 16  ;;  %v6489_v57 = vshrl.u32 %v15611_v52, 16 }
 0x3d5   : > { %v6450_v15 = vsel %vm13350_vm8, %v6445_v17, %v6449_v56  ;;  %v6478_v39 = vrot.slane %v6476_v50, 4  ;;  %v6481_v35 = vrot.slane %v6479_v41, 5  ;;  %v6495_v2 = vshll.u32 %v15621_v24, 16  ;;  %v15634_v41 = vld [vmem:[#allocation3 + $0x4] sm:$0xf] }
 0x3d6   : > { %v11216_v40 = vcombine.low %v6440_v28, %v6450_v15  ;;  %v6459_v62 = vrot.slane %v6458_v0, 4  ;;  %v6468_v11 = vor.u32 %v6467_v45, %v6463_v19  ;;  %v6487_v55 = vrot.slane %v6485_v32, 5  ;;  %v13140_v45 = vld [vmem:[#allocation3] sm:$0xf] }
 0x3d7   : > { %v6491_v7 = vrot.slane %v6489_v57, 4  ;;  %v6473_v8 = vrot.slane %v6471_v42, 5  ;;  %v6482_v38 = vor.u32 %v6481_v35, %v6478_v39  ;;  %v6497_v0 = vrot.slane %v6495_v2, 5  ;;  %v7065_v2 = vld [vmem:[#allocation3 + $0x78] sm:$0xe] }
 0x3d8   : > { %v6469_v60 = vrot.slane %v6468_v11, 4  ;;  %v6464_v56 = vsel %vm13350_vm8, %v6459_v62, %v6463_v19  ;;  %v11235_v15 = vcombine.low %v13140_v45, %v15634_v41  ;;  %v11242_v39 = vcombine.low %v15464_v33, %v15474_v29 }
 0x3d9   : > { %12223 = vmatmul.mubr.msk.bf16.gmra.mrb[24].mxu1 %vm6549_vm3, %v11216_v40  ;;  %v6492_v9 = vor.u32 %v6491_v7, %v6487_v55  ;;  %v6483_v17 = vrot.slane %v6482_v38, 4  ;;  %v11243_v19 = vcombine.low %v15486_v53, %v15499_v4  ;;  %v11244_v32 = vcombine.low %v15509_v23, %v15511_v5  ;;  %v13147_v23 = vld [vmem:[#allocation3 + $0x8] sm:$0x1] }
 0x3da   : > { %v6474_v27 = vsel %vm13350_vm8, %v6469_v60, %v6473_v8  ;;  %v11245_v40 = vcombine.low %v15519_v47, %v15529_v59  ;;  %v13142_v60 = vld [vmem:[#allocation3 + $0xc] sm:$0xf]  ;;  %v15662_v8 = vld [vmem:[#allocation3 + $0x10] sm:$0xf]  ;;  %v7154_v45 = vrot.slane %v15474_v29, 5  ;;  %v7199_v11 = vrot.slane %v15585_v18, 5 }
 0x3db   : > { %v11217_v50 = vcombine.low %v6464_v56, %v6474_v27  ;;  %v6493_v28 = vrot.slane %v6492_v9, 4  ;;  %v6488_v42 = vsel %vm13350_vm8, %v6483_v17, %v6487_v55  ;;  %v11236_v38 = vcombine.low %v13142_v60, %v15662_v8  ;;  %v13144_v56 = vld [vmem:[#allocation3 + $0x18] sm:$0xf]  ;;  %v15667_v27 = vld [vmem:[#allocation3 + $0x1c] sm:$0xf] }
 0x3dc   : > { %v7314_v9 = vsel %vm6598_vm2, %v15353_v51, 0  ;;  %v11237_v17 = vcombine.low %v13144_v56, %v15667_v27  ;;  %v7064_v51 = vld [vmem:[#allocation3 + $0x6c] sm:$0xe]  ;;  %v7161_v60 = vrot.slane %v15499_v4, 5  ;;  %v7066_v55 = vld [vmem:[#allocation3 + $0x84] sm:$0xe]  ;;  %v17381_v33 = vcombine.low %v15542_v25, %v15545_v36 }
 0x3dd   : > { %12226 = vmatprep.mubr.msk.bf16.mxu1 %vm6549_vm3, %v11217_v50  ;;  %v6498_v57 = vsel %vm13350_vm8, %v6493_v28, %v6497_v0  ;;  %v15673_v50 = vld [vmem:[%s17171_s4 + $0xc] sm:$0xf]  ;;  %v7063_v0 = vld [vmem:[#allocation3 + $0x60] sm:$0xe]  ;;  %v7210_v18 = vrot.slane %v15611_v52, 5  ;;  %v17382_v29 = vcombine.low %v15552_v48, %v15565_v44  ;;  %v7105_v53 = vrot.slane %v15634_v41, 5 }
 0x3de   : > { %v11218_v35 = vcombine.low %v6488_v42, %v6498_v57  ;;  %v7062_v28 = vld [vmem:[#allocation3 + $0x54] sm:$0xe]  ;;  %v11239_v57 = vcombine.low %v15378_v46, %v15384_v54  ;;  %v11275_v56 = vrot.slane %v7063_v0, 9  ;;  %v7168_v46 = vrot.slane %v15511_v5, 5  ;;  %v7055_v4 = vld [vmem:[#allocation3] sm:$0xe] }
 0x3df   : > { %v7108_v5 = vrot.slane %v13147_v23, 5  ;;  %v17383_v47 = vcombine.low %v15578_v16, %v15582_v30  ;;  %v7112_v48 = vrot.slane %v15662_v8, 5  ;;  %v17385_v16 = vcombine.low %v15603_v22, %v15611_v52  ;;  %v13151_v52 = vld [vmem:[#allocation3 + $0x34] sm:$0xf]  ;;  %v7058_v23 = vld [vmem:[#allocation3 + $0x24] sm:$0xe] }
 0x3e1   : > { %12227 = vmatmul.mubr.msk.bf16.gmra.mrb[28].mxu1 %vm6549_vm3, %v11218_v35  ;;  %v11274_v35 = vrot.slane %v7062_v28, 9  ;;  %v15697_v28 = vsel %vm13741_vm15, %v11275_v56, %v7161_v60  ;;  %v7067_v56 = vld [vmem:[#allocation3 + $0x90] sm:$0xe] }
 0x3e2   : > { %12232 = vmatprep.mubr.msk.bf16.mxu1 %vm6549_vm3, %v11235_v15  ;;  %v13146_v15 = vld [vmem:[#allocation3 + $0x24] sm:$0xf] }
 0x3e3   : > { %v11238_v42 = vcombine.low %v13146_v15, %v15365_v1  ;;  %v15688_v7 = vsel %vm13741_vm15, %v11274_v35, %v7154_v45  ;;  %v7163_v1 = vrot.slane %v7161_v60, 4  ;;  %v11276_v15 = vrot.slane %v7064_v51, 9 }
 0x3e4   : > { %v7170_v51 = vrot.slane %v7168_v46, 4  ;;  %v11277_v35 = vrot.slane %v7065_v2, 9  ;;  %v7192_v60 = vrot.slane %v15573_v14, 5 }
 0x3e5   : > { %v15715_v0 = vsel %vm13741_vm15, %v11276_v15, %v7168_v46  ;;  %v7189_v15 = vrot.slane %v15565_v44, 5  ;;  %v7068_v46 = vld [vmem:[#allocation3 + $0x9c] sm:$0xe]  ;;  %v7119_v44 = vrot.slane %v15667_v27, 5  ;;  %v13150_v27 = vld [vmem:[#allocation3 + $0x28] sm:$0xf] }
 0x3e9   : > { %12233 = vmatmul.mubr.msk.bf16.vlgmr.msra.gmra.mrb[0].mxu1 %vm6549_vm3, %v11236_v38  ;;  %v7156_v38 = vrot.slane %v7154_v45, 4 }
 0x3ea   : > { %12265 = vmatpush3.bf16.msra.mxu1 %v7314_v9  ;;  %12236 = vmatprep.mubr.msk.bf16.mxu1 %vm6549_vm3, %v11237_v17  ;;  %v7157_v9 = vrot.slane %v15484_v34, 5  ;;  %v7164_v17 = vrot.slane %v15501_v61, 5  ;;  %v7171_v34 = vrot.slane %v15527_v43, 5  ;;  %v7175_v61 = vrot.slane %v15529_v59, 5 }
 0x3eb   : > { %13026 = vmatprep.subr.msk.bf16.mxu1 %vm6598_vm2, %v15673_v50  ;;  %v7178_v43 = vrot.slane %v15537_v26, 5  ;;  %v7191_v26 = vrot.slane %v7189_v15, 4  ;;  %v17384_v59 = vcombine.low %v15591_v6, %v15596_v31  ;;  %v7121_v6 = vrot.slane %v7119_v44, 4 }
 0x3ec   : > { %v15693_v54 = vsel %vm13741_vm15, %v7156_v38, %v7157_v9  ;;  %v15705_v45 = vsel %vm13741_vm15, %v7163_v1, %v7164_v17  ;;  %v11240_v38 = vcombine.low %v15402_v21, %v15425_v58  ;;  %v7177_v9 = vrot.slane %v7175_v61, 4 }
 0x3ed   : > { %v15719_v2 = vsel %vm13741_vm15, %v7170_v51, %v7171_v34  ;;  %v15723_v21 = vsel %vm13741_vm15, %v11277_v35, %v7175_v61  ;;  %v7182_v17 = vrot.slane %v15545_v36, 5  ;;  %v11278_v1 = vrot.slane %v7066_v55, 9  ;;  %v7069_v55 = vld [vmem:[#allocation3 + $0xa8] sm:$0xe] }
 0x3ee   : > { %v7185_v51 = vrot.slane %v15555_v3, 5  ;;  %v11279_v35 = vrot.slane %v7067_v56, 9  ;;  %v11280_v3 = vrot.slane %v7068_v46, 9  ;;  %v7203_v56 = vrot.slane %v15596_v31, 5  ;;  %v7070_v46 = vld [vmem:[#allocation3 + $0xb4] sm:$0xe] }
 0x3ef   : > { %v7184_v61 = vrot.slane %v7182_v17, 4  ;;  %v15756_v14 = vsel %vm13741_vm15, %v7191_v26, %v7192_v60  ;;  %v13148_v31 = vld [vmem:[#allocation3 + $0x14] sm:$0x1] }
 0x3f0   : > { %v15749_v34 = vsel %vm13741_vm15, %v11279_v35, %v7189_v15  ;;  %v7205_v62 = vrot.slane %v7203_v56, 4  ;;  %v7206_v15 = vrot.slane %v15601_v63, 5  ;;  %v11241_v35 = vcombine.low %v15432_v10, %v15441_v12 }
 0x3f1   : > { %12237 = vmatmul.mubr.msk.bf16.gmra.mrb[4].mxu1 %vm6549_vm3, %v11238_v42  ;;  %v15731_v42 = vsel %vm13741_vm15, %v7177_v9, %v7178_v43  ;;  %v7196_v9 = vrot.slane %v15582_v30, 5  ;;  %v15745_v43 = vsel %vm13741_vm15, %v7184_v61, %v7185_v51  ;;  %v11281_v51 = vrot.slane %v7069_v55, 9  ;;  %v7056_v30 = vld [vmem:[#allocation3 + $0xc] sm:$0xe] }
 0x3f2   : > { %12240 = vmatprep.mubr.msk.bf16.mxu1 %vm6549_vm3, %v11239_v57  ;;  %v15739_v57 = vsel %vm13741_vm15, %v11278_v1, %v7182_v17  ;;  %v15782_v10 = vsel %vm13741_vm15, %v7205_v62, %v7206_v15  ;;  %v7212_v55 = vrot.slane %v7210_v18, 4  ;;  %v11268_v15 = vrot.slane %v7056_v30, 9 }
 0x3f3   : > { %v7198_v1 = vrot.slane %v7196_v9, 4  ;;  %v15766_v17 = vsel %vm13741_vm15, %v11280_v3, %v7196_v9  ;;  %v15778_v63 = vsel %vm13741_vm15, %v11281_v51, %v7203_v56  ;;  %v11282_v9 = vrot.slane %v7070_v46, 9 }
 0x3f4   : > { %v7126_v46 = vrot.slane %v13150_v27, 5  ;;  %v17404_v26 = vcombine.low %v15739_v57, %v15745_v43 }
 0x3f5   : > { %v15770_v60 = vsel %vm13741_vm15, %v7198_v1, %v7199_v11  ;;  %v15790_v3 = vsel %vm13741_vm15, %v11282_v9, %v7210_v18  ;;  %v13149_v1 = vld [vmem:[#allocation3 + $0x20] sm:$0x1]  ;;  %v7133_v18 = vrot.slane %v13151_v52, 5  ;;  %v7113_v9 = vsel %vm13741_vm15, %v11268_v15, %v7112_v48  ;;  %v8605_v11 = vld [vmem:[#allocation3 + $0x9c] sm:$0xe] }
 0x3f6   : > { %v7122_v51 = vrot.slane %v13149_v1, 5 }
 0x3f8   : > { %v7123_v22 = vsel %vm13741_vm15, %v7121_v6, %v7122_v51  ;;  %v7061_v51 = vld [vmem:[#allocation3 + $0x48] sm:$0xe] }
 0x3f9   : > { %12241 = vmatmul.mubr.msk.bf16.gmra.mrb[8].mxu1 %vm6549_vm3, %v11240_v38  ;;  %v7213_v38 = vrot.slane %v15621_v24, 5  ;;  %v11267_v24 = vrot.slane %v7055_v4, 9  ;;  %v15855_v4 = vld [vmem:[%s17171_s4 + $0x10] sm:$0xf]  ;;  %v11273_v27 = vrot.slane %v7061_v51, 9 }
 0x3fa   : > { %12244 = vmatprep.mubr.msk.bf16.mxu1 %vm6549_vm3, %v11241_v35  ;;  %v15933_v51 = vld [vmem:[#allocation3 + $0x64] sm:$0xf] }
 0x3fb   : > { %v15794_v56 = vsel %vm13741_vm15, %v7212_v55, %v7213_v38  ;;  %v7106_v25 = vsel %vm13741_vm15, %v11267_v24, %v7105_v53  ;;  %v7672_v38 = vsel %vm6598_vm2, %v15673_v50, 0  ;;  %v13152_v24 = vld [vmem:[#allocation3 + $0x2c] sm:$0x1]  ;;  %v7059_v50 = vld [vmem:[#allocation3 + $0x30] sm:$0xe] }
 0x401   : > { %12245 = vmatmul.mubr.msk.bf16.gmra.mrb[12].mxu1 %vm6549_vm3, %v11242_v39  ;;  %v7107_v39 = vrot.slane %v7105_v53, 4  ;;  %v7128_v53 = vrot.slane %v7126_v46, 4 }
 0x402   : > { %12248 = vmatprep.mubr.msk.bf16.mxu1 %vm6549_vm3, %v11243_v19  ;;  %v7114_v19 = vrot.slane %v7112_v48, 4  ;;  %v7140_v48 = vrot.slane %v15425_v58, 5  ;;  %v7143_v58 = vrot.slane %v15430_v37, 5  ;;  %v15885_v37 = vld [vmem:[#allocation3 + $0x28] sm:$0xf] }
 0x403   : > { %v7109_v36 = vsel %vm13741_vm15, %v7107_v39, %v7108_v5  ;;  %v7135_v5 = vrot.slane %v7133_v18, 4  ;;  %v7129_v39 = vrot.slane %v13152_v24, 5 }
 0x404   : > { %v11284_v41 = vcombine.low %v7106_v25, %v7109_v36  ;;  %v11270_v25 = vrot.slane %v7058_v23, 9  ;;  %v17387_v23 = vcombine.low %v15697_v28, %v15705_v45 }
 0x405   : > { %v7130_v36 = vsel %vm13741_vm15, %v7128_v53, %v7129_v39  ;;  %v8596_v53 = vld [vmem:[#allocation3 + $0x30] sm:$0xe] }
 0x406   : > { %v11385_v45 = vrot.slane %v8596_v53, 9  ;;  %v8604_v53 = vld [vmem:[#allocation3 + $0x90] sm:$0xe] }
 0x407   : > { %v11393_v61 = vrot.slane %v8604_v53, 9 }
 0x409   : > { %12249 = vmatmul.mubr.msk.bf16.gmra.mrb[16].mxu1 %vm6549_vm3, %v11244_v32  ;;  %v7115_v32 = vrot.slane %v13148_v31, 5 }
 0x40a   : > { %12252 = vmatprep.mubr.msk.bf16.mxu1 %vm6549_vm3, %v11245_v40  ;;  %v7057_v40 = vld [vmem:[#allocation3 + $0x18] sm:$0xe] }
 0x40b   : > { %v7116_v8 = vsel %vm13741_vm15, %v7114_v19, %v7115_v32  ;;  %v11269_v35 = vrot.slane %v7057_v40, 9  ;;  %v7147_v19 = vrot.slane %v15441_v12, 5  ;;  %v7142_v32 = vrot.slane %v7140_v48, 4  ;;  %v7060_v40 = vld [vmem:[#allocation3 + $0x3c] sm:$0xe] }
 0x40c   : > { %v11285_v55 = vcombine.low %v7113_v9, %v7116_v8  ;;  %v7150_v12 = vrot.slane %v15447_v13, 5  ;;  %v11272_v15 = vrot.slane %v7060_v40, 9  ;;  %v8595_v13 = vld [vmem:[#allocation3 + $0x24] sm:$0xe]  ;;  %v15887_v9 = vld [vmem:[#allocation3 + $0x2c] sm:$0x1] }
 0x40d   : > { %v7149_v1 = vrot.slane %v7147_v19, 4  ;;  %v7144_v8 = vsel %vm13741_vm15, %v7142_v32, %v7143_v58  ;;  %v7148_v52 = vsel %vm13741_vm15, %v11273_v27, %v7147_v19  ;;  %v11384_v24 = vrot.slane %v8595_v13, 9  ;;  %v8599_v58 = vld [vmem:[#allocation3 + $0x54] sm:$0xe] }
 0x411   : > { %12253 = vmatmul.mubr.msk.bf16.gmra.mrb[20].mxu1 %vm6549_vm3, %v17381_v33  ;;  %v7120_v33 = vsel %vm13741_vm15, %v11269_v35, %v7119_v44  ;;  %v11271_v44 = vrot.slane %v7059_v50, 9  ;;  %v7141_v35 = vsel %vm13741_vm15, %v11272_v15, %v7140_v48  ;;  %v8597_v50 = vld [vmem:[#allocation3 + $0x3c] sm:$0xe]  ;;  %v8598_v48 = vld [vmem:[#allocation3 + $0x48] sm:$0xe] }
 0x412   : > { %12256 = vmatprep.mubr.msk.bf16.mxu1 %vm6549_vm3, %v17382_v29  ;;  %v11286_v29 = vcombine.low %v7120_v33, %v7123_v22  ;;  %v11289_v22 = vcombine.low %v7141_v35, %v7144_v8  ;;  %v17386_v33 = vcombine.low %v15688_v7, %v15693_v54  ;;  %v8676_v7 = vrot.slane %v15887_v9, 5  ;;  %v15944_v35 = vld [vmem:[#allocation3 + $0x68] sm:$0x1] }
 0x413   : > { %v7134_v6 = vsel %vm13741_vm15, %v11271_v44, %v7133_v18  ;;  %v15917_v44 = vld [vmem:[#allocation3 + $0x58] sm:$0xf]  ;;  %v11387_v8 = vrot.slane %v8598_v48, 9  ;;  %v15974_v48 = vld [vmem:[#allocation3 + $0x7c] sm:$0xf] }
 0x419   : > { %12257 = vmatmul.mubr.msk.bf16.gmra.mrb[24].mxu1 %vm6549_vm3, %v17383_v47  ;;  %v13153_v47 = vld [vmem:[#allocation3 + $0x38] sm:$0x1] }
 0x41a   : > { %12260 = vmatprep.mubr.msk.bf16.mxu1 %vm6549_vm3, %v17384_v59  ;;  %v7136_v59 = vrot.slane %v13153_v47, 5  ;;  %v15904_v47 = vld [vmem:[#allocation3 + $0x44] sm:$0x1] }
 0x421   : > { %12261 = vmatmul.mubr.msk.bf16.gmra.mrb[28].mxu1 %vm6549_vm3, %v17385_v16  ;;  %v7127_v16 = vsel %vm13741_vm15, %v11270_v25, %v7126_v46  ;;  %v7151_v46 = vsel %vm13741_vm15, %v7149_v1, %v7150_v12  ;;  %v15910_v25 = vld [vmem:[#allocation3 + $0x50] sm:$0x1]  ;;  %v8690_v1 = vrot.slane %v15904_v47, 5 }
 0x422   : > { %12266 = vmatprep.mubr.msk.bf16.mxu1 %vm6549_vm3, %v11284_v41  ;;  %v7137_v41 = vsel %vm13741_vm15, %v7135_v5, %v7136_v59  ;;  %v11287_v30 = vcombine.low %v7127_v16, %v7130_v36  ;;  %v11290_v18 = vcombine.low %v7148_v52, %v7151_v46  ;;  %v15902_v5 = vld [vmem:[#allocation3 + $0x38] sm:$0x1]  ;;  %v15906_v59 = vld [vmem:[#allocation3 + $0x4c] sm:$0xf]  ;;  %v8600_v46 = vld [vmem:[#allocation3 + $0x60] sm:$0xe] }
 0x423   : > { %v11288_v31 = vcombine.low %v7134_v6, %v7137_v41  ;;  %v8683_v16 = vrot.slane %v15902_v5, 5  ;;  %v15924_v6 = vld [vmem:[#allocation3 + $0x5c] sm:$0x1]  ;;  %v8694_v27 = vrot.slane %v15906_v59, 5  ;;  %v8697_v13 = vrot.slane %v15910_v25, 5 }
 0x424   : > { %v16035_v52 = vld [vmem:[#allocation3 + $0xa4] sm:$0x1] }
 0x429   : > { %12267 = vmatmul.mubr.msk.bf16.vlgmr.msra.gmra.mrb[0].mxu1 %vm6549_vm3, %v11285_v55  ;;  %v15889_v55 = vld [vmem:[#allocation3 + $0x34] sm:$0xf] }
 0x42a   : > { %12299 = vmatpush3.bf16.msra.mxu1 %v7672_v38  ;;  %12270 = vmatprep.mubr.msk.bf16.mxu1 %vm6549_vm3, %v11286_v29  ;;  %v8673_v38 = vrot.slane %v15885_v37, 5  ;;  %v15896_v29 = vld [vmem:[#allocation3 + $0x40] sm:$0xf]  ;;  %v8680_v54 = vrot.slane %v15889_v55, 5 }
 0x42b   : > { %13027 = vmatprep.subr.msk.bf16.mxu1 %vm6598_vm2, %v15855_v4  ;;  %v8687_v36 = vrot.slane %v15896_v29, 5 }
 0x42c   : > { %v8675_v39 = vrot.slane %v8673_v38, 4  ;;  %v15914_v28 = vsel %vm13741_vm15, %v11384_v24, %v8673_v38  ;;  %v8682_v19 = vrot.slane %v8680_v54, 4  ;;  %v15930_v32 = vsel %vm13741_vm15, %v11385_v45, %v8680_v54  ;;  %v15967_v54 = vld [vmem:[#allocation3 + $0x74] sm:$0x1] }
 0x42d   : > { %17388 = vst [vmem:[#allocation15_spill] sm:$0xff] %v15914_v28  ;;  %17390 = vst [vmem:[#allocation17_spill] sm:$0xff] %v15930_v32  ;;  %v8689_v40 = vrot.slane %v8687_v36, 4  ;;  %v8701_v38 = vrot.slane %v15917_v44, 5  ;;  %v11388_v24 = vrot.slane %v8599_v58, 9  ;;  %v11389_v45 = vrot.slane %v8600_v46, 9 }
 0x42e   : > { %v15921_v41 = vsel %vm13741_vm15, %v8675_v39, %v8676_v7  ;;  %v15937_v12 = vsel %vm13741_vm15, %v8682_v19, %v8683_v16  ;;  %v8704_v39 = vrot.slane %v15924_v6, 5  ;;  %v17395_v7 = vcombine.low %v15723_v21, %v15731_v42  ;;  %v16005_v58 = vld [vmem:[#allocation3 + $0x94] sm:$0xf]  ;;  %v13092_v28 = vld [vmem:[#allocation3 + $0x78] sm:$0xff]  }
 0x42f   : > { %17389 = vst [vmem:[#allocation16_spill] sm:$0xff] %v15921_v41  ;;  %17391 = vst [vmem:[#allocation18_spill] sm:$0xff] %v15937_v12  ;;  %v15982_v21 = vsel %vm13741_vm15, %v11388_v24, %v8701_v38  ;;  %v8711_v42 = vrot.slane %v15944_v35, 5  ;;  %v8718_v24 = vrot.slane %v15967_v54, 5 }
 0x430   : > { %17398 = vst [vmem:[#allocation8_spill] sm:$0xff] %v15982_v21  ;;  %v7973_v21 = vshll.u32 %v15885_v37, 16 }
 0x431   : > { %12271 = vmatmul.mubr.msk.bf16.gmra.mrb[4].mxu1 %vm6549_vm3, %v11287_v30  ;;  %v11386_v30 = vrot.slane %v8597_v50, 9  ;;  %v8601_v50 = vld [vmem:[#allocation3 + $0x6c] sm:$0xe] }
 0x432   : > { %12274 = vmatprep.mubr.msk.bf16.mxu1 %vm6549_vm3, %v11288_v31  ;;  %v11390_v46 = vrot.slane %v8601_v50, 9 }
 0x433   : > { %v15941_v15 = vsel %vm13741_vm15, %v11386_v30, %v8687_v36  ;;  %v8708_v36 = vrot.slane %v15933_v51, 5  ;;  %v8602_v30 = vld [vmem:[#allocation3 + $0x78] sm:$0xe] }
 0x434   : > { %17392 = vst [vmem:[#allocation19_spill] sm:$0xff] %v15941_v15 }
 0x439   : > { %12275 = vmatmul.mubr.msk.bf16.gmra.mrb[8].mxu1 %vm6549_vm3, %v11289_v22  ;;  %v15946_v22 = vld [vmem:[#allocation3 + $0x70] sm:$0xf] }
 0x43a   : > { %12278 = vmatprep.mubr.msk.bf16.mxu1 %vm6549_vm3, %v11290_v18  ;;  %v15952_v18 = vsel %vm13741_vm15, %v8689_v40, %v8690_v1  ;;  %v8715_v16 = vrot.slane %v15946_v22, 5  ;;  %v15986_v40 = vld [vmem:[#allocation3 + $0x80] sm:$0x1]  ;;  %v15988_v1 = vld [vmem:[#allocation3 + $0x88] sm:$0xf] }
 0x43b   : > { %17393 = vst [vmem:[#allocation5_spill] sm:$0xff] %v15952_v18  ;;  %v16180_v18 = vrot.slane %v7973_v21, 5 }
 0x43c   : > { %v16013_v50 = vsel %vm13741_vm15, %v11390_v46, %v8715_v16 }
 0x43d   : > { %17402 = vst [vmem:[#allocation12_spill] sm:$0xff] %v16013_v50  ;;  %v8746_v50 = vrot.slane %v16035_v52, 5 }
 0x441   : > { %12279 = vmatmul.mubr.msk.bf16.gmra.mrb[12].mxu1 %vm6549_vm3, %v17386_v33  ;;  %v17394_v33 = vcombine.low %v15715_v0, %v15719_v2  ;;  %v15971_v0 = vsel %vm13741_vm15, %v11387_v8, %v8694_v27  ;;  %v8703_v2 = vrot.slane %v8701_v38, 4  ;;  %v8722_v38 = vrot.slane %v15974_v48, 5 }
 0x442   : > { %12282 = vmatprep.mubr.msk.bf16.mxu1 %vm6549_vm3, %v17387_v23  ;;  %v8696_v23 = vrot.slane %v8694_v27, 4  ;;  %17396 = vst [vmem:[#allocation6_spill] sm:$0xff] %v15971_v0  ;;  %v8710_v27 = vrot.slane %v8708_v36, 4 }
 0x443   : > { %v15994_v8 = vsel %vm13741_vm15, %v8703_v2, %v8704_v39  ;;  %v11391_v2 = vrot.slane %v8602_v30, 9  ;;  %v8736_v30 = vrot.slane %v16005_v58, 5 }
 0x444   : > { %v15978_v19 = vsel %vm13741_vm15, %v8696_v23, %v8697_v13  ;;  %17399 = vst [vmem:[#allocation9_spill] sm:$0xff] %v15994_v8  ;;  %v15996_v13 = vld [vmem:[#allocation3 + $0x8c] sm:$0x1]  ;;  %v8717_v23 = vrot.slane %v8715_v16, 4  ;;  %v16009_v39 = vsel %vm13741_vm15, %v8710_v27, %v8711_v42  ;;  %v8725_v42 = vrot.slane %v15986_v40, 5 }
 0x445   : > { %17397 = vst [vmem:[#allocation7_spill] sm:$0xff] %v15978_v19  ;;  %17401 = vst [vmem:[#allocation11_spill] sm:$0xff] %v16009_v39  ;;  %v8729_v16 = vrot.slane %v15988_v1, 5  ;;  %v8724_v27 = vrot.slane %v8722_v38, 4  ;;  %v8732_v62 = vrot.slane %v15996_v13, 5 }
 0x446   : > { %v16024_v31 = vsel %vm13741_vm15, %v8717_v23, %v8718_v24  ;;  %v16039_v23 = vsel %vm13741_vm15, %v11391_v2, %v8722_v38  ;;  %v16058_v38 = vld [vmem:[#allocation3 + $0xb8] sm:$0xf]  ;;  %v8738_v2 = vrot.slane %v8736_v30, 4  ;;  %v8607_v39 = vld [vmem:[#allocation3 + $0xb4] sm:$0xe] }
 0x447   : > { %17403 = vst [vmem:[#allocation13_spill] sm:$0xff] %v16024_v31  ;;  %17405 = vst [vmem:[#allocation14_spill] sm:$0xff] %v16039_v23  ;;  %v8731_v24 = vrot.slane %v8729_v16, 4  ;;  %v16046_v31 = vld [vmem:[#allocation3 + $0xac] sm:$0xf]  ;;  %v16050_v57 = vsel %vm13741_vm15, %v8724_v27, %v8725_v42  ;;  %v11394_v42 = vrot.slane %v8605_v11, 9 }
 0x448   : > { %17407 = vst [vmem:[#allocation4_spill] sm:$0xff] %v16050_v57  ;;  %v8606_v27 = vld [vmem:[#allocation3 + $0xa8] sm:$0xe]  ;;  %v16073_v8 = vld [vmem:[#allocation3 + $0xc4] sm:$0xf] }
 0x449   : > { %12283 = vmatmul.mubr.msk.bf16.gmra.mrb[16].mxu1 %vm6549_vm3, %v17394_v33  ;;  %v16002_v33 = vsel %vm13741_vm15, %v11389_v45, %v8708_v36  ;;  %v16016_v45 = vld [vmem:[#allocation3 + $0x98] sm:$0x1]  ;;  %v16018_v36 = vld [vmem:[#allocation3 + $0xa0] sm:$0xf]  ;;  %v16095_v57 = vld [vmem:[#allocation3 + $0xc8] sm:$0x1] }
 0x44a   : > { %12286 = vmatprep.mubr.msk.bf16.mxu1 %vm6549_vm3, %v17395_v7  ;;  %17400 = vst [vmem:[#allocation10_spill] sm:$0xff] %v16002_v33  ;;  %v8603_v7 = vld [vmem:[#allocation3 + $0x84] sm:$0xe]  ;;  %v8743_v53 = vrot.slane %v16018_v36, 5  ;;  %v16071_v33 = vld [vmem:[#allocation3 + $0xbc] sm:$0x1] }
 0x44b   : > { %v11392_v46 = vrot.slane %v8603_v7, 9  ;;  %v17406_v7 = vcombine.low %v15749_v34, %v15756_v14  ;;  %v16064_v14 = vsel %vm13741_vm15, %v8731_v24, %v8732_v62  ;;  %v16077_v62 = vsel %vm13741_vm15, %v11393_v61, %v8736_v30  ;;  %v8608_v30 = vld [vmem:[#allocation3 + $0xc0] sm:$0xe]  ;;  %17414 = vst [vmem:[#allocation26_spill] sm:$0xff] %v16095_v57 }
 0x44c   : > { %17409 = vst [vmem:[#allocation21_spill] sm:$0xff] %v16064_v14  ;;  %17410 = vst [vmem:[#allocation22_spill] sm:$0xff] %v16077_v62  ;;  %v16085_v24 = vsel %vm13741_vm15, %v11394_v42, %v8743_v53  ;;  %v8757_v61 = vrot.slane %v16058_v38, 5  ;;  %v11396_v42 = vrot.slane %v8607_v39, 9  ;;  %v8760_v34 = vrot.slane %v16071_v33, 5 }
 0x44d   : > { %v16054_v43 = vsel %vm13741_vm15, %v11392_v46, %v8729_v16  ;;  %v8745_v46 = vrot.slane %v8743_v53, 4  ;;  %17412 = vst [vmem:[#allocation24_spill] sm:$0xff] %v16085_v24  ;;  %v8750_v16 = vrot.slane %v16046_v31, 5  ;;  %v13089_v24 = vld [vmem:[#allocation3 + $0x54] sm:$0xff]  }
 0x44e   : > { %17408 = vst [vmem:[#allocation20_spill] sm:$0xff] %v16054_v43  ;;  %v11395_v43 = vrot.slane %v8606_v27, 9  ;;  %v8759_v23 = vrot.slane %v8757_v61, 4  ;;  %v16116_v39 = vsel %vm13741_vm15, %v11396_v42, %v8757_v61  ;;  %v13086_v42 = vld [vmem:[#allocation3 + $0x30] sm:$0xff]  }
 0x44f   : > { %v16092_v14 = vsel %vm13741_vm15, %v8745_v46, %v8746_v50  ;;  %v8752_v53 = vrot.slane %v8750_v16, 4  ;;  %v17415_v50 = vcombine.low %v15766_v17, %v15770_v60  ;;  %17418 = vst [vmem:[#allocation29_spill] sm:$0xff] %v16116_v39 }
 0x450   : > { %17413 = vst [vmem:[#allocation25_spill] sm:$0xff] %v16092_v14  ;;  %v16108_v27 = vsel %vm13741_vm15, %v11395_v43, %v8750_v16  ;;  %v17419_v14 = vcombine.low %v15778_v63, %v15782_v10  ;;  %v16126_v60 = vsel %vm13741_vm15, %v8759_v23, %v8760_v34  ;;  %v8767_v16 = vrot.slane %v16095_v57, 5  ;;  %v13084_v34 = vld [vmem:[#allocation3 + $0x18] sm:$0xff]   ;;  %v10153_v57 = vld [vmem:[#allocation3 + $0x54] sm:$0xe] }
 0x451   : > { %12287 = vmatmul.mubr.msk.bf16.gmra.mrb[20].mxu1 %vm6549_vm3, %v17404_v26  ;;  %v8739_v26 = vrot.slane %v16016_v45, 5  ;;  %17416 = vst [vmem:[#allocation27_spill] sm:$0xff] %v16108_v27  ;;  %17420 = vst [vmem:[#allocation30_spill] sm:$0xff] %v16126_v60  ;;  %v17423_v23 = vcombine.low %v15790_v3, %v15794_v56  ;;  %v16155_v3 = vld [vmem:[#allocation3 + $0x10] sm:$0xf]  ;;  %v13088_v27 = vld [vmem:[#allocation3 + $0x48] sm:$0xff]  }
 0x452   : > { %12290 = vmatprep.mubr.msk.bf16.mxu1 %vm6549_vm3, %v17406_v7  ;;  %v16066_v7 = vld [vmem:[#allocation3 + $0xb0] sm:$0x1]  ;;  %v7867_v56 = vld [vmem:[#allocation3 + $0xc] sm:$0xf]  ;;  %v7873_v60 = vld [vmem:[#allocation3 + $0x24] sm:$0xf] }
 0x453   : > { %v16081_v11 = vsel %vm13741_vm15, %v8738_v2, %v8739_v26  ;;  %v8753_v2 = vrot.slane %v16066_v7, 5  ;;  %v11397_v26 = vrot.slane %v8608_v30, 9 }
 0x454   : > { %17411 = vst [vmem:[#allocation23_spill] sm:$0xff] %v16081_v11  ;;  %v8764_v11 = vrot.slane %v16073_v8, 5 }
 0x455   : > { %v16112_v46 = vsel %vm13741_vm15, %v8752_v53, %v8753_v2  ;;  %v16151_v53 = vld [vmem:[%s17171_s4 + $0x14] sm:$0xf]  ;;  %v7925_v2 = vshll.u32 %v16155_v3, 16 }
 0x456   : > { %17417 = vst [vmem:[#allocation28_spill] sm:$0xff] %v16112_v46  ;;  %v8766_v43 = vrot.slane %v8764_v11, 4  ;;  %v16133_v30 = vsel %vm13741_vm15, %v11397_v26, %v8764_v11  ;;  %v8398_v11 = vsel %vm6598_vm2, %v15855_v4, 0  ;;  %v13085_v26 = vld [vmem:[#allocation3 + $0x24] sm:$0xff]   ;;  %v7929_v4 = vshrl.u32 %v16155_v3, 16 }
 0x457   : > { %17421 = vst [vmem:[#allocation31_spill] sm:$0xff] %v16133_v30 }
 0x458   : > { %v16137_v63 = vsel %vm13741_vm15, %v8766_v43, %v8767_v16  ;;  %v7919_v43 = vshll.u32 %v7867_v56, 16  ;;  %v7870_v16 = vld [vmem:[#allocation3 + $0x18] sm:$0xf] }
 0x459   : > { %12291 = vmatmul.mubr.msk.bf16.gmra.mrb[24].mxu1 %vm6549_vm3, %v17415_v50  ;;  %17422 = vst [vmem:[#allocation32_spill] sm:$0xff] %v16137_v63  ;;  %v7916_v50 = vshrl.u32 %v7867_v56, 16  ;;  %v7943_v10 = vshll.u32 %v7870_v16, 16  ;;  %v16165_v63 = vld [vmem:[#allocation3 + $0x14] sm:$0x1] }
 0x45a   : > { %12294 = vmatprep.mubr.msk.bf16.mxu1 %vm6549_vm3, %v17419_v14  ;;  %v13083_v14 = vld [vmem:[#allocation3 + $0xc] sm:$0xff]   ;;  %v7921_v17 = vrot.slane %v7919_v43, 5  ;;  %17425 = vst [vmem:[#allocation34_spill] sm:$0xff] %v16165_v63  ;;  %v7964_v43 = vshrl.u32 %v7873_v60, 16 }
 0x45b   : > { %v7918_v61 = vrot.slane %v7916_v50, 4 }
 0x45c   : > { %v7966_v0 = vrot.slane %v7964_v43, 4 }
 0x45d   : > { %v7922_v62 = vor.u32 %v7921_v17, %v7918_v61 }
 0x45f   : > { %v7923_v17 = vrot.slane %v7922_v62, 4  ;;  %v7879_v62 = vld [vmem:[#allocation3 + $0x3c] sm:$0xf] }
 0x461   : > { %12295 = vmatmul.mubr.msk.bf16.gmra.mrb[28].mxu1 %vm6549_vm3, %v17423_v23  ;;  %v16162_v23 = vld [vmem:[#allocation3 + $0x1c] sm:$0xf] }
 0x462   : > { %12300 = vmatprep.mubr.msk.bf16.mxu1 %vm6549_vm3, %v13083_v14  ;;  %v13087_v14 = vld [vmem:[#allocation3 + $0x3c] sm:$0xff]   ;;  %17424 = vst [vmem:[#allocation33_spill] sm:$0xff] %v16162_v23  ;;  %v7949_v30 = vshll.u32 %v16162_v23, 16  ;;  %v7953_v56 = vshrl.u32 %v16162_v23, 16 }
 0x464   : > { %v7955_v50 = vrot.slane %v7953_v56, 4 }
 0x469   : > { %12301 = vmatmul.mubr.msk.bf16.vlgmr.msra.gmra.mrb[0].mxu1 %vm6549_vm3, %v13084_v34  ;;  %v7927_v34 = vrot.slane %v7925_v2, 5  ;;  %v7935_v2 = vshll.u32 %v16165_v63, 16 }
 0x46a   : > { %12333 = vmatpush3.bf16.msra.mxu1 %v8398_v11  ;;  %12304 = vmatprep.mubr.msk.bf16.mxu1 %vm6549_vm3, %v13085_v26  ;;  %v7931_v11 = vrot.slane %v7929_v4, 4  ;;  %v7940_v26 = vshrl.u32 %v7870_v16, 16  ;;  %v16170_v4 = vld [vmem:[#allocation3 + $0x20] sm:$0x1]  ;;  %v16172_v16 = vrot.slane %v7949_v30, 5 }
 0x46b   : > { %13028 = vmatprep.subr.msk.bf16.mxu1 %vm6598_vm2, %v16151_v53  ;;  %17426 = vst [vmem:[#allocation35_spill] sm:$0xff] %v16170_v4  ;;  %v7959_v61 = vshll.u32 %v16170_v4, 16  ;;  %v7937_v19 = vrot.slane %v7935_v2, 5 }
 0x46c   : > { %v7932_v39 = vor.u32 %v7931_v11, %v7927_v34  ;;  %v7942_v46 = vrot.slane %v7940_v26, 4  ;;  %v7977_v11 = vshrl.u32 %v15885_v37, 16  ;;  %v7956_v30 = vor.u32 %v7955_v50, %v16172_v16  ;;  %v13091_v50 = vld [vmem:[#allocation3 + $0x6c] sm:$0xff]  }
 0x46d   : > { %v7961_v2 = vrot.slane %v7959_v61, 5  ;;  %v8015_v61 = vshll.u32 %v7879_v62, 16 }
 0x46e   : > { %v7957_v43 = vrot.slane %v7956_v30, 4  ;;  %v8025_v30 = vshrl.u32 %v15896_v29, 16 }
 0x471   : > { %12305 = vmatmul.mubr.msk.bf16.gmra.mrb[4].mxu1 %vm6549_vm3, %v13086_v42  ;;  %v7945_v42 = vrot.slane %v7943_v10, 5  ;;  %v7933_v10 = vrot.slane %v7932_v39, 4  ;;  %v13090_v39 = vld [vmem:[#allocation3 + $0x60] sm:$0xff]  }
 0x472   : > { %12308 = vmatprep.mubr.msk.bf16.mxu1 %vm6549_vm3, %v13087_v14  ;;  %v7967_v14 = vshll.u32 %v7873_v60, 16  ;;  %v7979_v60 = vrot.slane %v7977_v11, 4 }
 0x473   : > { %v7946_v26 = vor.u32 %v7945_v42, %v7942_v46  ;;  %v7938_v15 = vsel %vm13350_vm8, %v7933_v10, %v7937_v19  ;;  %v8001_v46 = vshrl.u32 %v15889_v55, 16  ;;  %v7928_v42 = vsel %vm13350_vm8, %v7923_v17, %v7927_v34 }
 0x474   : > { %v7969_v56 = vrot.slane %v7967_v14, 5  ;;  %v7983_v14 = vshll.u32 %v15887_v9, 16  ;;  %v16190_v19 = vcombine.low %v7928_v42, %v7938_v15  ;;  %v7980_v10 = vor.u32 %v7979_v60, %v16180_v18  ;;  %v7882_v15 = vld [vmem:[#allocation3 + $0x48] sm:$0xf] }
 0x475   : > { %v7947_v37 = vrot.slane %v7946_v26, 4  ;;  %v8021_v9 = vshll.u32 %v15896_v29, 16  ;;  %v8049_v60 = vshrl.u32 %v15906_v59, 16  ;;  %v8017_v29 = vrot.slane %v8015_v61, 5  ;;  %v7888_v61 = vld [vmem:[#allocation3 + $0x60] sm:$0xf] }
 0x476   : > { %v7970_v21 = vor.u32 %v7969_v56, %v7966_v0  ;;  %v8003_v0 = vrot.slane %v8001_v46, 4  ;;  %v8045_v56 = vshll.u32 %v15906_v59, 16  ;;  %v7985_v42 = vrot.slane %v7983_v14, 5 }
 0x477   : > { %v7952_v34 = vsel %vm13350_vm8, %v7947_v37, %v16172_v16  ;;  %v7981_v16 = vrot.slane %v7980_v10, 4  ;;  %v8036_v32 = vshrl.u32 %v7882_v15, 16  ;;  %v8039_v41 = vshll.u32 %v7882_v15, 16 }
 0x478   : > { %v16207_v4 = vrot.slane %v8021_v9, 5  ;;  %v8027_v59 = vrot.slane %v8025_v30, 4  ;;  %v16209_v23 = vrot.slane %v8045_v56, 5  ;;  %v8031_v9 = vshll.u32 %v15904_v47, 16 }
 0x479   : > { %12309 = vmatmul.mubr.msk.bf16.gmra.mrb[8].mxu1 %vm6549_vm3, %v13088_v27  ;;  %v7876_v27 = vld [vmem:[#allocation3 + $0x30] sm:$0xf]  ;;  %v8038_v30 = vrot.slane %v8036_v32, 4 }
 0x47a   : > { %12312 = vmatprep.mubr.msk.bf16.mxu1 %vm6549_vm3, %v13089_v24  ;;  %v7997_v24 = vshll.u32 %v15889_v55, 16  ;;  %v7988_v11 = vshrl.u32 %v7876_v27, 16  ;;  %v7991_v26 = vshll.u32 %v7876_v27, 16  ;;  %v8012_v55 = vshrl.u32 %v7879_v62, 16  ;;  %v7885_v62 = vld [vmem:[#allocation3 + $0x54] sm:$0xf] }
 0x47b   : > { %v7962_v27 = vsel %vm13350_vm8, %v7957_v43, %v7961_v2  ;;  %v8051_v2 = vrot.slane %v8049_v60, 4  ;;  %v13093_v43 = vld [vmem:[#allocation3 + $0x84] sm:$0xff]   ;;  %v8060_v14 = vshrl.u32 %v7885_v62, 16 }
 0x47c   : > { %v16197_v17 = vrot.slane %v7997_v24, 5  ;;  %v7993_v37 = vrot.slane %v7991_v26, 5  ;;  %v8007_v24 = vshll.u32 %v15902_v5, 16  ;;  %v8014_v46 = vrot.slane %v8012_v55, 4 }
 0x47d   : > { %v8069_v55 = vshll.u32 %v15917_v44, 16  ;;  %v8052_v60 = vor.u32 %v8051_v2, %v16209_v23 }
 0x47e   : > { %v8004_v12 = vor.u32 %v8003_v0, %v16197_v17  ;;  %v8009_v26 = vrot.slane %v8007_v24, 5  ;;  %v8073_v0 = vshrl.u32 %v15917_v44, 16  ;;  %v8018_v56 = vor.u32 %v8017_v29, %v8014_v46  ;;  %v13094_v46 = vld [vmem:[#allocation3 + $0x90] sm:$0xff]  }
 0x47f   : > { %v8087_v44 = vshll.u32 %v7888_v61, 16  ;;  %v8055_v24 = vshll.u32 %v15910_v25, 16 }
 0x480   : > { %v8005_v15 = vrot.slane %v8004_v12, 4  ;;  %v8097_v12 = vshrl.u32 %v15933_v51, 16 }
 0x481   : > { %12313 = vmatmul.mubr.msk.bf16.gmra.mrb[12].mxu1 %vm6549_vm3, %v13090_v39  ;;  %v7971_v39 = vrot.slane %v7970_v21, 4  ;;  %v16211_v21 = vcombine.low %v7952_v34, %v7962_v27  ;;  %v7986_v34 = vsel %vm13350_vm8, %v7981_v16, %v7985_v42  ;;  %v8062_v27 = vrot.slane %v8060_v14, 4  ;;  %v7891_v16 = vld [vmem:[#allocation3 + $0x6c] sm:$0xf] }
 0x482   : > { %12316 = vmatprep.mubr.msk.bf16.mxu1 %vm6549_vm3, %v13091_v50  ;;  %v7990_v50 = vrot.slane %v7988_v11, 4  ;;  %v8063_v11 = vshll.u32 %v7885_v62, 16  ;;  %v16228_v62 = vrot.slane %v8069_v55, 5  ;;  %v8075_v42 = vrot.slane %v8073_v0, 4 }
 0x483   : > { %v7976_v5 = vsel %vm13350_vm8, %v7971_v39, %v16180_v18  ;;  %v8041_v18 = vrot.slane %v8039_v41, 5  ;;  %v8093_v41 = vshll.u32 %v15933_v51, 16  ;;  %v8010_v29 = vsel %vm13350_vm8, %v8005_v15, %v8009_v26 }
 0x484   : > { %v7994_v10 = vor.u32 %v7993_v37, %v7990_v50  ;;  %v8065_v39 = vrot.slane %v8063_v11, 5  ;;  %v8084_v50 = vshrl.u32 %v7888_v61, 16  ;;  %v16225_v37 = vcombine.low %v7976_v5, %v7986_v34  ;;  %v13095_v5 = vld [vmem:[#allocation3 + $0x9c] sm:$0xff]  }
 0x485   : > { %v8042_v32 = vor.u32 %v8041_v18, %v8038_v30  ;;  %v8053_v14 = vrot.slane %v8052_v60, 4  ;;  %v8089_v55 = vrot.slane %v8087_v44, 5  ;;  %v8076_v0 = vor.u32 %v8075_v42, %v16228_v62 }
 0x486   : > { %v7995_v47 = vrot.slane %v7994_v10, 4  ;;  %v8066_v25 = vor.u32 %v8065_v39, %v8062_v27  ;;  %v8086_v11 = vrot.slane %v8084_v50, 4  ;;  %v8057_v10 = vrot.slane %v8055_v24, 5  ;;  %v7894_v50 = vld [vmem:[#allocation3 + $0x78] sm:$0xf] }
 0x487   : > { %v8108_v61 = vshrl.u32 %v7891_v16, 16  ;;  %v8111_v51 = vshll.u32 %v7891_v16, 16  ;;  %v8043_v34 = vrot.slane %v8042_v32, 4  ;;  %v8079_v26 = vshll.u32 %v15924_v6, 16  ;;  %v16272_v16 = vld [vmem:[#allocation3 + $0x20] sm:$0x1] }
 0x488   : > { %v16238_v30 = vrot.slane %v8093_v41, 5  ;;  %v8000_v18 = vsel %vm13350_vm8, %v7995_v47, %v16197_v17  ;;  %v8058_v27 = vsel %vm13350_vm8, %v8053_v14, %v8057_v10  ;;  %v16251_v6 = vrot.slane %v8066_v25, 4  ;;  %17428 = vst [vmem:[#allocation37_spill] sm:$0xff] %v16272_v16  ;;  %v13097_v14 = vld [vmem:[#allocation3 + $0xb4] sm:$0xff]  }
 0x489   : > { %12317 = vmatmul.mubr.msk.bf16.gmra.mrb[16].mxu1 %vm6549_vm3, %v13092_v28  ;;  %v8028_v28 = vor.u32 %v8027_v59, %v16207_v4  ;;  %v8019_v59 = vrot.slane %v8018_v56, 4  ;;  %v8117_v56 = vshll.u32 %v15946_v22, 16  ;;  %v16247_v60 = vcombine.low %v8000_v18, %v8010_v29 }
 0x48a   : > { %12320 = vmatprep.mubr.msk.bf16.mxu1 %vm6549_vm3, %v13093_v43  ;;  %v8033_v43 = vrot.slane %v8031_v9, 5  ;;  %v8099_v9 = vrot.slane %v8097_v12, 4  ;;  %v8090_v39 = vor.u32 %v8089_v55, %v8086_v11  ;;  %v16256_v44 = vrot.slane %v8076_v0, 4  ;;  %v16289_v55 = vld [vmem:[#allocation3 + $0x28] sm:$0xf] }
 0x48b   : > { %v8029_v2 = vrot.slane %v8028_v28, 4  ;;  %v8121_v28 = vshrl.u32 %v15946_v22, 16  ;;  %v8024_v17 = vsel %vm13350_vm8, %v8019_v59, %v16207_v4  ;;  %v16258_v24 = vrot.slane %v8108_v61, 4  ;;  %v16262_v22 = vld [vmem:[#allocation3 + $0x1c] sm:$0xf]  ;;  %17430 = vst [vmem:[#allocation39_spill] sm:$0xff] %v16289_v55 }
 0x48c   : > { %v16260_v42 = vrot.slane %v8111_v51, 5  ;;  %17427 = vst [vmem:[#allocation36_spill] sm:$0xff] %v16262_v22  ;;  %v8048_v32 = vsel %vm13350_vm8, %v8043_v34, %v16209_v23  ;;  %v16269_v41 = vrot.slane %v8079_v26, 5  ;;  %v8100_v12 = vor.u32 %v8099_v9, %v16238_v30  ;;  %v10148_v4 = vld [vmem:[#allocation3 + $0x18] sm:$0xe] }
 0x48d   : > { %v8034_v15 = vsel %vm13350_vm8, %v8029_v2, %v8033_v43  ;;  %v16274_v29 = vcombine.low %v8048_v32, %v8058_v27  ;;  %v16277_v2 = vrot.slane %v8117_v56, 5  ;;  %v16279_v43 = vrot.slane %v8121_v28, 4  ;;  %v16300_v26 = vld [vmem:[#allocation3 + $0x2c] sm:$0x1]  ;;  %v10150_v9 = vld [vmem:[#allocation3 + $0x30] sm:$0xe] }
 0x48e   : > { %v16264_v47 = vcombine.low %v8024_v17, %v8034_v15  ;;  %v16287_v25 = vrot.slane %v8090_v39, 4  ;;  %v8132_v11 = vshrl.u32 %v7894_v50, 16  ;;  %v10214_v10 = vrot.slane %v16262_v22, 5  ;;  %17431 = vst [vmem:[#allocation40_spill] sm:$0xff] %v16300_v26  ;;  %v16305_v15 = vld [vmem:[#allocation3 + $0x38] sm:$0x1] }
 0x48f   : > { %v8135_v34 = vshll.u32 %v7894_v50, 16  ;;  %v16303_v18 = vrot.slane %v8100_v12, 4  ;;  %17432 = vst [vmem:[#allocation41_spill] sm:$0xff] %v16305_v15  ;;  %v11497_v56 = vrot.slane %v10148_v4, 9  ;;  %v10217_v27 = vrot.slane %v16272_v16, 5  ;;  %v13098_v17 = vld [vmem:[#allocation3 + $0xc0] sm:$0xff]  }
 0x490   : > { %v10216_v28 = vrot.slane %v10214_v10, 4  ;;  %v10149_v39 = vld [vmem:[#allocation3 + $0x24] sm:$0xe]  ;;  %v16315_v12 = vrot.slane %v8132_v11, 4  ;;  %v16317_v51 = vld [vmem:[#allocation3 + $0x40] sm:$0xf] }
 0x491   : > { %12321 = vmatmul.mubr.msk.bf16.gmra.mrb[20].mxu1 %vm6549_vm3, %v13094_v46  ;;  %v13096_v46 = vld [vmem:[#allocation3 + $0xa8] sm:$0xff]   ;;  %v16319_v4 = vld [vmem:[#allocation3 + $0x44] sm:$0x1]  ;;  %v16323_v59 = vsel %vm13741_vm15, %v11497_v56, %v10214_v10  ;;  %v16330_v61 = vrot.slane %v8135_v34, 5  ;;  %v16332_v50 = vld [vmem:[#allocation3 + $0x50] sm:$0x1] }
 0x492   : > { %12324 = vmatprep.mubr.msk.bf16.mxu1 %vm6549_vm3, %v13095_v5  ;;  %v16281_v5 = vld [vmem:[#allocation3 + $0x34] sm:$0xf]  ;;  %17434 = vst [vmem:[#allocation43_spill] sm:$0xff] %v16319_v4  ;;  %17435 = vst [vmem:[#allocation44_spill] sm:$0xff] %v16323_v59  ;;  %v16327_v23 = vsel %vm13741_vm15, %v10216_v28, %v10217_v27  ;;  %v11498_v32 = vrot.slane %v10149_v39, 9  ;;  %v11499_v16 = vrot.slane %v10150_v9, 9 }
 0x493   : > { %17429 = vst [vmem:[#allocation38_spill] sm:$0xff] %v16281_v5  ;;  %17436 = vst [vmem:[#allocation45_spill] sm:$0xff] %v16327_v23  ;;  %v10228_v0 = vrot.slane %v16281_v5, 5  ;;  %v16338_v10 = vsel %vm6598_vm2, %v16151_v53, 0  ;;  %v10224_v28 = vrot.slane %v16300_v26, 5  ;;  %v10231_v53 = vrot.slane %v16305_v15, 5 }
 0x494   : > { %17437 = vst [vmem:[#allocation46_spill] sm:$0xff] %v16332_v50  ;;  %v10152_v5 = vld [vmem:[#allocation3 + $0x48] sm:$0xe]  ;;  %v16341_v22 = vld [vmem:[#allocation3 + $0x58] sm:$0xf]  ;;  %v10235_v39 = vrot.slane %v16317_v51, 5 }
 0x495   : > { %v10230_v27 = vrot.slane %v10228_v0, 4  ;;  %17438 = vst [vmem:[#allocation47_spill] sm:$0xff] %v16341_v22  ;;  %v16343_v34 = vld [vmem:[#allocation3 + $0x64] sm:$0xf]  ;;  %v16351_v9 = vsel %vm13741_vm15, %v11499_v16, %v10228_v0  ;;  %v10238_v59 = vrot.slane %v16319_v4, 5  ;;  %v10245_v0 = vrot.slane %v16332_v50, 5 }
 0x496   : > { %17440 = vst [vmem:[#allocation49_spill] sm:$0xff] %v16351_v9  ;;  %v16364_v16 = vld [vmem:[#allocation3 + $0x68] sm:$0x1]  ;;  %v16409_v15 = vld [vmem:[#allocation3 + $0x94] sm:$0xf] }
 0x497   : > { %17443 = vst [vmem:[#allocation52_spill] sm:$0xff] %v16364_v16  ;;  %v10259_v50 = vrot.slane %v16364_v16, 5  ;;  %17453 = vst [vmem:[#allocation62_spill] sm:$0xff] %v16409_v15 }
 0x499   : > { %12325 = vmatmul.mubr.msk.bf16.gmra.mrb[24].mxu1 %vm6549_vm3, %v13096_v46  ;;  %v16312_v46 = vld [vmem:[#allocation3 + $0x4c] sm:$0xf] }
 0x49a   : > { %12328 = vmatprep.mubr.msk.bf16.mxu1 %vm6549_vm3, %v13097_v14  ;;  %17433 = vst [vmem:[#allocation42_spill] sm:$0xff] %v16312_v46  ;;  %v10221_v14 = vrot.slane %v16289_v55, 5  ;;  %v10151_v55 = vld [vmem:[#allocation3 + $0x3c] sm:$0xe]  ;;  %v10242_v26 = vrot.slane %v16312_v46, 5 }
 0x49b   : > { %v11500_v23 = vrot.slane %v10151_v55, 9  ;;  %v11501_v55 = vrot.slane %v10152_v5, 9 }
 0x49c   : > { %v10223_v56 = vrot.slane %v10221_v14, 4  ;;  %v16347_v63 = vsel %vm13741_vm15, %v11498_v32, %v10221_v14  ;;  %v16362_v32 = vld [vmem:[#allocation3 + $0x5c] sm:$0x1]  ;;  %v16370_v14 = vsel %vm13741_vm15, %v10230_v27, %v10231_v53  ;;  %v10244_v46 = vrot.slane %v10242_v26, 4  ;;  %v16383_v27 = vld [vmem:[#allocation3 + $0x70] sm:$0xf] }
 0x49d   : > { %17439 = vst [vmem:[#allocation48_spill] sm:$0xff] %v16347_v63  ;;  %17442 = vst [vmem:[#allocation51_spill] sm:$0xff] %v16362_v32  ;;  %v16380_v4 = vsel %vm13741_vm15, %v11500_v23, %v10235_v39  ;;  %v11502_v53 = vrot.slane %v10153_v57, 9  ;;  %v16394_v23 = vld [vmem:[#allocation3 + $0x74] sm:$0x1] }
 0x49e   : > { %v16357_v11 = vsel %vm13741_vm15, %v10223_v56, %v10224_v28  ;;  %17444 = vst [vmem:[#allocation53_spill] sm:$0xff] %v16370_v14  ;;  %v10237_v56 = vrot.slane %v10235_v39, 4  ;;  %v16374_v28 = vld [vmem:[#allocation3 + $0x7c] sm:$0xf]  ;;  %17446 = vst [vmem:[#allocation55_spill] sm:$0xff] %v16380_v4  ;;  %v16402_v63 = vsel %vm13741_vm15, %v10244_v46, %v10245_v0 }
 0x49f   : > { %17441 = vst [vmem:[#allocation50_spill] sm:$0xff] %v16357_v11  ;;  %17445 = vst [vmem:[#allocation54_spill] sm:$0xff] %v16374_v28  ;;  %v10154_v11 = vld [vmem:[#allocation3 + $0x60] sm:$0xe]  ;;  %v10155_v14 = vld [vmem:[#allocation3 + $0x6c] sm:$0xe] }
 0x4a0   : > { %17447 = vst [vmem:[#allocation56_spill] sm:$0xff] %v16383_v27  ;;  %v16387_v5 = vsel %vm13741_vm15, %v10237_v56, %v10238_v59  ;;  %17450 = vst [vmem:[#allocation59_spill] sm:$0xff] %v16394_v23  ;;  %v16396_v39 = vld [vmem:[#allocation3 + $0x80] sm:$0x1]  ;;  %v10252_v59 = vrot.slane %v16362_v32, 5  ;;  %v11504_v0 = vrot.slane %v10155_v14, 9 }
 0x4a1   : > { %12329 = vmatmul.mubr.msk.bf16.gmra.mrb[28].mxu1 %vm6549_vm3, %v13098_v17  ;;  %17448 = vst [vmem:[#allocation57_spill] sm:$0xff] %v16387_v5  ;;  %v10249_v17 = vrot.slane %v16341_v22, 5  ;;  %17451 = vst [vmem:[#allocation60_spill] sm:$0xff] %v16396_v39  ;;  %v10156_v22 = vld [vmem:[#allocation3 + $0x78] sm:$0xe]  ;;  %v10263_v5 = vrot.slane %v16383_v27, 5 }
 0x4a2   : > { %12334 = vmatprep.mubr.msk.bf16.mxu1 %vm6549_vm3, %v16190_v19  ;;  %v16391_v19 = vsel %vm13741_vm15, %v11501_v55, %v10242_v26  ;;  %17452 = vst [vmem:[#allocation61_spill] sm:$0xff] %v16402_v63  ;;  %v10256_v26 = vrot.slane %v16343_v34, 5  ;;  %v11503_v55 = vrot.slane %v10154_v11, 9  ;;  %v16416_v4 = vld [vmem:[#allocation3 + $0x88] sm:$0xf]  ;;  %v10266_v63 = vrot.slane %v16394_v23, 5 }
 0x4a3   : > { %17449 = vst [vmem:[#allocation58_spill] sm:$0xff] %v16391_v19  ;;  %v10251_v56 = vrot.slane %v10249_v17, 4  ;;  %v16413_v9 = vsel %vm13741_vm15, %v11502_v53, %v10249_v17  ;;  %v16418_v32 = vld [vmem:[#allocation3 + $0x8c] sm:$0x1]  ;;  %v10270_v17 = vrot.slane %v16374_v28, 5  ;;  %v17460_v23 = vshll.u32 %v15974_v48, 16 }
 0x4a4   : > { %17454 = vst [vmem:[#allocation63_spill] sm:$0xff] %v16413_v9  ;;  %v10258_v46 = vrot.slane %v10256_v26, 4  ;;  %17455 = vst [vmem:[#allocation64_spill] sm:$0xff] %v16418_v32  ;;  %v16426_v57 = vsel %vm13741_vm15, %v11503_v55, %v10256_v26  ;;  %v16433_v14 = vld [vmem:[%s17171_s4 + $0x18] sm:$0xf]  ;;  %v10265_v26 = vrot.slane %v10263_v5, 4 }
 0x4a5   : > { %v16422_v11 = vsel %vm13741_vm15, %v10251_v56, %v10252_v59  ;;  %17457 = vst [vmem:[#allocation66_spill] sm:$0xff] %v16426_v57  ;;  %v16435_v53 = vld [vmem:[#allocation3 + $0x98] sm:$0x1]  ;;  %v11505_v56 = vrot.slane %v10156_v22, 9  ;;  %v10157_v55 = vld [vmem:[#allocation3 + $0x84] sm:$0xe] }
 0x4a6   : > { %17456 = vst [vmem:[#allocation65_spill] sm:$0xff] %v16422_v11  ;;  %17458 = vst [vmem:[#allocation67_spill] sm:$0xff] %v16435_v53  ;;  %v16441_v59 = vsel %vm13741_vm15, %v10258_v46, %v10259_v50  ;;  %v16447_v16 = vrot.slane %v17460_v23, 5  ;;  %v10272_v27 = vrot.slane %v10270_v17, 4  ;;  %v10273_v19 = vrot.slane %v16396_v39, 5  ;;  %v17554_v20 = vld [vmem:[#allocation55_spill] sm:$0xff] }
 0x4a7   : > { %17459 = vst [vmem:[#allocation68_spill] sm:$0xff] %v16441_v59  ;;  %v10158_v11 = vld [vmem:[#allocation3 + $0x90] sm:$0xe]  ;;  %v16455_v22 = vld [vmem:[#allocation3 + $0xa0] sm:$0xf]  ;;  %v16465_v23 = vsel %vm13741_vm15, %v10265_v26, %v10266_v63  ;;  %v16469_v46 = vsel %vm13741_vm15, %v11505_v56, %v10270_v17  ;;  %v11506_v63 = vrot.slane %v10157_v55, 9 }
 0x4a8   : > { %17461 = vst [vmem:[#allocation69_spill] sm:$0xff] %v16455_v22  ;;  %v16457_v50 = vld [vmem:[#allocation3 + $0xac] sm:$0xf]  ;;  %17464 = vst [vmem:[#allocation72_spill] sm:$0xff] %v16465_v23  ;;  %v10159_v26 = vld [vmem:[#allocation3 + $0x9c] sm:$0xe] }
 0x4a9   : > { %12335 = vmatmul.mubr.msk.bf16.vlgmr.msra.gmra.mrb[0].mxu1 %vm6549_vm3, %v16211_v21  ;;  %17462 = vst [vmem:[#allocation70_spill] sm:$0xff] %v16457_v50  ;;  %v16461_v21 = vsel %vm13741_vm15, %v11504_v0, %v10263_v5  ;;  %17465 = vst [vmem:[#allocation73_spill] sm:$0xff] %v16469_v46  ;;  %v16480_v5 = vsel %vm13741_vm15, %v10272_v27, %v10273_v19  ;;  %v10284_v0 = vrot.slane %v16409_v15, 5  ;;  %v9460_v17 = vld [vmem:[#allocation3 + $0xb0] sm:$0x1]  ;;  %v10280_v57 = vrot.slane %v16418_v32, 5 }
 0x4aa   : > { %12367 = vmatpush3.bf16.msra.mxu1 %v16338_v10  ;;  %12338 = vmatprep.mubr.msk.bf16.mxu1 %vm6549_vm3, %v16225_v37  ;;  %17463 = vst [vmem:[#allocation71_spill] sm:$0xff] %v16461_v21  ;;  %v10277_v10 = vrot.slane %v16416_v4, 5  ;;  %v16474_v37 = vld [vmem:[#allocation3 + $0xa4] sm:$0x1]  ;;  %17466 = vst [vmem:[#allocation74_spill] sm:$0xff] %v16480_v5  ;;  %v11507_v9 = vrot.slane %v10158_v11, 9 }
 0x4ab   : > { %13029 = vmatprep.subr.msk.bf16.mxu1 %vm6598_vm2, %v16433_v14  ;;  %v10286_v28 = vrot.slane %v10284_v0, 4  ;;  %v10287_v27 = vrot.slane %v16435_v53, 5  ;;  %v10291_v19 = vrot.slane %v16455_v22, 5  ;;  %v10160_v55 = vld [vmem:[#allocation3 + $0xa8] sm:$0xe]  ;;  %v11508_v11 = vrot.slane %v10159_v26, 9 }
 0x4ac   : > { %v10279_v59 = vrot.slane %v10277_v10, 4  ;;  %v16488_v39 = vsel %vm13741_vm15, %v11506_v63, %v10277_v10  ;;  %v16492_v23 = vld [vmem:[#allocation3 + $0xb8] sm:$0xf]  ;;  %v16500_v56 = vsel %vm13741_vm15, %v11507_v9, %v10284_v0  ;;  %v10298_v10 = vrot.slane %v16457_v50, 5  ;;  %v7897_v63 = vld [vmem:[#allocation3 + $0x84] sm:$0xf] }
 0x4ad   : > { %17468 = vst [vmem:[#allocation76_spill] sm:$0xff] %v16500_v56  ;;  %v9463_v5 = vld [vmem:[#allocation3 + $0xbc] sm:$0x1]  ;;  %v16503_v46 = vld [vmem:[#allocation3 + $0xc4] sm:$0xf]  ;;  %v16509_v22 = vsel %vm13741_vm15, %v10286_v28, %v10287_v27  ;;  %v11509_v0 = vrot.slane %v10160_v55, 9  ;;  %v16520_v28 = vsel %vm13741_vm15, %v11508_v11, %v10291_v19 }
 0x4ae   : > { %v16496_v21 = vsel %vm13741_vm15, %v10279_v59, %v10280_v57  ;;  %17469 = vst [vmem:[#allocation77_spill] sm:$0xff] %v16509_v22  ;;  %v10293_v57 = vrot.slane %v10291_v19, 4  ;;  %v10294_v59 = vrot.slane %v16474_v37, 5  ;;  %v10300_v26 = vrot.slane %v10298_v10, 4  ;;  %v10161_v32 = vld [vmem:[#allocation3 + $0xb4] sm:$0xe] }
 0x4af   : > { %17467 = vst [vmem:[#allocation75_spill] sm:$0xff] %v16496_v21  ;;  %v10301_v50 = vrot.slane %v9460_v17, 5  ;;  %v17470_v15 = vshrl.u32 %v15974_v48, 16  ;;  %v9466_v21 = vld [vmem:[#allocation3 + $0xc8] sm:$0x1]  ;;  %v10305_v55 = vrot.slane %v16492_v23, 5  ;;  %v16533_v48 = vsel %vm13741_vm15, %v11509_v0, %v10298_v10 }
 0x4b0   : > { %v16524_v27 = vsel %vm13741_vm15, %v10293_v57, %v10294_v59  ;;  %v10162_v9 = vld [vmem:[#allocation3 + $0xc0] sm:$0xe]  ;;  %v10312_v17 = vrot.slane %v16503_v46, 5  ;;  %v11510_v11 = vrot.slane %v10161_v32, 9  ;;  %v10308_v59 = vrot.slane %v9463_v5, 5 }
 0x4b1   : > { %12339 = vmatmul.mubr.msk.bf16.gmra.mrb[4].mxu1 %vm6549_vm3, %v16247_v60  ;;  %v8147_v53 = vrot.slane %v17470_v15, 4  ;;  %17471 = vst [vmem:[#allocation78_spill] sm:$0xff] %v16524_v27  ;;  %v16537_v15 = vsel %vm13741_vm15, %v10300_v26, %v10301_v50  ;;  %v10307_v57 = vrot.slane %v10305_v55, 4  ;;  %v11511_v22 = vrot.slane %v10162_v9, 9 }
 0x4b2   : > { %12342 = vmatprep.mubr.msk.bf16.mxu1 %vm6549_vm3, %v16264_v47  ;;  %v11526_v19 = vcombine.low %v16533_v48, %v16537_v15  ;;  %v8156_v47 = vshrl.u32 %v7897_v63, 16  ;;  %v10314_v56 = vrot.slane %v10312_v17, 4  ;;  %v10315_v60 = vrot.slane %v9466_v21, 5  ;;  %v17028_v48 = vld [vmem:[%s17173_s6] ss:$0 sm:$0xff] }
 0x4b3   : > { %v8165_v27 = vshll.u32 %v15988_v1, 16  ;;  %v8169_v10 = vshrl.u32 %v15988_v1, 16  ;;  %v16546_v50 = vsel %vm13741_vm15, %v11510_v11, %v10305_v55  ;;  %v16550_v0 = vsel %vm13741_vm15, %v10307_v57, %v10308_v59 }
 0x4b4   : > { %v8159_v26 = vshll.u32 %v7897_v63, 16  ;;  %v11527_v32 = vcombine.low %v16546_v50, %v16550_v0  ;;  %v16556_v5 = vsel %vm13741_vm15, %v11511_v22, %v10312_v17  ;;  %v16560_v21 = vsel %vm13741_vm15, %v10314_v56, %v10315_v60 }
 0x4b5   : > { %v17472_v1 = vor.u32 %v16260_v42, %v16258_v24  ;;  %v17473_v55 = vor.u32 %v16279_v43, %v16277_v2  ;;  %v8148_v63 = vor.u32 %v8147_v53, %v16447_v16  ;;  %v11528_v57 = vcombine.low %v16556_v5, %v16560_v21 }
 0x4b6   : > { %v17474_v22 = vsel %vm13350_vm8, %v16256_v44, %v16269_v41  ;;  %v17475_v24 = vsel %vm13350_vm8, %v16251_v6, %v16228_v62  ;;  %v17476_v56 = vshll.u32 %v15944_v35, 16  ;;  %v17477_v53 = vshll.u32 %v15967_v54, 16  ;;  %v7900_v41 = vld [vmem:[#allocation3 + $0x90] sm:$0xf] }
 0x4b7   : > { %v8115_v9 = vrot.slane %v17472_v1, 4  ;;  %v8125_v11 = vrot.slane %v17473_v55, 4  ;;  %v11356_v42 = vcombine.low %v17475_v24, %v17474_v22  ;;  %v8151_v17 = vshll.u32 %v15986_v40, 16 }
 0x4b8   : > { %v8105_v43 = vrot.slane %v17476_v56, 5  ;;  %v8129_v60 = vrot.slane %v17477_v53, 5  ;;  %v16588_v59 = vrot.slane %v8165_v27, 5  ;;  %v8171_v44 = vrot.slane %v8169_v10, 4 }
 0x4b9   : > { %12343 = vmatmul.mubr.msk.bf16.gmra.mrb[8].mxu1 %vm6549_vm3, %v16274_v29  ;;  %v8096_v35 = vsel %vm13350_vm8, %v16287_v25, %v16238_v30  ;;  %v8138_v62 = vor.u32 %v16330_v61, %v16315_v12  ;;  %v8158_v6 = vrot.slane %v8156_v47, 4  ;;  %v8161_v29 = vrot.slane %v8159_v26, 5  ;;  %v7903_v61 = vld [vmem:[#allocation3 + $0x9c] sm:$0xf] }
 0x4ba   : > { %12346 = vmatprep.mubr.msk.bf16.mxu1 %vm6549_vm3, %v11356_v42  ;;  %v8106_v54 = vsel %vm13350_vm8, %v16303_v18, %v8105_v43  ;;  %v8120_v40 = vsel %vm13350_vm8, %v8115_v9, %v16277_v2  ;;  %v8130_v27 = vsel %vm13350_vm8, %v8125_v11, %v8129_v60  ;;  %v8149_v10 = vrot.slane %v8148_v63, 4 }
 0x4bb   : > { %v8180_v1 = vshrl.u32 %v7900_v41, 16  ;;  %v8183_v55 = vshll.u32 %v7900_v41, 16  ;;  %v8189_v30 = vshll.u32 %v16005_v58, 16  ;;  %v8193_v25 = vshrl.u32 %v16005_v58, 16 }
 0x4bc   : > { %v8153_v12 = vrot.slane %v8151_v17, 5  ;;  %v8172_v47 = vor.u32 %v8171_v44, %v16588_v59  ;;  %v8213_v18 = vshll.u32 %v16018_v36, 16  ;;  %v8217_v26 = vshrl.u32 %v16018_v36, 16 }
 0x4bd   : > { %v11357_v22 = vcombine.low %v8096_v35, %v8106_v54  ;;  %v11358_v2 = vcombine.low %v8120_v40, %v8130_v27  ;;  %v8139_v9 = vrot.slane %v8138_v62, 4  ;;  %v8162_v24 = vor.u32 %v8161_v29, %v8158_v6  ;;  %v7906_v54 = vld [vmem:[#allocation3 + $0xa8] sm:$0xf] }
 0x4be   : > { %v8154_v11 = vsel %vm13350_vm8, %v8149_v10, %v8153_v12  ;;  %v8175_v63 = vshll.u32 %v15996_v13, 16  ;;  %v8204_v42 = vshrl.u32 %v7903_v61, 16  ;;  %v8207_v56 = vshll.u32 %v7903_v61, 16 }
 0x4bf   : > { %v8182_v58 = vrot.slane %v8180_v1, 4  ;;  %v8185_v43 = vrot.slane %v8183_v55, 5  ;;  %v8191_v53 = vrot.slane %v8189_v30, 5  ;;  %v8195_v60 = vrot.slane %v8193_v25, 4  ;;  %v7909_v55 = vld [vmem:[#allocation3 + $0xb4] sm:$0xf] }
 0x4c0   : > { %v8173_v17 = vrot.slane %v8172_v47, 4  ;;  %v8215_v44 = vrot.slane %v8213_v18, 5  ;;  %v8219_v36 = vrot.slane %v8217_v26, 4  ;;  %v8144_v41 = vsel %vm13350_vm8, %v8139_v9, %v16447_v16 }
 0x4c1   : > { %12347 = vmatmul.mubr.msk.bf16.gmra.mrb[12].mxu1 %vm6549_vm3, %v11357_v22  ;;  %v8163_v35 = vrot.slane %v8162_v24, 4  ;;  %v11359_v62 = vcombine.low %v8144_v41, %v8154_v11  ;;  %v8177_v13 = vrot.slane %v8175_v63, 5  ;;  %v8206_v6 = vrot.slane %v8204_v42, 4 }
 0x4c2   : > { %12350 = vmatprep.mubr.msk.bf16.mxu1 %vm6549_vm3, %v11358_v2  ;;  %v8209_v29 = vrot.slane %v8207_v56, 5  ;;  %v8186_v40 = vor.u32 %v8185_v43, %v8182_v58  ;;  %v8196_v27 = vor.u32 %v8195_v60, %v8191_v53  ;;  %v8237_v10 = vshll.u32 %v16046_v31, 16 }
 0x4c3   : > { %v8241_v1 = vshrl.u32 %v16046_v31, 16  ;;  %v8178_v30 = vsel %vm13350_vm8, %v8173_v17, %v8177_v13  ;;  %v8220_v25 = vor.u32 %v8219_v36, %v8215_v44  ;;  %v8261_v61 = vshll.u32 %v16058_v38, 16 }
 0x4c4   : > { %v8265_v16 = vshrl.u32 %v16058_v38, 16  ;;  %v8168_v12 = vsel %vm13350_vm8, %v8163_v35, %v16588_v59  ;;  %v8199_v47 = vshll.u32 %v16016_v45, 16  ;;  %v8228_v18 = vshrl.u32 %v7906_v54, 16  ;;  %v7912_v35 = vld [vmem:[#allocation3 + $0xc0] sm:$0xf] }
 0x4c5   : > { %v8231_v26 = vshll.u32 %v7906_v54, 16  ;;  %v8210_v22 = vor.u32 %v8209_v29, %v8206_v6  ;;  %v8223_v31 = vshll.u32 %v16035_v52, 16  ;;  %v8252_v2 = vshrl.u32 %v7909_v55, 16 }
 0x4c6   : > { %v8255_v9 = vshll.u32 %v7909_v55, 16  ;;  %v11360_v24 = vcombine.low %v8168_v12, %v8178_v30  ;;  %v8197_v11 = vrot.slane %v8196_v27, 4  ;;  %v8239_v63 = vrot.slane %v8237_v10, 5 }
 0x4c7   : > { %v8243_v42 = vrot.slane %v8241_v1, 4  ;;  %v8187_v38 = vrot.slane %v8186_v40, 4  ;;  %v8221_v56 = vrot.slane %v8220_v25, 4  ;;  %v8263_v58 = vrot.slane %v8261_v61, 5 }
 0x4c8   : > { %v8267_v43 = vrot.slane %v8265_v16, 4  ;;  %v8201_v45 = vrot.slane %v8199_v47, 5  ;;  %v8230_v59 = vrot.slane %v8228_v18, 4  ;;  %v8233_v60 = vrot.slane %v8231_v26, 5 }
 0x4c9   : > { %12351 = vmatmul.mubr.msk.bf16.gmra.mrb[16].mxu1 %vm6549_vm3, %v11359_v62  ;;  %v8211_v17 = vrot.slane %v8210_v22, 4  ;;  %v8225_v36 = vrot.slane %v8223_v31, 5  ;;  %v8254_v52 = vrot.slane %v8252_v2, 4  ;;  %v8257_v41 = vrot.slane %v8255_v9, 5 }
 0x4ca   : > { %12354 = vmatprep.mubr.msk.bf16.mxu1 %vm6549_vm3, %v11360_v24  ;;  %v8202_v13 = vsel %vm13350_vm8, %v8197_v11, %v8201_v45  ;;  %v8244_v6 = vor.u32 %v8243_v42, %v8239_v63  ;;  %v8285_v62 = vshll.u32 %v16073_v8, 16  ;;  %v8289_v29 = vshrl.u32 %v16073_v8, 16 }
 0x4cb   : > { %v8192_v54 = vsel %vm13350_vm8, %v8187_v38, %v8191_v53  ;;  %v8226_v40 = vsel %vm13350_vm8, %v8221_v56, %v8225_v36  ;;  %v8268_v27 = vor.u32 %v8267_v43, %v8263_v58  ;;  %v8234_v10 = vor.u32 %v8233_v60, %v8230_v59  ;;  %v17478_v43 = vld [vmem:[#allocation26_spill] sm:$0xff] }
 0x4cc   : > { %v8247_v1 = vshll.u32 %v16066_v7, 16  ;;  %v8276_v55 = vshrl.u32 %v7912_v35, 16  ;;  %v8279_v30 = vshll.u32 %v7912_v35, 16  ;;  %v11361_v25 = vcombine.low %v8192_v54, %v8202_v13  ;;  %v17479_v13 = vld [vmem:[#allocation34_spill] sm:$0xff] }
 0x4cd   : > { %v8216_v61 = vsel %vm13350_vm8, %v8211_v17, %v8215_v44  ;;  %v8258_v16 = vor.u32 %v8257_v41, %v8254_v52  ;;  %v8271_v12 = vshll.u32 %v16071_v33, 16  ;;  %v8245_v47 = vrot.slane %v8244_v6, 4 }
 0x4ce   : > { %v11362_v8 = vcombine.low %v8216_v61, %v8226_v40  ;;  %v8287_v18 = vrot.slane %v8285_v62, 5  ;;  %v8291_v53 = vrot.slane %v8289_v29, 4  ;;  %v8269_v26 = vrot.slane %v8268_v27, 4  ;;  %v17480_v62 = vld [vmem:[#allocation33_spill] sm:$0xff] }
 0x4cf   : > { %v8235_v22 = vrot.slane %v8234_v10, 4  ;;  %v8249_v7 = vrot.slane %v8247_v1, 5  ;;  %v8278_v31 = vrot.slane %v8276_v55, 4  ;;  %v8281_v2 = vrot.slane %v8279_v30, 5  ;;  %v8594_v30 = vld [vmem:[#allocation3 + $0x18] sm:$0xe] }
 0x4d0   : > { %v8259_v9 = vrot.slane %v8258_v16, 4  ;;  %v8273_v24 = vrot.slane %v8271_v12, 5  ;;  %v8292_v11 = vor.u32 %v8291_v53, %v8287_v18  ;;  %v8659_v42 = vrot.slane %v16155_v3, 5  ;;  %v8593_v3 = vld [vmem:[#allocation3 + $0xc] sm:$0xe] }
 0x4d1   : > { %12355 = vmatmul.mubr.msk.bf16.gmra.mrb[20].mxu1 %vm6549_vm3, %v11361_v25  ;;  %v8250_v44 = vsel %vm13350_vm8, %v8245_v47, %v8249_v7  ;;  %v8240_v38 = vsel %vm13350_vm8, %v8235_v22, %v8239_v63  ;;  %v8282_v56 = vor.u32 %v8281_v2, %v8278_v31  ;;  %v8295_v45 = vshll.u32 %v17478_v43, 16  ;;  %v17481_v25 = vld [vmem:[#allocation35_spill] sm:$0xff]  ;;  %v11464_v53 = vld [vmem:[%s17171_s4 + $0x1c] sm:$0xf]  ;;  %v17483_v22 = vld [vmem:[#allocation16_spill] sm:$0xff] }
 0x4d2   : > { %12358 = vmatprep.mubr.msk.bf16.mxu1 %vm6549_vm3, %v11362_v8  ;;  %v8274_v33 = vsel %vm13350_vm8, %v8269_v26, %v8273_v24  ;;  %v11363_v59 = vcombine.low %v8240_v38, %v8250_v44  ;;  %v8264_v60 = vsel %vm13350_vm8, %v8259_v9, %v8263_v58  ;;  %v8293_v36 = vrot.slane %v8292_v11, 4  ;;  %v17482_v26 = vld [vmem:[#allocation15_spill] sm:$0xff]  ;;  %v17485_v31 = vld [vmem:[#allocation17_spill] sm:$0xff]  ;;  %v17486_v2 = vld [vmem:[#allocation18_spill] sm:$0xff] }
 0x4d3   : > { %v11364_v17 = vcombine.low %v8264_v60, %v8274_v33  ;;  %v8661_v52 = vrot.slane %v8659_v42, 4  ;;  %v8283_v41 = vrot.slane %v8282_v56, 4  ;;  %v8297_v35 = vrot.slane %v8295_v45, 5  ;;  %v17489_v24 = vld [vmem:[#allocation5_spill] sm:$0xff]  ;;  %v17491_v11 = vld [vmem:[#allocation6_spill] sm:$0xff]  ;;  %v17492_v33 = vld [vmem:[#allocation7_spill] sm:$0xff] }
 0x4d4   : > { %v8662_v6 = vrot.slane %v17479_v13, 5  ;;  %v8666_v29 = vrot.slane %v17480_v62, 5  ;;  %v11382_v54 = vrot.slane %v8593_v3, 9  ;;  %v8669_v61 = vrot.slane %v17481_v25, 5  ;;  %v17494_v38 = vld [vmem:[#allocation8_spill] sm:$0xff]  ;;  %v17495_v56 = vld [vmem:[#allocation9_spill] sm:$0xff] }
 0x4d5   : > { %v8298_v63 = vsel %vm13350_vm8, %v8293_v36, %v8297_v35  ;;  %v8288_v40 = vsel %vm13350_vm8, %v8283_v41, %v8287_v18  ;;  %v11383_v16 = vrot.slane %v8594_v30, 9  ;;  %v9227_v18 = vsel %vm6598_vm2, %v16433_v14, 0  ;;  %v17488_v14 = vld [vmem:[#allocation19_spill] sm:$0xff]  ;;  %v17497_v45 = vld [vmem:[#allocation10_spill] sm:$0xff]  ;;  %v17501_v36 = vld [vmem:[#allocation13_spill] sm:$0xff] }
 0x4d6   : > { %v8663_v58 = vsel %vm13741_vm15, %v8661_v52, %v8662_v6  ;;  %v11365_v27 = vcombine.low %v8288_v40, %v8298_v63  ;;  %v8660_v10 = vsel %vm13741_vm15, %v11382_v54, %v8659_v42  ;;  %v8668_v55 = vrot.slane %v8666_v29, 4  ;;  %v17503_v41 = vld [vmem:[#allocation14_spill] sm:$0xff]  ;;  %v17504_v35 = vld [vmem:[#allocation4_spill] sm:$0xff]  ;;  %v17507_v6 = vld [vmem:[#allocation21_spill] sm:$0xff] }
 0x4d7   : > { %v11399_v1 = vcombine.low %v8660_v10, %v8663_v58  ;;  %v8667_v8 = vsel %vm13741_vm15, %v11383_v16, %v8666_v29  ;;  %v17484_v7 = vcombine.low %v17482_v26, %v17483_v22  ;;  %v17487_v9 = vcombine.low %v17485_v31, %v17486_v2  ;;  %v17506_v13 = vld [vmem:[#allocation20_spill] sm:$0xff]  ;;  %v17509_v62 = vld [vmem:[#allocation22_spill] sm:$0xff]  ;;  %v17510_v29 = vld [vmem:[#allocation23_spill] sm:$0xff] }
 0x4d8   : > { %v8670_v12 = vsel %vm13741_vm15, %v8668_v55, %v8669_v61  ;;  %v17490_v44 = vcombine.low %v17488_v14, %v17489_v24  ;;  %v17493_v42 = vcombine.low %v17491_v11, %v17492_v33  ;;  %v17496_v43 = vcombine.low %v17494_v38, %v17495_v56  ;;  %v17512_v58 = vld [vmem:[#allocation24_spill] sm:$0xff]  ;;  %v17513_v40 = vld [vmem:[#allocation25_spill] sm:$0xff]  ;;  %v17515_v10 = vld [vmem:[#allocation27_spill] sm:$0xff] }
 0x4d9   : > { %12359 = vmatmul.mubr.msk.bf16.gmra.mrb[24].mxu1 %vm6549_vm3, %v11363_v59  ;;  %v11400_v47 = vcombine.low %v8667_v8, %v8670_v12  ;;  %v17498_v59 = vld [vmem:[#allocation11_spill] sm:$0xff]  ;;  %v17505_v3 = vcombine.low %v17503_v41, %v17504_v35  ;;  %v17508_v63 = vcombine.low %v17506_v13, %v17507_v6  ;;  %v17511_v54 = vcombine.low %v17509_v62, %v17510_v29  ;;  %v17518_v30 = vld [vmem:[#allocation29_spill] sm:$0xff]  ;;  %v17519_v25 = vld [vmem:[#allocation30_spill] sm:$0xff] }
 0x4da   : > { %12362 = vmatprep.mubr.msk.bf16.mxu1 %vm6549_vm3, %v11364_v17  ;;  %v17499_v60 = vcombine.low %v17497_v45, %v17498_v59  ;;  %v17500_v17 = vld [vmem:[#allocation12_spill] sm:$0xff]  ;;  %v17520_v61 = vcombine.low %v17518_v30, %v17519_v25  ;;  %v17521_v12 = vld [vmem:[#allocation31_spill] sm:$0xff]  ;;  %v9953_v26 = vsel %vm6598_vm2, %v11464_v53, 0  ;;  %v13103_v2 = vld [vmem:[#allocation3 + $0x48] sm:$0xff]  }
 0x4db   : > { %v17502_v52 = vcombine.low %v17500_v17, %v17501_v36  ;;  %v13099_v16 = vld [vmem:[#allocation3 + $0x18] sm:$0xff]   ;;  %v13101_v22 = vld [vmem:[#allocation3 + $0x30] sm:$0xff]   ;;  %v9425_v59 = vld [vmem:[#allocation3 + $0x24] sm:$0xf] }
 0x4dc   : > { %v17522_v8 = vld [vmem:[#allocation32_spill] sm:$0xff]  ;;  %v13106_v14 = vld [vmem:[#allocation3 + $0x6c] sm:$0xff]   ;;  %v9495_v41 = vshrl.u32 %v9425_v59, 16  ;;  %v9498_v35 = vshll.u32 %v9425_v59, 16  ;;  %v9552_v59 = vshll.u32 %v16317_v51, 16 }
 0x4dd   : > { %v13102_v31 = vld [vmem:[#allocation3 + $0x3c] sm:$0xff]   ;;  %v13109_v38 = vld [vmem:[#allocation3 + $0x90] sm:$0xff]  }
 0x4de   : > { %v13107_v24 = vld [vmem:[#allocation3 + $0x78] sm:$0xff]   ;;  %v9428_v62 = vld [vmem:[#allocation3 + $0x30] sm:$0xf] }
 0x4df   : > { %v17524_v56 = vld [vmem:[#allocation36_spill] sm:$0xff] }
 0x4e0   : > { %v9484_v45 = vshrl.u32 %v17524_v56, 16  ;;  %v13110_v29 = vld [vmem:[#allocation3 + $0x9c] sm:$0xff]  }
 0x4e1   : > { %12363 = vmatmul.mubr.msk.bf16.gmra.mrb[28].mxu1 %vm6549_vm3, %v11365_v27  ;;  %v17514_v27 = vcombine.low %v17512_v58, %v17513_v40 }
 0x4e2   : > { %12368 = vmatprep.mubr.msk.bf16.mxu1 %vm6549_vm3, %v11399_v1  ;;  %v17516_v1 = vld [vmem:[#allocation28_spill] sm:$0xff] }
 0x4e3   : > { %v17517_v55 = vcombine.low %v17515_v10, %v17516_v1  ;;  %v9497_v1 = vrot.slane %v9495_v41, 4 }
 0x4e9   : > { %12369 = vmatmul.mubr.msk.bf16.vlgmr.msra.gmra.mrb[0].mxu1 %vm6549_vm3, %v11400_v47  ;;  %v17523_v47 = vcombine.low %v17521_v12, %v17522_v8  ;;  %v17527_v8 = vld [vmem:[#allocation37_spill] sm:$0xff] }
 0x4ea   : > { %12401 = vmatpush3.bf16.msra.mxu1 %v9227_v18  ;;  %12372 = vmatprep.mubr.msk.bf16.mxu1 %vm6549_vm3, %v17484_v7  ;;  %v13100_v18 = vld [vmem:[#allocation3 + $0x24] sm:$0xff]  }
 0x4eb   : > { %13030 = vmatprep.subr.msk.bf16.mxu1 %vm6598_vm2, %v11464_v53  ;;  %v16742_v7 = vld [vmem:[%s17171_s4 + $0x20] sm:$0xf]  ;;  %v13104_v53 = vld [vmem:[#allocation3 + $0x54] sm:$0xff]  }
 0x4f1   : > { %12373 = vmatmul.mubr.msk.bf16.gmra.mrb[4].mxu1 %vm6549_vm3, %v17487_v9  ;;  %v13105_v9 = vld [vmem:[#allocation3 + $0x60] sm:$0xff]  }
 0x4f2   : > { %12376 = vmatprep.mubr.msk.bf16.mxu1 %vm6549_vm3, %v17490_v44  ;;  %v9422_v44 = vld [vmem:[#allocation3 + $0x18] sm:$0xf] }
 0x4f3   : > { %v9471_v11 = vshrl.u32 %v9422_v44, 16  ;;  %v9474_v33 = vshll.u32 %v9422_v44, 16 }
 0x4f5   : > { %v9476_v17 = vrot.slane %v9474_v33, 5 }
 0x4f9   : > { %12377 = vmatmul.mubr.msk.bf16.gmra.mrb[8].mxu1 %vm6549_vm3, %v17493_v42  ;;  %v13108_v42 = vld [vmem:[#allocation3 + $0x84] sm:$0xff]  }
 0x4fa   : > { %12380 = vmatprep.mubr.msk.bf16.mxu1 %vm6549_vm3, %v17496_v43  ;;  %v9480_v43 = vshll.u32 %v17524_v56, 16  ;;  %v13112_v56 = vld [vmem:[#allocation3 + $0xb4] sm:$0xff]  }
 0x4fc   : > { %v16758_v36 = vrot.slane %v9480_v43, 5 }
 0x501   : > { %12381 = vmatmul.mubr.msk.bf16.gmra.mrb[12].mxu1 %vm6549_vm3, %v17499_v60  ;;  %v9473_v60 = vrot.slane %v9471_v11, 4 }
 0x502   : > { %12384 = vmatprep.mubr.msk.bf16.mxu1 %vm6549_vm3, %v17502_v52  ;;  %v9486_v52 = vrot.slane %v9484_v45, 4 }
 0x504   : > { %v9487_v10 = vor.u32 %v9486_v52, %v16758_v36  ;;  %v13113_v52 = vld [vmem:[#allocation3 + $0xc0] sm:$0xff]  }
 0x509   : > { %12385 = vmatmul.mubr.msk.bf16.gmra.mrb[16].mxu1 %vm6549_vm3, %v17505_v3  ;;  %v17525_v3 = vld [vmem:[#allocation39_spill] sm:$0xff] }
 0x50a   : > { %12388 = vmatprep.mubr.msk.bf16.mxu1 %vm6549_vm3, %v17508_v63  ;;  %v9504_v13 = vshll.u32 %v17525_v3, 16  ;;  %v9508_v6 = vshrl.u32 %v17525_v3, 16  ;;  %v9477_v63 = vor.u32 %v9476_v17, %v9473_v60  ;;  %v9556_v60 = vshrl.u32 %v16317_v51, 16  ;;  %v9434_v17 = vld [vmem:[#allocation3 + $0x48] sm:$0xf] }
 0x50b   : > { %v16788_v51 = vld [vmem:[#allocation3 + $0xd4] sm:$0x1] }
 0x50c   : > { %v16766_v30 = vrot.slane %v9504_v13, 5  ;;  %v9510_v25 = vrot.slane %v9508_v6, 4  ;;  %v9478_v12 = vrot.slane %v9477_v63, 4  ;;  %v17530_v13 = vld [vmem:[#allocation42_spill] sm:$0xff] }
 0x50d   : > { %v9576_v6 = vshll.u32 %v17530_v13, 16  ;;  %v9580_v63 = vshrl.u32 %v17530_v13, 16 }
 0x50e   : > { %v9483_v33 = vsel %vm13350_vm8, %v9478_v12, %v16758_v36 }
 0x511   : > { %12389 = vmatmul.mubr.msk.bf16.gmra.mrb[20].mxu1 %vm6549_vm3, %v17511_v54  ;;  %v17526_v54 = vld [vmem:[#allocation38_spill] sm:$0xff] }
 0x512   : > { %12392 = vmatprep.mubr.msk.bf16.mxu1 %vm6549_vm3, %v17514_v27  ;;  %v9528_v58 = vshll.u32 %v17526_v54, 16  ;;  %v9532_v40 = vshrl.u32 %v17526_v54, 16  ;;  %v13111_v27 = vld [vmem:[#allocation3 + $0xa8] sm:$0xff]  }
 0x519   : > { %12393 = vmatmul.mubr.msk.bf16.gmra.mrb[24].mxu1 %vm6549_vm3, %v17517_v55  ;;  %v9500_v55 = vrot.slane %v9498_v35, 5  ;;  %v17529_v35 = vld [vmem:[#allocation41_spill] sm:$0xff] }
 0x51a   : > { %12396 = vmatprep.mubr.msk.bf16.mxu1 %vm6549_vm3, %v17520_v61  ;;  %v9519_v61 = vshrl.u32 %v9428_v62, 16  ;;  %v9538_v3 = vshll.u32 %v17529_v35, 16 }
 0x521   : > { %12397 = vmatmul.mubr.msk.bf16.gmra.mrb[28].mxu1 %vm6549_vm3, %v17523_v47  ;;  %v9490_v47 = vshll.u32 %v17527_v8, 16  ;;  %v9570_v8 = vshll.u32 %v9434_v17, 16 }
 0x522   : > { %12402 = vmatprep.mubr.msk.bf16.mxu1 %vm6549_vm3, %v13099_v16  ;;  %v9522_v16 = vshll.u32 %v9428_v62, 16 }
 0x524   : > { %v9524_v44 = vrot.slane %v9522_v16, 5  ;;  %v9558_v16 = vrot.slane %v9556_v60, 4 }
 0x529   : > { %12403 = vmatmul.mubr.msk.bf16.vlgmr.msra.gmra.mrb[0].mxu1 %vm6549_vm3, %v13100_v18  ;;  %v9431_v18 = vld [vmem:[#allocation3 + $0x3c] sm:$0xf] }
 0x52a   : > { %12435 = vmatpush3.bf16.msra.mxu1 %v9953_v26  ;;  %12406 = vmatprep.mubr.msk.bf16.mxu1 %vm6549_vm3, %v13101_v22  ;;  %v17528_v26 = vld [vmem:[#allocation40_spill] sm:$0xff]  ;;  %v9543_v11 = vshrl.u32 %v9431_v18, 16 }
 0x52b   : > { %13031 = vmatprep.subr.msk.bf16.mxu1 %vm6598_vm2, %v16742_v7  ;;  %v9514_v22 = vshll.u32 %v17528_v26, 16  ;;  %v9437_v26 = vld [vmem:[#allocation3 + $0x54] sm:$0xf] }
 0x52c   : > { %v9545_v54 = vrot.slane %v9543_v11, 4  ;;  %v9594_v60 = vshll.u32 %v9437_v26, 16 }
 0x52d   : > { %v9516_v43 = vrot.slane %v9514_v22, 5 }
 0x531   : > { %12407 = vmatmul.mubr.msk.bf16.gmra.mrb[4].mxu1 %vm6549_vm3, %v13102_v31  ;;  %v16771_v31 = vrot.slane %v9528_v58, 5  ;;  %v16786_v58 = vld [vmem:[#allocation3 + $0xd0] sm:$0xf] }
 0x532   : > { %12410 = vmatprep.mubr.msk.bf16.mxu1 %vm6549_vm3, %v13103_v2  ;;  %v9534_v2 = vrot.slane %v9532_v40, 4 }
 0x534   : > { %v9535_v45 = vor.u32 %v9534_v2, %v16771_v31  ;;  %v13114_v2 = vld [vmem:[#allocation3 + $0xcc] sm:$0xff]  }
 0x539   : > { %12411 = vmatmul.mubr.msk.bf16.gmra.mrb[8].mxu1 %vm6549_vm3, %v13104_v53  ;;  %v9488_v53 = vrot.slane %v9487_v10, 4  ;;  %v10163_v10 = vld [vmem:[#allocation3 + $0xcc] sm:$0xe] }
 0x53a   : > { %12414 = vmatprep.mubr.msk.bf16.mxu1 %vm6549_vm3, %v13105_v9  ;;  %v9501_v9 = vor.u32 %v9500_v55, %v9497_v1  ;;  %v10319_v1 = vrot.slane %v16786_v58, 5  ;;  %v10322_v55 = vrot.slane %v16788_v51, 5  ;;  %v11512_v12 = vrot.slane %v10163_v10, 9 }
 0x53b   : > { %v9596_v10 = vrot.slane %v9594_v60, 5  ;;  %v17535_v60 = vld [vmem:[#allocation51_spill] sm:$0xff] }
 0x53c   : > { %v9502_v41 = vrot.slane %v9501_v9, 4  ;;  %v10321_v22 = vrot.slane %v10319_v1, 4 }
 0x53e   : > { %v9507_v49 = vsel %vm13350_vm8, %v9502_v41, %v16766_v30 }
 0x541   : > { %12415 = vmatmul.mubr.msk.bf16.gmra.mrb[12].mxu1 %vm6549_vm3, %v13106_v14  ;;  %v9511_v14 = vor.u32 %v9510_v25, %v16766_v30  ;;  %v9536_v25 = vrot.slane %v9535_v45, 4 }
 0x542   : > { %12418 = vmatprep.mubr.msk.bf16.mxu1 %vm6549_vm3, %v13107_v24  ;;  %v9521_v24 = vrot.slane %v9519_v61, 4  ;;  %v16793_v61 = vrot.slane %v9552_v59, 5  ;;  %v9591_v59 = vshrl.u32 %v9437_v26, 16 }
 0x543   : > { %v9512_v62 = vrot.slane %v9511_v14, 4  ;;  %v9540_v14 = vrot.slane %v9538_v3, 5  ;;  %v17532_v3 = vld [vmem:[#allocation47_spill] sm:$0xff] }
 0x544   : > { %v9600_v13 = vshll.u32 %v17532_v3, 16 }
 0x545   : > { %v9517_v9 = vsel %vm13350_vm8, %v9512_v62, %v9516_v43  ;;  %v9541_v43 = vsel %vm13350_vm8, %v9536_v25, %v9540_v14  ;;  %v9604_v62 = vshrl.u32 %v17532_v3, 16  ;;  %v17533_v25 = vld [vmem:[#allocation46_spill] sm:$0xff] }
 0x547   : > { %v9606_v26 = vrot.slane %v9604_v62, 4 }
 0x549   : > { %12419 = vmatmul.mubr.msk.bf16.gmra.mrb[16].mxu1 %vm6549_vm3, %v13108_v42  ;;  %v9492_v42 = vrot.slane %v9490_v47, 5  ;;  %v16795_v47 = vrot.slane %v9576_v6, 5  ;;  %v11466_v6 = vcombine.low %v9507_v49, %v9517_v9  ;;  %v10423_v9 = vsel %vm6598_vm2, %v16742_v7, 0 }
 0x54a   : > { %12422 = vmatprep.mubr.msk.bf16.mxu1 %vm6549_vm3, %v13109_v38  ;;  %v9546_v38 = vshll.u32 %v9431_v18, 16  ;;  %v9582_v18 = vrot.slane %v9580_v63, 4 }
 0x54b   : > { %v9493_v36 = vsel %vm13350_vm8, %v9488_v53, %v9492_v42  ;;  %v17531_v42 = vld [vmem:[#allocation43_spill] sm:$0xff] }
 0x54c   : > { %v9548_v40 = vrot.slane %v9546_v38, 5  ;;  %v11465_v53 = vcombine.low %v9483_v33, %v9493_v36  ;;  %v9562_v38 = vshll.u32 %v17531_v42, 16  ;;  %v9583_v35 = vor.u32 %v9582_v18, %v16795_v47 }
 0x54d   : > { %v9624_v18 = vshll.u32 %v16343_v34, 16 }
 0x54e   : > { %v9549_v11 = vor.u32 %v9548_v40, %v9545_v54  ;;  %v9564_v36 = vrot.slane %v9562_v38, 5  ;;  %v9584_v41 = vrot.slane %v9583_v35, 4 }
 0x54f   : > { %v16840_v7 = vrot.slane %v9624_v18, 5 }
 0x550   : > { %v9550_v40 = vrot.slane %v9549_v11, 4 }
 0x551   : > { %12423 = vmatmul.mubr.msk.bf16.gmra.mrb[20].mxu1 %vm6549_vm3, %v13110_v29  ;;  %v9525_v29 = vor.u32 %v9524_v44, %v9521_v24  ;;  %v16801_v24 = vsel %vm13741_vm15, %v11512_v12, %v10319_v1  ;;  %v9443_v1 = vld [vmem:[#allocation3 + $0x6c] sm:$0xf]  ;;  %v16825_v12 = vrot.slane %v9600_v13, 5 }
 0x552   : > { %12426 = vmatprep.mubr.msk.bf16.mxu1 %vm6549_vm3, %v13111_v27  ;;  %v9567_v27 = vshrl.u32 %v9434_v17, 16  ;;  %v9559_v17 = vor.u32 %v9558_v16, %v16793_v61  ;;  %v9586_v16 = vshll.u32 %v17533_v25, 16  ;;  %v9555_v38 = vsel %vm13350_vm8, %v9550_v40, %v16793_v61  ;;  %v17536_v40 = vld [vmem:[#allocation54_spill] sm:$0xff] }
 0x553   : > { %v9526_v44 = vrot.slane %v9525_v29, 4  ;;  %v9440_v29 = vld [vmem:[#allocation3 + $0x60] sm:$0xf]  ;;  %v9607_v35 = vor.u32 %v9606_v26, %v16825_v12 }
 0x554   : > { %v9569_v45 = vrot.slane %v9567_v27, 4  ;;  %v9593_v27 = vrot.slane %v9591_v59, 4  ;;  %v9588_v59 = vrot.slane %v9586_v16, 5 }
 0x555   : > { %v9531_v63 = vsel %vm13350_vm8, %v9526_v44, %v16771_v31  ;;  %v9628_v31 = vshrl.u32 %v16343_v34, 16  ;;  %v17534_v44 = vld [vmem:[#allocation56_spill] sm:$0xff]  ;;  %v9608_v16 = vrot.slane %v9607_v35, 4  ;;  %v9452_v35 = vld [vmem:[#allocation3 + $0x90] sm:$0xf] }
 0x556   : > { %v11467_v54 = vcombine.low %v9531_v63, %v9541_v43  ;;  %v9597_v14 = vor.u32 %v9596_v10, %v9593_v27  ;;  %v9648_v11 = vshll.u32 %v17534_v44, 16  ;;  %v9652_v42 = vshrl.u32 %v17534_v44, 16 }
 0x557   : > { %v9610_v43 = vshll.u32 %v17535_v60, 16  ;;  %v9589_v13 = vsel %vm13350_vm8, %v9584_v41, %v9588_v59  ;;  %v9672_v27 = vshll.u32 %v17536_v40, 16  ;;  %v9676_v10 = vshrl.u32 %v17536_v40, 16  ;;  %v17538_v60 = vld [vmem:[#allocation59_spill] sm:$0xff] }
 0x558   : > { %v9598_v63 = vrot.slane %v9597_v14, 4  ;;  %v9696_v14 = vshll.u32 %v16416_v4, 16  ;;  %v9700_v44 = vshrl.u32 %v16416_v4, 16 }
 0x559   : > { %12427 = vmatmul.mubr.msk.bf16.gmra.mrb[24].mxu1 %vm6549_vm3, %v13112_v56  ;;  %v16806_v56 = vsel %vm13741_vm15, %v10321_v22, %v10322_v55  ;;  %v9560_v55 = vrot.slane %v9559_v17, 4  ;;  %v9618_v22 = vshll.u32 %v9440_v29, 16 }
 0x55a   : > { %12430 = vmatprep.mubr.msk.bf16.mxu1 %vm6549_vm3, %v13113_v52  ;;  %v11529_v33 = vcombine.low %v16801_v24, %v16806_v56  ;;  %v9572_v52 = vrot.slane %v9570_v8, 5  ;;  %v9615_v8 = vshrl.u32 %v9440_v29, 16  ;;  %v9446_v29 = vld [vmem:[#allocation3 + $0x78] sm:$0xf]  ;;  %v9603_v26 = vsel %vm13350_vm8, %v9598_v63, %v16825_v12 }
 0x55b   : > { %v9620_v49 = vrot.slane %v9618_v22, 5  ;;  %v16871_v63 = vrot.slane %v9696_v14, 5  ;;  %v17541_v14 = vld [vmem:[#allocation64_spill] sm:$0xff] }
 0x55c   : > { %v9573_v30 = vor.u32 %v9572_v52, %v9569_v45  ;;  %v9565_v45 = vsel %vm13350_vm8, %v9560_v55, %v9564_v36  ;;  %v9617_v17 = vrot.slane %v9615_v8, 4  ;;  %v9630_v52 = vrot.slane %v9628_v31, 4  ;;  %v9449_v31 = vld [vmem:[#allocation3 + $0x84] sm:$0xf] }
 0x55d   : > { %v16846_v36 = vrot.slane %v9648_v11, 5  ;;  %v11468_v62 = vcombine.low %v9555_v38, %v9565_v45  ;;  %v9687_v38 = vshrl.u32 %v9449_v31, 16  ;;  %v9690_v45 = vshll.u32 %v9449_v31, 16 }
 0x55e   : > { %v9574_v34 = vrot.slane %v9573_v30, 4  ;;  %v9631_v55 = vor.u32 %v9630_v52, %v16840_v7  ;;  %v17537_v30 = vld [vmem:[#allocation52_spill] sm:$0xff]  ;;  %v9621_v8 = vor.u32 %v9620_v49, %v9617_v17  ;;  %v17539_v49 = vld [vmem:[#allocation62_spill] sm:$0xff] }
 0x55f   : > { %v9634_v25 = vshll.u32 %v17537_v30, 16  ;;  %v9720_v4 = vshll.u32 %v17539_v49, 16  ;;  %v9714_v30 = vshll.u32 %v9452_v35, 16 }
 0x560   : > { %v9632_v11 = vrot.slane %v9631_v55, 4  ;;  %v9711_v55 = vshrl.u32 %v9452_v35, 16  ;;  %v9458_v35 = vld [vmem:[#allocation3 + $0xa8] sm:$0xf] }
 0x561   : > { %12431 = vmatmul.mubr.msk.bf16.gmra.mrb[28].mxu1 %vm6549_vm3, %v13114_v2  ;;  %v9639_v2 = vshrl.u32 %v9443_v1, 16 }
 0x562   : > { %12436 = vmatprep.mubr.msk.bf16.mxu1 %vm6549_vm3, %v11465_v53  ;;  %v9642_v53 = vshll.u32 %v9443_v1, 16  ;;  %v9612_v1 = vrot.slane %v9610_v43, 5  ;;  %v9658_v43 = vshll.u32 %v17538_v60, 16 }
 0x563   : > { %v9641_v61 = vrot.slane %v9639_v2, 4  ;;  %v9663_v2 = vshrl.u32 %v9446_v29, 16 }
 0x564   : > { %v9644_v3 = vrot.slane %v9642_v53, 5  ;;  %v9666_v53 = vshll.u32 %v9446_v29, 16  ;;  %v9613_v12 = vsel %vm13350_vm8, %v9608_v16, %v9612_v1  ;;  %v17540_v29 = vld [vmem:[#allocation60_spill] sm:$0xff]  ;;  %v9660_v1 = vrot.slane %v9658_v43, 5 }
 0x565   : > { %v9665_v17 = vrot.slane %v9663_v2, 4  ;;  %v9682_v40 = vshll.u32 %v17540_v29, 16  ;;  %v16879_v16 = vrot.slane %v9720_v4, 5  ;;  %v17543_v4 = vld [vmem:[#allocation67_spill] sm:$0xff] }
 0x566   : > { %v9645_v18 = vor.u32 %v9644_v3, %v9641_v61  ;;  %v9668_v52 = vrot.slane %v9666_v53, 5  ;;  %v9724_v61 = vshrl.u32 %v17539_v49, 16 }
 0x568   : > { %v9646_v59 = vrot.slane %v9645_v18, 4  ;;  %v9455_v18 = vld [vmem:[#allocation3 + $0x9c] sm:$0xf] }
 0x569   : > { %12437 = vmatmul.mubr.msk.bf16.vlgmr.msra.gmra.mrb[0].mxu1 %vm6549_vm3, %v11466_v6  ;;  %v9654_v6 = vrot.slane %v9652_v42, 4  ;;  %v9636_v42 = vrot.slane %v9634_v25, 5 }
 0x56a   : > { %12469 = vmatpush3.bf16.msra.mxu1 %v10423_v9  ;;  %12440 = vmatprep.mubr.msk.bf16.mxu1 %vm6549_vm3, %v11467_v54  ;;  %v9579_v54 = vsel %vm13350_vm8, %v9574_v34, %v16795_v47  ;;  %v16859_v9 = vrot.slane %v9672_v27, 5  ;;  %v9678_v47 = vrot.slane %v9676_v10, 4  ;;  %v9622_v34 = vrot.slane %v9621_v8, 4 }
 0x56b   : > { %v11469_v41 = vcombine.low %v9579_v54, %v9589_v13  ;;  %v9655_v22 = vor.u32 %v9654_v6, %v16846_v36  ;;  %v9702_v6 = vrot.slane %v9700_v44, 4  ;;  %v9689_v27 = vrot.slane %v9687_v38, 4 }
 0x56c   : > { %v9679_v13 = vor.u32 %v9678_v47, %v16859_v9  ;;  %v9692_v10 = vrot.slane %v9690_v45, 5  ;;  %v11470_v54 = vcombine.low %v9603_v26, %v9613_v12  ;;  %v9627_v25 = vsel %vm13350_vm8, %v9622_v34, %v16840_v7 }
 0x56d   : > { %v9656_v3 = vrot.slane %v9655_v22, 4  ;;  %v9726_v8 = vrot.slane %v9724_v61, 4  ;;  %v9703_v53 = vor.u32 %v9702_v6, %v16871_v63  ;;  %v9651_v26 = vsel %vm13350_vm8, %v9646_v59, %v16846_v36 }
 0x56e   : > { %v9680_v2 = vrot.slane %v9679_v13, 4  ;;  %v9684_v47 = vrot.slane %v9682_v40, 5  ;;  %v9693_v7 = vor.u32 %v9692_v10, %v9689_v27  ;;  %v9706_v44 = vshll.u32 %v17541_v14, 16 }
 0x56f   : > { %v9661_v22 = vsel %vm13350_vm8, %v9656_v3, %v9660_v1  ;;  %v9735_v38 = vshrl.u32 %v9455_v18, 16  ;;  %v9738_v45 = vshll.u32 %v9455_v18, 16  ;;  %v9727_v60 = vor.u32 %v9726_v8, %v16879_v16  ;;  %v17544_v3 = vld [vmem:[#allocation70_spill] sm:$0xff] }
 0x570   : > { %v11472_v12 = vcombine.low %v9651_v26, %v9661_v22  ;;  %v9685_v43 = vsel %vm13350_vm8, %v9680_v2, %v9684_v47  ;;  %v9708_v49 = vrot.slane %v9706_v44, 5  ;;  %v9730_v61 = vshll.u32 %v17543_v4, 16  ;;  %v9461_v2 = vld [vmem:[#allocation3 + $0xb4] sm:$0xf] }
 0x571   : > { %12441 = vmatmul.mubr.msk.bf16.gmra.mrb[4].mxu1 %vm6549_vm3, %v11468_v62  ;;  %v9637_v62 = vsel %vm13350_vm8, %v9632_v11, %v9636_v42  ;;  %v9713_v11 = vrot.slane %v9711_v55, 4  ;;  %v9716_v42 = vrot.slane %v9714_v30, 5  ;;  %v9768_v13 = vshll.u32 %v17544_v3, 16 }
 0x572   : > { %12444 = vmatprep.mubr.msk.bf16.mxu1 %vm6549_vm3, %v11469_v41  ;;  %v9669_v41 = vor.u32 %v9668_v52, %v9665_v17  ;;  %v11471_v31 = vcombine.low %v9627_v25, %v9637_v62  ;;  %v9704_v17 = vrot.slane %v9703_v53, 4  ;;  %v17542_v52 = vld [vmem:[#allocation69_spill] sm:$0xff]  ;;  %v9772_v6 = vshrl.u32 %v17544_v3, 16  ;;  %v9467_v3 = vld [vmem:[#allocation3 + $0xcc] sm:$0xf] }
 0x573   : > { %v9744_v36 = vshll.u32 %v17542_v52, 16  ;;  %v9748_v59 = vshrl.u32 %v17542_v52, 16  ;;  %v9694_v62 = vrot.slane %v9693_v7, 4  ;;  %v9717_v29 = vor.u32 %v9716_v42, %v9713_v11 }
 0x574   : > { %v9670_v34 = vrot.slane %v9669_v41, 4  ;;  %v9737_v40 = vrot.slane %v9735_v38, 4  ;;  %v9740_v27 = vrot.slane %v9738_v45, 5  ;;  %v9759_v1 = vshrl.u32 %v9458_v35, 16 }
 0x575   : > { %v9762_v55 = vshll.u32 %v9458_v35, 16  ;;  %v9709_v25 = vsel %vm13350_vm8, %v9704_v17, %v9708_v49  ;;  %v16903_v41 = vrot.slane %v9744_v36, 5  ;;  %v9750_v8 = vrot.slane %v9748_v59, 4  ;;  %v13154_v59 = vld [vmem:[#allocation3 + $0xb0] sm:$0x1] }
 0x576   : > { %v9675_v10 = vsel %vm13350_vm8, %v9670_v34, %v16859_v9  ;;  %v9732_v18 = vrot.slane %v9730_v61, 5  ;;  %v9774_v22 = vrot.slane %v9772_v6, 4  ;;  %v9699_v9 = vsel %vm13350_vm8, %v9694_v62, %v16871_v63  ;;  %v9464_v34 = vld [vmem:[#allocation3 + $0xc0] sm:$0xf] }
 0x577   : > { %v11473_v30 = vcombine.low %v9675_v10, %v9685_v43  ;;  %v9718_v53 = vrot.slane %v9717_v29, 4  ;;  %v9741_v26 = vor.u32 %v9740_v27, %v9737_v40  ;;  %v9754_v47 = vshll.u32 %v16474_v37, 16 }
 0x578   : > { %v11474_v7 = vcombine.low %v9699_v9, %v9709_v25  ;;  %v9761_v44 = vrot.slane %v9759_v1, 4  ;;  %v9764_v11 = vrot.slane %v9762_v55, 5  ;;  %v9751_v42 = vor.u32 %v9750_v8, %v16903_v41 }
 0x579   : > { %12445 = vmatmul.mubr.msk.bf16.gmra.mrb[8].mxu1 %vm6549_vm3, %v11470_v54  ;;  %v9728_v54 = vrot.slane %v9727_v60, 4  ;;  %v9783_v38 = vshrl.u32 %v9461_v2, 16  ;;  %v9792_v45 = vshll.u32 %v16492_v23, 16  ;;  %v9786_v60 = vshll.u32 %v9461_v2, 16 }
 0x57a   : > { %12448 = vmatprep.mubr.msk.bf16.mxu1 %vm6549_vm3, %v11471_v31  ;;  %v16906_v31 = vrot.slane %v9768_v13, 5  ;;  %v9816_v43 = vshll.u32 %v16503_v46, 16  ;;  %v9820_v37 = vshrl.u32 %v16503_v46, 16  ;;  %v9723_v17 = vsel %vm13350_vm8, %v9718_v53, %v16879_v16 }
 0x57b   : > { %v9733_v14 = vsel %vm13350_vm8, %v9728_v54, %v9732_v18  ;;  %v9742_v52 = vrot.slane %v9741_v26, 4  ;;  %v9756_v36 = vrot.slane %v9754_v47, 5  ;;  %v9778_v35 = vshll.u32 %v13154_v59, 16  ;;  %v13155_v47 = vld [vmem:[#allocation3 + $0xbc] sm:$0x1] }
 0x57c   : > { %v9775_v63 = vor.u32 %v9774_v22, %v16906_v31  ;;  %v11475_v49 = vcombine.low %v9723_v17, %v9733_v14  ;;  %v9765_v4 = vor.u32 %v9764_v11, %v9761_v44  ;;  %v9807_v61 = vshrl.u32 %v9464_v34, 16 }
 0x57d   : > { %v9752_v13 = vrot.slane %v9751_v42, 4  ;;  %v9785_v6 = vrot.slane %v9783_v38, 4  ;;  %v9794_v62 = vrot.slane %v9792_v45, 5  ;;  %v9788_v40 = vrot.slane %v9786_v60, 5 }
 0x57e   : > { %v9776_v46 = vrot.slane %v9775_v63, 4  ;;  %v9818_v27 = vrot.slane %v9816_v43, 5  ;;  %v9822_v10 = vrot.slane %v9820_v37, 4  ;;  %v9831_v16 = vshrl.u32 %v9467_v3, 16 }
 0x57f   : > { %v9834_v54 = vshll.u32 %v9467_v3, 16  ;;  %v9840_v1 = vshll.u32 %v16786_v58, 16  ;;  %v9844_v55 = vshrl.u32 %v16786_v58, 16  ;;  %v9780_v25 = vrot.slane %v9778_v35, 5 }
 0x580   : > { %v9809_v8 = vrot.slane %v9807_v61, 4  ;;  %v9747_v22 = vsel %vm13350_vm8, %v9742_v52, %v16903_v41  ;;  %v9757_v2 = vsel %vm13350_vm8, %v9752_v13, %v9756_v36  ;;  %v9789_v26 = vor.u32 %v9788_v40, %v9785_v6 }
 0x581   : > { %12449 = vmatmul.mubr.msk.bf16.gmra.mrb[12].mxu1 %vm6549_vm3, %v11472_v12  ;;  %v9796_v12 = vshrl.u32 %v16492_v23, 16  ;;  %v9810_v23 = vshll.u32 %v9464_v34, 16  ;;  %v9781_v53 = vsel %vm13350_vm8, %v9776_v46, %v9780_v25  ;;  %v9823_v14 = vor.u32 %v9822_v10, %v9818_v27  ;;  %v17552_v25 = vld [vmem:[#allocation53_spill] sm:$0xff] }
 0x582   : > { %12452 = vmatprep.mubr.msk.bf16.mxu1 %vm6549_vm3, %v11473_v30  ;;  %v9766_v30 = vrot.slane %v9765_v4, 4  ;;  %v9833_v58 = vrot.slane %v9831_v16, 4  ;;  %v9836_v44 = vrot.slane %v9834_v54, 5  ;;  %v9842_v11 = vrot.slane %v9840_v1, 5  ;;  %v17546_v16 = vld [vmem:[#allocation45_spill] sm:$0xff]  ;;  %v17549_v1 = vld [vmem:[#allocation50_spill] sm:$0xff] }
 0x583   : > { %v9798_v29 = vrot.slane %v9796_v12, 4  ;;  %v9812_v18 = vrot.slane %v9810_v23, 5  ;;  %v9846_v42 = vrot.slane %v9844_v55, 4  ;;  %v11476_v38 = vcombine.low %v9747_v22, %v9757_v2  ;;  %v13156_v12 = vld [vmem:[#allocation3 + $0xc8] sm:$0x1] }
 0x584   : > { %v9771_v41 = vsel %vm13350_vm8, %v9766_v30, %v16906_v31  ;;  %v9826_v34 = vshll.u32 %v13156_v12, 16  ;;  %v9824_v37 = vrot.slane %v9823_v14, 4  ;;  %v9790_v17 = vrot.slane %v9789_v26, 4  ;;  %v17551_v30 = vld [vmem:[#allocation49_spill] sm:$0xff]  ;;  %v17557_v2 = vld [vmem:[#allocation58_spill] sm:$0xff]  ;;  %v17560_v26 = vld [vmem:[#allocation63_spill] sm:$0xff] }
 0x585   : > { %v9799_v9 = vor.u32 %v9798_v29, %v9794_v62  ;;  %v9813_v45 = vor.u32 %v9812_v18, %v9809_v8  ;;  %v11477_v63 = vcombine.low %v9771_v41, %v9781_v53  ;;  %v9837_v52 = vor.u32 %v9836_v44, %v9833_v58  ;;  %v17555_v18 = vld [vmem:[#allocation57_spill] sm:$0xff]  ;;  %v17563_v14 = vld [vmem:[#allocation66_spill] sm:$0xff]  ;;  %v17564_v58 = vld [vmem:[#allocation68_spill] sm:$0xff] }
 0x586   : > { %v9847_v36 = vor.u32 %v9846_v42, %v9842_v11  ;;  %v9850_v59 = vshll.u32 %v16788_v51, 16  ;;  %v9795_v61 = vsel %vm13350_vm8, %v9790_v17, %v9794_v62  ;;  %v17545_v62 = vld [vmem:[#allocation44_spill] sm:$0xff]  ;;  %v17553_v8 = vcombine.low %v17551_v30, %v17552_v25  ;;  %v17569_v41 = vld [vmem:[#allocation73_spill] sm:$0xff]  ;;  %v17577_v17 = vld [vmem:[#allocation78_spill] sm:$0xff] }
 0x587   : > { %v9800_v60 = vrot.slane %v9799_v9, 4  ;;  %v9814_v35 = vrot.slane %v9813_v45, 4  ;;  %v9838_v23 = vrot.slane %v9837_v52, 4  ;;  %v17547_v54 = vcombine.low %v17545_v62, %v17546_v16  ;;  %v17558_v9 = vld [vmem:[#allocation61_spill] sm:$0xff]  ;;  %v17567_v42 = vld [vmem:[#allocation72_spill] sm:$0xff]  ;;  %v17570_v45 = vld [vmem:[#allocation74_spill] sm:$0xff] }
 0x588   : > { %v9848_v3 = vrot.slane %v9847_v36, 4  ;;  %v9852_v13 = vrot.slane %v9850_v59, 5  ;;  %v17556_v22 = vcombine.low %v17554_v20, %v17555_v18  ;;  %v17559_v53 = vcombine.low %v17557_v2, %v17558_v9 }
 0x589   : > { %12453 = vmatmul.mubr.msk.bf16.gmra.mrb[16].mxu1 %vm6549_vm3, %v11474_v7  ;;  %v9802_v7 = vshll.u32 %v13155_v47, 16  ;;  %v9819_v29 = vsel %vm13350_vm8, %v9814_v35, %v9818_v27  ;;  %v9843_v51 = vsel %vm13350_vm8, %v9838_v23, %v9842_v11  ;;  %v17548_v27 = vld [vmem:[#allocation48_spill] sm:$0xff]  ;;  %v17561_v47 = vld [vmem:[#allocation65_spill] sm:$0xff]  ;;  %v17565_v44 = vcombine.low %v17563_v14, %v17564_v58  ;;  %v17566_v11 = vld [vmem:[#allocation71_spill] sm:$0xff] }
 0x58a   : > { %12456 = vmatprep.mubr.msk.bf16.mxu1 %vm6549_vm3, %v11475_v49  ;;  %v9828_v49 = vrot.slane %v9826_v34, 5  ;;  %v9853_v40 = vsel %vm13350_vm8, %v9848_v3, %v9852_v13  ;;  %v17550_v55 = vcombine.low %v17548_v27, %v17549_v1  ;;  %v17571_v12 = vcombine.low %v17569_v41, %v17570_v45  ;;  %v17572_v34 = vld [vmem:[#allocation75_spill] sm:$0xff] }
 0x58b   : > { %v9804_v43 = vrot.slane %v9802_v7, 5  ;;  %v11480_v10 = vcombine.low %v9843_v51, %v9853_v40  ;;  %v17562_v7 = vcombine.low %v17560_v26, %v17561_v47  ;;  %v17578_v52 = vcombine.low %v16520_v28, %v17577_v17 }
 0x58c   : > { %v9829_v4 = vsel %vm13350_vm8, %v9824_v37, %v9828_v49 }
 0x58d   : > { %v9805_v31 = vsel %vm13350_vm8, %v9800_v60, %v9804_v43  ;;  %v11479_v46 = vcombine.low %v9819_v29, %v9829_v4  ;;  %v17574_v60 = vld [vmem:[#allocation76_spill] sm:$0xff]  ;;  %v17575_v43 = vld [vmem:[#allocation77_spill] sm:$0xff] }
 0x58e   : > { %v11478_v6 = vcombine.low %v9795_v61, %v9805_v31  ;;  %v17576_v37 = vcombine.low %v17574_v60, %v17575_v43 }
 0x591   : > { %12457 = vmatmul.mubr.msk.bf16.gmra.mrb[20].mxu1 %vm6549_vm3, %v11476_v38  ;;  %v17568_v38 = vcombine.low %v17566_v11, %v17567_v42 }
 0x592   : > { %12460 = vmatprep.mubr.msk.bf16.mxu1 %vm6549_vm3, %v11477_v63  ;;  %v17573_v63 = vcombine.low %v16488_v39, %v17572_v34  ;;  %v17023_v39 = vld [vmem:[%s17172_s5] ss:$0 sm:$0xff] }
 0x599   : > { %12461 = vmatmul.mubr.msk.bf16.gmra.mrb[24].mxu1 %vm6549_vm3, %v11478_v6 }
 0x59a   : > { %12464 = vmatprep.mubr.msk.bf16.mxu1 %vm6549_vm3, %v11479_v46 }
 0x5a1   : > { %12465 = vmatmul.mubr.msk.bf16.gmra.mrb[28].mxu1 %vm6549_vm3, %v11480_v10 }
 0x5a2   : > { %12470 = vmatprep.mubr.msk.bf16.mxu1 %vm6549_vm3, %v17547_v54 }
 0x5a9   : > { %12471 = vmatmul.mubr.msk.bf16.vlgmr.msra.gmra.mrb[0].mxu1 %vm6549_vm3, %v17550_v55 }
 0x5aa   : > { %12474 = vmatprep.mubr.msk.bf16.mxu1 %vm6549_vm3, %v17553_v8 }
 0x5b1   : > { %12475 = vmatmul.mubr.msk.bf16.gmra.mrb[4].mxu1 %vm6549_vm3, %v17556_v22 }
 0x5b2   : > { %12478 = vmatprep.mubr.msk.bf16.mxu1 %vm6549_vm3, %v17559_v53 }
 0x5b9   : > { %12479 = vmatmul.mubr.msk.bf16.gmra.mrb[8].mxu1 %vm6549_vm3, %v17562_v7 }
 0x5ba   : > { %12482 = vmatprep.mubr.msk.bf16.mxu1 %vm6549_vm3, %v17565_v44 }
 0x5c1   : > { %12483 = vmatmul.mubr.msk.bf16.gmra.mrb[12].mxu1 %vm6549_vm3, %v17568_v38 }
 0x5c2   : > { %12486 = vmatprep.mubr.msk.bf16.mxu1 %vm6549_vm3, %v17571_v12 }
 0x5c9   : > { %12487 = vmatmul.mubr.msk.bf16.gmra.mrb[16].mxu1 %vm6549_vm3, %v17573_v63 }
 0x5ca   : > { %12490 = vmatprep.mubr.msk.bf16.mxu1 %vm6549_vm3, %v17576_v37 }
 0x5d1   : > { %12491 = vmatmul.mubr.msk.bf16.gmra.mrb[20].mxu1 %vm6549_vm3, %v17578_v52 }
 0x5d2   : > { %12494 = vmatprep.mubr.msk.bf16.mxu1 %vm6549_vm3, %v11526_v19 }
 0x5d9   : > { %12495 = vmatmul.mubr.msk.bf16.gmra.mrb[24].mxu1 %vm6549_vm3, %v11527_v32 }
 0x5da   : > { %12498 = vmatprep.mubr.msk.bf16.mxu1 %vm6549_vm3, %v11528_v57 }
 0x5e1   : > { %12499 = vmatmul.mubr.msk.bf16.gmra.mrb[28].mxu1 %vm6549_vm3, %v11529_v33 }
 0x67c   : > { %v12472_v28 = vpop.f32.mrb[0].mxu1 }
 0x67d   : > { %v10627_v15 = vmul.f32 %v12472_v28, %v17023_v39  ;;  %v10459_v19 = vpop.f32.mrb[1].mxu1 }
 0x67e   : > { %v10625_v50 = vmul.f32 %v17023_v39, %v10459_v19  ;;  %v12473_v0 = vpop.f32.mrb[2].mxu1 }
 0x67f   : > { %v10666_v32 = vadd.f32 %v17028_v48, %v10627_v15  ;;  %v10628_v5 = vmul.f32 %v12473_v0, %v17023_v39  ;;  %v10462_v21 = vpop.f32.mrb[3].mxu1 }
 0x680   : > { %v10664_v57 = vadd.f32 %v17028_v48, %v10625_v50  ;;  %v10626_v24 = vmul.f32 %v17023_v39, %v10462_v21 }
 0x681   : > { %v10698_v56 = vmax.f32 %v10666_v32, 0.0  ;;  %v10667_v33 = vadd.f32 %v17028_v48, %v10628_v5 }
 0x682   : > { %v10696_v36 = vmax.f32 %v10664_v57, 0.0  ;;  %v10665_v59 = vadd.f32 %v17028_v48, %v10626_v24 }
 0x683   : > { %10730 = vst.msk [vmem:[%s17038_s16 + $0x10] sm:$0xff] %vm1351_vm9, %v10698_v56  ;;  %v10699_v35 = vmax.f32 %v10667_v33, 0.0 }
 0x684   : > { %10728 = vst.msk [vmem:[%s17038_s16] sm:$0xff] %vm1351_vm9, %v10696_v36  ;;  %v10697_v49 = vmax.f32 %v10665_v59, 0.0  ;;  %v12476_v31 = vpop.f32.mrb[4].mxu1 }
 0x685   : > { %10731 = vst.msk [vmem:[%s17038_s16 + $0x18] sm:$0xff] %vm1351_vm9, %v10699_v35  ;;  %v10631_v4 = vmul.f32 %v12476_v31, %v17023_v39  ;;  %v10475_v61 = vpop.f32.mrb[5].mxu1 }
 0x686   : > { %10729 = vst.msk [vmem:[%s17038_s16 + $0x8] sm:$0xff] %vm1351_vm9, %v10697_v49  ;;  %v10629_v23 = vmul.f32 %v17023_v39, %v10475_v61  ;;  %v12477_v3 = vpop.f32.mrb[6].mxu1 }
 0x687   : > { %v10670_v13 = vadd.f32 %v17028_v48, %v10631_v4  ;;  %v10632_v6 = vmul.f32 %v12477_v3, %v17023_v39  ;;  %v10478_v29 = vpop.f32.mrb[7].mxu1 }
 0x688   : > { %v10668_v46 = vadd.f32 %v17028_v48, %v10629_v23  ;;  %v10630_v51 = vmul.f32 %v17023_v39, %v10478_v29 }
 0x689   : > { %v10702_v40 = vmax.f32 %v10670_v13, 0.0  ;;  %v10671_v10 = vadd.f32 %v17028_v48, %v10632_v6 }
 0x68a   : > { %v10700_v62 = vmax.f32 %v10668_v46, 0.0  ;;  %v10669_v16 = vadd.f32 %v17028_v48, %v10630_v51 }
 0x68b   : > { %10734 = vst.msk [vmem:[%s17038_s16 + $0x30] sm:$0xff] %vm1351_vm9, %v10702_v40  ;;  %v10703_v54 = vmax.f32 %v10671_v10, 0.0 }
 0x68c   : > { %10732 = vst.msk [vmem:[%s17038_s16 + $0x20] sm:$0xff] %vm1351_vm9, %v10700_v62  ;;  %v10701_v27 = vmax.f32 %v10669_v16, 0.0  ;;  %v12480_v1 = vpop.f32.mrb[8].mxu1 }
 0x68d   : > { %10735 = vst.msk [vmem:[%s17038_s16 + $0x38] sm:$0xff] %vm1351_vm9, %v10703_v54  ;;  %v10635_v55 = vmul.f32 %v12480_v1, %v17023_v39  ;;  %v10491_v30 = vpop.f32.mrb[9].mxu1 }
 0x68e   : > { %10733 = vst.msk [vmem:[%s17038_s16 + $0x28] sm:$0xff] %vm1351_vm9, %v10701_v27  ;;  %v10633_v25 = vmul.f32 %v17023_v39, %v10491_v30  ;;  %v12481_v8 = vpop.f32.mrb[10].mxu1 }
 0x68f   : > { %v10674_v20 = vadd.f32 %v17028_v48, %v10635_v55  ;;  %v10636_v18 = vmul.f32 %v12481_v8, %v17023_v39  ;;  %v10494_v22 = vpop.f32.mrb[11].mxu1 }
 0x690   : > { %v10672_v2 = vadd.f32 %v17028_v48, %v10633_v25  ;;  %v10634_v9 = vmul.f32 %v17023_v39, %v10494_v22 }
 0x691   : > { %v10706_v53 = vmax.f32 %v10674_v20, 0.0  ;;  %v10675_v26 = vadd.f32 %v17028_v48, %v10636_v18 }
 0x692   : > { %v10704_v47 = vmax.f32 %v10672_v2, 0.0  ;;  %v10673_v7 = vadd.f32 %v17028_v48, %v10634_v9 }
 0x693   : > { %10738 = vst.msk [vmem:[%s17038_s16 + $0x50] sm:$0xff] %vm1351_vm9, %v10706_v53  ;;  %v10707_v14 = vmax.f32 %v10675_v26, 0.0 }
 0x694   : > { %10736 = vst.msk [vmem:[%s17038_s16 + $0x40] sm:$0xff] %vm1351_vm9, %v10704_v47  ;;  %v10705_v58 = vmax.f32 %v10673_v7, 0.0  ;;  %v12484_v44 = vpop.f32.mrb[12].mxu1 }
 0x695   : > { %10739 = vst.msk [vmem:[%s17038_s16 + $0x58] sm:$0xff] %vm1351_vm9, %v10707_v14  ;;  %v10639_v11 = vmul.f32 %v12484_v44, %v17023_v39  ;;  %v10507_v42 = vpop.f32.mrb[13].mxu1 }
 0x696   : > { %10737 = vst.msk [vmem:[%s17038_s16 + $0x48] sm:$0xff] %vm1351_vm9, %v10705_v58  ;;  %v10637_v38 = vmul.f32 %v17023_v39, %v10507_v42  ;;  %v12485_v41 = vpop.f32.mrb[14].mxu1 }
 0x697   : > { %v10678_v45 = vadd.f32 %v17028_v48, %v10639_v11  ;;  %v10640_v12 = vmul.f32 %v12485_v41, %v17023_v39  ;;  %v10510_v34 = vpop.f32.mrb[15].mxu1 }
 0x698   : > { %v10676_v63 = vadd.f32 %v17028_v48, %v10637_v38  ;;  %v10638_v60 = vmul.f32 %v17023_v39, %v10510_v34 }
 0x699   : > { %v10710_v43 = vmax.f32 %v10678_v45, 0.0  ;;  %v10679_v37 = vadd.f32 %v17028_v48, %v10640_v12 }
 0x69a   : > { %v10708_v17 = vmax.f32 %v10676_v63, 0.0  ;;  %v10677_v52 = vadd.f32 %v17028_v48, %v10638_v60 }
 0x69b   : > { %10742 = vst.msk [vmem:[%s17038_s16 + $0x70] sm:$0xff] %vm1351_vm9, %v10710_v43  ;;  %v10711_v28 = vmax.f32 %v10679_v37, 0.0 }
 0x69c   : > { %10740 = vst.msk [vmem:[%s17038_s16 + $0x60] sm:$0xff] %vm1351_vm9, %v10708_v17  ;;  %v10709_v15 = vmax.f32 %v10677_v52, 0.0  ;;  %v12488_v19 = vpop.f32.mrb[16].mxu1 }
 0x69d   : > { %10743 = vst.msk [vmem:[%s17038_s16 + $0x78] sm:$0xff] %vm1351_vm9, %v10711_v28  ;;  %v10643_v50 = vmul.f32 %v12488_v19, %v17023_v39  ;;  %v10523_v0 = vpop.f32.mrb[17].mxu1 }
 0x69e   : > { %10741 = vst.msk [vmem:[%s17038_s16 + $0x68] sm:$0xff] %vm1351_vm9, %v10709_v15  ;;  %v10641_v32 = vmul.f32 %v17023_v39, %v10523_v0  ;;  %v12489_v5 = vpop.f32.mrb[18].mxu1 }
 0x69f   : > { %v10682_v21 = vadd.f32 %v17028_v48, %v10643_v50  ;;  %v10644_v57 = vmul.f32 %v12489_v5, %v17023_v39  ;;  %v10526_v24 = vpop.f32.mrb[19].mxu1 }
 0x6a0   : > { %v10680_v56 = vadd.f32 %v17028_v48, %v10641_v32  ;;  %v10642_v33 = vmul.f32 %v17023_v39, %v10526_v24 }
 0x6a1   : > { %v10714_v36 = vmax.f32 %v10682_v21, 0.0  ;;  %v10683_v59 = vadd.f32 %v17028_v48, %v10644_v57 }
 0x6a2   : > { %v10712_v35 = vmax.f32 %v10680_v56, 0.0  ;;  %v10681_v49 = vadd.f32 %v17028_v48, %v10642_v33 }
 0x6a3   : > { %10746 = vst.msk [vmem:[%s17038_s16 + $0x90] sm:$0xff] %vm1351_vm9, %v10714_v36  ;;  %v10715_v31 = vmax.f32 %v10683_v59, 0.0 }
 0x6a4   : > { %10744 = vst.msk [vmem:[%s17038_s16 + $0x80] sm:$0xff] %vm1351_vm9, %v10712_v35  ;;  %v10713_v4 = vmax.f32 %v10681_v49, 0.0  ;;  %v12492_v61 = vpop.f32.mrb[20].mxu1 }
 0x6a5   : > { %10747 = vst.msk [vmem:[%s17038_s16 + $0x98] sm:$0xff] %vm1351_vm9, %v10715_v31  ;;  %v10647_v23 = vmul.f32 %v12492_v61, %v17023_v39  ;;  %v10539_v3 = vpop.f32.mrb[21].mxu1 }
 0x6a6   : > { %10745 = vst.msk [vmem:[%s17038_s16 + $0x88] sm:$0xff] %vm1351_vm9, %v10713_v4  ;;  %v10645_v13 = vmul.f32 %v17023_v39, %v10539_v3  ;;  %v12493_v6 = vpop.f32.mrb[22].mxu1 }
 0x6a7   : > { %v10686_v29 = vadd.f32 %v17028_v48, %v10647_v23  ;;  %v10648_v46 = vmul.f32 %v12493_v6, %v17023_v39  ;;  %v10542_v51 = vpop.f32.mrb[23].mxu1 }
 0x6a8   : > { %v10684_v40 = vadd.f32 %v17028_v48, %v10645_v13  ;;  %v10646_v10 = vmul.f32 %v17023_v39, %v10542_v51 }
 0x6a9   : > { %v10718_v62 = vmax.f32 %v10686_v29, 0.0  ;;  %v10687_v16 = vadd.f32 %v17028_v48, %v10648_v46 }
 0x6aa   : > { %v10716_v54 = vmax.f32 %v10684_v40, 0.0  ;;  %v10685_v27 = vadd.f32 %v17028_v48, %v10646_v10 }
 0x6ab   : > { %10750 = vst.msk [vmem:[%s17038_s16 + $0xb0] sm:$0xff] %vm1351_vm9, %v10718_v62  ;;  %v10719_v1 = vmax.f32 %v10687_v16, 0.0 }
 0x6ac   : > { %10748 = vst.msk [vmem:[%s17038_s16 + $0xa0] sm:$0xff] %vm1351_vm9, %v10716_v54  ;;  %v10717_v55 = vmax.f32 %v10685_v27, 0.0  ;;  %v12496_v30 = vpop.f32.mrb[24].mxu1 }
 0x6ad   : > { %10751 = vst.msk [vmem:[%s17038_s16 + $0xb8] sm:$0xff] %vm1351_vm9, %v10719_v1  ;;  %v10651_v25 = vmul.f32 %v12496_v30, %v17023_v39  ;;  %v10555_v8 = vpop.f32.mrb[25].mxu1 }
 0x6ae   : > { %10749 = vst.msk [vmem:[%s17038_s16 + $0xa8] sm:$0xff] %vm1351_vm9, %v10717_v55  ;;  %v10649_v20 = vmul.f32 %v17023_v39, %v10555_v8  ;;  %v12497_v18 = vpop.f32.mrb[26].mxu1 }
 0x6af   : > { %v10690_v22 = vadd.f32 %v17028_v48, %v10651_v25  ;;  %v10652_v2 = vmul.f32 %v12497_v18, %v17023_v39  ;;  %v10558_v9 = vpop.f32.mrb[27].mxu1 }
 0x6b0   : > { %v10688_v53 = vadd.f32 %v17028_v48, %v10649_v20  ;;  %v10650_v26 = vmul.f32 %v17023_v39, %v10558_v9 }
 0x6b1   : > { %v10722_v47 = vmax.f32 %v10690_v22, 0.0  ;;  %v10691_v7 = vadd.f32 %v17028_v48, %v10652_v2 }
 0x6b2   : > { %v10720_v14 = vmax.f32 %v10688_v53, 0.0  ;;  %v10689_v58 = vadd.f32 %v17028_v48, %v10650_v26 }
 0x6b3   : > { %10754 = vst.msk [vmem:[%s17038_s16 + $0xd0] sm:$0xff] %vm1351_vm9, %v10722_v47  ;;  %v10723_v44 = vmax.f32 %v10691_v7, 0.0 }
 0x6b4   : > { %10752 = vst.msk [vmem:[%s17038_s16 + $0xc0] sm:$0xff] %vm1351_vm9, %v10720_v14  ;;  %v10721_v11 = vmax.f32 %v10689_v58, 0.0  ;;  %v12500_v42 = vpop.f32.mrb[28].mxu1 }
 0x6b5   : > { %10755 = vst.msk [vmem:[%s17038_s16 + $0xd8] sm:$0xff] %vm1351_vm9, %v10723_v44  ;;  %v10655_v38 = vmul.f32 %v12500_v42, %v17023_v39  ;;  %v10571_v41 = vpop.f32.mrb[29].mxu1 }
 0x6b6   : > { %10753 = vst.msk [vmem:[%s17038_s16 + $0xc8] sm:$0xff] %vm1351_vm9, %v10721_v11  ;;  %v10653_v45 = vmul.f32 %v17023_v39, %v10571_v41  ;;  %v12501_v12 = vpop.f32.mrb[30].mxu1 }
 0x6b7   : > { %v10694_v34 = vadd.f32 %v17028_v48, %v10655_v38  ;;  %v10656_v63 = vmul.f32 %v12501_v12, %v17023_v39  ;;  %v10574_v60 = vpop.f32.mrb[31].mxu1 }
 0x6b8   : > { %v10692_v43 = vadd.f32 %v17028_v48, %v10653_v45  ;;  %v10654_v37 = vmul.f32 %v17023_v39, %v10574_v60 }
 0x6b9   : > { %v10726_v17 = vmax.f32 %v10694_v34, 0.0  ;;  %v10695_v52 = vadd.f32 %v17028_v48, %v10656_v63 }
 0x6ba   : > { %v10724_v28 = vmax.f32 %v10692_v43, 0.0  ;;  %v10693_v15 = vadd.f32 %v17028_v48, %v10654_v37 }
 0x6bb   : > { %10758 = vst.msk [vmem:[%s17038_s16 + $0xf0] sm:$0xff] %vm1351_vm9, %v10726_v17  ;;  %v10727_v19 = vmax.f32 %v10695_v52, 0.0 }
 0x6bc   : > { %10756 = vst.msk [vmem:[%s17038_s16 + $0xe0] sm:$0xff] %vm1351_vm9, %v10724_v28  ;;  %v10725_v50 = vmax.f32 %v10693_v15, 0.0 }
 0x6bd   : > { %10759 = vst.msk [vmem:[%s17038_s16 + $0xf8] sm:$0xff] %vm1351_vm9, %v10727_v19 }
 0x6be   : > { %10757 = vst.msk [vmem:[%s17038_s16 + $0xe8] sm:$0xff] %vm1351_vm9, %v10725_v50 }
 0x6bf PF: > { %s17_s24 = sadd.s32 1, %s13163_s24  }
 0x6c0   : > { %p14_p4 = scmp.ge.s32.totalorder %s17_s24, 4  }
 0x6c2   :  { %16 = sbr.rel (!%p14_p4) target bundleno = 1 (0x1), region = 98 }

</bundles_post_ra>
